<compile_context>
chip_gen: v7x
topology: tpu7x:2x2x1
jax: 0.10.0
libtpu: 0.0.40
codegen_flags: <defaults>
</compile_context>

<pallas_src>
import numpy as np
import jax
import jax.numpy as jnp
from jax.experimental import pallas as pl
from jax.experimental.pallas import tpu as pltpu

EPS = 1e-5                      # PyTorch BatchNorm2d default eps
H = W = 28                      # Linear(1568 = 2*28*28) implies 1x28x28 inputs
HP, WP = H + 2, W + 2           # zero-padded spatial (30 x 30)
Q = HP * WP                     # padded-flat spatial length (900)
MARGIN = WP + 1                 # 31 = max |tap offset| in padded-flat coords
QE = Q + 2 * MARGIN             # 962 = margin-extended flat length
# 3x3 conv tap offsets in padded-flat coordinates (dy outer, dx inner)
OFFSETS = tuple((dy - 1) * WP + (dx - 1) for dy in range(3) for dx in range(3))


# --------------------------- fused Pallas kernel ---------------------------

def _conv_taps(in_ref, bi, w9_ref):
    """3x3 'same' conv for batch `bi` as 9 shifted matmuls.

    in_ref : (B, Cin, QE) margin-extended, zero-ringed padded-flat activations.
    w9_ref : (9, Cout, Cin) per-tap weight matrices.
    Returns (Cout, Q) f32 pre-activation (garbage on the pad ring — the caller
    either masks it or it hits all-zero rows of the remapped linear weight).
    """
    cout, cin = w9_ref.shape[1], w9_ref.shape[2]
    acc = jnp.zeros((cout, Q), jnp.float32)
    for k, off in enumerate(OFFSETS):
        xs = in_ref[bi, :, MARGIN + off:MARGIN + off + Q]          # (Cin, Q)
        wk = w9_ref[k]                                             # (Cout, Cin)
        if cin == 1:
            # K = 1: outer product on the VPU, skip a degenerate MXU matmul.
            acc = acc + wk * xs
        else:
            acc = acc + jnp.dot(wk, xs.astype(jnp.bfloat16),
                                preferred_element_type=jnp.float32)
    return acc


def siamese_kernel(x_ref, mask_ref,
                   w1_ref, e1_ref, w2_ref, e2_ref, w3_ref, e3_ref,
                   w4_ref, e4_ref, wl_ref, bl_ref,
                   o_ref,
                   a1_ref, a2_ref, a3_ref):
    B = x_ref.shape[0]
    mask = mask_ref[...]                       # (1, Q): 1 on the 28x28 interior

    # Zero the margin-extended scratch once: the zero ring doubles as the next
    # conv's zero padding; interiors are overwritten below.
    a1_ref[...] = jnp.zeros_like(a1_ref)
    a2_ref[...] = jnp.zeros_like(a2_ref)
    a3_ref[...] = jnp.zeros_like(a3_ref)

    def conv_relu_bn(in_ref, out_ref, w9_ref, epi_ref):
        # Conv(+bias) -> ReLU -> BatchNorm(eval) folded to scale/shift.
        bias = epi_ref[:, 0:1]
        scale = epi_ref[:, 1:2]
        shift = epi_ref[:, 2:3]
        for bi in range(B):
            acc = _conv_taps(in_ref, bi, w9_ref)                   # (Cout, Q)
            y = (jnp.maximum(acc + bias, 0.0) * scale + shift) * mask
            out_ref[bi, :, MARGIN:MARGIN + Q] = y

    conv_relu_bn(x_ref, a1_ref, w1_ref, e1_ref)      # 1  -> 4
    conv_relu_bn(a1_ref, a2_ref, w2_ref, e2_ref)     # 4  -> 8
    conv_relu_bn(a2_ref, a3_ref, w3_ref, e3_ref)     # 8  -> 16

    # Layer 4: Conv -> BN -> ReLU, with BN folded into the conv weights/bias.
    bias4 = e4_ref[...]                              # (2, 1)
    acts4 = [jnp.maximum(_conv_taps(a3_ref, bi, w4_ref) + bias4, 0.0)
             for bi in range(B)]                     # each (2, Q)

    # Flatten(NCHW) + Dropout(eval = identity) + Linear(1568 -> 128).
    # The linear weight was remapped onto the padded-flat layout with zero rows
    # on the pad ring, so layer-4 pad-ring garbage contributes exactly nothing.
    # TODO(synk): training-mode Dropout(0.2) RNG not implemented (eval mode).
    y = bl_ref[...]                                  # (1, 128) -> broadcasts
    for c in range(w4_ref.shape[1]):
        xc = jnp.concatenate([a[c:c + 1, :] for a in acts4], axis=0)   # (B, Q)
        y = y + jnp.dot(xc.astype(jnp.bfloat16), wl_ref[c],
                        preferred_element_type=jnp.float32)
    o_ref[...] = y


# ------------------------------- host wrapper -------------------------------

def siamese_forward(x, params):
    """x: (B, 1, 28, 28) NCHW float32 -> (B, 128) embeddings (eval mode)."""
    B = x.shape[0]
    # Cheap host-side layout prep (one pad + reshape, no im2col expansion):
    # zero-pad to 30x30, flatten to padded-flat, add the 31-lane zero margins.
    xp = jnp.pad(x, ((0, 0), (0, 0), (1, 1), (1, 1)))              # (B,1,30,30)
    xf = jnp.pad(xp.reshape(B, 1, Q), ((0, 0), (0, 0), (MARGIN, MARGIN)))

    scratch = [pltpu.VMEM((B, c, QE), jnp.float32) for c in (4, 8, 16)]
    return pl.pallas_call(
        siamese_kernel,
        out_shape=jax.ShapeDtypeStruct((B, 128), jnp.float32),
        scratch_shapes=scratch,
    )(xf, params["mask"],
      params["w1"], params["e1"], params["w2"], params["e2"],
      params["w3"], params["e3"], params["w4"], params["e4"],
      params["wl"], params["bl"])


# ---------------- deterministic synthetic params, pre-transformed -----------

def init_params(key):
    chans = [(1, 4), (4, 8), (8, 16), (16, 2)]
    keys = jax.random.split(key, 6 * len(chans) + 2)
    ki = 0
    params = {}
    for l, (cin, cout) in enumerate(chans):
        w = 0.1 * jax.random.normal(keys[ki], (cout, cin, 3, 3), jnp.float32); ki += 1
        b = 0.05 * jax.random.normal(keys[ki], (cout,), jnp.float32); ki += 1
        gamma = 1.0 + 0.1 * jax.random.normal(keys[ki], (cout,), jnp.float32); ki += 1
        beta = 0.05 * jax.random.normal(keys[ki], (cout,), jnp.float32); ki += 1
        mean = 0.05 * jax.random.normal(keys[ki], (cout,), jnp.float32); ki += 1
        var = jax.random.uniform(keys[ki], (cout,), jnp.float32,
                                 minval=0.5, maxval=1.5); ki += 1

        scale = gamma * jax.lax.rsqrt(var + EPS)     # BN(eval) -> scale/shift
        shift = beta - mean * scale
        if l < 3:                                    # Conv -> ReLU -> BN
            w9 = jnp.transpose(w, (2, 3, 0, 1)).reshape(9, cout, cin)
            epi = jnp.stack([b, scale, shift], axis=1)             # (cout, 3)
        else:                                        # Conv -> BN -> ReLU: fold BN into W, b
            w9 = jnp.transpose(w * scale[:, None, None, None],
                               (2, 3, 0, 1)).reshape(9, cout, cin)
            epi = (scale * b + shift).reshape(cout, 1)             # (cout, 1)
        w9 = w9.astype(jnp.float32 if cin == 1 else jnp.bfloat16)  # layer 1 -> VPU
        params[f"w{l + 1}"] = w9
        params[f"e{l + 1}"] = epi

    lw = 0.02 * jax.random.normal(keys[ki], (128, 1568), jnp.float32); ki += 1
    lb = 0.05 * jax.random.normal(keys[ki], (128,), jnp.float32)
    # Remap the Linear weight onto the padded-flat layout: feature (c, h, w)
    # -> row (h+1)*30 + (w+1) of wl[c]; pad-ring rows stay zero.
    wl = jnp.pad(lw.T.reshape(2, H, W, 128), ((0, 0), (1, 1), (1, 1), (0, 0)))
    params["wl"] = wl.reshape(2, Q, 128).astype(jnp.bfloat16)
    params["bl"] = lb.reshape(1, 128)

    m = np.zeros((HP, WP), np.float32)               # interior (non-pad) mask
    m[1:1 + H, 1:1 + W] = 1.0
    params["mask"] = jnp.asarray(m.reshape(1, Q))
    return params


if __name__ == "__main__":
    key = jax.random.PRNGKey(0)
    k_in, k_par = jax.random.split(key)
    # Linear in_features = 1568 = 2*28*28 implies 1x28x28 inputs (MNIST-like).
    x = jax.random.normal(k_in, (2, 1, 28, 28), jnp.float32)
    params = init_params(k_par)

    fwd = jax.jit(lambda xx: siamese_forward(xx, params))
    out = fwd(x)
    jax.block_until_ready(out)
    assert out.shape == (2, 128) and out.dtype == jnp.float32
    print("KERNEL_OK")
</pallas_src>

<mosaic_0001>
module attributes {stable_mosaic.version = 11 : i64} {
  func.func @siamese_kernel(%arg0: memref<2x1x962xf32, #tpu.memory_space<vmem>>, %arg1: memref<1x900xf32, #tpu.memory_space<vmem>>, %arg2: memref<9x4x1xf32, #tpu.memory_space<vmem>>, %arg3: memref<4x3xf32, #tpu.memory_space<vmem>>, %arg4: memref<9x8x4xbf16, #tpu.memory_space<vmem>>, %arg5: memref<8x3xf32, #tpu.memory_space<vmem>>, %arg6: memref<9x16x8xbf16, #tpu.memory_space<vmem>>, %arg7: memref<16x3xf32, #tpu.memory_space<vmem>>, %arg8: memref<9x2x16xbf16, #tpu.memory_space<vmem>>, %arg9: memref<2x1xf32, #tpu.memory_space<vmem>>, %arg10: memref<2x900x128xbf16, #tpu.memory_space<vmem>>, %arg11: memref<1x128xf32, #tpu.memory_space<vmem>>, %arg12: memref<2x128xf32, #tpu.memory_space<vmem>>, %arg13: memref<2x4x962xf32, #tpu.memory_space<vmem>>, %arg14: memref<2x8x962xf32, #tpu.memory_space<vmem>>, %arg15: memref<2x16x962xf32, #tpu.memory_space<vmem>>) attributes {dimension_semantics = [], scalar_prefetch = 0 : i64, scratch_operands = 3 : i64, tpu.core_type = #tpu.core_type<tc>} {
    %c0 = arith.constant 0 : index
    %c0_0 = arith.constant 0 : index
    %0 = vector.load %arg1[%c0, %c0_0] : memref<1x900xf32, #tpu.memory_space<vmem>>, vector<1x900xf32>
    %cst = arith.constant 0.000000e+00 : f32
    %1 = vector.broadcast %cst : f32 to vector<2x4x962xf32>
    %c0_1 = arith.constant 0 : index
    %c0_2 = arith.constant 0 : index
    %c0_3 = arith.constant 0 : index
    %2 = vector.load %arg13[%c0_1, %c0_2, %c0_3] : memref<2x4x962xf32, #tpu.memory_space<vmem>>, vector<2x4x962xf32>
    tpu.vector_store %arg13[%c0_1, %c0_2, %c0_3], %1 {strides = array<i32>} : memref<2x4x962xf32, #tpu.memory_space<vmem>>, vector<2x4x962xf32>,
    %cst_4 = arith.constant 0.000000e+00 : f32
    %3 = vector.broadcast %cst_4 : f32 to vector<2x8x962xf32>
    %c0_5 = arith.constant 0 : index
    %c0_6 = arith.constant 0 : index
    %c0_7 = arith.constant 0 : index
    %4 = vector.load %arg14[%c0_5, %c0_6, %c0_7] : memref<2x8x962xf32, #tpu.memory_space<vmem>>, vector<2x8x962xf32>
    tpu.vector_store %arg14[%c0_5, %c0_6, %c0_7], %3 {strides = array<i32>} : memref<2x8x962xf32, #tpu.memory_space<vmem>>, vector<2x8x962xf32>,
    %cst_8 = arith.constant 0.000000e+00 : f32
    %5 = vector.broadcast %cst_8 : f32 to vector<2x16x962xf32>
    %c0_9 = arith.constant 0 : index
    %c0_10 = arith.constant 0 : index
    %c0_11 = arith.constant 0 : index
    %6 = vector.load %arg15[%c0_9, %c0_10, %c0_11] : memref<2x16x962xf32, #tpu.memory_space<vmem>>, vector<2x16x962xf32>
    tpu.vector_store %arg15[%c0_9, %c0_10, %c0_11], %5 {strides = array<i32>} : memref<2x16x962xf32, #tpu.memory_space<vmem>>, vector<2x16x962xf32>,
    %c0_12 = arith.constant 0 : index
    %c0_13 = arith.constant 0 : index
    %7 = vector.load %arg3[%c0_12, %c0_13] : memref<4x3xf32, #tpu.memory_space<vmem>>, vector<4x1xf32>
    %c0_14 = arith.constant 0 : index
    %c1 = arith.constant 1 : index
    %8 = vector.load %arg3[%c0_14, %c1] : memref<4x3xf32, #tpu.memory_space<vmem>>, vector<4x1xf32>
    %c0_15 = arith.constant 0 : index
    %c2 = arith.constant 2 : index
    %9 = vector.load %arg3[%c0_15, %c2] : memref<4x3xf32, #tpu.memory_space<vmem>>, vector<4x1xf32>
    %cst_16 = arith.constant 0.000000e+00 : f32
    %10 = vector.broadcast %cst_16 : f32 to vector<4x900xf32>
    %c0_17 = arith.constant 0 : index
    %c0_18 = arith.constant 0 : index
    %c0_19 = arith.constant 0 : index
    %11 = vector.load %arg0[%c0_17, %c0_18, %c0_19] : memref<2x1x962xf32, #tpu.memory_space<vmem>>, vector<1x1x900xf32>
    %12 = vector.shape_cast %11 : vector<1x1x900xf32> to vector<1x900xf32>
    %c0_20 = arith.constant 0 : index
    %c0_21 = arith.constant 0 : index
    %c0_22 = arith.constant 0 : index
    %13 = vector.load %arg2[%c0_20, %c0_21, %c0_22] : memref<9x4x1xf32, #tpu.memory_space<vmem>>, vector<1x4x1xf32>
    %14 = vector.shape_cast %13 : vector<1x4x1xf32> to vector<4x1xf32>
    %15 = vector.broadcast %14 : vector<4x1xf32> to vector<4x900xf32>
    %16 = vector.broadcast %12 : vector<1x900xf32> to vector<4x900xf32>
    %17 = arith.mulf %15, %16 : vector<4x900xf32>
    %18 = arith.addf %10, %17 : vector<4x900xf32>
    %c0_23 = arith.constant 0 : index
    %c0_24 = arith.constant 0 : index
    %c1_25 = arith.constant 1 : index
    %19 = vector.load %arg0[%c0_23, %c0_24, %c1_25] : memref<2x1x962xf32, #tpu.memory_space<vmem>>, vector<1x1x900xf32>
    %20 = vector.shape_cast %19 : vector<1x1x900xf32> to vector<1x900xf32>
    %c1_26 = arith.constant 1 : index
    %c0_27 = arith.constant 0 : index
    %c0_28 = arith.constant 0 : index
    %21 = vector.load %arg2[%c1_26, %c0_27, %c0_28] : memref<9x4x1xf32, #tpu.memory_space<vmem>>, vector<1x4x1xf32>
    %22 = vector.shape_cast %21 : vector<1x4x1xf32> to vector<4x1xf32>
    %23 = vector.broadcast %22 : vector<4x1xf32> to vector<4x900xf32>
    %24 = vector.broadcast %20 : vector<1x900xf32> to vector<4x900xf32>
    %25 = arith.mulf %23, %24 : vector<4x900xf32>
    %26 = arith.addf %18, %25 : vector<4x900xf32>
    %c0_29 = arith.constant 0 : index
    %c0_30 = arith.constant 0 : index
    %c2_31 = arith.constant 2 : index
    %27 = vector.load %arg0[%c0_29, %c0_30, %c2_31] : memref<2x1x962xf32, #tpu.memory_space<vmem>>, vector<1x1x900xf32>
    %28 = vector.shape_cast %27 : vector<1x1x900xf32> to vector<1x900xf32>
    %c2_32 = arith.constant 2 : index
    %c0_33 = arith.constant 0 : index
    %c0_34 = arith.constant 0 : index
    %29 = vector.load %arg2[%c2_32, %c0_33, %c0_34] : memref<9x4x1xf32, #tpu.memory_space<vmem>>, vector<1x4x1xf32>
    %30 = vector.shape_cast %29 : vector<1x4x1xf32> to vector<4x1xf32>
    %31 = vector.broadcast %30 : vector<4x1xf32> to vector<4x900xf32>
    %32 = vector.broadcast %28 : vector<1x900xf32> to vector<4x900xf32>
    %33 = arith.mulf %31, %32 : vector<4x900xf32>
    %34 = arith.addf %26, %33 : vector<4x900xf32>
    %c0_35 = arith.constant 0 : index
    %c0_36 = arith.constant 0 : index
    %c30 = arith.constant 30 : index
    %35 = vector.load %arg0[%c0_35, %c0_36, %c30] : memref<2x1x962xf32, #tpu.memory_space<vmem>>, vector<1x1x900xf32>
    %36 = vector.shape_cast %35 : vector<1x1x900xf32> to vector<1x900xf32>
    %c3 = arith.constant 3 : index
    %c0_37 = arith.constant 0 : index
    %c0_38 = arith.constant 0 : index
    %37 = vector.load %arg2[%c3, %c0_37, %c0_38] : memref<9x4x1xf32, #tpu.memory_space<vmem>>, vector<1x4x1xf32>
    %38 = vector.shape_cast %37 : vector<1x4x1xf32> to vector<4x1xf32>
    %39 = vector.broadcast %38 : vector<4x1xf32> to vector<4x900xf32>
    %40 = vector.broadcast %36 : vector<1x900xf32> to vector<4x900xf32>
    %41 = arith.mulf %39, %40 : vector<4x900xf32>
    %42 = arith.addf %34, %41 : vector<4x900xf32>
    %c0_39 = arith.constant 0 : index
    %c0_40 = arith.constant 0 : index
    %c31 = arith.constant 31 : index
    %43 = vector.load %arg0[%c0_39, %c0_40, %c31] : memref<2x1x962xf32, #tpu.memory_space<vmem>>, vector<1x1x900xf32>
    %44 = vector.shape_cast %43 : vector<1x1x900xf32> to vector<1x900xf32>
    %c4 = arith.constant 4 : index
    %c0_41 = arith.constant 0 : index
    %c0_42 = arith.constant 0 : index
    %45 = vector.load %arg2[%c4, %c0_41, %c0_42] : memref<9x4x1xf32, #tpu.memory_space<vmem>>, vector<1x4x1xf32>
    %46 = vector.shape_cast %45 : vector<1x4x1xf32> to vector<4x1xf32>
    %47 = vector.broadcast %46 : vector<4x1xf32> to vector<4x900xf32>
    %48 = vector.broadcast %44 : vector<1x900xf32> to vector<4x900xf32>
    %49 = arith.mulf %47, %48 : vector<4x900xf32>
    %50 = arith.addf %42, %49 : vector<4x900xf32>
    %c0_43 = arith.constant 0 : index
    %c0_44 = arith.constant 0 : index
    %c32 = arith.constant 32 : index
    %51 = vector.load %arg0[%c0_43, %c0_44, %c32] : memref<2x1x962xf32, #tpu.memory_space<vmem>>, vector<1x1x900xf32>
    %52 = vector.shape_cast %51 : vector<1x1x900xf32> to vector<1x900xf32>
    %c5 = arith.constant 5 : index
    %c0_45 = arith.constant 0 : index
    %c0_46 = arith.constant 0 : index
    %53 = vector.load %arg2[%c5, %c0_45, %c0_46] : memref<9x4x1xf32, #tpu.memory_space<vmem>>, vector<1x4x1xf32>
    %54 = vector.shape_cast %53 : vector<1x4x1xf32> to vector<4x1xf32>
    %55 = vector.broadcast %54 : vector<4x1xf32> to vector<4x900xf32>
    %56 = vector.broadcast %52 : vector<1x900xf32> to vector<4x900xf32>
    %57 = arith.mulf %55, %56 : vector<4x900xf32>
    %58 = arith.addf %50, %57 : vector<4x900xf32>
    %c0_47 = arith.constant 0 : index
    %c0_48 = arith.constant 0 : index
    %c60 = arith.constant 60 : index
    %59 = vector.load %arg0[%c0_47, %c0_48, %c60] : memref<2x1x962xf32, #tpu.memory_space<vmem>>, vector<1x1x900xf32>
    %60 = vector.shape_cast %59 : vector<1x1x900xf32> to vector<1x900xf32>
    %c6 = arith.constant 6 : index
    %c0_49 = arith.constant 0 : index
    %c0_50 = arith.constant 0 : index
    %61 = vector.load %arg2[%c6, %c0_49, %c0_50] : memref<9x4x1xf32, #tpu.memory_space<vmem>>, vector<1x4x1xf32>
    %62 = vector.shape_cast %61 : vector<1x4x1xf32> to vector<4x1xf32>
    %63 = vector.broadcast %62 : vector<4x1xf32> to vector<4x900xf32>
    %64 = vector.broadcast %60 : vector<1x900xf32> to vector<4x900xf32>
    %65 = arith.mulf %63, %64 : vector<4x900xf32>
    %66 = arith.addf %58, %65 : vector<4x900xf32>
    %c0_51 = arith.constant 0 : index
    %c0_52 = arith.constant 0 : index
    %c61 = arith.constant 61 : index
    %67 = vector.load %arg0[%c0_51, %c0_52, %c61] : memref<2x1x962xf32, #tpu.memory_space<vmem>>, vector<1x1x900xf32>
    %68 = vector.shape_cast %67 : vector<1x1x900xf32> to vector<1x900xf32>
    %c7 = arith.constant 7 : index
    %c0_53 = arith.constant 0 : index
    %c0_54 = arith.constant 0 : index
    %69 = vector.load %arg2[%c7, %c0_53, %c0_54] : memref<9x4x1xf32, #tpu.memory_space<vmem>>, vector<1x4x1xf32>
    %70 = vector.shape_cast %69 : vector<1x4x1xf32> to vector<4x1xf32>
    %71 = vector.broadcast %70 : vector<4x1xf32> to vector<4x900xf32>
    %72 = vector.broadcast %68 : vector<1x900xf32> to vector<4x900xf32>
    %73 = arith.mulf %71, %72 : vector<4x900xf32>
    %74 = arith.addf %66, %73 : vector<4x900xf32>
    %c0_55 = arith.constant 0 : index
    %c0_56 = arith.constant 0 : index
    %c62 = arith.constant 62 : index
    %75 = vector.load %arg0[%c0_55, %c0_56, %c62] : memref<2x1x962xf32, #tpu.memory_space<vmem>>, vector<1x1x900xf32>
    %76 = vector.shape_cast %75 : vector<1x1x900xf32> to vector<1x900xf32>
    %c8 = arith.constant 8 : index
    %c0_57 = arith.constant 0 : index
    %c0_58 = arith.constant 0 : index
    %77 = vector.load %arg2[%c8, %c0_57, %c0_58] : memref<9x4x1xf32, #tpu.memory_space<vmem>>, vector<1x4x1xf32>
    %78 = vector.shape_cast %77 : vector<1x4x1xf32> to vector<4x1xf32>
    %79 = vector.broadcast %78 : vector<4x1xf32> to vector<4x900xf32>
    %80 = vector.broadcast %76 : vector<1x900xf32> to vector<4x900xf32>
    %81 = arith.mulf %79, %80 : vector<4x900xf32>
    %82 = arith.addf %74, %81 : vector<4x900xf32>
    %83 = vector.broadcast %7 : vector<4x1xf32> to vector<4x900xf32>
    %84 = arith.addf %82, %83 : vector<4x900xf32>
    %cst_59 = arith.constant 0.000000e+00 : f32
    %85 = vector.broadcast %cst_59 : f32 to vector<4x900xf32>
    %86 = arith.maximumf %84, %85 : vector<4x900xf32>
    %87 = vector.broadcast %8 : vector<4x1xf32> to vector<4x900xf32>
    %88 = arith.mulf %86, %87 : vector<4x900xf32>
    %89 = vector.broadcast %9 : vector<4x1xf32> to vector<4x900xf32>
    %90 = arith.addf %88, %89 : vector<4x900xf32>
    %91 = vector.broadcast %0 : vector<1x900xf32> to vector<4x900xf32>
    %92 = arith.mulf %90, %91 : vector<4x900xf32>
    %c0_60 = arith.constant 0 : index
    %c0_61 = arith.constant 0 : index
    %c31_62 = arith.constant 31 : index
    %93 = vector.load %arg13[%c0_60, %c0_61, %c31_62] : memref<2x4x962xf32, #tpu.memory_space<vmem>>, vector<1x4x900xf32>
    %94 = vector.shape_cast %93 : vector<1x4x900xf32> to vector<4x900xf32>
    %95 = vector.shape_cast %92 : vector<4x900xf32> to vector<1x4x900xf32>
    tpu.vector_store %arg13[%c0_60, %c0_61, %c31_62], %95 {strides = array<i32>} : memref<2x4x962xf32, #tpu.memory_space<vmem>>, vector<1x4x900xf32>,
    %cst_63 = arith.constant 0.000000e+00 : f32
    %96 = vector.broadcast %cst_63 : f32 to vector<4x900xf32>
    %c1_64 = arith.constant 1 : index
    %c0_65 = arith.constant 0 : index
    %c0_66 = arith.constant 0 : index
    %97 = vector.load %arg0[%c1_64, %c0_65, %c0_66] : memref<2x1x962xf32, #tpu.memory_space<vmem>>, vector<1x1x900xf32>
    %98 = vector.shape_cast %97 : vector<1x1x900xf32> to vector<1x900xf32>
    %c0_67 = arith.constant 0 : index
    %c0_68 = arith.constant 0 : index
    %c0_69 = arith.constant 0 : index
    %99 = vector.load %arg2[%c0_67, %c0_68, %c0_69] : memref<9x4x1xf32, #tpu.memory_space<vmem>>, vector<1x4x1xf32>
    %100 = vector.shape_cast %99 : vector<1x4x1xf32> to vector<4x1xf32>
    %101 = vector.broadcast %100 : vector<4x1xf32> to vector<4x900xf32>
    %102 = vector.broadcast %98 : vector<1x900xf32> to vector<4x900xf32>
    %103 = arith.mulf %101, %102 : vector<4x900xf32>
    %104 = arith.addf %96, %103 : vector<4x900xf32>
    %c1_70 = arith.constant 1 : index
    %c0_71 = arith.constant 0 : index
    %c1_72 = arith.constant 1 : index
    %105 = vector.load %arg0[%c1_70, %c0_71, %c1_72] : memref<2x1x962xf32, #tpu.memory_space<vmem>>, vector<1x1x900xf32>
    %106 = vector.shape_cast %105 : vector<1x1x900xf32> to vector<1x900xf32>
    %c1_73 = arith.constant 1 : index
    %c0_74 = arith.constant 0 : index
    %c0_75 = arith.constant 0 : index
    %107 = vector.load %arg2[%c1_73, %c0_74, %c0_75] : memref<9x4x1xf32, #tpu.memory_space<vmem>>, vector<1x4x1xf32>
    %108 = vector.shape_cast %107 : vector<1x4x1xf32> to vector<4x1xf32>
    %109 = vector.broadcast %108 : vector<4x1xf32> to vector<4x900xf32>
    %110 = vector.broadcast %106 : vector<1x900xf32> to vector<4x900xf32>
    %111 = arith.mulf %109, %110 : vector<4x900xf32>
    %112 = arith.addf %104, %111 : vector<4x900xf32>
    %c1_76 = arith.constant 1 : index
    %c0_77 = arith.constant 0 : index
    %c2_78 = arith.constant 2 : index
    %113 = vector.load %arg0[%c1_76, %c0_77, %c2_78] : memref<2x1x962xf32, #tpu.memory_space<vmem>>, vector<1x1x900xf32>
    %114 = vector.shape_cast %113 : vector<1x1x900xf32> to vector<1x900xf32>
    %c2_79 = arith.constant 2 : index
    %c0_80 = arith.constant 0 : index
    %c0_81 = arith.constant 0 : index
    %115 = vector.load %arg2[%c2_79, %c0_80, %c0_81] : memref<9x4x1xf32, #tpu.memory_space<vmem>>, vector<1x4x1xf32>
    %116 = vector.shape_cast %115 : vector<1x4x1xf32> to vector<4x1xf32>
    %117 = vector.broadcast %116 : vector<4x1xf32> to vector<4x900xf32>
    %118 = vector.broadcast %114 : vector<1x900xf32> to vector<4x900xf32>
    %119 = arith.mulf %117, %118 : vector<4x900xf32>
    %120 = arith.addf %112, %119 : vector<4x900xf32>
    %c1_82 = arith.constant 1 : index
    %c0_83 = arith.constant 0 : index
    %c30_84 = arith.constant 30 : index
    %121 = vector.load %arg0[%c1_82, %c0_83, %c30_84] : memref<2x1x962xf32, #tpu.memory_space<vmem>>, vector<1x1x900xf32>
    %122 = vector.shape_cast %121 : vector<1x1x900xf32> to vector<1x900xf32>
    %c3_85 = arith.constant 3 : index
    %c0_86 = arith.constant 0 : index
    %c0_87 = arith.constant 0 : index
    %123 = vector.load %arg2[%c3_85, %c0_86, %c0_87] : memref<9x4x1xf32, #tpu.memory_space<vmem>>, vector<1x4x1xf32>
    %124 = vector.shape_cast %123 : vector<1x4x1xf32> to vector<4x1xf32>
    %125 = vector.broadcast %124 : vector<4x1xf32> to vector<4x900xf32>
    %126 = vector.broadcast %122 : vector<1x900xf32> to vector<4x900xf32>
    %127 = arith.mulf %125, %126 : vector<4x900xf32>
    %128 = arith.addf %120, %127 : vector<4x900xf32>
    %c1_88 = arith.constant 1 : index
    %c0_89 = arith.constant 0 : index
    %c31_90 = arith.constant 31 : index
    %129 = vector.load %arg0[%c1_88, %c0_89, %c31_90] : memref<2x1x962xf32, #tpu.memory_space<vmem>>, vector<1x1x900xf32>
    %130 = vector.shape_cast %129 : vector<1x1x900xf32> to vector<1x900xf32>
    %c4_91 = arith.constant 4 : index
    %c0_92 = arith.constant 0 : index
    %c0_93 = arith.constant 0 : index
    %131 = vector.load %arg2[%c4_91, %c0_92, %c0_93] : memref<9x4x1xf32, #tpu.memory_space<vmem>>, vector<1x4x1xf32>
    %132 = vector.shape_cast %131 : vector<1x4x1xf32> to vector<4x1xf32>
    %133 = vector.broadcast %132 : vector<4x1xf32> to vector<4x900xf32>
    %134 = vector.broadcast %130 : vector<1x900xf32> to vector<4x900xf32>
    %135 = arith.mulf %133, %134 : vector<4x900xf32>
    %136 = arith.addf %128, %135 : vector<4x900xf32>
    %c1_94 = arith.constant 1 : index
    %c0_95 = arith.constant 0 : index
    %c32_96 = arith.constant 32 : index
    %137 = vector.load %arg0[%c1_94, %c0_95, %c32_96] : memref<2x1x962xf32, #tpu.memory_space<vmem>>, vector<1x1x900xf32>
    %138 = vector.shape_cast %137 : vector<1x1x900xf32> to vector<1x900xf32>
    %c5_97 = arith.constant 5 : index
    %c0_98 = arith.constant 0 : index
    %c0_99 = arith.constant 0 : index
    %139 = vector.load %arg2[%c5_97, %c0_98, %c0_99] : memref<9x4x1xf32, #tpu.memory_space<vmem>>, vector<1x4x1xf32>
    %140 = vector.shape_cast %139 : vector<1x4x1xf32> to vector<4x1xf32>
    %141 = vector.broadcast %140 : vector<4x1xf32> to vector<4x900xf32>
    %142 = vector.broadcast %138 : vector<1x900xf32> to vector<4x900xf32>
    %143 = arith.mulf %141, %142 : vector<4x900xf32>
    %144 = arith.addf %136, %143 : vector<4x900xf32>
    %c1_100 = arith.constant 1 : index
    %c0_101 = arith.constant 0 : index
    %c60_102 = arith.constant 60 : index
    %145 = vector.load %arg0[%c1_100, %c0_101, %c60_102] : memref<2x1x962xf32, #tpu.memory_space<vmem>>, vector<1x1x900xf32>
    %146 = vector.shape_cast %145 : vector<1x1x900xf32> to vector<1x900xf32>
    %c6_103 = arith.constant 6 : index
    %c0_104 = arith.constant 0 : index
    %c0_105 = arith.constant 0 : index
    %147 = vector.load %arg2[%c6_103, %c0_104, %c0_105] : memref<9x4x1xf32, #tpu.memory_space<vmem>>, vector<1x4x1xf32>
    %148 = vector.shape_cast %147 : vector<1x4x1xf32> to vector<4x1xf32>
    %149 = vector.broadcast %148 : vector<4x1xf32> to vector<4x900xf32>
    %150 = vector.broadcast %146 : vector<1x900xf32> to vector<4x900xf32>
    %151 = arith.mulf %149, %150 : vector<4x900xf32>
    %152 = arith.addf %144, %151 : vector<4x900xf32>
    %c1_106 = arith.constant 1 : index
    %c0_107 = arith.constant 0 : index
    %c61_108 = arith.constant 61 : index
    %153 = vector.load %arg0[%c1_106, %c0_107, %c61_108] : memref<2x1x962xf32, #tpu.memory_space<vmem>>, vector<1x1x900xf32>
    %154 = vector.shape_cast %153 : vector<1x1x900xf32> to vector<1x900xf32>
    %c7_109 = arith.constant 7 : index
    %c0_110 = arith.constant 0 : index
    %c0_111 = arith.constant 0 : index
    %155 = vector.load %arg2[%c7_109, %c0_110, %c0_111] : memref<9x4x1xf32, #tpu.memory_space<vmem>>, vector<1x4x1xf32>
    %156 = vector.shape_cast %155 : vector<1x4x1xf32> to vector<4x1xf32>
    %157 = vector.broadcast %156 : vector<4x1xf32> to vector<4x900xf32>
    %158 = vector.broadcast %154 : vector<1x900xf32> to vector<4x900xf32>
    %159 = arith.mulf %157, %158 : vector<4x900xf32>
    %160 = arith.addf %152, %159 : vector<4x900xf32>
    %c1_112 = arith.constant 1 : index
    %c0_113 = arith.constant 0 : index
    %c62_114 = arith.constant 62 : index
    %161 = vector.load %arg0[%c1_112, %c0_113, %c62_114] : memref<2x1x962xf32, #tpu.memory_space<vmem>>, vector<1x1x900xf32>
    %162 = vector.shape_cast %161 : vector<1x1x900xf32> to vector<1x900xf32>
    %c8_115 = arith.constant 8 : index
    %c0_116 = arith.constant 0 : index
    %c0_117 = arith.constant 0 : index
    %163 = vector.load %arg2[%c8_115, %c0_116, %c0_117] : memref<9x4x1xf32, #tpu.memory_space<vmem>>, vector<1x4x1xf32>
    %164 = vector.shape_cast %163 : vector<1x4x1xf32> to vector<4x1xf32>
    %165 = vector.broadcast %164 : vector<4x1xf32> to vector<4x900xf32>
    %166 = vector.broadcast %162 : vector<1x900xf32> to vector<4x900xf32>
    %167 = arith.mulf %165, %166 : vector<4x900xf32>
    %168 = arith.addf %160, %167 : vector<4x900xf32>
    %169 = vector.broadcast %7 : vector<4x1xf32> to vector<4x900xf32>
    %170 = arith.addf %168, %169 : vector<4x900xf32>
    %cst_118 = arith.constant 0.000000e+00 : f32
    %171 = vector.broadcast %cst_118 : f32 to vector<4x900xf32>
    %172 = arith.maximumf %170, %171 : vector<4x900xf32>
    %173 = vector.broadcast %8 : vector<4x1xf32> to vector<4x900xf32>
    %174 = arith.mulf %172, %173 : vector<4x900xf32>
    %175 = vector.broadcast %9 : vector<4x1xf32> to vector<4x900xf32>
    %176 = arith.addf %174, %175 : vector<4x900xf32>
    %177 = vector.broadcast %0 : vector<1x900xf32> to vector<4x900xf32>
    %178 = arith.mulf %176, %177 : vector<4x900xf32>
    %c1_119 = arith.constant 1 : index
    %c0_120 = arith.constant 0 : index
    %c31_121 = arith.constant 31 : index
    %179 = vector.load %arg13[%c1_119, %c0_120, %c31_121] : memref<2x4x962xf32, #tpu.memory_space<vmem>>, vector<1x4x900xf32>
    %180 = vector.shape_cast %179 : vector<1x4x900xf32> to vector<4x900xf32>
    %181 = vector.shape_cast %178 : vector<4x900xf32> to vector<1x4x900xf32>
    tpu.vector_store %arg13[%c1_119, %c0_120, %c31_121], %181 {strides = array<i32>} : memref<2x4x962xf32, #tpu.memory_space<vmem>>, vector<1x4x900xf32>,
    %c0_122 = arith.constant 0 : index
    %c0_123 = arith.constant 0 : index
    %182 = vector.load %arg5[%c0_122, %c0_123] : memref<8x3xf32, #tpu.memory_space<vmem>>, vector<8x1xf32>
    %c0_124 = arith.constant 0 : index
    %c1_125 = arith.constant 1 : index
    %183 = vector.load %arg5[%c0_124, %c1_125] : memref<8x3xf32, #tpu.memory_space<vmem>>, vector<8x1xf32>
    %c0_126 = arith.constant 0 : index
    %c2_127 = arith.constant 2 : index
    %184 = vector.load %arg5[%c0_126, %c2_127] : memref<8x3xf32, #tpu.memory_space<vmem>>, vector<8x1xf32>
    %cst_128 = arith.constant 0.000000e+00 : f32
    %185 = vector.broadcast %cst_128 : f32 to vector<8x900xf32>
    %c0_129 = arith.constant 0 : index
    %c0_130 = arith.constant 0 : index
    %c0_131 = arith.constant 0 : index
    %186 = vector.load %arg13[%c0_129, %c0_130, %c0_131] : memref<2x4x962xf32, #tpu.memory_space<vmem>>, vector<1x4x900xf32>
    %187 = vector.shape_cast %186 : vector<1x4x900xf32> to vector<4x900xf32>
    %c0_132 = arith.constant 0 : index
    %c0_133 = arith.constant 0 : index
    %c0_134 = arith.constant 0 : index
    %188 = vector.load %arg4[%c0_132, %c0_133, %c0_134] : memref<9x8x4xbf16, #tpu.memory_space<vmem>>, vector<1x8x4xbf16>
    %189 = vector.shape_cast %188 : vector<1x8x4xbf16> to vector<8x4xbf16>
    %190 = arith.truncf %187 : vector<4x900xf32> to vector<4x900xbf16>
    %cst_135 = arith.constant dense<0.000000e+00> : vector<8x900xf32>
    %191 = tpu.matmul %189, %190, %cst_135 {dimension_numbers = #tpu.dot_dimension_numbers<[1], [0], [0], [1], [0, 0, 1, 1], [], []>} : vector<8x4xbf16>, vector<4x900xbf16>, vector<8x900xf32> -> vector<8x900xf32>
    %192 = arith.addf %185, %191 : vector<8x900xf32>
    %c0_136 = arith.constant 0 : index
    %c0_137 = arith.constant 0 : index
    %c1_138 = arith.constant 1 : index
    %193 = vector.load %arg13[%c0_136, %c0_137, %c1_138] : memref<2x4x962xf32, #tpu.memory_space<vmem>>, vector<1x4x900xf32>
    %194 = vector.shape_cast %193 : vector<1x4x900xf32> to vector<4x900xf32>
    %c1_139 = arith.constant 1 : index
    %c0_140 = arith.constant 0 : index
    %c0_141 = arith.constant 0 : index
    %195 = vector.load %arg4[%c1_139, %c0_140, %c0_141] : memref<9x8x4xbf16, #tpu.memory_space<vmem>>, vector<1x8x4xbf16>
    %196 = vector.shape_cast %195 : vector<1x8x4xbf16> to vector<8x4xbf16>
    %197 = arith.truncf %194 : vector<4x900xf32> to vector<4x900xbf16>
    %cst_142 = arith.constant dense<0.000000e+00> : vector<8x900xf32>
    %198 = tpu.matmul %196, %197, %cst_142 {dimension_numbers = #tpu.dot_dimension_numbers<[1], [0], [0], [1], [0, 0, 1, 1], [], []>} : vector<8x4xbf16>, vector<4x900xbf16>, vector<8x900xf32> -> vector<8x900xf32>
    %199 = arith.addf %192, %198 : vector<8x900xf32>
    %c0_143 = arith.constant 0 : index
    %c0_144 = arith.constant 0 : index
    %c2_145 = arith.constant 2 : index
    %200 = vector.load %arg13[%c0_143, %c0_144, %c2_145] : memref<2x4x962xf32, #tpu.memory_space<vmem>>, vector<1x4x900xf32>
    %201 = vector.shape_cast %200 : vector<1x4x900xf32> to vector<4x900xf32>
    %c2_146 = arith.constant 2 : index
    %c0_147 = arith.constant 0 : index
    %c0_148 = arith.constant 0 : index
    %202 = vector.load %arg4[%c2_146, %c0_147, %c0_148] : memref<9x8x4xbf16, #tpu.memory_space<vmem>>, vector<1x8x4xbf16>
    %203 = vector.shape_cast %202 : vector<1x8x4xbf16> to vector<8x4xbf16>
    %204 = arith.truncf %201 : vector<4x900xf32> to vector<4x900xbf16>
    %cst_149 = arith.constant dense<0.000000e+00> : vector<8x900xf32>
    %205 = tpu.matmul %203, %204, %cst_149 {dimension_numbers = #tpu.dot_dimension_numbers<[1], [0], [0], [1], [0, 0, 1, 1], [], []>} : vector<8x4xbf16>, vector<4x900xbf16>, vector<8x900xf32> -> vector<8x900xf32>
    %206 = arith.addf %199, %205 : vector<8x900xf32>
    %c0_150 = arith.constant 0 : index
    %c0_151 = arith.constant 0 : index
    %c30_152 = arith.constant 30 : index
    %207 = vector.load %arg13[%c0_150, %c0_151, %c30_152] : memref<2x4x962xf32, #tpu.memory_space<vmem>>, vector<1x4x900xf32>
    %208 = vector.shape_cast %207 : vector<1x4x900xf32> to vector<4x900xf32>
    %c3_153 = arith.constant 3 : index
    %c0_154 = arith.constant 0 : index
    %c0_155 = arith.constant 0 : index
    %209 = vector.load %arg4[%c3_153, %c0_154, %c0_155] : memref<9x8x4xbf16, #tpu.memory_space<vmem>>, vector<1x8x4xbf16>
    %210 = vector.shape_cast %209 : vector<1x8x4xbf16> to vector<8x4xbf16>
    %211 = arith.truncf %208 : vector<4x900xf32> to vector<4x900xbf16>
    %cst_156 = arith.constant dense<0.000000e+00> : vector<8x900xf32>
    %212 = tpu.matmul %210, %211, %cst_156 {dimension_numbers = #tpu.dot_dimension_numbers<[1], [0], [0], [1], [0, 0, 1, 1], [], []>} : vector<8x4xbf16>, vector<4x900xbf16>, vector<8x900xf32> -> vector<8x900xf32>
    %213 = arith.addf %206, %212 : vector<8x900xf32>
    %c0_157 = arith.constant 0 : index
    %c0_158 = arith.constant 0 : index
    %c31_159 = arith.constant 31 : index
    %214 = vector.load %arg13[%c0_157, %c0_158, %c31_159] : memref<2x4x962xf32, #tpu.memory_space<vmem>>, vector<1x4x900xf32>
    %215 = vector.shape_cast %214 : vector<1x4x900xf32> to vector<4x900xf32>
    %c4_160 = arith.constant 4 : index
    %c0_161 = arith.constant 0 : index
    %c0_162 = arith.constant 0 : index
    %216 = vector.load %arg4[%c4_160, %c0_161, %c0_162] : memref<9x8x4xbf16, #tpu.memory_space<vmem>>, vector<1x8x4xbf16>
    %217 = vector.shape_cast %216 : vector<1x8x4xbf16> to vector<8x4xbf16>
    %218 = arith.truncf %215 : vector<4x900xf32> to vector<4x900xbf16>
    %cst_163 = arith.constant dense<0.000000e+00> : vector<8x900xf32>
    %219 = tpu.matmul %217, %218, %cst_163 {dimension_numbers = #tpu.dot_dimension_numbers<[1], [0], [0], [1], [0, 0, 1, 1], [], []>} : vector<8x4xbf16>, vector<4x900xbf16>, vector<8x900xf32> -> vector<8x900xf32>
    %220 = arith.addf %213, %219 : vector<8x900xf32>
    %c0_164 = arith.constant 0 : index
    %c0_165 = arith.constant 0 : index
    %c32_166 = arith.constant 32 : index
    %221 = vector.load %arg13[%c0_164, %c0_165, %c32_166] : memref<2x4x962xf32, #tpu.memory_space<vmem>>, vector<1x4x900xf32>
    %222 = vector.shape_cast %221 : vector<1x4x900xf32> to vector<4x900xf32>
    %c5_167 = arith.constant 5 : index
    %c0_168 = arith.constant 0 : index
    %c0_169 = arith.constant 0 : index
    %223 = vector.load %arg4[%c5_167, %c0_168, %c0_169] : memref<9x8x4xbf16, #tpu.memory_space<vmem>>, vector<1x8x4xbf16>
    %224 = vector.shape_cast %223 : vector<1x8x4xbf16> to vector<8x4xbf16>
    %225 = arith.truncf %222 : vector<4x900xf32> to vector<4x900xbf16>
    %cst_170 = arith.constant dense<0.000000e+00> : vector<8x900xf32>
    %226 = tpu.matmul %224, %225, %cst_170 {dimension_numbers = #tpu.dot_dimension_numbers<[1], [0], [0], [1], [0, 0, 1, 1], [], []>} : vector<8x4xbf16>, vector<4x900xbf16>, vector<8x900xf32> -> vector<8x900xf32>
    %227 = arith.addf %220, %226 : vector<8x900xf32>
    %c0_171 = arith.constant 0 : index
    %c0_172 = arith.constant 0 : index
    %c60_173 = arith.constant 60 : index
    %228 = vector.load %arg13[%c0_171, %c0_172, %c60_173] : memref<2x4x962xf32, #tpu.memory_space<vmem>>, vector<1x4x900xf32>
    %229 = vector.shape_cast %228 : vector<1x4x900xf32> to vector<4x900xf32>
    %c6_174 = arith.constant 6 : index
    %c0_175 = arith.constant 0 : index
    %c0_176 = arith.constant 0 : index
    %230 = vector.load %arg4[%c6_174, %c0_175, %c0_176] : memref<9x8x4xbf16, #tpu.memory_space<vmem>>, vector<1x8x4xbf16>
    %231 = vector.shape_cast %230 : vector<1x8x4xbf16> to vector<8x4xbf16>
    %232 = arith.truncf %229 : vector<4x900xf32> to vector<4x900xbf16>
    %cst_177 = arith.constant dense<0.000000e+00> : vector<8x900xf32>
    %233 = tpu.matmul %231, %232, %cst_177 {dimension_numbers = #tpu.dot_dimension_numbers<[1], [0], [0], [1], [0, 0, 1, 1], [], []>} : vector<8x4xbf16>, vector<4x900xbf16>, vector<8x900xf32> -> vector<8x900xf32>
    %234 = arith.addf %227, %233 : vector<8x900xf32>
    %c0_178 = arith.constant 0 : index
    %c0_179 = arith.constant 0 : index
    %c61_180 = arith.constant 61 : index
    %235 = vector.load %arg13[%c0_178, %c0_179, %c61_180] : memref<2x4x962xf32, #tpu.memory_space<vmem>>, vector<1x4x900xf32>
    %236 = vector.shape_cast %235 : vector<1x4x900xf32> to vector<4x900xf32>
    %c7_181 = arith.constant 7 : index
    %c0_182 = arith.constant 0 : index
    %c0_183 = arith.constant 0 : index
    %237 = vector.load %arg4[%c7_181, %c0_182, %c0_183] : memref<9x8x4xbf16, #tpu.memory_space<vmem>>, vector<1x8x4xbf16>
    %238 = vector.shape_cast %237 : vector<1x8x4xbf16> to vector<8x4xbf16>
    %239 = arith.truncf %236 : vector<4x900xf32> to vector<4x900xbf16>
    %cst_184 = arith.constant dense<0.000000e+00> : vector<8x900xf32>
    %240 = tpu.matmul %238, %239, %cst_184 {dimension_numbers = #tpu.dot_dimension_numbers<[1], [0], [0], [1], [0, 0, 1, 1], [], []>} : vector<8x4xbf16>, vector<4x900xbf16>, vector<8x900xf32> -> vector<8x900xf32>
    %241 = arith.addf %234, %240 : vector<8x900xf32>
    %c0_185 = arith.constant 0 : index
    %c0_186 = arith.constant 0 : index
    %c62_187 = arith.constant 62 : index
    %242 = vector.load %arg13[%c0_185, %c0_186, %c62_187] : memref<2x4x962xf32, #tpu.memory_space<vmem>>, vector<1x4x900xf32>
    %243 = vector.shape_cast %242 : vector<1x4x900xf32> to vector<4x900xf32>
    %c8_188 = arith.constant 8 : index
    %c0_189 = arith.constant 0 : index
    %c0_190 = arith.constant 0 : index
    %244 = vector.load %arg4[%c8_188, %c0_189, %c0_190] : memref<9x8x4xbf16, #tpu.memory_space<vmem>>, vector<1x8x4xbf16>
    %245 = vector.shape_cast %244 : vector<1x8x4xbf16> to vector<8x4xbf16>
    %246 = arith.truncf %243 : vector<4x900xf32> to vector<4x900xbf16>
    %cst_191 = arith.constant dense<0.000000e+00> : vector<8x900xf32>
    %247 = tpu.matmul %245, %246, %cst_191 {dimension_numbers = #tpu.dot_dimension_numbers<[1], [0], [0], [1], [0, 0, 1, 1], [], []>} : vector<8x4xbf16>, vector<4x900xbf16>, vector<8x900xf32> -> vector<8x900xf32>
    %248 = arith.addf %241, %247 : vector<8x900xf32>
    %249 = vector.broadcast %182 : vector<8x1xf32> to vector<8x900xf32>
    %250 = arith.addf %248, %249 : vector<8x900xf32>
    %cst_192 = arith.constant 0.000000e+00 : f32
    %251 = vector.broadcast %cst_192 : f32 to vector<8x900xf32>
    %252 = arith.maximumf %250, %251 : vector<8x900xf32>
    %253 = vector.broadcast %183 : vector<8x1xf32> to vector<8x900xf32>
    %254 = arith.mulf %252, %253 : vector<8x900xf32>
    %255 = vector.broadcast %184 : vector<8x1xf32> to vector<8x900xf32>
    %256 = arith.addf %254, %255 : vector<8x900xf32>
    %257 = vector.broadcast %0 : vector<1x900xf32> to vector<8x900xf32>
    %258 = arith.mulf %256, %257 : vector<8x900xf32>
    %c0_193 = arith.constant 0 : index
    %c0_194 = arith.constant 0 : index
    %c31_195 = arith.constant 31 : index
    %259 = vector.load %arg14[%c0_193, %c0_194, %c31_195] : memref<2x8x962xf32, #tpu.memory_space<vmem>>, vector<1x8x900xf32>
    %260 = vector.shape_cast %259 : vector<1x8x900xf32> to vector<8x900xf32>
    %261 = vector.shape_cast %258 : vector<8x900xf32> to vector<1x8x900xf32>
    tpu.vector_store %arg14[%c0_193, %c0_194, %c31_195], %261 {strides = array<i32>} : memref<2x8x962xf32, #tpu.memory_space<vmem>>, vector<1x8x900xf32>,
    %cst_196 = arith.constant 0.000000e+00 : f32
    %262 = vector.broadcast %cst_196 : f32 to vector<8x900xf32>
    %c1_197 = arith.constant 1 : index
    %c0_198 = arith.constant 0 : index
    %c0_199 = arith.constant 0 : index
    %263 = vector.load %arg13[%c1_197, %c0_198, %c0_199] : memref<2x4x962xf32, #tpu.memory_space<vmem>>, vector<1x4x900xf32>
    %264 = vector.shape_cast %263 : vector<1x4x900xf32> to vector<4x900xf32>
    %c0_200 = arith.constant 0 : index
    %c0_201 = arith.constant 0 : index
    %c0_202 = arith.constant 0 : index
    %265 = vector.load %arg4[%c0_200, %c0_201, %c0_202] : memref<9x8x4xbf16, #tpu.memory_space<vmem>>, vector<1x8x4xbf16>
    %266 = vector.shape_cast %265 : vector<1x8x4xbf16> to vector<8x4xbf16>
    %267 = arith.truncf %264 : vector<4x900xf32> to vector<4x900xbf16>
    %cst_203 = arith.constant dense<0.000000e+00> : vector<8x900xf32>
    %268 = tpu.matmul %266, %267, %cst_203 {dimension_numbers = #tpu.dot_dimension_numbers<[1], [0], [0], [1], [0, 0, 1, 1], [], []>} : vector<8x4xbf16>, vector<4x900xbf16>, vector<8x900xf32> -> vector<8x900xf32>
    %269 = arith.addf %262, %268 : vector<8x900xf32>
    %c1_204 = arith.constant 1 : index
    %c0_205 = arith.constant 0 : index
    %c1_206 = arith.constant 1 : index
    %270 = vector.load %arg13[%c1_204, %c0_205, %c1_206] : memref<2x4x962xf32, #tpu.memory_space<vmem>>, vector<1x4x900xf32>
    %271 = vector.shape_cast %270 : vector<1x4x900xf32> to vector<4x900xf32>
    %c1_207 = arith.constant 1 : index
    %c0_208 = arith.constant 0 : index
    %c0_209 = arith.constant 0 : index
    %272 = vector.load %arg4[%c1_207, %c0_208, %c0_209] : memref<9x8x4xbf16, #tpu.memory_space<vmem>>, vector<1x8x4xbf16>
    %273 = vector.shape_cast %272 : vector<1x8x4xbf16> to vector<8x4xbf16>
    %274 = arith.truncf %271 : vector<4x900xf32> to vector<4x900xbf16>
    %cst_210 = arith.constant dense<0.000000e+00> : vector<8x900xf32>
    %275 = tpu.matmul %273, %274, %cst_210 {dimension_numbers = #tpu.dot_dimension_numbers<[1], [0], [0], [1], [0, 0, 1, 1], [], []>} : vector<8x4xbf16>, vector<4x900xbf16>, vector<8x900xf32> -> vector<8x900xf32>
    %276 = arith.addf %269, %275 : vector<8x900xf32>
    %c1_211 = arith.constant 1 : index
    %c0_212 = arith.constant 0 : index
    %c2_213 = arith.constant 2 : index
    %277 = vector.load %arg13[%c1_211, %c0_212, %c2_213] : memref<2x4x962xf32, #tpu.memory_space<vmem>>, vector<1x4x900xf32>
    %278 = vector.shape_cast %277 : vector<1x4x900xf32> to vector<4x900xf32>
    %c2_214 = arith.constant 2 : index
    %c0_215 = arith.constant 0 : index
    %c0_216 = arith.constant 0 : index
    %279 = vector.load %arg4[%c2_214, %c0_215, %c0_216] : memref<9x8x4xbf16, #tpu.memory_space<vmem>>, vector<1x8x4xbf16>
    %280 = vector.shape_cast %279 : vector<1x8x4xbf16> to vector<8x4xbf16>
    %281 = arith.truncf %278 : vector<4x900xf32> to vector<4x900xbf16>
    %cst_217 = arith.constant dense<0.000000e+00> : vector<8x900xf32>
    %282 = tpu.matmul %280, %281, %cst_217 {dimension_numbers = #tpu.dot_dimension_numbers<[1], [0], [0], [1], [0, 0, 1, 1], [], []>} : vector<8x4xbf16>, vector<4x900xbf16>, vector<8x900xf32> -> vector<8x900xf32>
    %283 = arith.addf %276, %282 : vector<8x900xf32>
    %c1_218 = arith.constant 1 : index
    %c0_219 = arith.constant 0 : index
    %c30_220 = arith.constant 30 : index
    %284 = vector.load %arg13[%c1_218, %c0_219, %c30_220] : memref<2x4x962xf32, #tpu.memory_space<vmem>>, vector<1x4x900xf32>
    %285 = vector.shape_cast %284 : vector<1x4x900xf32> to vector<4x900xf32>
    %c3_221 = arith.constant 3 : index
    %c0_222 = arith.constant 0 : index
    %c0_223 = arith.constant 0 : index
    %286 = vector.load %arg4[%c3_221, %c0_222, %c0_223] : memref<9x8x4xbf16, #tpu.memory_space<vmem>>, vector<1x8x4xbf16>
    %287 = vector.shape_cast %286 : vector<1x8x4xbf16> to vector<8x4xbf16>
    %288 = arith.truncf %285 : vector<4x900xf32> to vector<4x900xbf16>
    %cst_224 = arith.constant dense<0.000000e+00> : vector<8x900xf32>
    %289 = tpu.matmul %287, %288, %cst_224 {dimension_numbers = #tpu.dot_dimension_numbers<[1], [0], [0], [1], [0, 0, 1, 1], [], []>} : vector<8x4xbf16>, vector<4x900xbf16>, vector<8x900xf32> -> vector<8x900xf32>
    %290 = arith.addf %283, %289 : vector<8x900xf32>
    %c1_225 = arith.constant 1 : index
    %c0_226 = arith.constant 0 : index
    %c31_227 = arith.constant 31 : index
    %291 = vector.load %arg13[%c1_225, %c0_226, %c31_227] : memref<2x4x962xf32, #tpu.memory_space<vmem>>, vector<1x4x900xf32>
    %292 = vector.shape_cast %291 : vector<1x4x900xf32> to vector<4x900xf32>
    %c4_228 = arith.constant 4 : index
    %c0_229 = arith.constant 0 : index
    %c0_230 = arith.constant 0 : index
    %293 = vector.load %arg4[%c4_228, %c0_229, %c0_230] : memref<9x8x4xbf16, #tpu.memory_space<vmem>>, vector<1x8x4xbf16>
    %294 = vector.shape_cast %293 : vector<1x8x4xbf16> to vector<8x4xbf16>
    %295 = arith.truncf %292 : vector<4x900xf32> to vector<4x900xbf16>
    %cst_231 = arith.constant dense<0.000000e+00> : vector<8x900xf32>
    %296 = tpu.matmul %294, %295, %cst_231 {dimension_numbers = #tpu.dot_dimension_numbers<[1], [0], [0], [1], [0, 0, 1, 1], [], []>} : vector<8x4xbf16>, vector<4x900xbf16>, vector<8x900xf32> -> vector<8x900xf32>
    %297 = arith.addf %290, %296 : vector<8x900xf32>
    %c1_232 = arith.constant 1 : index
    %c0_233 = arith.constant 0 : index
    %c32_234 = arith.constant 32 : index
    %298 = vector.load %arg13[%c1_232, %c0_233, %c32_234] : memref<2x4x962xf32, #tpu.memory_space<vmem>>, vector<1x4x900xf32>
    %299 = vector.shape_cast %298 : vector<1x4x900xf32> to vector<4x900xf32>
    %c5_235 = arith.constant 5 : index
    %c0_236 = arith.constant 0 : index
    %c0_237 = arith.constant 0 : index
    %300 = vector.load %arg4[%c5_235, %c0_236, %c0_237] : memref<9x8x4xbf16, #tpu.memory_space<vmem>>, vector<1x8x4xbf16>
    %301 = vector.shape_cast %300 : vector<1x8x4xbf16> to vector<8x4xbf16>
    %302 = arith.truncf %299 : vector<4x900xf32> to vector<4x900xbf16>
    %cst_238 = arith.constant dense<0.000000e+00> : vector<8x900xf32>
    %303 = tpu.matmul %301, %302, %cst_238 {dimension_numbers = #tpu.dot_dimension_numbers<[1], [0], [0], [1], [0, 0, 1, 1], [], []>} : vector<8x4xbf16>, vector<4x900xbf16>, vector<8x900xf32> -> vector<8x900xf32>
    %304 = arith.addf %297, %303 : vector<8x900xf32>
    %c1_239 = arith.constant 1 : index
    %c0_240 = arith.constant 0 : index
    %c60_241 = arith.constant 60 : index
    %305 = vector.load %arg13[%c1_239, %c0_240, %c60_241] : memref<2x4x962xf32, #tpu.memory_space<vmem>>, vector<1x4x900xf32>
    %306 = vector.shape_cast %305 : vector<1x4x900xf32> to vector<4x900xf32>
    %c6_242 = arith.constant 6 : index
    %c0_243 = arith.constant 0 : index
    %c0_244 = arith.constant 0 : index
    %307 = vector.load %arg4[%c6_242, %c0_243, %c0_244] : memref<9x8x4xbf16, #tpu.memory_space<vmem>>, vector<1x8x4xbf16>
    %308 = vector.shape_cast %307 : vector<1x8x4xbf16> to vector<8x4xbf16>
    %309 = arith.truncf %306 : vector<4x900xf32> to vector<4x900xbf16>
    %cst_245 = arith.constant dense<0.000000e+00> : vector<8x900xf32>
    %310 = tpu.matmul %308, %309, %cst_245 {dimension_numbers = #tpu.dot_dimension_numbers<[1], [0], [0], [1], [0, 0, 1, 1], [], []>} : vector<8x4xbf16>, vector<4x900xbf16>, vector<8x900xf32> -> vector<8x900xf32>
    %311 = arith.addf %304, %310 : vector<8x900xf32>
    %c1_246 = arith.constant 1 : index
    %c0_247 = arith.constant 0 : index
    %c61_248 = arith.constant 61 : index
    %312 = vector.load %arg13[%c1_246, %c0_247, %c61_248] : memref<2x4x962xf32, #tpu.memory_space<vmem>>, vector<1x4x900xf32>
    %313 = vector.shape_cast %312 : vector<1x4x900xf32> to vector<4x900xf32>
    %c7_249 = arith.constant 7 : index
    %c0_250 = arith.constant 0 : index
    %c0_251 = arith.constant 0 : index
    %314 = vector.load %arg4[%c7_249, %c0_250, %c0_251] : memref<9x8x4xbf16, #tpu.memory_space<vmem>>, vector<1x8x4xbf16>
    %315 = vector.shape_cast %314 : vector<1x8x4xbf16> to vector<8x4xbf16>
    %316 = arith.truncf %313 : vector<4x900xf32> to vector<4x900xbf16>
    %cst_252 = arith.constant dense<0.000000e+00> : vector<8x900xf32>
    %317 = tpu.matmul %315, %316, %cst_252 {dimension_numbers = #tpu.dot_dimension_numbers<[1], [0], [0], [1], [0, 0, 1, 1], [], []>} : vector<8x4xbf16>, vector<4x900xbf16>, vector<8x900xf32> -> vector<8x900xf32>
    %318 = arith.addf %311, %317 : vector<8x900xf32>
    %c1_253 = arith.constant 1 : index
    %c0_254 = arith.constant 0 : index
    %c62_255 = arith.constant 62 : index
    %319 = vector.load %arg13[%c1_253, %c0_254, %c62_255] : memref<2x4x962xf32, #tpu.memory_space<vmem>>, vector<1x4x900xf32>
    %320 = vector.shape_cast %319 : vector<1x4x900xf32> to vector<4x900xf32>
    %c8_256 = arith.constant 8 : index
    %c0_257 = arith.constant 0 : index
    %c0_258 = arith.constant 0 : index
    %321 = vector.load %arg4[%c8_256, %c0_257, %c0_258] : memref<9x8x4xbf16, #tpu.memory_space<vmem>>, vector<1x8x4xbf16>
    %322 = vector.shape_cast %321 : vector<1x8x4xbf16> to vector<8x4xbf16>
    %323 = arith.truncf %320 : vector<4x900xf32> to vector<4x900xbf16>
    %cst_259 = arith.constant dense<0.000000e+00> : vector<8x900xf32>
    %324 = tpu.matmul %322, %323, %cst_259 {dimension_numbers = #tpu.dot_dimension_numbers<[1], [0], [0], [1], [0, 0, 1, 1], [], []>} : vector<8x4xbf16>, vector<4x900xbf16>, vector<8x900xf32> -> vector<8x900xf32>
    %325 = arith.addf %318, %324 : vector<8x900xf32>
    %326 = vector.broadcast %182 : vector<8x1xf32> to vector<8x900xf32>
    %327 = arith.addf %325, %326 : vector<8x900xf32>
    %cst_260 = arith.constant 0.000000e+00 : f32
    %328 = vector.broadcast %cst_260 : f32 to vector<8x900xf32>
    %329 = arith.maximumf %327, %328 : vector<8x900xf32>
    %330 = vector.broadcast %183 : vector<8x1xf32> to vector<8x900xf32>
    %331 = arith.mulf %329, %330 : vector<8x900xf32>
    %332 = vector.broadcast %184 : vector<8x1xf32> to vector<8x900xf32>
    %333 = arith.addf %331, %332 : vector<8x900xf32>
    %334 = vector.broadcast %0 : vector<1x900xf32> to vector<8x900xf32>
    %335 = arith.mulf %333, %334 : vector<8x900xf32>
    %c1_261 = arith.constant 1 : index
    %c0_262 = arith.constant 0 : index
    %c31_263 = arith.constant 31 : index
    %336 = vector.load %arg14[%c1_261, %c0_262, %c31_263] : memref<2x8x962xf32, #tpu.memory_space<vmem>>, vector<1x8x900xf32>
    %337 = vector.shape_cast %336 : vector<1x8x900xf32> to vector<8x900xf32>
    %338 = vector.shape_cast %335 : vector<8x900xf32> to vector<1x8x900xf32>
    tpu.vector_store %arg14[%c1_261, %c0_262, %c31_263], %338 {strides = array<i32>} : memref<2x8x962xf32, #tpu.memory_space<vmem>>, vector<1x8x900xf32>,
    %c0_264 = arith.constant 0 : index
    %c0_265 = arith.constant 0 : index
    %339 = vector.load %arg7[%c0_264, %c0_265] : memref<16x3xf32, #tpu.memory_space<vmem>>, vector<16x1xf32>
    %c0_266 = arith.constant 0 : index
    %c1_267 = arith.constant 1 : index
    %340 = vector.load %arg7[%c0_266, %c1_267] : memref<16x3xf32, #tpu.memory_space<vmem>>, vector<16x1xf32>
    %c0_268 = arith.constant 0 : index
    %c2_269 = arith.constant 2 : index
    %341 = vector.load %arg7[%c0_268, %c2_269] : memref<16x3xf32, #tpu.memory_space<vmem>>, vector<16x1xf32>
    %cst_270 = arith.constant 0.000000e+00 : f32
    %342 = vector.broadcast %cst_270 : f32 to vector<16x900xf32>
    %c0_271 = arith.constant 0 : index
    %c0_272 = arith.constant 0 : index
    %c0_273 = arith.constant 0 : index
    %343 = vector.load %arg14[%c0_271, %c0_272, %c0_273] : memref<2x8x962xf32, #tpu.memory_space<vmem>>, vector<1x8x900xf32>
    %344 = vector.shape_cast %343 : vector<1x8x900xf32> to vector<8x900xf32>
    %c0_274 = arith.constant 0 : index
    %c0_275 = arith.constant 0 : index
    %c0_276 = arith.constant 0 : index
    %345 = vector.load %arg6[%c0_274, %c0_275, %c0_276] : memref<9x16x8xbf16, #tpu.memory_space<vmem>>, vector<1x16x8xbf16>
    %346 = vector.shape_cast %345 : vector<1x16x8xbf16> to vector<16x8xbf16>
    %347 = arith.truncf %344 : vector<8x900xf32> to vector<8x900xbf16>
    %cst_277 = arith.constant dense<0.000000e+00> : vector<16x900xf32>
    %348 = tpu.matmul %346, %347, %cst_277 {dimension_numbers = #tpu.dot_dimension_numbers<[1], [0], [0], [1], [0, 0, 1, 1], [], []>} : vector<16x8xbf16>, vector<8x900xbf16>, vector<16x900xf32> -> vector<16x900xf32>
    %349 = arith.addf %342, %348 : vector<16x900xf32>
    %c0_278 = arith.constant 0 : index
    %c0_279 = arith.constant 0 : index
    %c1_280 = arith.constant 1 : index
    %350 = vector.load %arg14[%c0_278, %c0_279, %c1_280] : memref<2x8x962xf32, #tpu.memory_space<vmem>>, vector<1x8x900xf32>
    %351 = vector.shape_cast %350 : vector<1x8x900xf32> to vector<8x900xf32>
    %c1_281 = arith.constant 1 : index
    %c0_282 = arith.constant 0 : index
    %c0_283 = arith.constant 0 : index
    %352 = vector.load %arg6[%c1_281, %c0_282, %c0_283] : memref<9x16x8xbf16, #tpu.memory_space<vmem>>, vector<1x16x8xbf16>
    %353 = vector.shape_cast %352 : vector<1x16x8xbf16> to vector<16x8xbf16>
    %354 = arith.truncf %351 : vector<8x900xf32> to vector<8x900xbf16>
    %cst_284 = arith.constant dense<0.000000e+00> : vector<16x900xf32>
    %355 = tpu.matmul %353, %354, %cst_284 {dimension_numbers = #tpu.dot_dimension_numbers<[1], [0], [0], [1], [0, 0, 1, 1], [], []>} : vector<16x8xbf16>, vector<8x900xbf16>, vector<16x900xf32> -> vector<16x900xf32>
    %356 = arith.addf %349, %355 : vector<16x900xf32>
    %c0_285 = arith.constant 0 : index
    %c0_286 = arith.constant 0 : index
    %c2_287 = arith.constant 2 : index
    %357 = vector.load %arg14[%c0_285, %c0_286, %c2_287] : memref<2x8x962xf32, #tpu.memory_space<vmem>>, vector<1x8x900xf32>
    %358 = vector.shape_cast %357 : vector<1x8x900xf32> to vector<8x900xf32>
    %c2_288 = arith.constant 2 : index
    %c0_289 = arith.constant 0 : index
    %c0_290 = arith.constant 0 : index
    %359 = vector.load %arg6[%c2_288, %c0_289, %c0_290] : memref<9x16x8xbf16, #tpu.memory_space<vmem>>, vector<1x16x8xbf16>
    %360 = vector.shape_cast %359 : vector<1x16x8xbf16> to vector<16x8xbf16>
    %361 = arith.truncf %358 : vector<8x900xf32> to vector<8x900xbf16>
    %cst_291 = arith.constant dense<0.000000e+00> : vector<16x900xf32>
    %362 = tpu.matmul %360, %361, %cst_291 {dimension_numbers = #tpu.dot_dimension_numbers<[1], [0], [0], [1], [0, 0, 1, 1], [], []>} : vector<16x8xbf16>, vector<8x900xbf16>, vector<16x900xf32> -> vector<16x900xf32>
    %363 = arith.addf %356, %362 : vector<16x900xf32>
    %c0_292 = arith.constant 0 : index
    %c0_293 = arith.constant 0 : index
    %c30_294 = arith.constant 30 : index
    %364 = vector.load %arg14[%c0_292, %c0_293, %c30_294] : memref<2x8x962xf32, #tpu.memory_space<vmem>>, vector<1x8x900xf32>
    %365 = vector.shape_cast %364 : vector<1x8x900xf32> to vector<8x900xf32>
    %c3_295 = arith.constant 3 : index
    %c0_296 = arith.constant 0 : index
    %c0_297 = arith.constant 0 : index
    %366 = vector.load %arg6[%c3_295, %c0_296, %c0_297] : memref<9x16x8xbf16, #tpu.memory_space<vmem>>, vector<1x16x8xbf16>
    %367 = vector.shape_cast %366 : vector<1x16x8xbf16> to vector<16x8xbf16>
    %368 = arith.truncf %365 : vector<8x900xf32> to vector<8x900xbf16>
    %cst_298 = arith.constant dense<0.000000e+00> : vector<16x900xf32>
    %369 = tpu.matmul %367, %368, %cst_298 {dimension_numbers = #tpu.dot_dimension_numbers<[1], [0], [0], [1], [0, 0, 1, 1], [], []>} : vector<16x8xbf16>, vector<8x900xbf16>, vector<16x900xf32> -> vector<16x900xf32>
    %370 = arith.addf %363, %369 : vector<16x900xf32>
    %c0_299 = arith.constant 0 : index
    %c0_300 = arith.constant 0 : index
    %c31_301 = arith.constant 31 : index
    %371 = vector.load %arg14[%c0_299, %c0_300, %c31_301] : memref<2x8x962xf32, #tpu.memory_space<vmem>>, vector<1x8x900xf32>
    %372 = vector.shape_cast %371 : vector<1x8x900xf32> to vector<8x900xf32>
    %c4_302 = arith.constant 4 : index
    %c0_303 = arith.constant 0 : index
    %c0_304 = arith.constant 0 : index
    %373 = vector.load %arg6[%c4_302, %c0_303, %c0_304] : memref<9x16x8xbf16, #tpu.memory_space<vmem>>, vector<1x16x8xbf16>
    %374 = vector.shape_cast %373 : vector<1x16x8xbf16> to vector<16x8xbf16>
    %375 = arith.truncf %372 : vector<8x900xf32> to vector<8x900xbf16>
    %cst_305 = arith.constant dense<0.000000e+00> : vector<16x900xf32>
    %376 = tpu.matmul %374, %375, %cst_305 {dimension_numbers = #tpu.dot_dimension_numbers<[1], [0], [0], [1], [0, 0, 1, 1], [], []>} : vector<16x8xbf16>, vector<8x900xbf16>, vector<16x900xf32> -> vector<16x900xf32>
    %377 = arith.addf %370, %376 : vector<16x900xf32>
    %c0_306 = arith.constant 0 : index
    %c0_307 = arith.constant 0 : index
    %c32_308 = arith.constant 32 : index
    %378 = vector.load %arg14[%c0_306, %c0_307, %c32_308] : memref<2x8x962xf32, #tpu.memory_space<vmem>>, vector<1x8x900xf32>
    %379 = vector.shape_cast %378 : vector<1x8x900xf32> to vector<8x900xf32>
    %c5_309 = arith.constant 5 : index
    %c0_310 = arith.constant 0 : index
    %c0_311 = arith.constant 0 : index
    %380 = vector.load %arg6[%c5_309, %c0_310, %c0_311] : memref<9x16x8xbf16, #tpu.memory_space<vmem>>, vector<1x16x8xbf16>
    %381 = vector.shape_cast %380 : vector<1x16x8xbf16> to vector<16x8xbf16>
    %382 = arith.truncf %379 : vector<8x900xf32> to vector<8x900xbf16>
    %cst_312 = arith.constant dense<0.000000e+00> : vector<16x900xf32>
    %383 = tpu.matmul %381, %382, %cst_312 {dimension_numbers = #tpu.dot_dimension_numbers<[1], [0], [0], [1], [0, 0, 1, 1], [], []>} : vector<16x8xbf16>, vector<8x900xbf16>, vector<16x900xf32> -> vector<16x900xf32>
    %384 = arith.addf %377, %383 : vector<16x900xf32>
    %c0_313 = arith.constant 0 : index
    %c0_314 = arith.constant 0 : index
    %c60_315 = arith.constant 60 : index
    %385 = vector.load %arg14[%c0_313, %c0_314, %c60_315] : memref<2x8x962xf32, #tpu.memory_space<vmem>>, vector<1x8x900xf32>
    %386 = vector.shape_cast %385 : vector<1x8x900xf32> to vector<8x900xf32>
    %c6_316 = arith.constant 6 : index
    %c0_317 = arith.constant 0 : index
    %c0_318 = arith.constant 0 : index
    %387 = vector.load %arg6[%c6_316, %c0_317, %c0_318] : memref<9x16x8xbf16, #tpu.memory_space<vmem>>, vector<1x16x8xbf16>
    %388 = vector.shape_cast %387 : vector<1x16x8xbf16> to vector<16x8xbf16>
    %389 = arith.truncf %386 : vector<8x900xf32> to vector<8x900xbf16>
    %cst_319 = arith.constant dense<0.000000e+00> : vector<16x900xf32>
    %390 = tpu.matmul %388, %389, %cst_319 {dimension_numbers = #tpu.dot_dimension_numbers<[1], [0], [0], [1], [0, 0, 1, 1], [], []>} : vector<16x8xbf16>, vector<8x900xbf16>, vector<16x900xf32> -> vector<16x900xf32>
    %391 = arith.addf %384, %390 : vector<16x900xf32>
    %c0_320 = arith.constant 0 : index
    %c0_321 = arith.constant 0 : index
    %c61_322 = arith.constant 61 : index
    %392 = vector.load %arg14[%c0_320, %c0_321, %c61_322] : memref<2x8x962xf32, #tpu.memory_space<vmem>>, vector<1x8x900xf32>
    %393 = vector.shape_cast %392 : vector<1x8x900xf32> to vector<8x900xf32>
    %c7_323 = arith.constant 7 : index
    %c0_324 = arith.constant 0 : index
    %c0_325 = arith.constant 0 : index
    %394 = vector.load %arg6[%c7_323, %c0_324, %c0_325] : memref<9x16x8xbf16, #tpu.memory_space<vmem>>, vector<1x16x8xbf16>
    %395 = vector.shape_cast %394 : vector<1x16x8xbf16> to vector<16x8xbf16>
    %396 = arith.truncf %393 : vector<8x900xf32> to vector<8x900xbf16>
    %cst_326 = arith.constant dense<0.000000e+00> : vector<16x900xf32>
    %397 = tpu.matmul %395, %396, %cst_326 {dimension_numbers = #tpu.dot_dimension_numbers<[1], [0], [0], [1], [0, 0, 1, 1], [], []>} : vector<16x8xbf16>, vector<8x900xbf16>, vector<16x900xf32> -> vector<16x900xf32>
    %398 = arith.addf %391, %397 : vector<16x900xf32>
    %c0_327 = arith.constant 0 : index
    %c0_328 = arith.constant 0 : index
    %c62_329 = arith.constant 62 : index
    %399 = vector.load %arg14[%c0_327, %c0_328, %c62_329] : memref<2x8x962xf32, #tpu.memory_space<vmem>>, vector<1x8x900xf32>
    %400 = vector.shape_cast %399 : vector<1x8x900xf32> to vector<8x900xf32>
    %c8_330 = arith.constant 8 : index
    %c0_331 = arith.constant 0 : index
    %c0_332 = arith.constant 0 : index
    %401 = vector.load %arg6[%c8_330, %c0_331, %c0_332] : memref<9x16x8xbf16, #tpu.memory_space<vmem>>, vector<1x16x8xbf16>
    %402 = vector.shape_cast %401 : vector<1x16x8xbf16> to vector<16x8xbf16>
    %403 = arith.truncf %400 : vector<8x900xf32> to vector<8x900xbf16>
    %cst_333 = arith.constant dense<0.000000e+00> : vector<16x900xf32>
    %404 = tpu.matmul %402, %403, %cst_333 {dimension_numbers = #tpu.dot_dimension_numbers<[1], [0], [0], [1], [0, 0, 1, 1], [], []>} : vector<16x8xbf16>, vector<8x900xbf16>, vector<16x900xf32> -> vector<16x900xf32>
    %405 = arith.addf %398, %404 : vector<16x900xf32>
    %406 = vector.broadcast %339 : vector<16x1xf32> to vector<16x900xf32>
    %407 = arith.addf %405, %406 : vector<16x900xf32>
    %cst_334 = arith.constant 0.000000e+00 : f32
    %408 = vector.broadcast %cst_334 : f32 to vector<16x900xf32>
    %409 = arith.maximumf %407, %408 : vector<16x900xf32>
    %410 = vector.broadcast %340 : vector<16x1xf32> to vector<16x900xf32>
    %411 = arith.mulf %409, %410 : vector<16x900xf32>
    %412 = vector.broadcast %341 : vector<16x1xf32> to vector<16x900xf32>
    %413 = arith.addf %411, %412 : vector<16x900xf32>
    %414 = vector.broadcast %0 : vector<1x900xf32> to vector<16x900xf32>
    %415 = arith.mulf %413, %414 : vector<16x900xf32>
    %c0_335 = arith.constant 0 : index
    %c0_336 = arith.constant 0 : index
    %c31_337 = arith.constant 31 : index
    %416 = vector.load %arg15[%c0_335, %c0_336, %c31_337] : memref<2x16x962xf32, #tpu.memory_space<vmem>>, vector<1x16x900xf32>
    %417 = vector.shape_cast %416 : vector<1x16x900xf32> to vector<16x900xf32>
    %418 = vector.shape_cast %415 : vector<16x900xf32> to vector<1x16x900xf32>
    tpu.vector_store %arg15[%c0_335, %c0_336, %c31_337], %418 {strides = array<i32>} : memref<2x16x962xf32, #tpu.memory_space<vmem>>, vector<1x16x900xf32>,
    %cst_338 = arith.constant 0.000000e+00 : f32
    %419 = vector.broadcast %cst_338 : f32 to vector<16x900xf32>
    %c1_339 = arith.constant 1 : index
    %c0_340 = arith.constant 0 : index
    %c0_341 = arith.constant 0 : index
    %420 = vector.load %arg14[%c1_339, %c0_340, %c0_341] : memref<2x8x962xf32, #tpu.memory_space<vmem>>, vector<1x8x900xf32>
    %421 = vector.shape_cast %420 : vector<1x8x900xf32> to vector<8x900xf32>
    %c0_342 = arith.constant 0 : index
    %c0_343 = arith.constant 0 : index
    %c0_344 = arith.constant 0 : index
    %422 = vector.load %arg6[%c0_342, %c0_343, %c0_344] : memref<9x16x8xbf16, #tpu.memory_space<vmem>>, vector<1x16x8xbf16>
    %423 = vector.shape_cast %422 : vector<1x16x8xbf16> to vector<16x8xbf16>
    %424 = arith.truncf %421 : vector<8x900xf32> to vector<8x900xbf16>
    %cst_345 = arith.constant dense<0.000000e+00> : vector<16x900xf32>
    %425 = tpu.matmul %423, %424, %cst_345 {dimension_numbers = #tpu.dot_dimension_numbers<[1], [0], [0], [1], [0, 0, 1, 1], [], []>} : vector<16x8xbf16>, vector<8x900xbf16>, vector<16x900xf32> -> vector<16x900xf32>
    %426 = arith.addf %419, %425 : vector<16x900xf32>
    %c1_346 = arith.constant 1 : index
    %c0_347 = arith.constant 0 : index
    %c1_348 = arith.constant 1 : index
    %427 = vector.load %arg14[%c1_346, %c0_347, %c1_348] : memref<2x8x962xf32, #tpu.memory_space<vmem>>, vector<1x8x900xf32>
    %428 = vector.shape_cast %427 : vector<1x8x900xf32> to vector<8x900xf32>
    %c1_349 = arith.constant 1 : index
    %c0_350 = arith.constant 0 : index
    %c0_351 = arith.constant 0 : index
    %429 = vector.load %arg6[%c1_349, %c0_350, %c0_351] : memref<9x16x8xbf16, #tpu.memory_space<vmem>>, vector<1x16x8xbf16>
    %430 = vector.shape_cast %429 : vector<1x16x8xbf16> to vector<16x8xbf16>
    %431 = arith.truncf %428 : vector<8x900xf32> to vector<8x900xbf16>
    %cst_352 = arith.constant dense<0.000000e+00> : vector<16x900xf32>
    %432 = tpu.matmul %430, %431, %cst_352 {dimension_numbers = #tpu.dot_dimension_numbers<[1], [0], [0], [1], [0, 0, 1, 1], [], []>} : vector<16x8xbf16>, vector<8x900xbf16>, vector<16x900xf32> -> vector<16x900xf32>
    %433 = arith.addf %426, %432 : vector<16x900xf32>
    %c1_353 = arith.constant 1 : index
    %c0_354 = arith.constant 0 : index
    %c2_355 = arith.constant 2 : index
    %434 = vector.load %arg14[%c1_353, %c0_354, %c2_355] : memref<2x8x962xf32, #tpu.memory_space<vmem>>, vector<1x8x900xf32>
    %435 = vector.shape_cast %434 : vector<1x8x900xf32> to vector<8x900xf32>
    %c2_356 = arith.constant 2 : index
    %c0_357 = arith.constant 0 : index
    %c0_358 = arith.constant 0 : index
    %436 = vector.load %arg6[%c2_356, %c0_357, %c0_358] : memref<9x16x8xbf16, #tpu.memory_space<vmem>>, vector<1x16x8xbf16>
    %437 = vector.shape_cast %436 : vector<1x16x8xbf16> to vector<16x8xbf16>
    %438 = arith.truncf %435 : vector<8x900xf32> to vector<8x900xbf16>
    %cst_359 = arith.constant dense<0.000000e+00> : vector<16x900xf32>
    %439 = tpu.matmul %437, %438, %cst_359 {dimension_numbers = #tpu.dot_dimension_numbers<[1], [0], [0], [1], [0, 0, 1, 1], [], []>} : vector<16x8xbf16>, vector<8x900xbf16>, vector<16x900xf32> -> vector<16x900xf32>
    %440 = arith.addf %433, %439 : vector<16x900xf32>
    %c1_360 = arith.constant 1 : index
    %c0_361 = arith.constant 0 : index
    %c30_362 = arith.constant 30 : index
    %441 = vector.load %arg14[%c1_360, %c0_361, %c30_362] : memref<2x8x962xf32, #tpu.memory_space<vmem>>, vector<1x8x900xf32>
    %442 = vector.shape_cast %441 : vector<1x8x900xf32> to vector<8x900xf32>
    %c3_363 = arith.constant 3 : index
    %c0_364 = arith.constant 0 : index
    %c0_365 = arith.constant 0 : index
    %443 = vector.load %arg6[%c3_363, %c0_364, %c0_365] : memref<9x16x8xbf16, #tpu.memory_space<vmem>>, vector<1x16x8xbf16>
    %444 = vector.shape_cast %443 : vector<1x16x8xbf16> to vector<16x8xbf16>
    %445 = arith.truncf %442 : vector<8x900xf32> to vector<8x900xbf16>
    %cst_366 = arith.constant dense<0.000000e+00> : vector<16x900xf32>
    %446 = tpu.matmul %444, %445, %cst_366 {dimension_numbers = #tpu.dot_dimension_numbers<[1], [0], [0], [1], [0, 0, 1, 1], [], []>} : vector<16x8xbf16>, vector<8x900xbf16>, vector<16x900xf32> -> vector<16x900xf32>
    %447 = arith.addf %440, %446 : vector<16x900xf32>
    %c1_367 = arith.constant 1 : index
    %c0_368 = arith.constant 0 : index
    %c31_369 = arith.constant 31 : index
    %448 = vector.load %arg14[%c1_367, %c0_368, %c31_369] : memref<2x8x962xf32, #tpu.memory_space<vmem>>, vector<1x8x900xf32>
    %449 = vector.shape_cast %448 : vector<1x8x900xf32> to vector<8x900xf32>
    %c4_370 = arith.constant 4 : index
    %c0_371 = arith.constant 0 : index
    %c0_372 = arith.constant 0 : index
    %450 = vector.load %arg6[%c4_370, %c0_371, %c0_372] : memref<9x16x8xbf16, #tpu.memory_space<vmem>>, vector<1x16x8xbf16>
    %451 = vector.shape_cast %450 : vector<1x16x8xbf16> to vector<16x8xbf16>
    %452 = arith.truncf %449 : vector<8x900xf32> to vector<8x900xbf16>
    %cst_373 = arith.constant dense<0.000000e+00> : vector<16x900xf32>
    %453 = tpu.matmul %451, %452, %cst_373 {dimension_numbers = #tpu.dot_dimension_numbers<[1], [0], [0], [1], [0, 0, 1, 1], [], []>} : vector<16x8xbf16>, vector<8x900xbf16>, vector<16x900xf32> -> vector<16x900xf32>
    %454 = arith.addf %447, %453 : vector<16x900xf32>
    %c1_374 = arith.constant 1 : index
    %c0_375 = arith.constant 0 : index
    %c32_376 = arith.constant 32 : index
    %455 = vector.load %arg14[%c1_374, %c0_375, %c32_376] : memref<2x8x962xf32, #tpu.memory_space<vmem>>, vector<1x8x900xf32>
    %456 = vector.shape_cast %455 : vector<1x8x900xf32> to vector<8x900xf32>
    %c5_377 = arith.constant 5 : index
    %c0_378 = arith.constant 0 : index
    %c0_379 = arith.constant 0 : index
    %457 = vector.load %arg6[%c5_377, %c0_378, %c0_379] : memref<9x16x8xbf16, #tpu.memory_space<vmem>>, vector<1x16x8xbf16>
    %458 = vector.shape_cast %457 : vector<1x16x8xbf16> to vector<16x8xbf16>
    %459 = arith.truncf %456 : vector<8x900xf32> to vector<8x900xbf16>
    %cst_380 = arith.constant dense<0.000000e+00> : vector<16x900xf32>
    %460 = tpu.matmul %458, %459, %cst_380 {dimension_numbers = #tpu.dot_dimension_numbers<[1], [0], [0], [1], [0, 0, 1, 1], [], []>} : vector<16x8xbf16>, vector<8x900xbf16>, vector<16x900xf32> -> vector<16x900xf32>
    %461 = arith.addf %454, %460 : vector<16x900xf32>
    %c1_381 = arith.constant 1 : index
    %c0_382 = arith.constant 0 : index
    %c60_383 = arith.constant 60 : index
    %462 = vector.load %arg14[%c1_381, %c0_382, %c60_383] : memref<2x8x962xf32, #tpu.memory_space<vmem>>, vector<1x8x900xf32>
    %463 = vector.shape_cast %462 : vector<1x8x900xf32> to vector<8x900xf32>
    %c6_384 = arith.constant 6 : index
    %c0_385 = arith.constant 0 : index
    %c0_386 = arith.constant 0 : index
    %464 = vector.load %arg6[%c6_384, %c0_385, %c0_386] : memref<9x16x8xbf16, #tpu.memory_space<vmem>>, vector<1x16x8xbf16>
    %465 = vector.shape_cast %464 : vector<1x16x8xbf16> to vector<16x8xbf16>
    %466 = arith.truncf %463 : vector<8x900xf32> to vector<8x900xbf16>
    %cst_387 = arith.constant dense<0.000000e+00> : vector<16x900xf32>
    %467 = tpu.matmul %465, %466, %cst_387 {dimension_numbers = #tpu.dot_dimension_numbers<[1], [0], [0], [1], [0, 0, 1, 1], [], []>} : vector<16x8xbf16>, vector<8x900xbf16>, vector<16x900xf32> -> vector<16x900xf32>
    %468 = arith.addf %461, %467 : vector<16x900xf32>
    %c1_388 = arith.constant 1 : index
    %c0_389 = arith.constant 0 : index
    %c61_390 = arith.constant 61 : index
    %469 = vector.load %arg14[%c1_388, %c0_389, %c61_390] : memref<2x8x962xf32, #tpu.memory_space<vmem>>, vector<1x8x900xf32>
    %470 = vector.shape_cast %469 : vector<1x8x900xf32> to vector<8x900xf32>
    %c7_391 = arith.constant 7 : index
    %c0_392 = arith.constant 0 : index
    %c0_393 = arith.constant 0 : index
    %471 = vector.load %arg6[%c7_391, %c0_392, %c0_393] : memref<9x16x8xbf16, #tpu.memory_space<vmem>>, vector<1x16x8xbf16>
    %472 = vector.shape_cast %471 : vector<1x16x8xbf16> to vector<16x8xbf16>
    %473 = arith.truncf %470 : vector<8x900xf32> to vector<8x900xbf16>
    %cst_394 = arith.constant dense<0.000000e+00> : vector<16x900xf32>
    %474 = tpu.matmul %472, %473, %cst_394 {dimension_numbers = #tpu.dot_dimension_numbers<[1], [0], [0], [1], [0, 0, 1, 1], [], []>} : vector<16x8xbf16>, vector<8x900xbf16>, vector<16x900xf32> -> vector<16x900xf32>
    %475 = arith.addf %468, %474 : vector<16x900xf32>
    %c1_395 = arith.constant 1 : index
    %c0_396 = arith.constant 0 : index
    %c62_397 = arith.constant 62 : index
    %476 = vector.load %arg14[%c1_395, %c0_396, %c62_397] : memref<2x8x962xf32, #tpu.memory_space<vmem>>, vector<1x8x900xf32>
    %477 = vector.shape_cast %476 : vector<1x8x900xf32> to vector<8x900xf32>
    %c8_398 = arith.constant 8 : index
    %c0_399 = arith.constant 0 : index
    %c0_400 = arith.constant 0 : index
    %478 = vector.load %arg6[%c8_398, %c0_399, %c0_400] : memref<9x16x8xbf16, #tpu.memory_space<vmem>>, vector<1x16x8xbf16>
    %479 = vector.shape_cast %478 : vector<1x16x8xbf16> to vector<16x8xbf16>
    %480 = arith.truncf %477 : vector<8x900xf32> to vector<8x900xbf16>
    %cst_401 = arith.constant dense<0.000000e+00> : vector<16x900xf32>
    %481 = tpu.matmul %479, %480, %cst_401 {dimension_numbers = #tpu.dot_dimension_numbers<[1], [0], [0], [1], [0, 0, 1, 1], [], []>} : vector<16x8xbf16>, vector<8x900xbf16>, vector<16x900xf32> -> vector<16x900xf32>
    %482 = arith.addf %475, %481 : vector<16x900xf32>
    %483 = vector.broadcast %339 : vector<16x1xf32> to vector<16x900xf32>
    %484 = arith.addf %482, %483 : vector<16x900xf32>
    %cst_402 = arith.constant 0.000000e+00 : f32
    %485 = vector.broadcast %cst_402 : f32 to vector<16x900xf32>
    %486 = arith.maximumf %484, %485 : vector<16x900xf32>
    %487 = vector.broadcast %340 : vector<16x1xf32> to vector<16x900xf32>
    %488 = arith.mulf %486, %487 : vector<16x900xf32>
    %489 = vector.broadcast %341 : vector<16x1xf32> to vector<16x900xf32>
    %490 = arith.addf %488, %489 : vector<16x900xf32>
    %491 = vector.broadcast %0 : vector<1x900xf32> to vector<16x900xf32>
    %492 = arith.mulf %490, %491 : vector<16x900xf32>
    %c1_403 = arith.constant 1 : index
    %c0_404 = arith.constant 0 : index
    %c31_405 = arith.constant 31 : index
    %493 = vector.load %arg15[%c1_403, %c0_404, %c31_405] : memref<2x16x962xf32, #tpu.memory_space<vmem>>, vector<1x16x900xf32>
    %494 = vector.shape_cast %493 : vector<1x16x900xf32> to vector<16x900xf32>
    %495 = vector.shape_cast %492 : vector<16x900xf32> to vector<1x16x900xf32>
    tpu.vector_store %arg15[%c1_403, %c0_404, %c31_405], %495 {strides = array<i32>} : memref<2x16x962xf32, #tpu.memory_space<vmem>>, vector<1x16x900xf32>,
    %c0_406 = arith.constant 0 : index
    %c0_407 = arith.constant 0 : index
    %496 = vector.load %arg9[%c0_406, %c0_407] : memref<2x1xf32, #tpu.memory_space<vmem>>, vector<2x1xf32>
    %cst_408 = arith.constant 0.000000e+00 : f32
    %497 = vector.broadcast %cst_408 : f32 to vector<2x900xf32>
    %c0_409 = arith.constant 0 : index
    %c0_410 = arith.constant 0 : index
    %c0_411 = arith.constant 0 : index
    %498 = vector.load %arg15[%c0_409, %c0_410, %c0_411] : memref<2x16x962xf32, #tpu.memory_space<vmem>>, vector<1x16x900xf32>
    %499 = vector.shape_cast %498 : vector<1x16x900xf32> to vector<16x900xf32>
    %c0_412 = arith.constant 0 : index
    %c0_413 = arith.constant 0 : index
    %c0_414 = arith.constant 0 : index
    %500 = vector.load %arg8[%c0_412, %c0_413, %c0_414] : memref<9x2x16xbf16, #tpu.memory_space<vmem>>, vector<1x2x16xbf16>
    %501 = vector.shape_cast %500 : vector<1x2x16xbf16> to vector<2x16xbf16>
    %502 = arith.truncf %499 : vector<16x900xf32> to vector<16x900xbf16>
    %cst_415 = arith.constant dense<0.000000e+00> : vector<2x900xf32>
    %503 = tpu.matmul %501, %502, %cst_415 {dimension_numbers = #tpu.dot_dimension_numbers<[1], [0], [0], [1], [0, 0, 1, 1], [], []>} : vector<2x16xbf16>, vector<16x900xbf16>, vector<2x900xf32> -> vector<2x900xf32>
    %504 = arith.addf %497, %503 : vector<2x900xf32>
    %c0_416 = arith.constant 0 : index
    %c0_417 = arith.constant 0 : index
    %c1_418 = arith.constant 1 : index
    %505 = vector.load %arg15[%c0_416, %c0_417, %c1_418] : memref<2x16x962xf32, #tpu.memory_space<vmem>>, vector<1x16x900xf32>
    %506 = vector.shape_cast %505 : vector<1x16x900xf32> to vector<16x900xf32>
    %c1_419 = arith.constant 1 : index
    %c0_420 = arith.constant 0 : index
    %c0_421 = arith.constant 0 : index
    %507 = vector.load %arg8[%c1_419, %c0_420, %c0_421] : memref<9x2x16xbf16, #tpu.memory_space<vmem>>, vector<1x2x16xbf16>
    %508 = vector.shape_cast %507 : vector<1x2x16xbf16> to vector<2x16xbf16>
    %509 = arith.truncf %506 : vector<16x900xf32> to vector<16x900xbf16>
    %cst_422 = arith.constant dense<0.000000e+00> : vector<2x900xf32>
    %510 = tpu.matmul %508, %509, %cst_422 {dimension_numbers = #tpu.dot_dimension_numbers<[1], [0], [0], [1], [0, 0, 1, 1], [], []>} : vector<2x16xbf16>, vector<16x900xbf16>, vector<2x900xf32> -> vector<2x900xf32>
    %511 = arith.addf %504, %510 : vector<2x900xf32>
    %c0_423 = arith.constant 0 : index
    %c0_424 = arith.constant 0 : index
    %c2_425 = arith.constant 2 : index
    %512 = vector.load %arg15[%c0_423, %c0_424, %c2_425] : memref<2x16x962xf32, #tpu.memory_space<vmem>>, vector<1x16x900xf32>
    %513 = vector.shape_cast %512 : vector<1x16x900xf32> to vector<16x900xf32>
    %c2_426 = arith.constant 2 : index
    %c0_427 = arith.constant 0 : index
    %c0_428 = arith.constant 0 : index
    %514 = vector.load %arg8[%c2_426, %c0_427, %c0_428] : memref<9x2x16xbf16, #tpu.memory_space<vmem>>, vector<1x2x16xbf16>
    %515 = vector.shape_cast %514 : vector<1x2x16xbf16> to vector<2x16xbf16>
    %516 = arith.truncf %513 : vector<16x900xf32> to vector<16x900xbf16>
    %cst_429 = arith.constant dense<0.000000e+00> : vector<2x900xf32>
    %517 = tpu.matmul %515, %516, %cst_429 {dimension_numbers = #tpu.dot_dimension_numbers<[1], [0], [0], [1], [0, 0, 1, 1], [], []>} : vector<2x16xbf16>, vector<16x900xbf16>, vector<2x900xf32> -> vector<2x900xf32>
    %518 = arith.addf %511, %517 : vector<2x900xf32>
    %c0_430 = arith.constant 0 : index
    %c0_431 = arith.constant 0 : index
    %c30_432 = arith.constant 30 : index
    %519 = vector.load %arg15[%c0_430, %c0_431, %c30_432] : memref<2x16x962xf32, #tpu.memory_space<vmem>>, vector<1x16x900xf32>
    %520 = vector.shape_cast %519 : vector<1x16x900xf32> to vector<16x900xf32>
    %c3_433 = arith.constant 3 : index
    %c0_434 = arith.constant 0 : index
    %c0_435 = arith.constant 0 : index
    %521 = vector.load %arg8[%c3_433, %c0_434, %c0_435] : memref<9x2x16xbf16, #tpu.memory_space<vmem>>, vector<1x2x16xbf16>
    %522 = vector.shape_cast %521 : vector<1x2x16xbf16> to vector<2x16xbf16>
    %523 = arith.truncf %520 : vector<16x900xf32> to vector<16x900xbf16>
    %cst_436 = arith.constant dense<0.000000e+00> : vector<2x900xf32>
    %524 = tpu.matmul %522, %523, %cst_436 {dimension_numbers = #tpu.dot_dimension_numbers<[1], [0], [0], [1], [0, 0, 1, 1], [], []>} : vector<2x16xbf16>, vector<16x900xbf16>, vector<2x900xf32> -> vector<2x900xf32>
    %525 = arith.addf %518, %524 : vector<2x900xf32>
    %c0_437 = arith.constant 0 : index
    %c0_438 = arith.constant 0 : index
    %c31_439 = arith.constant 31 : index
    %526 = vector.load %arg15[%c0_437, %c0_438, %c31_439] : memref<2x16x962xf32, #tpu.memory_space<vmem>>, vector<1x16x900xf32>
    %527 = vector.shape_cast %526 : vector<1x16x900xf32> to vector<16x900xf32>
    %c4_440 = arith.constant 4 : index
    %c0_441 = arith.constant 0 : index
    %c0_442 = arith.constant 0 : index
    %528 = vector.load %arg8[%c4_440, %c0_441, %c0_442] : memref<9x2x16xbf16, #tpu.memory_space<vmem>>, vector<1x2x16xbf16>
    %529 = vector.shape_cast %528 : vector<1x2x16xbf16> to vector<2x16xbf16>
    %530 = arith.truncf %527 : vector<16x900xf32> to vector<16x900xbf16>
    %cst_443 = arith.constant dense<0.000000e+00> : vector<2x900xf32>
    %531 = tpu.matmul %529, %530, %cst_443 {dimension_numbers = #tpu.dot_dimension_numbers<[1], [0], [0], [1], [0, 0, 1, 1], [], []>} : vector<2x16xbf16>, vector<16x900xbf16>, vector<2x900xf32> -> vector<2x900xf32>
    %532 = arith.addf %525, %531 : vector<2x900xf32>
    %c0_444 = arith.constant 0 : index
    %c0_445 = arith.constant 0 : index
    %c32_446 = arith.constant 32 : index
    %533 = vector.load %arg15[%c0_444, %c0_445, %c32_446] : memref<2x16x962xf32, #tpu.memory_space<vmem>>, vector<1x16x900xf32>
    %534 = vector.shape_cast %533 : vector<1x16x900xf32> to vector<16x900xf32>
    %c5_447 = arith.constant 5 : index
    %c0_448 = arith.constant 0 : index
    %c0_449 = arith.constant 0 : index
    %535 = vector.load %arg8[%c5_447, %c0_448, %c0_449] : memref<9x2x16xbf16, #tpu.memory_space<vmem>>, vector<1x2x16xbf16>
    %536 = vector.shape_cast %535 : vector<1x2x16xbf16> to vector<2x16xbf16>
    %537 = arith.truncf %534 : vector<16x900xf32> to vector<16x900xbf16>
    %cst_450 = arith.constant dense<0.000000e+00> : vector<2x900xf32>
    %538 = tpu.matmul %536, %537, %cst_450 {dimension_numbers = #tpu.dot_dimension_numbers<[1], [0], [0], [1], [0, 0, 1, 1], [], []>} : vector<2x16xbf16>, vector<16x900xbf16>, vector<2x900xf32> -> vector<2x900xf32>
    %539 = arith.addf %532, %538 : vector<2x900xf32>
    %c0_451 = arith.constant 0 : index
    %c0_452 = arith.constant 0 : index
    %c60_453 = arith.constant 60 : index
    %540 = vector.load %arg15[%c0_451, %c0_452, %c60_453] : memref<2x16x962xf32, #tpu.memory_space<vmem>>, vector<1x16x900xf32>
    %541 = vector.shape_cast %540 : vector<1x16x900xf32> to vector<16x900xf32>
    %c6_454 = arith.constant 6 : index
    %c0_455 = arith.constant 0 : index
    %c0_456 = arith.constant 0 : index
    %542 = vector.load %arg8[%c6_454, %c0_455, %c0_456] : memref<9x2x16xbf16, #tpu.memory_space<vmem>>, vector<1x2x16xbf16>
    %543 = vector.shape_cast %542 : vector<1x2x16xbf16> to vector<2x16xbf16>
    %544 = arith.truncf %541 : vector<16x900xf32> to vector<16x900xbf16>
    %cst_457 = arith.constant dense<0.000000e+00> : vector<2x900xf32>
    %545 = tpu.matmul %543, %544, %cst_457 {dimension_numbers = #tpu.dot_dimension_numbers<[1], [0], [0], [1], [0, 0, 1, 1], [], []>} : vector<2x16xbf16>, vector<16x900xbf16>, vector<2x900xf32> -> vector<2x900xf32>
    %546 = arith.addf %539, %545 : vector<2x900xf32>
    %c0_458 = arith.constant 0 : index
    %c0_459 = arith.constant 0 : index
    %c61_460 = arith.constant 61 : index
    %547 = vector.load %arg15[%c0_458, %c0_459, %c61_460] : memref<2x16x962xf32, #tpu.memory_space<vmem>>, vector<1x16x900xf32>
    %548 = vector.shape_cast %547 : vector<1x16x900xf32> to vector<16x900xf32>
    %c7_461 = arith.constant 7 : index
    %c0_462 = arith.constant 0 : index
    %c0_463 = arith.constant 0 : index
    %549 = vector.load %arg8[%c7_461, %c0_462, %c0_463] : memref<9x2x16xbf16, #tpu.memory_space<vmem>>, vector<1x2x16xbf16>
    %550 = vector.shape_cast %549 : vector<1x2x16xbf16> to vector<2x16xbf16>
    %551 = arith.truncf %548 : vector<16x900xf32> to vector<16x900xbf16>
    %cst_464 = arith.constant dense<0.000000e+00> : vector<2x900xf32>
    %552 = tpu.matmul %550, %551, %cst_464 {dimension_numbers = #tpu.dot_dimension_numbers<[1], [0], [0], [1], [0, 0, 1, 1], [], []>} : vector<2x16xbf16>, vector<16x900xbf16>, vector<2x900xf32> -> vector<2x900xf32>
    %553 = arith.addf %546, %552 : vector<2x900xf32>
    %c0_465 = arith.constant 0 : index
    %c0_466 = arith.constant 0 : index
    %c62_467 = arith.constant 62 : index
    %554 = vector.load %arg15[%c0_465, %c0_466, %c62_467] : memref<2x16x962xf32, #tpu.memory_space<vmem>>, vector<1x16x900xf32>
    %555 = vector.shape_cast %554 : vector<1x16x900xf32> to vector<16x900xf32>
    %c8_468 = arith.constant 8 : index
    %c0_469 = arith.constant 0 : index
    %c0_470 = arith.constant 0 : index
    %556 = vector.load %arg8[%c8_468, %c0_469, %c0_470] : memref<9x2x16xbf16, #tpu.memory_space<vmem>>, vector<1x2x16xbf16>
    %557 = vector.shape_cast %556 : vector<1x2x16xbf16> to vector<2x16xbf16>
    %558 = arith.truncf %555 : vector<16x900xf32> to vector<16x900xbf16>
    %cst_471 = arith.constant dense<0.000000e+00> : vector<2x900xf32>
    %559 = tpu.matmul %557, %558, %cst_471 {dimension_numbers = #tpu.dot_dimension_numbers<[1], [0], [0], [1], [0, 0, 1, 1], [], []>} : vector<2x16xbf16>, vector<16x900xbf16>, vector<2x900xf32> -> vector<2x900xf32>
    %560 = arith.addf %553, %559 : vector<2x900xf32>
    %561 = vector.broadcast %496 : vector<2x1xf32> to vector<2x900xf32>
    %562 = arith.addf %560, %561 : vector<2x900xf32>
    %cst_472 = arith.constant 0.000000e+00 : f32
    %563 = vector.broadcast %cst_472 : f32 to vector<2x900xf32>
    %564 = arith.maximumf %562, %563 : vector<2x900xf32>
    %cst_473 = arith.constant 0.000000e+00 : f32
    %565 = vector.broadcast %cst_473 : f32 to vector<2x900xf32>
    %c1_474 = arith.constant 1 : index
    %c0_475 = arith.constant 0 : index
    %c0_476 = arith.constant 0 : index
    %566 = vector.load %arg15[%c1_474, %c0_475, %c0_476] : memref<2x16x962xf32, #tpu.memory_space<vmem>>, vector<1x16x900xf32>
    %567 = vector.shape_cast %566 : vector<1x16x900xf32> to vector<16x900xf32>
    %c0_477 = arith.constant 0 : index
    %c0_478 = arith.constant 0 : index
    %c0_479 = arith.constant 0 : index
    %568 = vector.load %arg8[%c0_477, %c0_478, %c0_479] : memref<9x2x16xbf16, #tpu.memory_space<vmem>>, vector<1x2x16xbf16>
    %569 = vector.shape_cast %568 : vector<1x2x16xbf16> to vector<2x16xbf16>
    %570 = arith.truncf %567 : vector<16x900xf32> to vector<16x900xbf16>
    %cst_480 = arith.constant dense<0.000000e+00> : vector<2x900xf32>
    %571 = tpu.matmul %569, %570, %cst_480 {dimension_numbers = #tpu.dot_dimension_numbers<[1], [0], [0], [1], [0, 0, 1, 1], [], []>} : vector<2x16xbf16>, vector<16x900xbf16>, vector<2x900xf32> -> vector<2x900xf32>
    %572 = arith.addf %565, %571 : vector<2x900xf32>
    %c1_481 = arith.constant 1 : index
    %c0_482 = arith.constant 0 : index
    %c1_483 = arith.constant 1 : index
    %573 = vector.load %arg15[%c1_481, %c0_482, %c1_483] : memref<2x16x962xf32, #tpu.memory_space<vmem>>, vector<1x16x900xf32>
    %574 = vector.shape_cast %573 : vector<1x16x900xf32> to vector<16x900xf32>
    %c1_484 = arith.constant 1 : index
    %c0_485 = arith.constant 0 : index
    %c0_486 = arith.constant 0 : index
    %575 = vector.load %arg8[%c1_484, %c0_485, %c0_486] : memref<9x2x16xbf16, #tpu.memory_space<vmem>>, vector<1x2x16xbf16>
    %576 = vector.shape_cast %575 : vector<1x2x16xbf16> to vector<2x16xbf16>
    %577 = arith.truncf %574 : vector<16x900xf32> to vector<16x900xbf16>
    %cst_487 = arith.constant dense<0.000000e+00> : vector<2x900xf32>
    %578 = tpu.matmul %576, %577, %cst_487 {dimension_numbers = #tpu.dot_dimension_numbers<[1], [0], [0], [1], [0, 0, 1, 1], [], []>} : vector<2x16xbf16>, vector<16x900xbf16>, vector<2x900xf32> -> vector<2x900xf32>
    %579 = arith.addf %572, %578 : vector<2x900xf32>
    %c1_488 = arith.constant 1 : index
    %c0_489 = arith.constant 0 : index
    %c2_490 = arith.constant 2 : index
    %580 = vector.load %arg15[%c1_488, %c0_489, %c2_490] : memref<2x16x962xf32, #tpu.memory_space<vmem>>, vector<1x16x900xf32>
    %581 = vector.shape_cast %580 : vector<1x16x900xf32> to vector<16x900xf32>
    %c2_491 = arith.constant 2 : index
    %c0_492 = arith.constant 0 : index
    %c0_493 = arith.constant 0 : index
    %582 = vector.load %arg8[%c2_491, %c0_492, %c0_493] : memref<9x2x16xbf16, #tpu.memory_space<vmem>>, vector<1x2x16xbf16>
    %583 = vector.shape_cast %582 : vector<1x2x16xbf16> to vector<2x16xbf16>
    %584 = arith.truncf %581 : vector<16x900xf32> to vector<16x900xbf16>
    %cst_494 = arith.constant dense<0.000000e+00> : vector<2x900xf32>
    %585 = tpu.matmul %583, %584, %cst_494 {dimension_numbers = #tpu.dot_dimension_numbers<[1], [0], [0], [1], [0, 0, 1, 1], [], []>} : vector<2x16xbf16>, vector<16x900xbf16>, vector<2x900xf32> -> vector<2x900xf32>
    %586 = arith.addf %579, %585 : vector<2x900xf32>
    %c1_495 = arith.constant 1 : index
    %c0_496 = arith.constant 0 : index
    %c30_497 = arith.constant 30 : index
    %587 = vector.load %arg15[%c1_495, %c0_496, %c30_497] : memref<2x16x962xf32, #tpu.memory_space<vmem>>, vector<1x16x900xf32>
    %588 = vector.shape_cast %587 : vector<1x16x900xf32> to vector<16x900xf32>
    %c3_498 = arith.constant 3 : index
    %c0_499 = arith.constant 0 : index
    %c0_500 = arith.constant 0 : index
    %589 = vector.load %arg8[%c3_498, %c0_499, %c0_500] : memref<9x2x16xbf16, #tpu.memory_space<vmem>>, vector<1x2x16xbf16>
    %590 = vector.shape_cast %589 : vector<1x2x16xbf16> to vector<2x16xbf16>
    %591 = arith.truncf %588 : vector<16x900xf32> to vector<16x900xbf16>
    %cst_501 = arith.constant dense<0.000000e+00> : vector<2x900xf32>
    %592 = tpu.matmul %590, %591, %cst_501 {dimension_numbers = #tpu.dot_dimension_numbers<[1], [0], [0], [1], [0, 0, 1, 1], [], []>} : vector<2x16xbf16>, vector<16x900xbf16>, vector<2x900xf32> -> vector<2x900xf32>
    %593 = arith.addf %586, %592 : vector<2x900xf32>
    %c1_502 = arith.constant 1 : index
    %c0_503 = arith.constant 0 : index
    %c31_504 = arith.constant 31 : index
    %594 = vector.load %arg15[%c1_502, %c0_503, %c31_504] : memref<2x16x962xf32, #tpu.memory_space<vmem>>, vector<1x16x900xf32>
    %595 = vector.shape_cast %594 : vector<1x16x900xf32> to vector<16x900xf32>
    %c4_505 = arith.constant 4 : index
    %c0_506 = arith.constant 0 : index
    %c0_507 = arith.constant 0 : index
    %596 = vector.load %arg8[%c4_505, %c0_506, %c0_507] : memref<9x2x16xbf16, #tpu.memory_space<vmem>>, vector<1x2x16xbf16>
    %597 = vector.shape_cast %596 : vector<1x2x16xbf16> to vector<2x16xbf16>
    %598 = arith.truncf %595 : vector<16x900xf32> to vector<16x900xbf16>
    %cst_508 = arith.constant dense<0.000000e+00> : vector<2x900xf32>
    %599 = tpu.matmul %597, %598, %cst_508 {dimension_numbers = #tpu.dot_dimension_numbers<[1], [0], [0], [1], [0, 0, 1, 1], [], []>} : vector<2x16xbf16>, vector<16x900xbf16>, vector<2x900xf32> -> vector<2x900xf32>
    %600 = arith.addf %593, %599 : vector<2x900xf32>
    %c1_509 = arith.constant 1 : index
    %c0_510 = arith.constant 0 : index
    %c32_511 = arith.constant 32 : index
    %601 = vector.load %arg15[%c1_509, %c0_510, %c32_511] : memref<2x16x962xf32, #tpu.memory_space<vmem>>, vector<1x16x900xf32>
    %602 = vector.shape_cast %601 : vector<1x16x900xf32> to vector<16x900xf32>
    %c5_512 = arith.constant 5 : index
    %c0_513 = arith.constant 0 : index
    %c0_514 = arith.constant 0 : index
    %603 = vector.load %arg8[%c5_512, %c0_513, %c0_514] : memref<9x2x16xbf16, #tpu.memory_space<vmem>>, vector<1x2x16xbf16>
    %604 = vector.shape_cast %603 : vector<1x2x16xbf16> to vector<2x16xbf16>
    %605 = arith.truncf %602 : vector<16x900xf32> to vector<16x900xbf16>
    %cst_515 = arith.constant dense<0.000000e+00> : vector<2x900xf32>
    %606 = tpu.matmul %604, %605, %cst_515 {dimension_numbers = #tpu.dot_dimension_numbers<[1], [0], [0], [1], [0, 0, 1, 1], [], []>} : vector<2x16xbf16>, vector<16x900xbf16>, vector<2x900xf32> -> vector<2x900xf32>
    %607 = arith.addf %600, %606 : vector<2x900xf32>
    %c1_516 = arith.constant 1 : index
    %c0_517 = arith.constant 0 : index
    %c60_518 = arith.constant 60 : index
    %608 = vector.load %arg15[%c1_516, %c0_517, %c60_518] : memref<2x16x962xf32, #tpu.memory_space<vmem>>, vector<1x16x900xf32>
    %609 = vector.shape_cast %608 : vector<1x16x900xf32> to vector<16x900xf32>
    %c6_519 = arith.constant 6 : index
    %c0_520 = arith.constant 0 : index
    %c0_521 = arith.constant 0 : index
    %610 = vector.load %arg8[%c6_519, %c0_520, %c0_521] : memref<9x2x16xbf16, #tpu.memory_space<vmem>>, vector<1x2x16xbf16>
    %611 = vector.shape_cast %610 : vector<1x2x16xbf16> to vector<2x16xbf16>
    %612 = arith.truncf %609 : vector<16x900xf32> to vector<16x900xbf16>
    %cst_522 = arith.constant dense<0.000000e+00> : vector<2x900xf32>
    %613 = tpu.matmul %611, %612, %cst_522 {dimension_numbers = #tpu.dot_dimension_numbers<[1], [0], [0], [1], [0, 0, 1, 1], [], []>} : vector<2x16xbf16>, vector<16x900xbf16>, vector<2x900xf32> -> vector<2x900xf32>
    %614 = arith.addf %607, %613 : vector<2x900xf32>
    %c1_523 = arith.constant 1 : index
    %c0_524 = arith.constant 0 : index
    %c61_525 = arith.constant 61 : index
    %615 = vector.load %arg15[%c1_523, %c0_524, %c61_525] : memref<2x16x962xf32, #tpu.memory_space<vmem>>, vector<1x16x900xf32>
    %616 = vector.shape_cast %615 : vector<1x16x900xf32> to vector<16x900xf32>
    %c7_526 = arith.constant 7 : index
    %c0_527 = arith.constant 0 : index
    %c0_528 = arith.constant 0 : index
    %617 = vector.load %arg8[%c7_526, %c0_527, %c0_528] : memref<9x2x16xbf16, #tpu.memory_space<vmem>>, vector<1x2x16xbf16>
    %618 = vector.shape_cast %617 : vector<1x2x16xbf16> to vector<2x16xbf16>
    %619 = arith.truncf %616 : vector<16x900xf32> to vector<16x900xbf16>
    %cst_529 = arith.constant dense<0.000000e+00> : vector<2x900xf32>
    %620 = tpu.matmul %618, %619, %cst_529 {dimension_numbers = #tpu.dot_dimension_numbers<[1], [0], [0], [1], [0, 0, 1, 1], [], []>} : vector<2x16xbf16>, vector<16x900xbf16>, vector<2x900xf32> -> vector<2x900xf32>
    %621 = arith.addf %614, %620 : vector<2x900xf32>
    %c1_530 = arith.constant 1 : index
    %c0_531 = arith.constant 0 : index
    %c62_532 = arith.constant 62 : index
    %622 = vector.load %arg15[%c1_530, %c0_531, %c62_532] : memref<2x16x962xf32, #tpu.memory_space<vmem>>, vector<1x16x900xf32>
    %623 = vector.shape_cast %622 : vector<1x16x900xf32> to vector<16x900xf32>
    %c8_533 = arith.constant 8 : index
    %c0_534 = arith.constant 0 : index
    %c0_535 = arith.constant 0 : index
    %624 = vector.load %arg8[%c8_533, %c0_534, %c0_535] : memref<9x2x16xbf16, #tpu.memory_space<vmem>>, vector<1x2x16xbf16>
    %625 = vector.shape_cast %624 : vector<1x2x16xbf16> to vector<2x16xbf16>
    %626 = arith.truncf %623 : vector<16x900xf32> to vector<16x900xbf16>
    %cst_536 = arith.constant dense<0.000000e+00> : vector<2x900xf32>
    %627 = tpu.matmul %625, %626, %cst_536 {dimension_numbers = #tpu.dot_dimension_numbers<[1], [0], [0], [1], [0, 0, 1, 1], [], []>} : vector<2x16xbf16>, vector<16x900xbf16>, vector<2x900xf32> -> vector<2x900xf32>
    %628 = arith.addf %621, %627 : vector<2x900xf32>
    %629 = vector.broadcast %496 : vector<2x1xf32> to vector<2x900xf32>
    %630 = arith.addf %628, %629 : vector<2x900xf32>
    %cst_537 = arith.constant 0.000000e+00 : f32
    %631 = vector.broadcast %cst_537 : f32 to vector<2x900xf32>
    %632 = arith.maximumf %630, %631 : vector<2x900xf32>
    %c0_538 = arith.constant 0 : index
    %c0_539 = arith.constant 0 : index
    %633 = vector.load %arg11[%c0_538, %c0_539] : memref<1x128xf32, #tpu.memory_space<vmem>>, vector<1x128xf32>
    %634 = vector.extract_strided_slice %564 {offsets = [0, 0], sizes = [1, 900], strides = [1, 1]} : vector<2x900xf32> to vector<1x900xf32>
    %635 = vector.extract_strided_slice %632 {offsets = [0, 0], sizes = [1, 900], strides = [1, 1]} : vector<2x900xf32> to vector<1x900xf32>
    %636 = tpu.concatenate %634, %635 in 0 : vector<1x900xf32>, vector<1x900xf32> -> vector<2x900xf32>
    %637 = arith.truncf %636 : vector<2x900xf32> to vector<2x900xbf16>
    %c0_540 = arith.constant 0 : index
    %c0_541 = arith.constant 0 : index
    %c0_542 = arith.constant 0 : index
    %638 = vector.load %arg10[%c0_540, %c0_541, %c0_542] : memref<2x900x128xbf16, #tpu.memory_space<vmem>>, vector<1x900x128xbf16>
    %639 = vector.shape_cast %638 : vector<1x900x128xbf16> to vector<900x128xbf16>
    %cst_543 = arith.constant dense<0.000000e+00> : vector<2x128xf32>
    %640 = tpu.matmul %637, %639, %cst_543 {dimension_numbers = #tpu.dot_dimension_numbers<[1], [0], [0], [1], [0, 0, 1, 1], [], []>} : vector<2x900xbf16>, vector<900x128xbf16>, vector<2x128xf32> -> vector<2x128xf32>
    %641 = vector.broadcast %633 : vector<1x128xf32> to vector<2x128xf32>
    %642 = arith.addf %641, %640 : vector<2x128xf32>
    %643 = vector.extract_strided_slice %564 {offsets = [1, 0], sizes = [1, 900], strides = [1, 1]} : vector<2x900xf32> to vector<1x900xf32>
    %644 = vector.extract_strided_slice %632 {offsets = [1, 0], sizes = [1, 900], strides = [1, 1]} : vector<2x900xf32> to vector<1x900xf32>
    %645 = tpu.concatenate %643, %644 in 0 : vector<1x900xf32>, vector<1x900xf32> -> vector<2x900xf32>
    %646 = arith.truncf %645 : vector<2x900xf32> to vector<2x900xbf16>
    %c1_544 = arith.constant 1 : index
    %c0_545 = arith.constant 0 : index
    %c0_546 = arith.constant 0 : index
    %647 = vector.load %arg10[%c1_544, %c0_545, %c0_546] : memref<2x900x128xbf16, #tpu.memory_space<vmem>>, vector<1x900x128xbf16>
    %648 = vector.shape_cast %647 : vector<1x900x128xbf16> to vector<900x128xbf16>
    %cst_547 = arith.constant dense<0.000000e+00> : vector<2x128xf32>
    %649 = tpu.matmul %646, %648, %cst_547 {dimension_numbers = #tpu.dot_dimension_numbers<[1], [0], [0], [1], [0, 0, 1, 1], [], []>} : vector<2x900xbf16>, vector<900x128xbf16>, vector<2x128xf32> -> vector<2x128xf32>
    %650 = arith.addf %642, %649 : vector<2x128xf32>
    %c0_548 = arith.constant 0 : index
    %c0_549 = arith.constant 0 : index
    %651 = vector.load %arg12[%c0_548, %c0_549] : memref<2x128xf32, #tpu.memory_space<vmem>>, vector<2x128xf32>
    tpu.vector_store %arg12[%c0_548, %c0_549], %650 {strides = array<i32>} : memref<2x128xf32, #tpu.memory_space<vmem>>, vector<2x128xf32>,
    return
  }
}

</mosaic_0001>

<bundles_post_ra>
// kernel: _lambda_.1
= control target key start
LH: loop header
LB: loop body
LE: loop exit
PB: predicated region body
PF: predicated region fallthrough
CT: control target
= control target key end

     0   :  { %17 = vsyncpa [#allocation6], 0  ;;  %s21427_s0 = inlined_call_operand.vmem [shape: f32[2,1,962], index: 0, kind: input, shape index: {}]   ;;  %s21428_s1 = inlined_call_operand.vmem [shape: f32[1,900], index: 1, kind: input, shape index: {}]   ;;  %s21429_s2 = inlined_call_operand.vmem [shape: f32[9,4,1], index: 2, kind: input, shape index: {}]   ;;  %s21430_s3 = inlined_call_operand.vmem [shape: f32[4,3], index: 3, kind: input, shape index: {}]   ;;  %s21431_s4 = inlined_call_operand.vmem [shape: bf16[9,8,4], index: 4, kind: input, shape index: {}]   ;;  %s21432_s5 = inlined_call_operand.vmem [shape: f32[8,3], index: 5, kind: input, shape index: {}]   ;;  %s21433_s6 = inlined_call_operand.vmem [shape: bf16[9,16,8], index: 6, kind: input, shape index: {}]   ;;  %s21434_s7 = inlined_call_operand.vmem [shape: f32[16,3], index: 7, kind: input, shape index: {}]   ;;  %s21435_s8 = inlined_call_operand.vmem [shape: bf16[9,2,16], index: 8, kind: input, shape index: {}]   ;;  %s21436_s9 = inlined_call_operand.vmem [shape: f32[2,1], index: 9, kind: input, shape index: {}]   ;;  %s21437_s10 = inlined_call_operand.hbm [shape: bf16[2,900,128], index: 10, kind: input, shape index: {}]   ;;  %s21438_s11 = inlined_call_operand.vmem [shape: f32[1,128], index: 11, kind: input, shape index: {}]   ;;  %s21439_s12 = inlined_call_operand.hbm [shape: f32[2,128], index: 12, kind: output, shape index: {}]  }
   0x1   :  { %18 = vsyncpa [#allocation7], 0  ;;  %s17078_s21 = smov [#allocation5]   ;;  %s17030_s25 = scalar_lea.hbm %s21437_s10, 14464 }
   0x2   :  { %s44_s22 = sshll.u32 %s17078_s21, 4  ;;  %p17031_p0 = scmp.ne.s32.totalorder %s21437_s10, %s17030_s25  ;;  %s45_s22 = int_to_ptr.vmem [resolvable:$true] %s44_s22 }
   0x3   :  { %p17034_p1 = scmp.lt.u32.totalorder %s17030_s25, %s21437_s10 }
   0x5   :  { %p17036_p2 = pnand %p17034_p1, %p17031_p0 }
   0x7   :  { %17039 = shalt.err (!%p17036_p2)
}
   0x8   :  { %s17040_s30 = scalar_lea.vmem %s45_s22, 14464  ;;  %p17045_p4 = scmp.lt.s32.totalorder %s45_s22, %s45_s22 }
   0x9   :  { %p17041_p3 = scmp.ne.s32.totalorder %s45_s22, %s17040_s30  ;;  %p17046_p5 = scmp.lt.s32.totalorder %s17040_s30, %s17040_s30 }
   0xb   :  { %p17047_p6 = por %p17046_p5, %p17045_p4 }
   0xd   :  { %p17048_p7 = pnand %p17047_p6, %p17041_p3 }
   0xf   :  { %17051 = shalt.err (!%p17048_p7)
}
  0x10   :  { %s17079_s13 = smov 64   ;;  %s17080_s14 = smov 4  }
  0x11   :  { %50 = dma.hbm_to_vmem [thread:$0]  %s21437_s10, 14464, %s45_s22, [#allocation6], %s17079_s13, %s17079_s13, %s17080_s14  }
  0x12   :  { %17074 = dma.done.wait [#allocation6], 14464  }
  0x13   :  { %17075 = vsyncadd [#allocation6], 4294952832  ;;  %v21443_v0 = vmov 0   ;;  %v15899_v1 = vld [vmem:[%s21429_s2 + $0x4] sm:$0xf]  ;;  %v21440_v5 = vmov 1   ;;  %v127_v11 = vlaneseq }
  0x14   :  { %16879 = vset.pattern.permute.xlu0 %v21443_v0  ;;  %16880 = vset.pattern.permute.xlu1 %v21443_v0  ;;  %v15901_v2 = vld [vmem:[%s21429_s2 + $0xc] sm:$0xf]  ;;  %v17185_v3 = vld [vmem:[%s21430_s3] sm:$0xf]  ;;  %v15902_v4 = vld [vmem:[%s21429_s2 + $0x10] sm:$0xf] }
  0x15   :  { %1579 = vmatprep.mubr.bf16.mxu0 %v21443_v0  ;;  %1620 = vmatprep.mubr.bf16.mxu1 %v21443_v0  ;;  %v15904_v6 = vld [vmem:[%s21429_s2 + $0x18] sm:$0xf]  ;;  %v15900_v7 = vld [vmem:[%s21429_s2 + $0x8] sm:$0xf]  ;;  %v15906_v8 = vld [vmem:[%s21429_s2 + $0x20] sm:$0xf] }
  0x16   :  { %187 = vperm.xlu0 %16879, %v15899_v1   ;;  %313 = vperm.xlu1 %16880, %v15901_v2   ;;  %v15903_v9 = vld [vmem:[%s21429_s2 + $0x14] sm:$0xf]  ;;  %v15905_v10 = vld [vmem:[%s21429_s2 + $0x1c] sm:$0xf]  ;;  %v17209_v12 = vshrl.u32 %v127_v11, 7  ;;  %v17220_v15 = vld [vmem:[%s21427_s0] sm:$0xff] }
  0x17   :  { %v21441_v20 = vmov 2   ;;  %s17084_s17 = smov 127   ;;  %s17085_s18 = smov 126   ;;  %vm222_vm0 = vcmask 1039360   ;;  %vm285_vm1 = vcmask 1031168   ;;  %vm348_vm2 = vcmask 801792  }
  0x18   :  { %v17212_v13 = vsub.s32 1, %v17209_v12  ;;  %v17215_v14 = vsub.s32 0, %v17209_v12  ;;  %v17231_v18 = vsub.s32 3, %v17209_v12  ;;  %v17234_v19 = vsub.s32 2, %v17209_v12  ;;  %s17086_s19 = smov 98   ;;  %s17087_s20 = smov 97  }
  0x19   :  { %v17240_v22 = vsub.s32 5, %v17209_v12  ;;  %v17243_v23 = vsub.s32 4, %v17209_v12  ;;  %v17260_v28 = vsub.s32 6, %v17209_v12  ;;  %v17347_v58 = vsub.s32 7, %v17209_v12  ;;  %s17088_s10 = smov 96   ;;  %s17089_s21 = smov 68  }
  0x1a   :  { %16881 = vset.pattern.permute.xlu0 %v21440_v5  ;;  %376 = vperm.xlu1 %16880, %v15902_v4   ;;  %21514 = vst [vmem:[#allocation11_spill] sm:$0xff] %v17212_v13  ;;  %21515 = vst [vmem:[#allocation12_spill] sm:$0xff] %v17215_v14  ;;  %v17224_v16 = vrot.slane %v17220_v15, %v17212_v13  ;;  %v17228_v17 = vrot.slane %v17220_v15, %v17215_v14  ;;  %s17090_s22 = smov 67   ;;  %s17091_s23 = smov 66   ;;  %vm411_vm3 = vcmask 793600   ;;  %vm474_vm4 = vcmask 785408  }
  0x1b   :  { %708 = vperm.xlu0 %16881, %v17185_v3   ;;  %21516 = vst [vmem:[#allocation13_spill] sm:$0xff] %v17231_v18  ;;  %21517 = vst [vmem:[#allocation14_spill] sm:$0xff] %v17234_v19  ;;  %v17251_v26 = vrot.slane %v17220_v15, %v17231_v18  ;;  %v17255_v27 = vrot.slane %v17220_v15, %v17234_v19  ;;  %v17270_v32 = vrot.slane %v17220_v15, %v17240_v22  ;;  %vm537_vm5 = vcmask 556032  }
  0x1c   :  { %21518 = vst [vmem:[#allocation15_spill] sm:$0xff] %v17240_v22  ;;  %21519 = vst [vmem:[#allocation16_spill] sm:$0xff] %v17243_v23  ;;  %v17274_v33 = vrot.slane %v17220_v15, %v17243_v23  ;;  %v17284_v36 = vrot.slane %v17220_v15, %v17260_v28  ;;  %v17357_v61 = vrot.slane %v17220_v15, %v17347_v58  ;;  %vm600_vm6 = vcmask 547840  }
  0x1d   :  { %21520 = vst [vmem:[#allocation17_spill] sm:$0xff] %v17260_v28  ;;  %21522 = vst [vmem:[#allocation19_spill] sm:$0xff] %v17347_v58  ;;  %vm76_vm7 = vcmask 539648   ;;  %vm61_vm8 = vcmask 1043456   ;;  %vm62_vm9 = vcmask 539652   ;;  %vm816_vm11 = vcmask 1043704  }
  0x1e   :  { %502 = vperm.xlu1 %16880, %v15904_v6   ;;  %vm63_vm10 = vmor %vm62_vm9, %vm61_vm8  ;;  %vm817_vm12 = vcmask 1047556   ;;  %vm804_vm13 = vcmask 252928   ;;  %vm822_vm15 = vcmask 285700  }
  0x1f   :  { %16882 = vset.pattern.permute.xlu0 %v21443_v0  ;;  %vm18196_vm14 = vmor %vm817_vm12, %vm816_vm11  ;;  %vm1518_vm11 = vcmask 31744   ;;  %vm3793_vm12 = vcmask 1047800  }
  0x20   :  { %250 = vperm.xlu0 %16882, %v15900_v7   ;;  %vm18212_vm9 = vmor %vm822_vm15, %vm61_vm8  ;;  %vm6174_vm15 = vcmask 64512  }
  0x22   :  { %628 = vperm.xlu1 %16880, %v15906_v8  }
  0x24   :  { %439 = vperm.xlu0 %16882, %v15903_v9  }
  0x26   :  { %688 = vperm.xlu1 %16880, %v17185_v3  }
  0x28   :  { %565 = vperm.xlu0 %16882, %v15905_v10  }
  0x2a   :  { %16883 = vset.pattern.permute.xlu1 %v21441_v20 }
  0x95   :  { %v17237_v21 = vpop.permute.xlu0 %187  ;;  %v17312_v46 = vpop.permute.xlu1 %313 }
  0x96   :  { %v191_v24 = vmul.f32 %v17237_v21, %v17224_v16  ;;  %v190_v25 = vmul.f32 %v17237_v21, %v17228_v17  ;;  %v193_v30 = vmul.f32 %v17237_v21, %v17251_v26  ;;  %v192_v31 = vmul.f32 %v17237_v21, %v17255_v27 }
  0x97   :  { %v195_v34 = vmul.f32 %v17237_v21, %v17270_v32  ;;  %v194_v35 = vmul.f32 %v17237_v21, %v17274_v33  ;;  %v196_v39 = vmul.f32 %v17237_v21, %v17284_v36  ;;  %v317_v47 = vmul.f32 %v17312_v46, %v17224_v16 }
  0x98   :  { %208 = vrot.lane.b32.xlu0 %v191_v24, %s17084_s17  ;;  %206 = vrot.lane.b32.xlu1 %v190_v25, %s17084_s17  ;;  %v316_v48 = vmul.f32 %v17312_v46, %v17228_v17  ;;  %v319_v49 = vmul.f32 %v17312_v46, %v17251_v26  ;;  %v318_v50 = vmul.f32 %v17312_v46, %v17255_v27 }
  0x99   :  { %v321_v51 = vmul.f32 %v17312_v46, %v17270_v32  ;;  %v320_v52 = vmul.f32 %v17312_v46, %v17274_v33  ;;  %v17334_v53 = vpop.permute.xlu1 %376  ;;  %v322_v55 = vmul.f32 %v17312_v46, %v17284_v36  ;;  %v197_v63 = vmul.f32 %v17237_v21, %v17357_v61 }
  0x9a   :  { %v17262_v29 = vpop.permute.xlu0 %708  ;;  %v379_v54 = vmul.f32 %v17334_v53, %v17228_v17  ;;  %v381_v56 = vmul.f32 %v17334_v53, %v17255_v27  ;;  %v380_v57 = vmul.f32 %v17334_v53, %v17224_v16  ;;  %v383_v59 = vmul.f32 %v17334_v53, %v17274_v33 }
  0x9b   :  { %21521 = vst [vmem:[#allocation18_spill] sm:$0xff] %v17262_v29  ;;  %v382_v60 = vmul.f32 %v17334_v53, %v17251_v26  ;;  %v384_v62 = vmul.f32 %v17334_v53, %v17270_v32  ;;  %v385_v4 = vmul.f32 %v17334_v53, %v17284_v36 }
  0x9c   :  { %212 = vrot.lane.b32.xlu0 %v193_v30, %s17084_s17  ;;  %210 = vrot.lane.b32.xlu1 %v192_v31, %s17084_s17 }
  0x9d   :  { %v17393_v12 = vpop.permute.xlu1 %502 }
  0x9e   :  { %v505_v15 = vmul.f32 %v17393_v12, %v17228_v17  ;;  %v507_v24 = vmul.f32 %v17393_v12, %v17255_v27  ;;  %v506_v25 = vmul.f32 %v17393_v12, %v17224_v16  ;;  %v509_v30 = vmul.f32 %v17393_v12, %v17274_v33 }
  0x9f   :  { %v17286_v37 = vpop.permute.xlu0 %250  ;;  %v508_v31 = vmul.f32 %v17393_v12, %v17251_v26 }
  0xa0   :  { %216 = vrot.lane.b32.xlu0 %v195_v34, %s17084_s17  ;;  %214 = vrot.lane.b32.xlu1 %v194_v35, %s17084_s17  ;;  %v253_v38 = vmul.f32 %v17286_v37, %v17228_v17  ;;  %v255_v40 = vmul.f32 %v17286_v37, %v17255_v27  ;;  %v254_v41 = vmul.f32 %v17286_v37, %v17224_v16 }
  0xa1   :  { %v257_v42 = vmul.f32 %v17286_v37, %v17274_v33  ;;  %v256_v43 = vmul.f32 %v17286_v37, %v17251_v26  ;;  %v259_v44 = vmul.f32 %v17286_v37, %v17284_v36  ;;  %v258_v45 = vmul.f32 %v17286_v37, %v17270_v32 }
  0xa2   :  { %v260_v11 = vmul.f32 %v17286_v37, %v17357_v61  ;;  %v323_v34 = vmul.f32 %v17312_v46, %v17357_v61  ;;  %v510_v35 = vmul.f32 %v17393_v12, %v17270_v32  ;;  %v629_v46 = vpop.permute.xlu1 %628 }
  0xa3   :  { %v17367_v1 = vpop.permute.xlu0 %439 }
  0xa4   :  { %269 = vrot.lane.b32.xlu0 %v253_v38, %s17085_s18  ;;  %218 = vrot.lane.b32.xlu1 %v196_v39, %s17084_s17  ;;  %v442_v2 = vmul.f32 %v17367_v1, %v17228_v17  ;;  %v444_v6 = vmul.f32 %v17367_v1, %v17255_v27  ;;  %v443_v7 = vmul.f32 %v17367_v1, %v17224_v16 }
  0xa5   :  { %v446_v8 = vmul.f32 %v17367_v1, %v17274_v33  ;;  %v445_v9 = vmul.f32 %v17367_v1, %v17251_v26  ;;  %v447_v10 = vmul.f32 %v17367_v1, %v17270_v32  ;;  %v448_v21 = vmul.f32 %v17367_v1, %v17284_v36 }
  0xa6   :  { %v511_v38 = vmul.f32 %v17393_v12, %v17284_v36 }
  0xa7   :  { %v566_v37 = vpop.permute.xlu0 %565 }
  0xa8   :  { %273 = vrot.lane.b32.xlu0 %v255_v40, %s17085_s18  ;;  %271 = vrot.lane.b32.xlu1 %v254_v41, %s17085_s18  ;;  %v568_v39 = vmul.f32 %v566_v37, %v17228_v17  ;;  %v569_v40 = vmul.f32 %v566_v37, %v17224_v16  ;;  %v570_v41 = vmul.f32 %v566_v37, %v17255_v27 }
  0xac   :  { %277 = vrot.lane.b32.xlu0 %v257_v42, %s17085_s18  ;;  %275 = vrot.lane.b32.xlu1 %v256_v43, %s17085_s18  ;;  %v571_v42 = vmul.f32 %v566_v37, %v17251_v26  ;;  %v572_v43 = vmul.f32 %v566_v37, %v17274_v33 }
  0xb0   :  { %281 = vrot.lane.b32.xlu0 %v259_v44, %s17085_s18  ;;  %279 = vrot.lane.b32.xlu1 %v258_v45, %s17085_s18  ;;  %v386_v44 = vmul.f32 %v17334_v53, %v17357_v61  ;;  %v573_v45 = vmul.f32 %v566_v37, %v17270_v32  ;;  %v635_v53 = vmul.f32 %v629_v46, %v17274_v33 }
  0xb4   :  { %334 = vrot.lane.b32.xlu0 %v317_v47, %s17086_s19  ;;  %332 = vrot.lane.b32.xlu1 %v316_v48, %s17086_s19  ;;  %v574_v47 = vmul.f32 %v566_v37, %v17284_v36  ;;  %v631_v48 = vmul.f32 %v629_v46, %v17228_v17 }
  0xb8   :  { %338 = vrot.lane.b32.xlu0 %v319_v49, %s17086_s19  ;;  %336 = vrot.lane.b32.xlu1 %v318_v50, %s17086_s19  ;;  %v632_v49 = vmul.f32 %v629_v46, %v17224_v16  ;;  %v633_v50 = vmul.f32 %v629_v46, %v17255_v27 }
  0xbc   :  { %342 = vrot.lane.b32.xlu0 %v321_v51, %s17086_s19  ;;  %340 = vrot.lane.b32.xlu1 %v320_v52, %s17086_s19  ;;  %v17445_v51 = vpop.permute.xlu1 %688  ;;  %v634_v52 = vmul.f32 %v629_v46, %v17251_v26 }
  0xbd   :  { %21523 = vst [vmem:[#allocation20_spill] sm:$0xff] %v17445_v51 }
  0xc0   :  { %395 = vrot.lane.b32.xlu0 %v379_v54, %s17087_s20  ;;  %344 = vrot.lane.b32.xlu1 %v322_v55, %s17086_s19  ;;  %v120_v54 = vld [vmem:[%s21429_s2] sm:$0xf] }
  0xc4   :  { %399 = vrot.lane.b32.xlu0 %v381_v56, %s17087_s20  ;;  %397 = vrot.lane.b32.xlu1 %v380_v57, %s17087_s20  ;;  %v449_v57 = vmul.f32 %v17367_v1, %v17357_v61  ;;  %v512_v1 = vmul.f32 %v17393_v12, %v17357_v61 }
  0xc8   :  { %403 = vrot.lane.b32.xlu0 %v383_v59, %s17087_s20  ;;  %401 = vrot.lane.b32.xlu1 %v382_v60, %s17087_s20 }
  0xcc   :  { %405 = vrot.lane.b32.xlu0 %v384_v62, %s17087_s20  ;;  %220 = vrot.lane.b32.xlu1 %v197_v63, %s17084_s17  ;;  %v637_v62 = vmul.f32 %v629_v46, %v17284_v36  ;;  %v636_v63 = vmul.f32 %v629_v46, %v17270_v32 }
  0xd0   :  { %458 = vrot.lane.b32.xlu0 %v442_v2, %s17088_s10  ;;  %407 = vrot.lane.b32.xlu1 %v385_v4, %s17087_s20 }
  0xd4   :  { %462 = vrot.lane.b32.xlu0 %v444_v6, %s17088_s10  ;;  %460 = vrot.lane.b32.xlu1 %v443_v7, %s17088_s10 }
  0xd8   :  { %466 = vrot.lane.b32.xlu0 %v446_v8, %s17088_s10  ;;  %464 = vrot.lane.b32.xlu1 %v445_v9, %s17088_s10  ;;  %v638_v8 = vmul.f32 %v629_v46, %v17357_v61  ;;  %v575_v9 = vmul.f32 %v566_v37, %v17357_v61  ;;  %v827_v37 = vld [vmem:[%s21429_s2] sm:$0xf] }
  0xdc   :  { %468 = vrot.lane.b32.xlu0 %v447_v10, %s17088_s10  ;;  %283 = vrot.lane.b32.xlu1 %v260_v11, %s17085_s18  ;;  %v15909_v10 = vld [vmem:[%s21429_s2 + $0x8] sm:$0xf] }
  0xe0   :  { %521 = vrot.lane.b32.xlu0 %v505_v15, %s17089_s21  ;;  %470 = vrot.lane.b32.xlu1 %v448_v21, %s17088_s10  ;;  %v15912_v15 = vld [vmem:[%s21429_s2 + $0x14] sm:$0xf]  ;;  %v15910_v21 = vld [vmem:[%s21429_s2 + $0xc] sm:$0xf] }
  0xe4   :  { %525 = vrot.lane.b32.xlu0 %v507_v24, %s17089_s21  ;;  %523 = vrot.lane.b32.xlu1 %v506_v25, %s17089_s21 }
  0xe8   :  { %529 = vrot.lane.b32.xlu0 %v509_v30, %s17089_s21  ;;  %527 = vrot.lane.b32.xlu1 %v508_v31, %s17089_s21  ;;  %v15915_v30 = vld [vmem:[%s21429_s2 + $0x20] sm:$0xf]  ;;  %v15911_v31 = vld [vmem:[%s21429_s2 + $0x10] sm:$0xf] }
  0xec   :  { %346 = vrot.lane.b32.xlu0 %v323_v34, %s17086_s19  ;;  %531 = vrot.lane.b32.xlu1 %v510_v35, %s17089_s21 }
  0xf0   :  { %533 = vrot.lane.b32.xlu0 %v511_v38, %s17089_s21  ;;  %584 = vrot.lane.b32.xlu1 %v568_v39, %s17090_s22  ;;  %v15913_v38 = vld [vmem:[%s21429_s2 + $0x18] sm:$0xf] }
  0xf4   :  { %586 = vrot.lane.b32.xlu0 %v569_v40, %s17090_s22  ;;  %588 = vrot.lane.b32.xlu1 %v570_v41, %s17090_s22  ;;  %v15914_v41 = vld [vmem:[%s21429_s2 + $0x1c] sm:$0xf] }
  0xf8   :  { %590 = vrot.lane.b32.xlu0 %v571_v42, %s17090_s22  ;;  %592 = vrot.lane.b32.xlu1 %v572_v43, %s17090_s22 }
  0xfc   :  { %409 = vrot.lane.b32.xlu0 %v386_v44, %s17087_s20  ;;  %594 = vrot.lane.b32.xlu1 %v573_v45, %s17090_s22 }
 0x100   :  { %596 = vrot.lane.b32.xlu0 %v574_v47, %s17090_s22  ;;  %647 = vrot.lane.b32.xlu1 %v631_v48, %s17091_s23 }
 0x104   :  { %649 = vrot.lane.b32.xlu0 %v632_v49, %s17091_s23  ;;  %651 = vrot.lane.b32.xlu1 %v633_v50, %s17091_s23 }
 0x108   :  { %653 = vrot.lane.b32.xlu0 %v634_v52, %s17091_s23  ;;  %655 = vrot.lane.b32.xlu1 %v635_v53, %s17091_s23 }
 0x10a   :  { %v17454_v55 = vpop.permute.xlu0 %208  ;;  %v17456_v56 = vpop.permute.xlu1 %206 }
 0x10c   :  { %123 = vperm.xlu0 %16882, %v120_v54   ;;  %472 = vrot.lane.b32.xlu1 %v449_v57, %s17088_s10 }
 0x10e   :  { %v17461_v59 = vpop.permute.xlu0 %212  ;;  %v17463_v60 = vpop.permute.xlu1 %210 }
 0x110   :  { %659 = vrot.lane.b32.xlu0 %v637_v62, %s17091_s23  ;;  %657 = vrot.lane.b32.xlu1 %v636_v63, %s17091_s23 }
 0x112   :  { %v17469_v2 = vpop.permute.xlu0 %216  ;;  %v17471_v4 = vpop.permute.xlu1 %214 }
 0x114   :  { %535 = vrot.lane.b32.xlu0 %v512_v1, %s17089_s21  ;;  %720 = vperm.xlu1 %16883, %v17185_v3   ;;  %v15908_v3 = vld [vmem:[%s21429_s2 + $0x4] sm:$0xf] }
 0x116   :  { %v17477_v6 = vpop.permute.xlu0 %269  ;;  %v17479_v7 = vpop.permute.xlu1 %218 }
 0x118   :  { %661 = vrot.lane.b32.xlu0 %v638_v8, %s17091_s23  ;;  %598 = vrot.lane.b32.xlu1 %v575_v9, %s17090_s22 }
 0x119   :  { %16884 = vset.pattern.permute.xlu1 %v21443_v0 }
 0x11a   :  { %v17492_v11 = vpop.permute.xlu0 %273  ;;  %v17494_v12 = vpop.permute.xlu1 %271 }
 0x11c   :  { %954 = vperm.xlu0 %16882, %v15909_v10   ;;  %893 = vperm.xlu1 %16884, %v15908_v3  }
 0x11e   :  { %v17502_v24 = vpop.permute.xlu0 %277  ;;  %v17504_v25 = vpop.permute.xlu1 %275 }
 0x120   :  { %1137 = vperm.xlu0 %16882, %v15912_v15   ;;  %1015 = vperm.xlu1 %16884, %v15910_v21  }
 0x122   :  { %v17512_v34 = vpop.permute.xlu0 %281  ;;  %v17514_v35 = vpop.permute.xlu1 %279 }
 0x124   :  { %1320 = vperm.xlu0 %16882, %v15915_v30   ;;  %1076 = vperm.xlu1 %16884, %v15911_v31  }
 0x126   :  { %v17522_v39 = vpop.permute.xlu0 %334  ;;  %v17524_v40 = vpop.permute.xlu1 %332 }
 0x128   :  { %830 = vperm.xlu0 %16882, %v827_v37   ;;  %1198 = vperm.xlu1 %16884, %v15913_v38  }
 0x12a   :  { %v17529_v42 = vpop.permute.xlu0 %338  ;;  %v17531_v43 = vpop.permute.xlu1 %336 }
 0x12c   :  { %1259 = vperm.xlu1 %16884, %v15914_v41   ;;  %16885 = vset.pattern.permute.xlu0 %v21440_v5 }
 0x12e   :  { %v17534_v44 = vpop.permute.xlu0 %342  ;;  %v17536_v45 = vpop.permute.xlu1 %340 }
 0x132   :  { %v17538_v46 = vpop.permute.xlu0 %395  ;;  %v17540_v47 = vpop.permute.xlu1 %344 }
 0x136   :  { %v17542_v48 = vpop.permute.xlu0 %399  ;;  %v17544_v49 = vpop.permute.xlu1 %397 }
 0x13a   :  { %v17546_v50 = vpop.permute.xlu0 %403  ;;  %v17548_v52 = vpop.permute.xlu1 %401 }
 0x13e   :  { %v17550_v53 = vpop.permute.xlu0 %405  ;;  %v17552_v54 = vpop.permute.xlu1 %220 }
 0x142   :  { %v17554_v57 = vpop.permute.xlu0 %458  ;;  %v17556_v62 = vpop.permute.xlu1 %407 }
 0x146   :  { %v17558_v63 = vpop.permute.xlu0 %462  ;;  %v17560_v1 = vpop.permute.xlu1 %460 }
 0x14a   :  { %v17562_v8 = vpop.permute.xlu0 %466  ;;  %v17564_v9 = vpop.permute.xlu1 %464 }
 0x14e   :  { %v17566_v10 = vpop.permute.xlu0 %468  ;;  %v17568_v3 = vpop.permute.xlu1 %283 }
 0x152   :  { %v17570_v15 = vpop.permute.xlu0 %521  ;;  %v17572_v21 = vpop.permute.xlu1 %470 }
 0x153   :  { %21524 = vst [vmem:[#allocation21_spill] sm:$0xff] %v17570_v15 }
 0x156   :  { %v17574_v30 = vpop.permute.xlu0 %525  ;;  %v17576_v31 = vpop.permute.xlu1 %523 }
 0x157   :  { %21525 = vst [vmem:[#allocation22_spill] sm:$0xff] %v17574_v30 }
 0x15a   :  { %v17578_v37 = vpop.permute.xlu0 %529  ;;  %v17580_v38 = vpop.permute.xlu1 %527 }
 0x15b   :  { %21526 = vst [vmem:[#allocation23_spill] sm:$0xff] %v17578_v37  ;;  %21527 = vst [vmem:[#allocation24_spill] sm:$0xff] %v17580_v38 }
 0x15e   :  { %v17582_v41 = vpop.permute.xlu1 %531  ;;  %v17584_v5 = vpop.permute.xlu0 %346 }
 0x15f   :  { %21528 = vst [vmem:[#allocation25_spill] sm:$0xff] %v17582_v41  ;;  %21529 = vst [vmem:[#allocation26_spill] sm:$0xff] %v17584_v5 }
 0x162   :  { %v17586_v20 = vpop.permute.xlu1 %584  ;;  %v17588_v0 = vpop.permute.xlu0 %533 }
 0x163   :  { %21530 = vst [vmem:[#allocation27_spill] sm:$0xff] %v17586_v20  ;;  %21531 = vst [vmem:[#allocation28_spill] sm:$0xff] %v17588_v0 }
 0x166   :  { %v17590_v29 = vpop.permute.xlu1 %588  ;;  %v17592_v58 = vpop.permute.xlu0 %586 }
 0x167   :  { %21532 = vst [vmem:[#allocation29_spill] sm:$0xff] %v17590_v29  ;;  %21533 = vst [vmem:[#allocation30_spill] sm:$0xff] %v17592_v58 }
 0x16a   :  { %v17594_v51 = vpop.permute.xlu1 %592  ;;  %v17596_v30 = vpop.permute.xlu0 %590 }
 0x16b   :  { %21534 = vst [vmem:[#allocation31_spill] sm:$0xff] %v17594_v51  ;;  %21535 = vst [vmem:[#allocation32_spill] sm:$0xff] %v17596_v30 }
 0x16e   :  { %v17598_v15 = vpop.permute.xlu1 %594  ;;  %v17600_v37 = vpop.permute.xlu0 %409 }
 0x16f   :  { %21536 = vst [vmem:[#allocation33_spill] sm:$0xff] %v17598_v15  ;;  %21537 = vst [vmem:[#allocation34_spill] sm:$0xff] %v17600_v37 }
 0x172   :  { %v17602_v38 = vpop.permute.xlu1 %647  ;;  %v17604_v41 = vpop.permute.xlu0 %596 }
 0x173   :  { %21538 = vst [vmem:[#allocation35_spill] sm:$0xff] %v17602_v38  ;;  %21539 = vst [vmem:[#allocation36_spill] sm:$0xff] %v17604_v41 }
 0x176   :  { %v17606_v5 = vpop.permute.xlu1 %651  ;;  %v17608_v20 = vpop.permute.xlu0 %649 }
 0x177   :  { %21540 = vst [vmem:[#allocation37_spill] sm:$0xff] %v17606_v5  ;;  %21541 = vst [vmem:[#allocation38_spill] sm:$0xff] %v17608_v20  ;;  %v17627_v5 = vld [vmem:[%s21427_s0 + $0x8] sm:$0xff] }
 0x178   :  { %21548 = vst [vmem:[#allocation45_spill] sm:$0xff] %v17627_v5 }
 0x17a   :  { %v17610_v0 = vpop.permute.xlu1 %655  ;;  %v17612_v29 = vpop.permute.xlu0 %653 }
 0x17b   :  { %21542 = vst [vmem:[#allocation39_spill] sm:$0xff] %v17610_v0  ;;  %21543 = vst [vmem:[#allocation40_spill] sm:$0xff] %v17612_v29  ;;  %v17633_v0 = vrot.slane %v17627_v5, %v17212_v13  ;;  %v17637_v29 = vrot.slane %v17627_v5, %v17215_v14  ;;  %v17653_v13 = vrot.slane %v17627_v5, %v17234_v19 }
 0x17c   :  { %v223_v14 = vsel %vm222_vm0, %v17456_v56, %v17454_v55  ;;  %v17678_v56 = vrot.slane %v17627_v5, %v17243_v23  ;;  %v287_v23 = vsel %vm285_vm1, %v17494_v12, %v17492_v11 }
 0x17e   :  { %v17614_v58 = vpop.permute.xlu1 %472 }
 0x17f   :  { %21544 = vst [vmem:[#allocation41_spill] sm:$0xff] %v17614_v58 }
 0x182   :  { %v17618_v30 = vpop.permute.xlu1 %657 }
 0x183   :  { %21545 = vst [vmem:[#allocation42_spill] sm:$0xff] %v17618_v30 }
 0x18b   :  { %v17616_v51 = vpop.permute.xlu0 %123 }
 0x18f   :  { %v17620_v15 = vpop.permute.xlu0 %659 }
 0x190   :  { %21546 = vst [vmem:[#allocation43_spill] sm:$0xff] %v17620_v15 }
 0x193   :  { %v17622_v37 = vpop.permute.xlu1 %720  ;;  %v17639_v30 = vpop.permute.xlu0 %535 }
 0x194   :  { %21547 = vst [vmem:[#allocation44_spill] sm:$0xff] %v17622_v37  ;;  %21550 = vst [vmem:[#allocation47_spill] sm:$0xff] %v17639_v30  ;;  %v224_v30 = vsel %vm222_vm0, %v17454_v55, %v17463_v60  ;;  %v226_v55 = vsel %vm222_vm0, %v17461_v59, %v17471_v4 }
 0x197   :  { %v17629_v38 = vpop.permute.xlu1 %598  ;;  %v17666_v58 = vpop.permute.xlu0 %661 }
 0x198   :  { %21549 = vst [vmem:[#allocation46_spill] sm:$0xff] %v17629_v38  ;;  %v17649_v38 = vrot.slane %v17627_v5, %v17231_v18  ;;  %v225_v18 = vsel %vm222_vm0, %v17463_v60, %v17461_v59  ;;  %21551 = vst [vmem:[#allocation48_spill] sm:$0xff] %v17666_v58  ;;  %v227_v60 = vsel %vm222_vm0, %v17471_v4, %v17469_v2 }
 0x199   :  { %v228_v58 = vsel %vm222_vm0, %v17469_v2, %v17479_v7  ;;  %v288_v59 = vsel %vm285_vm1, %v17492_v11, %v17504_v25  ;;  %v17702_v2 = vrot.slane %v17627_v5, %v17260_v28  ;;  %v289_v4 = vsel %vm285_vm1, %v17504_v25, %v17502_v24 }
 0x19a   :  { %v170_v11 = vmul.f32 %v17251_v26, %v17616_v51  ;;  %v349_v26 = vsel %vm348_vm2, %v17524_v40, %v17522_v39  ;;  %v354_v40 = vsel %vm348_vm2, %v17534_v44, %v17540_v47 }
 0x19b   :  { %v17641_v15 = vpop.permute.xlu1 %893  ;;  %21553 = vst [vmem:[#allocation50_spill] sm:$0xff] %v17702_v2 }
 0x19c   :  { %v897_v37 = vmul.f32 %v17641_v15, %v17633_v0  ;;  %v896_v20 = vmul.f32 %v17641_v15, %v17637_v29  ;;  %v899_v19 = vmul.f32 %v17641_v15, %v17649_v38  ;;  %v900_v25 = vmul.f32 %v17641_v15, %v17678_v56 }
 0x19d   :  { %v241_v41 = vadd.f32 %v226_v55, %v170_v11 }
 0x19e   :  { %914 = vrot.lane.b32.xlu0 %v897_v37, %s17084_s17  ;;  %912 = vrot.lane.b32.xlu1 %v896_v20, %s17084_s17  ;;  %v898_v20 = vmul.f32 %v17641_v15, %v17653_v13  ;;  %v17674_v37 = vrot.slane %v17627_v5, %v17240_v22  ;;  %v286_v22 = vsel %vm285_vm1, %v17477_v6, %v17494_v12 }
 0x19f   :  { %v167_v6 = vmul.f32 %v17228_v17, %v17616_v51  ;;  %v169_v12 = vmul.f32 %v17255_v27, %v17616_v51  ;;  %v291_v17 = vsel %vm285_vm1, %v17514_v35, %v17512_v34  ;;  %v350_v27 = vsel %vm348_vm2, %v17522_v39, %v17531_v43 }
 0x1a0   :  { %21552 = vst [vmem:[#allocation49_spill] sm:$0xff] %v17674_v37  ;;  %v901_v28 = vmul.f32 %v17641_v15, %v17674_v37  ;;  %v352_v5 = vsel %vm348_vm2, %v17529_v42, %v17536_v45  ;;  %v171_v37 = vmul.f32 %v17274_v33, %v17616_v51  ;;  %v17772_v33 = vsel %vm411_vm3, %v17546_v50, %v17550_v53 }
 0x1a1   :  { %v238_v39 = vadd.f32 %v223_v14, %v167_v6  ;;  %v413_v14 = vsel %vm411_vm3, %v17544_v49, %v17542_v48  ;;  %v304_v55 = vadd.f32 %v289_v4, %v241_v41  ;;  %v479_v4 = vsel %vm474_vm4, %v17562_v8, %v17566_v10 }
 0x1a2   :  { %918 = vrot.lane.b32.xlu0 %v899_v19, %s17084_s17  ;;  %916 = vrot.lane.b32.xlu1 %v898_v20, %s17084_s17  ;;  %v290_v19 = vsel %vm285_vm1, %v17502_v24, %v17514_v35  ;;  %v168_v20 = vmul.f32 %v17224_v16, %v17616_v51  ;;  %v351_v16 = vsel %vm348_vm2, %v17531_v43, %v17529_v42  ;;  %v17734_v24 = vpop.permute.xlu0 %954 }
 0x1a3   :  { %v17742_v35 = vsel %vm348_vm2, %v17536_v45, %v17534_v44  ;;  %v240_v43 = vadd.f32 %v225_v18, %v169_v12  ;;  %v172_v42 = vmul.f32 %v17270_v32, %v17616_v51  ;;  %v902_v44 = vmul.f32 %v17641_v15, %v17702_v2 }
 0x1a4   :  { %21554 = vst [vmem:[#allocation51_spill] sm:$0xff] %v17742_v35  ;;  %v239_v45 = vadd.f32 %v224_v30, %v168_v20  ;;  %v957_v35 = vmul.f32 %v17734_v24, %v17637_v29  ;;  %v414_v18 = vsel %vm411_vm3, %v17542_v48, %v17548_v52  ;;  %v415_v32 = vsel %vm411_vm3, %v17548_v52, %v17546_v50  ;;  %v21555_v20 = vld [vmem:[#allocation21_spill] sm:$0xff] }
 0x1a5   :  { %v301_v48 = vadd.f32 %v286_v22, %v238_v39  ;;  %v303_v30 = vadd.f32 %v288_v59, %v240_v43  ;;  %v243_v52 = vadd.f32 %v228_v58, %v172_v42  ;;  %v242_v6 = vadd.f32 %v227_v60, %v171_v37 }
 0x1a6   :  { %922 = vrot.lane.b32.xlu0 %v901_v28, %s17084_s17  ;;  %920 = vrot.lane.b32.xlu1 %v900_v25, %s17084_s17  ;;  %v412_v28 = vsel %vm411_vm3, %v17538_v46, %v17544_v49  ;;  %v173_v46 = vmul.f32 %v17284_v36, %v17616_v51  ;;  %v174_v49 = vmul.f32 %v17357_v61, %v17616_v51 }
 0x1a7   :  { %v302_v12 = vadd.f32 %v287_v23, %v239_v45  ;;  %v959_v50 = vmul.f32 %v17734_v24, %v17653_v13  ;;  %v958_v11 = vmul.f32 %v17734_v24, %v17633_v0  ;;  %v229_v36 = vsel %vm222_vm0, %v17479_v7, %v17552_v54  ;;  %v21558_v45 = vld [vmem:[#allocation22_spill] sm:$0xff] }
 0x1a8   :  { %v417_v61 = vsel %vm411_vm3, %v17550_v53, %v17556_v62  ;;  %v475_v22 = vsel %vm474_vm4, %v17554_v57, %v17560_v1  ;;  %v476_v23 = vsel %vm474_vm4, %v17560_v1, %v17558_v63  ;;  %v477_v58 = vsel %vm474_vm4, %v17558_v63, %v17564_v9 }
 0x1a9   :  { %v244_v51 = vadd.f32 %v229_v36, %v173_v46  ;;  %v245_v7 = vadd.f32 %v17552_v54, %v174_v49  ;;  %v306_v53 = vadd.f32 %v291_v17, %v243_v52  ;;  %v366_v41 = vadd.f32 %v351_v16, %v303_v30  ;;  %v17841_v49 = vpop.permute.xlu1 %1015 }
 0x1aa   :  { %973 = vrot.lane.b32.xlu0 %v957_v35, %s17085_s18  ;;  %924 = vrot.lane.b32.xlu1 %v902_v44, %s17084_s17  ;;  %v367_v37 = vadd.f32 %v352_v5, %v304_v55  ;;  %v364_v57 = vadd.f32 %v349_v26, %v301_v48  ;;  %v305_v60 = vadd.f32 %v290_v19, %v242_v6  ;;  %v21556_v35 = vld [vmem:[#allocation49_spill] sm:$0xff]  ;;  %v21559_v44 = vld [vmem:[#allocation24_spill] sm:$0xff] }
 0x1ab   :  { %v961_v1 = vmul.f32 %v17734_v24, %v17678_v56  ;;  %v960_v59 = vmul.f32 %v17734_v24, %v17649_v38  ;;  %v365_v63 = vadd.f32 %v350_v27, %v302_v12  ;;  %v478_v54 = vsel %vm474_vm4, %v17564_v9, %v17562_v8  ;;  %v21557_v43 = vld [vmem:[#allocation51_spill] sm:$0xff] }
 0x1ac   :  { %v292_v5 = vsel %vm285_vm1, %v17512_v34, %v17568_v3  ;;  %v480_v19 = vsel %vm474_vm4, %v17566_v10, %v17572_v21  ;;  %v538_v25 = vsel %vm537_vm5, %v21555_v20, %v17576_v31  ;;  %v308_v26 = vadd.f32 %v17568_v3, %v245_v7 }
 0x1ad   :  { %v307_v17 = vadd.f32 %v292_v5, %v244_v51  ;;  %v369_v8 = vadd.f32 %v354_v40, %v306_v53  ;;  %v429_v9 = vadd.f32 %v414_v18, %v366_v41  ;;  %v430_v27 = vadd.f32 %v415_v32, %v367_v37  ;;  %v21560_v18 = vld [vmem:[#allocation23_spill] sm:$0xff]  ;;  %v21561_v32 = vld [vmem:[#allocation26_spill] sm:$0xff]  ;;  %v21563_v51 = vld [vmem:[#allocation28_spill] sm:$0xff] }
 0x1ae   :  { %977 = vrot.lane.b32.xlu0 %v959_v50, %s17085_s18  ;;  %975 = vrot.lane.b32.xlu1 %v958_v11, %s17085_s18  ;;  %v427_v16 = vadd.f32 %v412_v28, %v364_v57  ;;  %v963_v34 = vmul.f32 %v17734_v24, %v17702_v2  ;;  %v962_v10 = vmul.f32 %v17734_v24, %v21556_v35  ;;  %v21564_v53 = vld [vmem:[#allocation30_spill] sm:$0xff]  ;;  %v21565_v41 = vld [vmem:[#allocation27_spill] sm:$0xff] }
 0x1af   :  { %v428_v39 = vadd.f32 %v413_v14, %v365_v63  ;;  %v368_v42 = vadd.f32 %v21557_v43, %v305_v60  ;;  %v539_v3 = vsel %vm537_vm5, %v17576_v31, %v21558_v45  ;;  %v540_v40 = vsel %vm537_vm5, %v21558_v45, %v21559_v44  ;;  %v21562_v14 = vld [vmem:[#allocation25_spill] sm:$0xff]  ;;  %v21567_v37 = vld [vmem:[#allocation34_spill] sm:$0xff]  ;;  %v21568_v60 = vld [vmem:[#allocation32_spill] sm:$0xff] }
 0x1b0   :  { %v541_v28 = vsel %vm537_vm5, %v21559_v44, %v21560_v18  ;;  %v355_v46 = vsel %vm348_vm2, %v17540_v47, %v21561_v32  ;;  %v542_v48 = vsel %vm537_vm5, %v21560_v18, %v21562_v14  ;;  %v371_v30 = vadd.f32 %v21561_v32, %v308_v26  ;;  %v21574_v43 = vld [vmem:[#allocation35_spill] sm:$0xff] }
 0x1b1   :  { %v370_v31 = vadd.f32 %v355_v46, %v307_v17  ;;  %v432_v55 = vadd.f32 %v417_v61, %v369_v8  ;;  %v492_v52 = vadd.f32 %v477_v58, %v429_v9  ;;  %v493_v6 = vadd.f32 %v478_v54, %v430_v27  ;;  %v21566_v58 = vld [vmem:[#allocation29_spill] sm:$0xff]  ;;  %v21569_v8 = vld [vmem:[#allocation31_spill] sm:$0xff] }
 0x1b2   :  { %981 = vrot.lane.b32.xlu0 %v961_v1, %s17085_s18  ;;  %979 = vrot.lane.b32.xlu1 %v960_v59, %s17085_s18  ;;  %v490_v12 = vadd.f32 %v475_v22, %v427_v16  ;;  %v1019_v47 = vmul.f32 %v17841_v49, %v17633_v0  ;;  %v1018_v50 = vmul.f32 %v17841_v49, %v17637_v29  ;;  %v21570_v27 = vld [vmem:[#allocation33_spill] sm:$0xff] }
 0x1b3   :  { %v491_v11 = vadd.f32 %v476_v23, %v428_v39  ;;  %v431_v36 = vadd.f32 %v17772_v33, %v368_v42  ;;  %v543_v7 = vsel %vm537_vm5, %v21562_v14, %v21563_v51  ;;  %v601_v61 = vsel %vm600_vm6, %v21565_v41, %v21564_v53  ;;  %v21573_v39 = vld [vmem:[#allocation38_spill] sm:$0xff] }
 0x1b4   :  { %v602_v22 = vsel %vm600_vm6, %v21564_v53, %v21566_v58  ;;  %v418_v57 = vsel %vm411_vm3, %v17556_v62, %v21567_v37  ;;  %v603_v33 = vsel %vm600_vm6, %v21566_v58, %v21568_v60  ;;  %v434_v1 = vadd.f32 %v21567_v37, %v371_v30 }
 0x1b5   :  { %v433_v23 = vadd.f32 %v418_v57, %v370_v31  ;;  %v495_v59 = vadd.f32 %v480_v19, %v432_v55  ;;  %v555_v63 = vadd.f32 %v540_v40, %v492_v52  ;;  %v556_v54 = vadd.f32 %v541_v28, %v493_v6  ;;  %v21571_v19 = vld [vmem:[#allocation36_spill] sm:$0xff]  ;;  %v17894_v28 = vpop.permute.xlu1 %1076  ;;  %v21575_v31 = vld [vmem:[#allocation37_spill] sm:$0xff]  ;;  %v21577_v6 = vld [vmem:[#allocation39_spill] sm:$0xff] }
 0x1b6   :  { %985 = vrot.lane.b32.xlu0 %v963_v34, %s17085_s18  ;;  %983 = vrot.lane.b32.xlu1 %v962_v10, %s17085_s18  ;;  %v553_v5 = vadd.f32 %v538_v25, %v490_v12  ;;  %v1021_v20 = vmul.f32 %v17841_v49, %v17649_v38  ;;  %v1020_v62 = vmul.f32 %v17841_v49, %v17653_v13  ;;  %v21572_v34 = vld [vmem:[#allocation41_spill] sm:$0xff]  ;;  %v21576_v55 = vld [vmem:[#allocation40_spill] sm:$0xff] }
 0x1b7   :  { %v554_v17 = vadd.f32 %v539_v3, %v491_v11  ;;  %v494_v26 = vadd.f32 %v479_v4, %v431_v36  ;;  %v604_v9 = vsel %vm600_vm6, %v21568_v60, %v21569_v8  ;;  %v605_v16 = vsel %vm600_vm6, %v21569_v8, %v21570_v27  ;;  %v21580_v60 = vld [vmem:[#allocation42_spill] sm:$0xff] }
 0x1b8   :  { %v606_v25 = vsel %vm600_vm6, %v21570_v27, %v21571_v19  ;;  %v481_v10 = vsel %vm474_vm4, %v17572_v21, %v21572_v34  ;;  %v663_v4 = vsel %vm76_vm7, %v21574_v43, %v21573_v39  ;;  %v497_v45 = vadd.f32 %v21572_v34, %v434_v1 }
 0x1b9   :  { %v496_v42 = vadd.f32 %v481_v10, %v433_v23  ;;  %v558_v3 = vadd.f32 %v543_v7, %v495_v59  ;;  %v618_v44 = vadd.f32 %v603_v33, %v555_v63  ;;  %v619_v40 = vadd.f32 %v604_v9, %v556_v54  ;;  %v21581_v23 = vld [vmem:[#allocation43_spill] sm:$0xff] }
 0x1ba   :  { %1036 = vrot.lane.b32.xlu0 %v1019_v47, %s17086_s19  ;;  %1034 = vrot.lane.b32.xlu1 %v1018_v50, %s17086_s19  ;;  %v616_v18 = vadd.f32 %v601_v61, %v553_v5  ;;  %v1023_v21 = vmul.f32 %v17841_v49, %v21556_v35  ;;  %v1022_v32 = vmul.f32 %v17841_v49, %v17678_v56  ;;  %v21578_v47 = vld [vmem:[#allocation47_spill] sm:$0xff] }
 0x1bb   :  { %v617_v46 = vadd.f32 %v602_v22, %v554_v17  ;;  %v557_v14 = vadd.f32 %v542_v48, %v494_v26  ;;  %v664_v30 = vsel %vm76_vm7, %v21573_v39, %v21575_v31  ;;  %v665_v52 = vsel %vm76_vm7, %v21575_v31, %v21576_v55  ;;  %v21579_v48 = vld [vmem:[#allocation46_spill] sm:$0xff]  ;;  %v21584_v10 = vld [vmem:[#allocation19_spill] sm:$0xff]  ;;  %v21585_v39 = vld [vmem:[#allocation45_spill] sm:$0xff] }
 0x1bc   :  { %v666_v12 = vsel %vm76_vm7, %v21576_v55, %v21577_v6  ;;  %v544_v50 = vsel %vm537_vm5, %v21563_v51, %v21578_v47  ;;  %v560_v36 = vadd.f32 %v21578_v47, %v497_v45  ;;  %v607_v7 = vsel %vm600_vm6, %v21571_v19, %v21579_v48 }
 0x1bd   :  { %v559_v11 = vadd.f32 %v544_v50, %v496_v42  ;;  %v621_v53 = vadd.f32 %v606_v25, %v558_v3  ;;  %v1024_v41 = vmul.f32 %v17841_v49, %v17702_v2  ;;  %v1079_v61 = vmul.f32 %v17894_v28, %v17637_v29 }
 0x1be   :  { %1040 = vrot.lane.b32.xlu0 %v1021_v20, %s17086_s19  ;;  %1038 = vrot.lane.b32.xlu1 %v1020_v62, %s17086_s19  ;;  %v680_v58 = vadd.f32 %v665_v52, %v618_v44  ;;  %v681_v51 = vadd.f32 %v666_v12, %v619_v40  ;;  %v678_v22 = vadd.f32 %v663_v4, %v616_v18  ;;  %v21582_v62 = vld [vmem:[#allocation20_spill] sm:$0xff]  ;;  %v21587_v52 = vld [vmem:[#allocation18_spill] sm:$0xff]  ;;  %v17967_v12 = vpop.permute.xlu0 %1137 }
 0x1bf   :  { %v679_v37 = vadd.f32 %v664_v30, %v617_v46  ;;  %v620_v57 = vadd.f32 %v605_v16, %v557_v14  ;;  %v667_v33 = vsel %vm76_vm7, %v21577_v6, %v21580_v60  ;;  %v668_v1 = vsel %vm76_vm7, %v21580_v60, %v21581_v23  ;;  %v21583_v16 = vld [vmem:[#allocation48_spill] sm:$0xff]  ;;  %v57_v14 = vld [vmem:[%s21428_s1] sm:$0xff]  ;;  %s17093_s1 = smov 31  }
 0x1c0   :  { %v622_v59 = vadd.f32 %v607_v7, %v559_v11  ;;  %v623_v63 = vadd.f32 %v21579_v48, %v560_v36  ;;  %v683_v54 = vadd.f32 %v668_v1, %v621_v53  ;;  %v1080_v5 = vmul.f32 %v17894_v28, %v17633_v0  ;;  %v21588_v48 = vld [vmem:[#allocation14_spill] sm:$0xff]  ;;  %v21590_v53 = vld [vmem:[#allocation13_spill] sm:$0xff]  ;;  %v21596_v1 = vld [vmem:[#allocation44_spill] sm:$0xff] }
 0x1c1   :  { %v1081_v20 = vmul.f32 %v17894_v28, %v17653_v13  ;;  %v693_v17 = vadd.f32 %v21582_v62, %v680_v58  ;;  %v694_v26 = vadd.f32 %v21582_v62, %v681_v51  ;;  %v691_v8 = vadd.f32 %v21582_v62, %v678_v22  ;;  %v21592_v58 = vld [vmem:[#allocation12_spill] sm:$0xff]  ;;  %v21594_v22 = vld [vmem:[#allocation11_spill] sm:$0xff] }
 0x1c2   :  { %1044 = vrot.lane.b32.xlu0 %v1023_v21, %s17086_s19  ;;  %1042 = vrot.lane.b32.xlu1 %v1022_v32, %s17086_s19  ;;  %v692_v9 = vadd.f32 %v21582_v62, %v679_v37  ;;  %v682_v27 = vadd.f32 %v667_v33, %v620_v57  ;;  %v669_v19 = vsel %vm76_vm7, %v21581_v23, %v21583_v16  ;;  %v17092_v57 = vmov 0.0  }
 0x1c3   :  { %v684_v25 = vadd.f32 %v669_v19, %v622_v59  ;;  %v685_v34 = vadd.f32 %v21583_v16, %v623_v63  ;;  %v17947_v43 = vrot.slane %v21585_v39, %v21584_v10  ;;  %v696_v4 = vadd.f32 %v21582_v62, %v683_v54  ;;  %58 = vst [vmem:[#allocation2] sm:$0xff] %v17092_v57 }
 0x1c4   :  { %v1082_v42 = vmul.f32 %v17894_v28, %v17649_v38  ;;  %v1083_v45 = vmul.f32 %v17894_v28, %v17678_v56  ;;  %v701_v3 = vmax.f32 %v693_v17, 0.0  ;;  %v702_v44 = vmax.f32 %v694_v26, 0.0  ;;  %65 = vst [vmem:[#allocation2 + $0x20] sm:$0xff] %v17092_v57  ;;  %69 = vst [vmem:[#allocation3] sm:$0xff] %v17092_v57  ;;  %v21597_v17 = vld [vmem:[#allocation16_spill] sm:$0xff] }
 0x1c5   :  { %21586 = vst [vmem:[#allocation21_spill] sm:$0xff] %v17947_v43  ;;  %v699_v40 = vmax.f32 %v691_v8, 0.0  ;;  %v700_v18 = vmax.f32 %v692_v9, 0.0  ;;  %v695_v21 = vadd.f32 %v21582_v62, %v682_v27  ;;  %v697_v32 = vadd.f32 %v21582_v62, %v684_v25  ;;  %77 = vst.msk [vmem:[#allocation3 + $0x38] sm:$0xff] %vm76_vm7, %v17092_v57  ;;  %v21599_v27 = vld [vmem:[#allocation15_spill] sm:$0xff] }
 0x1c6   :  { %1046 = vrot.lane.b32.xlu1 %v1024_v41, %s17086_s19  ;;  %1095 = vrot.lane.b32.xlu0 %v1079_v61, %s17087_s20  ;;  %v698_v46 = vadd.f32 %v21582_v62, %v685_v34  ;;  %v704_v31 = vmax.f32 %v696_v4, 0.0  ;;  %v903_v30 = vmul.f32 %v17641_v15, %v17947_v43  ;;  %v1084_v55 = vmul.f32 %v17894_v28, %v21556_v35 }
 0x1c7   :  { %v713_v6 = vmul.f32 %v21587_v52, %v701_v3  ;;  %v714_v47 = vmul.f32 %v21587_v52, %v702_v44  ;;  %v711_v50 = vmul.f32 %v21587_v52, %v699_v40  ;;  %v712_v11 = vmul.f32 %v21587_v52, %v700_v18  ;;  %78 = vst [vmem:[#allocation3 + $0x40] sm:$0xff] %v17092_v57  ;;  %v21601_v18 = vld [vmem:[#allocation17_spill] sm:$0xff] }
 0x1c8   :  { %v703_v36 = vmax.f32 %v695_v21, 0.0  ;;  %v17973_v7 = vrot.slane %v57_v14, %v21588_v48  ;;  %v17976_v41 = vrot.slane %v57_v14, %v21590_v53  ;;  %v705_v15 = vmax.f32 %v697_v32, 0.0  ;;  %85 = vst.msk [vmem:[#allocation3 + $0x78] sm:$0xff] %vm76_vm7, %v17092_v57  ;;  %86 = vst [vmem:[#allocation4] sm:$0xff] %v17092_v57  ;;  %v18051_v53 = vpop.permute.xlu1 %1198 }
 0x1c9   :  { %v706_v61 = vmax.f32 %v698_v46, 0.0  ;;  %v17981_v51 = vrot.slane %v57_v14, %v21592_v58  ;;  %v17984_v37 = vrot.slane %v57_v14, %v21594_v22  ;;  %93 = vst.msk [vmem:[#allocation4 + $0x38] sm:$0xff] %vm76_vm7, %v17092_v57  ;;  %94 = vst [vmem:[#allocation4 + $0x40] sm:$0xff] %v17092_v57  ;;  %v716_v60 = vmul.f32 %v21587_v52, %v704_v31 }
 0x1ca   :  { %1097 = vrot.lane.b32.xlu1 %v1080_v5, %s17087_s20  ;;  %1099 = vrot.lane.b32.xlu0 %v1081_v20, %s17087_s20  ;;  %21589 = vst [vmem:[#allocation49_spill] sm:$0xff] %v17973_v7  ;;  %21591 = vst [vmem:[#allocation51_spill] sm:$0xff] %v17976_v41  ;;  %v1085_v33 = vmul.f32 %v17894_v28, %v17702_v2  ;;  %v1140_v23 = vmul.f32 %v17967_v12, %v17637_v29 }
 0x1cb   :  { %21593 = vst [vmem:[#allocation22_spill] sm:$0xff] %v17981_v51  ;;  %21595 = vst [vmem:[#allocation24_spill] sm:$0xff] %v17984_v37  ;;  %v725_v59 = vadd.f32 %v21596_v1, %v713_v6  ;;  %v726_v63 = vadd.f32 %v21596_v1, %v714_v47  ;;  %v723_v54 = vadd.f32 %v21596_v1, %v711_v50 }
 0x1cc   :  { %101 = vst.msk [vmem:[#allocation4 + $0x78] sm:$0xff] %vm76_vm7, %v17092_v57  ;;  %102 = vst [vmem:[#allocation4 + $0x80] sm:$0xff] %v17092_v57  ;;  %v724_v5 = vadd.f32 %v21596_v1, %v712_v11  ;;  %v715_v20 = vmul.f32 %v21587_v52, %v703_v36  ;;  %v18003_v26 = vrot.slane %v57_v14, %v21597_v17  ;;  %v18090_v17 = vpop.permute.xlu0 %1320 }
 0x1cd   :  { %109 = vst.msk [vmem:[#allocation4 + $0xb8] sm:$0xff] %vm76_vm7, %v17092_v57  ;;  %110 = vst [vmem:[#allocation4 + $0xc0] sm:$0xff] %v17092_v57  ;;  %v717_v8 = vmul.f32 %v21587_v52, %v705_v15  ;;  %v718_v9 = vmul.f32 %v21587_v52, %v706_v61  ;;  %v18010_v16 = vrot.slane %v57_v14, %v21599_v27 }
 0x1ce   :  { %1101 = vrot.lane.b32.xlu1 %v1082_v42, %s17087_s20  ;;  %1103 = vrot.lane.b32.xlu0 %v1083_v45, %s17087_s20  ;;  %117 = vst.msk [vmem:[#allocation4 + $0xf8] sm:$0xff] %vm76_vm7, %v17092_v57  ;;  %21598 = vst [vmem:[#allocation23_spill] sm:$0xff] %v18003_v26  ;;  %v1141_v19 = vmul.f32 %v17967_v12, %v17633_v0  ;;  %v1142_v25 = vmul.f32 %v17967_v12, %v17653_v13 }
 0x1cf   :  { %21600 = vst [vmem:[#allocation26_spill] sm:$0xff] %v18010_v16  ;;  %v774_v34 = vmul.f32 %v17973_v7, %v725_v59  ;;  %v728_v39 = vadd.f32 %v21596_v1, %v716_v60  ;;  %v775_v4 = vmul.f32 %v17976_v41, %v726_v63  ;;  %v772_v42 = vmul.f32 %v17981_v51, %v723_v54 }
 0x1d0   :  { %v773_v45 = vmul.f32 %v17984_v37, %v724_v5  ;;  %v727_v3 = vadd.f32 %v21596_v1, %v715_v20  ;;  %v729_v40 = vadd.f32 %v21596_v1, %v717_v8  ;;  %v18027_v21 = vrot.slane %v57_v14, %v21601_v18  ;;  %64 = vst.msk [vmem:[#allocation2 + $0x18] sm:$0xff] %vm63_vm10, %v17092_v57  ;;  %v18099_v27 = vpop.permute.xlu0 %830 }
 0x1d1   :  { %v777_v44 = vmul.f32 %v18010_v16, %v728_v39  ;;  %v18030_v32 = vrot.slane %v57_v14, %v21584_v10  ;;  %v789_v46 = vcombine.low %v774_v34, %v775_v4  ;;  %68 = vst.msk [vmem:[#allocation2 + $0x38] sm:$0xff] %vm63_vm10, %v17092_v57  ;;  %v1143_v10 = vmul.f32 %v17967_v12, %v17649_v38 }
 0x1d2   :  { %926 = vrot.lane.b32.xlu1 %v903_v30, %s17084_s17  ;;  %1105 = vrot.lane.b32.xlu0 %v1084_v55, %s17087_s20  ;;  %21602 = vst [vmem:[#allocation25_spill] sm:$0xff] %v18027_v21  ;;  %v788_v31 = vcombine.low %v772_v42, %v773_v45  ;;  %v776_v30 = vmul.f32 %v18003_v26, %v727_v3  ;;  %vm1522_vm10 = vcmask 1041408  }
 0x1d3   :  { %21603 = vst [vmem:[#allocation28_spill] sm:$0xff] %v18030_v32  ;;  %v730_v55 = vadd.f32 %v21596_v1, %v718_v9  ;;  %v778_v14 = vmul.f32 %v18027_v21, %v729_v40  ;;  %v1144_v50 = vmul.f32 %v17967_v12, %v17678_v56  ;;  %v1145_v36 = vmul.f32 %v17967_v12, %v21556_v35 }
 0x1d4   :  { %v790_v6 = vcombine.low %v776_v30, %v777_v44  ;;  %v964_v48 = vmul.f32 %v17734_v24, %v17947_v43  ;;  %v1201_v15 = vmul.f32 %v18051_v53, %v17637_v29  ;;  %v1146_v61 = vmul.f32 %v17967_v12, %v17702_v2 }
 0x1d5   :  { %v779_v47 = vmul.f32 %v18030_v32, %v730_v55  ;;  %v1203_v58 = vmul.f32 %v18051_v53, %v17653_v13  ;;  %v1202_v24 = vmul.f32 %v18051_v53, %v17633_v0  ;;  %v1205_v22 = vmul.f32 %v18051_v53, %v17678_v56 }
 0x1d6   :  { %1107 = vrot.lane.b32.xlu1 %v1085_v33, %s17087_s20  ;;  %1156 = vrot.lane.b32.xlu0 %v1140_v23, %s17088_s10  ;;  %v1204_v57 = vmul.f32 %v18051_v53, %v17649_v38  ;;  %v1206_v60 = vmul.f32 %v18051_v53, %v21556_v35  ;;  %v1025_v33 = vmul.f32 %v17841_v49, %v17947_v43  ;;  %v1260_v23 = vpop.permute.xlu1 %1259 }
 0x1d7   :  { %v791_v11 = vcombine.low %v778_v14, %v779_v47  ;;  %v1262_v59 = vmul.f32 %v1260_v23, %v17637_v29  ;;  %v1207_v63 = vmul.f32 %v18051_v53, %v17702_v2  ;;  %v1264_v54 = vmul.f32 %v1260_v23, %v17653_v13 }
 0x1d8   :  { %v1263_v5 = vmul.f32 %v1260_v23, %v17633_v0  ;;  %v1266_v49 = vmul.f32 %v1260_v23, %v17678_v56  ;;  %v1265_v20 = vmul.f32 %v1260_v23, %v17649_v38  ;;  %v1267_v8 = vmul.f32 %v1260_v23, %v21556_v35 }
 0x1d9   :  { %v1086_v9 = vmul.f32 %v17894_v28, %v17947_v43  ;;  %v1325_v28 = vmul.f32 %v18090_v17, %v17653_v13  ;;  %v1324_v4 = vmul.f32 %v18090_v17, %v17633_v0  ;;  %v1327_v3 = vmul.f32 %v18090_v17, %v17678_v56 }
 0x1da   :  { %1158 = vrot.lane.b32.xlu1 %v1141_v19, %s17088_s10  ;;  %1160 = vrot.lane.b32.xlu0 %v1142_v25, %s17088_s10  ;;  %v1323_v19 = vmul.f32 %v18090_v17, %v17637_v29  ;;  %v1268_v25 = vmul.f32 %v1260_v23, %v17702_v2  ;;  %v1326_v44 = vmul.f32 %v18090_v17, %v17649_v38 }
 0x1db   :  { %v1208_v47 = vmul.f32 %v18051_v53, %v17947_v43  ;;  %v875_v52 = vmul.f32 %v17633_v0, %v18099_v27  ;;  %v878_v0 = vmul.f32 %v17678_v56, %v18099_v27 }
 0x1de   :  { %794 = vrot.lane.b32.xlu0 %v789_v46, %s17093_s1  ;;  %792 = vrot.lane.b32.xlu1 %v788_v31, %s17093_s1  ;;  %v1328_v46 = vmul.f32 %v18090_v17, %v21556_v35  ;;  %v1147_v31 = vmul.f32 %v17967_v12, %v17947_v43 }
 0x1e2   :  { %796 = vrot.lane.b32.xlu0 %v790_v6, %s17093_s1  ;;  %1162 = vrot.lane.b32.xlu1 %v1143_v10, %s17088_s10  ;;  %v1269_v6 = vmul.f32 %v1260_v23, %v17947_v43  ;;  %v1329_v10 = vmul.f32 %v18090_v17, %v17702_v2 }
 0x1e6   :  { %1164 = vrot.lane.b32.xlu0 %v1144_v50, %s17088_s10  ;;  %798 = vrot.lane.b32.xlu1 %v791_v11, %s17093_s1 }
 0x1ea   :  { %1166 = vrot.lane.b32.xlu0 %v1145_v36, %s17088_s10  ;;  %987 = vrot.lane.b32.xlu1 %v964_v48, %s17085_s18 }
 0x1ee   :  { %1217 = vrot.lane.b32.xlu0 %v1201_v15, %s17089_s21  ;;  %1168 = vrot.lane.b32.xlu1 %v1146_v61, %s17088_s10 }
 0x1f2   :  { %1221 = vrot.lane.b32.xlu0 %v1203_v58, %s17089_s21  ;;  %1219 = vrot.lane.b32.xlu1 %v1202_v24, %s17089_s21 }
 0x1f6   :  { %1225 = vrot.lane.b32.xlu0 %v1205_v22, %s17089_s21  ;;  %1223 = vrot.lane.b32.xlu1 %v1204_v57, %s17089_s21 }
 0x1fa   :  { %1227 = vrot.lane.b32.xlu0 %v1206_v60, %s17089_s21  ;;  %1048 = vrot.lane.b32.xlu1 %v1025_v33, %s17086_s19 }
 0x1fe   :  { %1278 = vrot.lane.b32.xlu0 %v1262_v59, %s17090_s22  ;;  %1229 = vrot.lane.b32.xlu1 %v1207_v63, %s17089_s21 }
 0x202   :  { %1282 = vrot.lane.b32.xlu0 %v1264_v54, %s17090_s22  ;;  %1280 = vrot.lane.b32.xlu1 %v1263_v5, %s17090_s22 }
 0x206   :  { %1286 = vrot.lane.b32.xlu0 %v1266_v49, %s17090_s22  ;;  %1284 = vrot.lane.b32.xlu1 %v1265_v20, %s17090_s22 }
 0x20a   :  { %1288 = vrot.lane.b32.xlu0 %v1267_v8, %s17090_s22  ;;  %1109 = vrot.lane.b32.xlu1 %v1086_v9, %s17087_s20 }
 0x20e   :  { %1339 = vrot.lane.b32.xlu0 %v1323_v19, %s17091_s23  ;;  %1290 = vrot.lane.b32.xlu1 %v1268_v25, %s17090_s22 }
 0x210   :  { %v18106_v34 = vpop.permute.xlu0 %914  ;;  %v18108_v39 = vpop.permute.xlu1 %912 }
 0x212   :  { %1343 = vrot.lane.b32.xlu0 %v1325_v28, %s17091_s23  ;;  %1341 = vrot.lane.b32.xlu1 %v1324_v4, %s17091_s23  ;;  %v21605_v4 = vmov 0 }
 0x213   :  { %v21606_v4 = vsel %vm18196_vm14, 4294967295, %v21605_v4 }
 0x214   :  { %v18116_v42 = vpop.permute.xlu0 %918  ;;  %v18118_v45 = vpop.permute.xlu1 %916  ;;  %21607 = vst [vmem:[#allocation27_spill] sm:$0xff] %v21606_v4 }
 0x215   :  { %v930_v1 = vsel %vm222_vm0, %v18118_v45, %v18116_v42 }
 0x216   :  { %1347 = vrot.lane.b32.xlu0 %v1327_v3, %s17091_s23  ;;  %1345 = vrot.lane.b32.xlu1 %v1326_v44, %s17091_s23 }
 0x218   :  { %v18126_v40 = vpop.permute.xlu0 %922  ;;  %v18128_v18 = vpop.permute.xlu1 %920 }
 0x21a   :  { %1349 = vrot.lane.b32.xlu0 %v1328_v46, %s17091_s23  ;;  %1170 = vrot.lane.b32.xlu1 %v1147_v31, %s17088_s10 }
 0x21c   :  { %v18136_v30 = vpop.permute.xlu0 %973  ;;  %v18138_v55 = vpop.permute.xlu1 %924 }
 0x21e   :  { %1292 = vrot.lane.b32.xlu0 %v1269_v6, %s17090_s22  ;;  %1351 = vrot.lane.b32.xlu1 %v1329_v10, %s17091_s23 }
 0x220   :  { %v18145_v14 = vpop.permute.xlu0 %977  ;;  %v18147_v12 = vpop.permute.xlu1 %975 }
 0x222   :  { %1231 = vrot.lane.b32.xlu1 %v1208_v47, %s17089_s21 }
 0x224   :  { %v18152_v50 = vpop.permute.xlu0 %981  ;;  %v18154_v11 = vpop.permute.xlu1 %979 }
 0x228   :  { %v18156_v36 = vpop.permute.xlu0 %985  ;;  %v18158_v48 = vpop.permute.xlu1 %983 }
 0x22c   :  { %v18160_v15 = vpop.permute.xlu0 %1036  ;;  %v18162_v61 = vpop.permute.xlu1 %1034 }
 0x230   :  { %v18164_v58 = vpop.permute.xlu0 %1040  ;;  %v18166_v24 = vpop.permute.xlu1 %1038 }
 0x234   :  { %v18168_v22 = vpop.permute.xlu0 %1044  ;;  %v18170_v53 = vpop.permute.xlu1 %1042 }
 0x238   :  { %v18172_v57 = vpop.permute.xlu0 %1095  ;;  %v18174_v60 = vpop.permute.xlu1 %1046 }
 0x23c   :  { %v18176_v33 = vpop.permute.xlu0 %1099  ;;  %v18178_v23 = vpop.permute.xlu1 %1097 }
 0x240   :  { %v18180_v59 = vpop.permute.xlu0 %1103  ;;  %v18182_v63 = vpop.permute.xlu1 %1101 }
 0x244   :  { %v18184_v54 = vpop.permute.xlu0 %1105  ;;  %v18186_v5 = vpop.permute.xlu1 %926 }
 0x245   :  { %21604 = vst [vmem:[#allocation30_spill] sm:$0xff] %v18186_v5 }
 0x248   :  { %v18188_v49 = vpop.permute.xlu0 %1156  ;;  %v18190_v20 = vpop.permute.xlu1 %1107 }
 0x24c   :  { %v18192_v8 = vpop.permute.xlu0 %1160  ;;  %v18194_v9 = vpop.permute.xlu1 %1158 }
 0x250   :  { %v795_v19 = vpop.permute.xlu0 %794  ;;  %v793_v25 = vpop.permute.xlu1 %792 }
 0x251   :  { %v801_v28 = vrot.slane %v795_v19, 4  ;;  %v800_v3 = vrot.slane %v793_v25, 4 }
 0x253   :  { %v805_v44 = vsel %vm804_vm13, %v800_v3, %v793_v25  ;;  %v806_v46 = vsel %vm61_vm8, %v800_v3, %v801_v28  ;;  %v21608_v3 = vmov 0 }
 0x254   :  { %v807_v31 = vsel %vm804_vm13, %v806_v46, %v795_v19  ;;  %819 = vst.msk [vmem:[#allocation2] sm:$0xff] %vm18196_vm14, %v805_v44  ;;  %v797_v6 = vpop.permute.xlu0 %796  ;;  %v18205_v10 = vpop.permute.xlu1 %1162  ;;  %v21609_v3 = vsel %vm18212_vm9, 4294967295, %v21608_v3 }
 0x255   :  { %v802_v47 = vrot.slane %v797_v6, 4  ;;  %21610 = vst [vmem:[#allocation29_spill] sm:$0xff] %v21609_v3  ;;  %v1469_v26 = vcombine.high %v807_v31, %v807_v31 }
 0x257   :  { %v808_v21 = vsel %vm61_vm8, %v801_v28, %v802_v47 }
 0x258   :  { %v809_v32 = vsel %vm804_vm13, %v808_v21, %v797_v6  ;;  %v18209_v2 = vpop.permute.xlu0 %1164  ;;  %v799_v5 = vpop.permute.xlu1 %798 }
 0x259   :  { %v803_v25 = vrot.slane %v799_v5, 4  ;;  %v1470_v3 = vcombine.high %v809_v32, %v809_v32 }
 0x25b   :  { %v810_v19 = vsel %vm61_vm8, %v802_v47, %v803_v25  ;;  %v1459_v44 = vld [vmem:[#allocation2] sm:$0xff]  ;;  %v18236_v25 = vpack.c.bf16 %v807_v31, %v807_v31  ;;  %v1330_v31 = vmul.f32 %v18090_v17, %v17947_v43  ;;  %v18259_v7 = vpack.c.bf16 %v1470_v3, %v1470_v3 }
 0x25c   :  { %v811_v46 = vsel %vm804_vm13, %v810_v19, %v799_v5  ;;  %v18218_v4 = vpop.permute.xlu0 %1166  ;;  %v18220_v28 = vpop.permute.xlu1 %987  ;;  %v18222_v16 = vpack.c.bf16 %v1459_v44, %v1459_v44  ;;  %v1468_v21 = vcombine.high %v1459_v44, %v1459_v44  ;;  %v18240_v19 = vpack.c.bf16 %v1469_v26, %v1469_v26 }
 0x25d   :  { %21611 = vst [vmem:[#allocation34_spill] sm:$0xff] %v18220_v28  ;;  %824 = vst.msk [vmem:[#allocation2 + $0x18] sm:$0xff] %vm18212_vm9, %v811_v46 }
 0x25e   :  { %1494 = vrot.lane.b32.xlu0 %v18222_v16, %s17084_s17  ;;  %v18228_v6 = vpack.c.bf16 %v1468_v21, %v1468_v21  ;;  %v18248_v21 = vpack.c.bf16 %v809_v32, %v809_v32 }
 0x260   :  { %v18230_v47 = vpop.permute.xlu0 %1217  ;;  %1496 = vrot.lane.b32.xlu1 %v18228_v6, %s17084_s17  ;;  %v18234_v5 = vpop.permute.xlu1 %1168 }
 0x261   :  { %21612 = vst [vmem:[#allocation32_spill] sm:$0xff] %v18234_v5 }
 0x262   :  { %1498 = vrot.lane.b32.xlu0 %v18236_v25, %s17084_s17 }
 0x264   :  { %v18242_v44 = vpop.permute.xlu0 %1221  ;;  %1500 = vrot.lane.b32.xlu1 %v18240_v19, %s17084_s17  ;;  %v18246_v46 = vpop.permute.xlu1 %1219  ;;  %v1462_v28 = vld [vmem:[#allocation2 + $0x18] sm:$0xff] }
 0x265   :  { %v1471_v37 = vcombine.high %v1462_v28, %v1462_v28  ;;  %v18263_v32 = vpack.c.bf16 %v1462_v28, %v1462_v28  ;;  %v874_v28 = vmul.f32 %v17637_v29, %v18099_v27  ;;  %v877_v29 = vmul.f32 %v17649_v38, %v18099_v27 }
 0x266   :  { %1502 = vrot.lane.b32.xlu0 %v18248_v21, %s17084_s17  ;;  %v933_v38 = vsel %vm222_vm0, %v18126_v40, %v18138_v55 }
 0x267   :  { %v18271_v43 = vpack.c.bf16 %v1471_v37, %v1471_v37  ;;  %v928_v37 = vsel %vm222_vm0, %v18108_v39, %v18106_v34  ;;  %v931_v39 = vsel %vm222_vm0, %v18116_v42, %v18128_v18  ;;  %v989_v42 = vsel %vm285_vm1, %v18136_v30, %v18147_v12 }
 0x268   :  { %v18254_v41 = vpop.permute.xlu0 %1225  ;;  %1353 = vrot.lane.b32.xlu1 %v1330_v31, %s17091_s23  ;;  %v18257_v26 = vpop.permute.xlu1 %1223  ;;  %v946_v56 = vadd.f32 %v931_v39, %v877_v29  ;;  %v1053_v39 = vsel %vm348_vm2, %v18164_v58, %v18170_v53 }
 0x269   :  { %21615 = vst [vmem:[#allocation36_spill] sm:$0xff] %v18271_v43 }
 0x26a   :  { %1504 = vrot.lane.b32.xlu0 %v18259_v7, %s17084_s17 }
 0x26c   :  { %v18265_v51 = vpop.permute.xlu0 %1227  ;;  %1506 = vrot.lane.b32.xlu1 %v18263_v32, %s17084_s17  ;;  %v18269_v17 = vpop.permute.xlu1 %1048 }
 0x26d   :  { %21613 = vst [vmem:[#allocation31_spill] sm:$0xff] %v18265_v51  ;;  %21614 = vst [vmem:[#allocation33_spill] sm:$0xff] %v18269_v17  ;;  %v929_v17 = vsel %vm222_vm0, %v18106_v34, %v18118_v45  ;;  %v943_v45 = vadd.f32 %v928_v37, %v874_v28 }
 0x26e   :  { %1508 = vrot.lane.b32.xlu0 %v18271_v43, %s17084_s17  ;;  %v944_v51 = vadd.f32 %v929_v17, %v875_v52  ;;  %v879_v43 = vmul.f32 %v21556_v35, %v18099_v27  ;;  %v992_v52 = vsel %vm285_vm1, %v18154_v11, %v18152_v50  ;;  %v993_v35 = vsel %vm285_vm1, %v18152_v50, %v18158_v48 }
 0x26f   :  { %v1004_v17 = vadd.f32 %v989_v42, %v943_v45  ;;  %v1052_v50 = vsel %vm348_vm2, %v18166_v24, %v18164_v58  ;;  %v1007_v29 = vadd.f32 %v992_v52, %v946_v56  ;;  %v1173_v42 = vsel %vm474_vm4, %v18194_v9, %v18192_v8 }
 0x270   :  { %v18275_v3 = vpop.permute.xlu0 %1278  ;;  %1936 = vrot.lane.b32.xlu1 %v18222_v16, %s17085_s18  ;;  %v18279_v31 = vpop.permute.xlu1 %1229  ;;  %v948_v30 = vadd.f32 %v933_v38, %v879_v43  ;;  %v1050_v43 = vsel %vm348_vm2, %v18162_v61, %v18160_v15  ;;  %v1054_v61 = vsel %vm348_vm2, %v18170_v53, %v18168_v22  ;;  %v1234_v52 = vsel %vm537_vm5, %v18246_v46, %v18242_v44 }
 0x271   :  { %21616 = vst [vmem:[#allocation41_spill] sm:$0xff] %v18279_v31  ;;  %v876_v31 = vmul.f32 %v17653_v13, %v18099_v27  ;;  %v932_v13 = vsel %vm222_vm0, %v18128_v18, %v18126_v40  ;;  %v990_v18 = vsel %vm285_vm1, %v18147_v12, %v18145_v14  ;;  %v991_v40 = vsel %vm285_vm1, %v18145_v14, %v18154_v11 }
 0x272   :  { %1938 = vrot.lane.b32.xlu0 %v18228_v6, %s17085_s18  ;;  %v994_v14 = vsel %vm285_vm1, %v18158_v48, %v18156_v36  ;;  %v1051_v11 = vsel %vm348_vm2, %v18160_v15, %v18166_v24  ;;  %v1005_v28 = vadd.f32 %v990_v18, %v944_v51  ;;  %v1111_v15 = vsel %vm411_vm3, %v18172_v57, %v18178_v23 }
 0x273   :  { %v945_v5 = vadd.f32 %v930_v1, %v876_v31  ;;  %v947_v1 = vadd.f32 %v932_v13, %v878_v0  ;;  %v1112_v51 = vsel %vm411_vm3, %v18178_v23, %v18176_v33  ;;  %v1009_v24 = vadd.f32 %v994_v14, %v948_v30 }
 0x274   :  { %v18303_v62 = vpop.permute.xlu0 %1282  ;;  %1940 = vrot.lane.b32.xlu1 %v18236_v25, %s17085_s18  ;;  %v18307_v34 = vpop.permute.xlu1 %1280  ;;  %v1066_v0 = vadd.f32 %v1051_v11, %v1005_v28  ;;  %v1068_v53 = vadd.f32 %v1053_v39, %v1007_v29  ;;  %v1055_v57 = vsel %vm348_vm2, %v18168_v22, %v18174_v60  ;;  %v1172_v23 = vsel %vm474_vm4, %v18188_v49, %v18194_v9 }
 0x275   :  { %v1006_v37 = vadd.f32 %v991_v40, %v945_v5  ;;  %v1008_v48 = vadd.f32 %v993_v35, %v947_v1  ;;  %v1065_v5 = vadd.f32 %v1050_v43, %v1004_v17  ;;  %v1113_v40 = vsel %vm411_vm3, %v18176_v33, %v18182_v63 }
 0x276   :  { %2195 = vrot.lane.b32.xlu0 %v18228_v6, %s17086_s19  ;;  %v1127_v18 = vadd.f32 %v1112_v51, %v1066_v0  ;;  %v1114_v22 = vsel %vm411_vm3, %v18182_v63, %v18180_v59  ;;  %v1115_v49 = vsel %vm411_vm3, %v18180_v59, %v18184_v54  ;;  %v1233_v9 = vsel %vm537_vm5, %v18230_v47, %v18246_v46 }
 0x277   :  { %v1067_v58 = vadd.f32 %v1052_v50, %v1006_v37  ;;  %v1069_v45 = vadd.f32 %v1054_v61, %v1008_v48  ;;  %v1126_v56 = vadd.f32 %v1111_v15, %v1065_v5  ;;  %v1070_v33 = vadd.f32 %v1055_v57, %v1009_v24 }
 0x278   :  { %v18336_v31 = vpop.permute.xlu0 %1286  ;;  %1944 = vrot.lane.b32.xlu1 %v18248_v21, %s17085_s18  ;;  %v18340_v12 = vpop.permute.xlu1 %1284  ;;  %v1188_v30 = vadd.f32 %v1173_v42, %v1127_v18  ;;  %v1174_v17 = vsel %vm474_vm4, %v18192_v8, %v18205_v10  ;;  %v1175_v47 = vsel %vm474_vm4, %v18205_v10, %v18209_v2  ;;  %v1294_v46 = vsel %vm600_vm6, %v18275_v3, %v18307_v34  ;;  %v21619_v42 = vld [vmem:[#allocation31_spill] sm:$0xff]  ;;  %v21620_v18 = vld [vmem:[#allocation20_spill] sm:$0xff] }
 0x279   :  { %v1187_v1 = vadd.f32 %v1172_v23, %v1126_v56  ;;  %v1128_v35 = vadd.f32 %v1113_v40, %v1067_v58  ;;  %v1295_v14 = vsel %vm600_vm6, %v18307_v34, %v18303_v62  ;;  %v1129_v8 = vadd.f32 %v1114_v22, %v1068_v53  ;;  %v21617_v58 = vld [vmem:[#allocation36_spill] sm:$0xff] }
 0x27a   :  { %2452 = vrot.lane.b32.xlu0 %v18228_v6, %s17087_s20  ;;  %v1130_v43 = vadd.f32 %v1115_v49, %v1069_v45  ;;  %v1249_v50 = vadd.f32 %v1234_v52, %v1188_v30  ;;  %v1116_v28 = vsel %vm411_vm3, %v18184_v54, %v18190_v20  ;;  %v1235_v3 = vsel %vm537_vm5, %v18242_v44, %v18257_v26  ;;  %v21618_v23 = vld [vmem:[#allocation32_spill] sm:$0xff]  ;;  %v21621_v52 = vld [vmem:[#allocation41_spill] sm:$0xff] }
 0x27b   :  { %v1248_v11 = vadd.f32 %v1233_v9, %v1187_v1  ;;  %v1189_v10 = vadd.f32 %v1174_v17, %v1128_v35  ;;  %v1236_v34 = vsel %vm537_vm5, %v18257_v26, %v18254_v41  ;;  %v1190_v37 = vadd.f32 %v1175_v47, %v1129_v8  ;;  %v21622_v8 = vld [vmem:[#allocation18_spill] sm:$0xff] }
 0x27c   :  { %v18368_v13 = vpop.permute.xlu0 %1288  ;;  %1948 = vrot.lane.b32.xlu1 %v18263_v32, %s17085_s18  ;;  %v18372_v38 = vpop.permute.xlu1 %1109  ;;  %v1176_v29 = vsel %vm474_vm4, %v18209_v2, %v18218_v4  ;;  %v1310_v48 = vadd.f32 %v1295_v14, %v1249_v50  ;;  %v1296_v44 = vsel %vm600_vm6, %v18303_v62, %v18340_v12  ;;  %v1297_v26 = vsel %vm600_vm6, %v18340_v12, %v18336_v31 }
 0x27d   :  { %v1309_v39 = vadd.f32 %v1294_v46, %v1248_v11  ;;  %v1250_v2 = vadd.f32 %v1235_v3, %v1189_v10  ;;  %v1251_v24 = vadd.f32 %v1236_v34, %v1190_v37  ;;  %v1131_v53 = vadd.f32 %v1116_v28, %v1070_v33 }
 0x27e   :  { %1942 = vrot.lane.b32.xlu0 %v18240_v19, %s17085_s18  ;;  %v1191_v57 = vadd.f32 %v1176_v29, %v1130_v43  ;;  %v1177_v62 = vsel %vm474_vm4, %v18218_v4, %v21618_v23  ;;  %v1237_v12 = vsel %vm537_vm5, %v18254_v41, %v21619_v42  ;;  %v1238_v33 = vsel %vm537_vm5, %v21619_v42, %v21621_v52  ;;  %v21623_v29 = vld [vmem:[#allocation44_spill] sm:$0xff] }
 0x27f   :  { %v1311_v45 = vadd.f32 %v1296_v44, %v1250_v2  ;;  %v1312_v56 = vadd.f32 %v1297_v26, %v1251_v24  ;;  %v1298_v4 = vsel %vm600_vm6, %v18336_v31, %v18368_v13  ;;  %v1192_v47 = vadd.f32 %v1177_v62, %v1131_v53  ;;  %v21624_v2 = vld [vmem:[#allocation22_spill] sm:$0xff] }
 0x280   :  { %v1340_v63 = vpop.permute.xlu0 %1339  ;;  %2193 = vrot.lane.b32.xlu1 %v18222_v16, %s17086_s19  ;;  %v18405_v59 = vpop.permute.xlu1 %1290  ;;  %v1252_v46 = vadd.f32 %v1237_v12, %v1191_v57 }
 0x281   :  { %v1299_v14 = vsel %vm600_vm6, %v18368_v13, %v18405_v59  ;;  %v1253_v3 = vadd.f32 %v1238_v33, %v1192_v47 }
 0x282   :  { %1946 = vrot.lane.b32.xlu0 %v18259_v7, %s17085_s18  ;;  %v1313_v34 = vadd.f32 %v1298_v4, %v1252_v46  ;;  %v21629_v46 = vld [vmem:[#allocation26_spill] sm:$0xff] }
 0x284   :  { %v1344_v61 = vpop.permute.xlu0 %1343  ;;  %2197 = vrot.lane.b32.xlu1 %v18236_v25, %s17086_s19  ;;  %v1342_v54 = vpop.permute.xlu1 %1341 }
 0x285   :  { %v1355_v15 = vsel %vm76_vm7, %v1340_v63, %v1342_v54  ;;  %v1356_v51 = vsel %vm76_vm7, %v1342_v54, %v1344_v61  ;;  %v1314_v54 = vadd.f32 %v1299_v14, %v1253_v3  ;;  %v21632_v3 = vld [vmem:[#allocation50_spill] sm:$0xff] }
 0x286   :  { %v1370_v5 = vadd.f32 %v1355_v15, %v1309_v39  ;;  %v1371_v0 = vadd.f32 %v1356_v51, %v1310_v48  ;;  %1950 = vrot.lane.b32.xlu0 %v21617_v58, %s17085_s18 }
 0x288   :  { %v1378_v40 = vadd.f32 %v1370_v5, %v21620_v18  ;;  %v1379_v22 = vadd.f32 %v1371_v0, %v21620_v18  ;;  %v1348_v49 = vpop.permute.xlu0 %1347  ;;  %2201 = vrot.lane.b32.xlu1 %v18248_v21, %s17086_s19  ;;  %v1346_v9 = vpop.permute.xlu1 %1345  ;;  %v21625_v5 = vld [vmem:[#allocation24_spill] sm:$0xff] }
 0x289   :  { %v1357_v41 = vsel %vm76_vm7, %v1344_v61, %v1346_v9  ;;  %v1358_v1 = vsel %vm76_vm7, %v1346_v9, %v1348_v49  ;;  %v21627_v9 = vld [vmem:[#allocation51_spill] sm:$0xff] }
 0x28a   :  { %v1386_v30 = vmax.f32 %v1378_v40, 0.0  ;;  %v1387_v17 = vmax.f32 %v1379_v22, 0.0  ;;  %v1372_v63 = vadd.f32 %v1357_v41, %v1311_v45  ;;  %v1373_v35 = vadd.f32 %v1358_v1, %v1312_v56  ;;  %v21626_v22 = vld [vmem:[#allocation49_spill] sm:$0xff] }
 0x28c   :  { %v1394_v43 = vmul.f32 %v1386_v30, %v21622_v8  ;;  %v1395_v11 = vmul.f32 %v1387_v17, %v21622_v8  ;;  %v1380_v31 = vadd.f32 %v1372_v63, %v21620_v18  ;;  %v1381_v50 = vadd.f32 %v1373_v35, %v21620_v18  ;;  %v1350_v28 = vpop.permute.xlu0 %1349  ;;  %2205 = vrot.lane.b32.xlu1 %v18263_v32, %s17086_s19  ;;  %v18469_v10 = vpop.permute.xlu1 %1170  ;;  %v21628_v35 = vld [vmem:[#allocation23_spill] sm:$0xff] }
 0x28d   :  { %v1359_v37 = vsel %vm76_vm7, %v1348_v49, %v1350_v28 }
 0x28e   :  { %v1402_v13 = vadd.f32 %v1394_v43, %v21623_v29  ;;  %v1403_v39 = vadd.f32 %v1395_v11, %v21623_v29  ;;  %v1388_v48 = vmax.f32 %v1380_v31, 0.0  ;;  %v1389_v61 = vmax.f32 %v1381_v50, 0.0  ;;  %v21630_v11 = vld [vmem:[#allocation21_spill] sm:$0xff]  ;;  %v21631_v50 = vld [vmem:[#allocation30_spill] sm:$0xff] }
 0x28f   :  { %v1374_v44 = vadd.f32 %v1359_v37, %v1313_v34  ;;  %v881_v31 = vmul.f32 %v21630_v11, %v18099_v27  ;;  %v880_v34 = vmul.f32 %v21632_v3, %v18099_v27  ;;  %v21635_v11 = vmov 0  }
 0x290   :  { %v1396_v26 = vmul.f32 %v1388_v48, %v21622_v8  ;;  %v1397_v15 = vmul.f32 %v1389_v61, %v21622_v8  ;;  %2450 = vrot.lane.b32.xlu1 %v18222_v16, %s17087_s20  ;;  %v18478_v51 = vpop.permute.xlu1 %1351  ;;  %v1410_v24 = vmul.f32 %v1402_v13, %v21624_v2  ;;  %v1411_v0 = vmul.f32 %v1403_v39, %v21625_v5  ;;  %v21633_v13 = vld [vmem:[#allocation34_spill] sm:$0xff]  ;;  %v1293_v61 = vpop.permute.xlu0 %1292 }
 0x291   :  { %v1382_v53 = vadd.f32 %v1374_v44, %v21620_v18  ;;  %v1360_v57 = vsel %vm76_vm7, %v1350_v28, %v18478_v51  ;;  %v934_v28 = vsel %vm222_vm0, %v18138_v55, %v21631_v50  ;;  %v950_v37 = vadd.f32 %v21631_v50, %v881_v31  ;;  %v21634_v44 = vld [vmem:[#allocation33_spill] sm:$0xff] }
 0x292   :  { %v1404_v62 = vadd.f32 %v1396_v26, %v21623_v29  ;;  %v1405_v42 = vadd.f32 %v1397_v15, %v21623_v29  ;;  %v1375_v12 = vadd.f32 %v1360_v57, %v1314_v54  ;;  %v1426_v45 = vcombine.low %v1410_v24, %v1411_v0 }
 0x293   :  { %v1390_v56 = vmax.f32 %v1382_v53, 0.0  ;;  %v995_v39 = vsel %vm285_vm1, %v18156_v36, %v21633_v13  ;;  %v949_v48 = vadd.f32 %v934_v28, %v880_v34  ;;  %v1011_v54 = vadd.f32 %v21633_v13, %v950_v37 }
 0x294   :  { %v1383_v40 = vadd.f32 %v1375_v12, %v21620_v18  ;;  %2454 = vrot.lane.b32.xlu1 %v18236_v25, %s17087_s20  ;;  %1430 = vrot.lane.b32.xlu0 %v1426_v45, %s17093_s1  ;;  %v1412_v49 = vmul.f32 %v1404_v62, %v21626_v22  ;;  %v1413_v33 = vmul.f32 %v1405_v42, %v21627_v9  ;;  %v1232_v15 = vpop.permute.xlu1 %1231 }
 0x295   :  { %v1398_v4 = vmul.f32 %v1390_v56, %v21622_v8  ;;  %v1056_v55 = vsel %vm348_vm2, %v18174_v60, %v21634_v44  ;;  %v1010_v26 = vadd.f32 %v995_v39, %v949_v48  ;;  %v1072_v27 = vadd.f32 %v21634_v44, %v1011_v54 }
 0x296   :  { %v1391_v41 = vmax.f32 %v1383_v40, 0.0  ;;  %v1427_v1 = vcombine.low %v1412_v49, %v1413_v33  ;;  %v1117_v24 = vsel %vm411_vm3, %v18190_v20, %v18372_v38  ;;  %v1178_v57 = vsel %vm474_vm4, %v21618_v23, %v18469_v10  ;;  %v15916_v33 = vld [vmem:[%s21431_s4 + $0x4] sm:$0xf] }
 0x297   :  { %v1406_v30 = vadd.f32 %v1398_v4, %v21623_v29  ;;  %v1071_v36 = vadd.f32 %v1056_v55, %v1010_v26  ;;  %v1133_v53 = vadd.f32 %v18372_v38, %v1072_v27  ;;  %v1239_v12 = vsel %vm537_vm5, %v21621_v52, %v1232_v15 }
 0x298   :  { %v1399_v17 = vmul.f32 %v1391_v41, %v21622_v8  ;;  %2458 = vrot.lane.b32.xlu1 %v18248_v21, %s17087_s20  ;;  %2199 = vrot.lane.b32.xlu0 %v18240_v19, %s17086_s19  ;;  %v1300_v41 = vsel %vm600_vm6, %v18405_v59, %v1293_v61 }
 0x299   :  { %v1414_v47 = vmul.f32 %v1406_v30, %v21628_v35  ;;  %v1132_v60 = vadd.f32 %v1117_v24, %v1071_v36  ;;  %v1194_v42 = vadd.f32 %v18469_v10, %v1133_v53  ;;  %v21636_v24 = vld [vmem:[#allocation28_spill] sm:$0xff]  ;;  %v21637_v53 = vld [vmem:[#allocation25_spill] sm:$0xff] }
 0x29a   :  { %v1407_v63 = vadd.f32 %v1399_v17, %v21623_v29 }
 0x29b   :  { %v1193_v45 = vadd.f32 %v1178_v57, %v1132_v60  ;;  %v1255_v40 = vadd.f32 %v1232_v15, %v1194_v42 }
 0x29c   :  { %2203 = vrot.lane.b32.xlu0 %v18259_v7, %s17086_s19  ;;  %1432 = vrot.lane.b32.xlu1 %v1427_v1, %s17093_s1  ;;  %v1415_v14 = vmul.f32 %v1407_v63, %v21629_v46 }
 0x29d   :  { %v1254_v49 = vadd.f32 %v1239_v12, %v1193_v45  ;;  %v1316_v30 = vadd.f32 %v1293_v61, %v1255_v40  ;;  %v1727_v12 = vsel %vm1522_vm10, %v18248_v21, 0 }
 0x29e   :  { %v1428_v43 = vcombine.low %v1414_v47, %v1415_v14 }
 0x29f   :  { %v1315_v17 = vadd.f32 %v1300_v41, %v1254_v49 }
 0x2a0   :  { %2207 = vrot.lane.b32.xlu0 %v21617_v58, %s17086_s19  ;;  %2462 = vrot.lane.b32.xlu1 %v18263_v32, %s17087_s20 }
 0x2a4   :  { %2707 = vrot.lane.b32.xlu1 %v18222_v16, %s17088_s10  ;;  %1434 = vrot.lane.b32.xlu0 %v1428_v43, %s17093_s1 }
 0x2a8   :  { %2464 = vrot.lane.b32.xlu1 %v21617_v58, %s17087_s20  ;;  %2456 = vrot.lane.b32.xlu0 %v18240_v19, %s17087_s20 }
 0x2ac   :  { %2711 = vrot.lane.b32.xlu1 %v18236_v25, %s17088_s10  ;;  %2460 = vrot.lane.b32.xlu0 %v18259_v7, %s17087_s20 }
 0x2b0   :  { %2715 = vrot.lane.b32.xlu1 %v18248_v21, %s17088_s10 }
 0x2b4   :  { %2719 = vrot.lane.b32.xlu1 %v18263_v32, %s17088_s10 }
 0x2b8   :  { %2964 = vrot.lane.b32.xlu1 %v18222_v16, %s17089_s21 }
 0x2bc   :  { %2968 = vrot.lane.b32.xlu1 %v18236_v25, %s17089_s21 }
 0x2c0   :  { %2972 = vrot.lane.b32.xlu1 %v18248_v21, %s17089_s21 }
 0x2c4   :  { %2976 = vrot.lane.b32.xlu1 %v18263_v32, %s17089_s21 }
 0x2c8   :  { %3221 = vrot.lane.b32.xlu1 %v18222_v16, %s17090_s22 }
 0x2cc   :  { %3225 = vrot.lane.b32.xlu1 %v18236_v25, %s17090_s22 }
 0x2d0   :  { %v1495_v0 = vpop.permute.xlu0 %1494  ;;  %3229 = vrot.lane.b32.xlu1 %v18248_v21, %s17090_s22 }
 0x2d2   :  { %v1497_v62 = vpop.permute.xlu1 %1496 }
 0x2d3   :  { %v1511_v20 = vsel %vm222_vm0, %v1495_v0, %v1497_v62  ;;  %v1721_v0 = vsel %vm1522_vm10, %v18236_v25, 0 }
 0x2d4   :  { %v1499_v56 = vpop.permute.xlu0 %1498  ;;  %3233 = vrot.lane.b32.xlu1 %v18263_v32, %s17090_s22  ;;  %v1524_v10 = vsel %vm1522_vm10, %v1511_v20, 0 }
 0x2d5   :  { %v1512_v38 = vsel %vm222_vm0, %v1497_v62, %v1499_v56  ;;  %v1463_v62 = vld [vmem:[%s21431_s4] sm:$0xf] }
 0x2d6   :  { %15917 = vmatprep.subr.msk.bf16.mxu0 %vm1522_vm10, %v1512_v38  ;;  %v1501_v23 = vpop.permute.xlu1 %1500 }
 0x2d7   :  { %1548 = vmatpush1.bf16.msra.mxu0 %v1524_v10  ;;  %v1513_v52 = vsel %vm222_vm0, %v1499_v56, %v1501_v23  ;;  %v1733_v56 = vsel %vm1522_vm10, %v18263_v32, 0 }
 0x2d8   :  { %v1503_v4 = vpop.permute.xlu0 %1502  ;;  %3478 = vrot.lane.b32.xlu1 %v18222_v16, %s17091_s23  ;;  %v1530_v47 = vsel %vm1522_vm10, %v1513_v52, 0 }
 0x2d9   :  { %v1514_v1 = vsel %vm222_vm0, %v1501_v23, %v1503_v4 }
 0x2da   :  { %15919 = vmatprep.subr.msk.bf16.mxu1 %vm1522_vm10, %v1514_v1  ;;  %v1354_v63 = vpop.permute.xlu1 %1353  ;;  %15918 = vmatmul.mubr.msk.bf16.vlgmr.msra.gmra.mrb[0].mxu0 %vm1518_vm11, %v15916_v33 }
 0x2db   :  { %v1361_v14 = vsel %vm76_vm7, %v18478_v51, %v1354_v63  ;;  %v1377_v43 = vadd.f32 %v1354_v63, %v1316_v30  ;;  %1589 = vmatpush1.bf16.msra.mxu1 %v1530_v47  ;;  %1661 = vmatprep.mubr.bf16.mxu0 %v21635_v11  ;;  %v15933_v30 = vld [vmem:[%s21431_s4 + $0x8] sm:$0xf] }
 0x2dc   :  { %v1376_v31 = vadd.f32 %v1361_v14, %v1315_v17  ;;  %v1505_v59 = vpop.permute.xlu0 %1504  ;;  %3482 = vrot.lane.b32.xlu1 %v18236_v25, %s17091_s23 }
 0x2dd   :  { %v1385_v50 = vadd.f32 %v1377_v43, %v21620_v18  ;;  %v1515_v28 = vsel %vm222_vm0, %v1503_v4, %v1505_v59 }
 0x2de   :  { %v1384_v3 = vadd.f32 %v1376_v31, %v21620_v18  ;;  %15920 = vmatmul.mubr.msk.bf16.vlgmr.msra.gmra.mrb[0].mxu1 %vm1518_vm11, %v15916_v33  ;;  %v1507_v34 = vpop.permute.xlu1 %1506  ;;  %v1536_v48 = vsel %vm1522_vm10, %v1515_v28, 0 }
 0x2df   :  { %v1393_v37 = vmax.f32 %v1385_v50, 0.0  ;;  %v1516_v51 = vsel %vm222_vm0, %v1505_v59, %v1507_v34  ;;  %1702 = vmatprep.mubr.bf16.mxu1 %v21635_v11 }
 0x2e0   :  { %v1392_v13 = vmax.f32 %v1384_v3, 0.0  ;;  %v1509_v39 = vpop.permute.xlu0 %1508  ;;  %3486 = vrot.lane.b32.xlu1 %v18248_v21, %s17091_s23  ;;  %15921 = vmatprep.subr.msk.bf16.mxu0 %vm1522_vm10, %v1516_v51 }
 0x2e1   :  { %v1401_v61 = vmul.f32 %v1393_v37, %v21622_v8  ;;  %v1517_v18 = vsel %vm222_vm0, %v1507_v34, %v1509_v39  ;;  %1630 = vmatpush1.bf16.msra.mxu0 %v1536_v48  ;;  %15923 = vmatprep.subr.msk.bf16.mxu1 %vm1522_vm10, %v1509_v39 }
 0x2e2   :  { %v1400_v54 = vmul.f32 %v1392_v13, %v21622_v8  ;;  %15925 = vmatprep.subr.msk.bf16.mxu0 %vm1522_vm10, %v18228_v6  ;;  %v1937_v44 = vpop.permute.xlu1 %1936  ;;  %v1542_v55 = vsel %vm1522_vm10, %v1517_v18, 0  ;;  %v1715_v8 = vsel %vm1522_vm10, %v18222_v16, 0  ;;  %v15942_v13 = vld [vmem:[%s21431_s4 + $0xc] sm:$0xf] }
 0x2e3   :  { %v1409_v26 = vadd.f32 %v1401_v61, %v21623_v29  ;;  %1671 = vmatpush1.bf16.msra.mxu1 %v1542_v55 }
 0x2e4   :  { %v1408_v15 = vadd.f32 %v1400_v54, %v21623_v29  ;;  %v1939_v27 = vpop.permute.xlu0 %1938  ;;  %3490 = vrot.lane.b32.xlu1 %v18263_v32, %s17091_s23  ;;  %15922 = vmatmul.mubr.msk.bf16.vlgmr.msra.gmra.mrb[4].mxu0 %vm1518_vm11, %v15916_v33 }
 0x2e5   :  { %15927 = vmatprep.subr.msk.bf16.mxu1 %vm1522_vm10, %v18240_v19  ;;  %1739 = vmatpush1.bf16.msra.mxu0 %v1715_v8  ;;  %v1417_v36 = vmul.f32 %v1409_v26, %v21636_v24  ;;  %v1953_v21 = vsel %vm285_vm1, %v1937_v44, %v1939_v27 }
 0x2e6   :  { %15924 = vmatmul.mubr.msk.bf16.vlgmr.msra.gmra.mrb[4].mxu1 %vm1518_vm11, %v15916_v33  ;;  %15929 = vmatprep.subr.msk.bf16.mxu0 %vm1522_vm10, %v18259_v7  ;;  %v1941_v29 = vpop.permute.xlu1 %1940  ;;  %v1416_v57 = vmul.f32 %v1408_v15, %v21637_v53  ;;  %v1964_v32 = vsel %vm1522_vm10, %v1953_v21, 0 }
 0x2e7   :  { %1780 = vmatpush1.bf16.msra.mxu1 %v1721_v0  ;;  %1770 = vmatprep.mubr.bf16.mxu0 %v21635_v11  ;;  %v1954_v20 = vsel %vm285_vm1, %v1939_v27, %v1941_v29 }
 0x2e8   :  { %v2196_v16 = vpop.permute.xlu0 %2195  ;;  %15931 = vmatprep.subr.msk.bf16.mxu1 %vm1522_vm10, %v21617_v58  ;;  %v1429_v60 = vcombine.low %v1416_v57, %v1417_v36  ;;  %1811 = vmatprep.mubr.bf16.mxu1 %v21635_v11 }
 0x2ea   :  { %1436 = vrot.lane.b32.xlu0 %v1429_v60, %s17093_s1  ;;  %v1945_v42 = vpop.permute.xlu1 %1944 }
 0x2ec   :  { %v18629_v25 = vpop.permute.xlu0 %2452  ;;  %15926 = vmatmul.mubr.msk.bf16.vlgmr.msra.gmra.mrb[8].mxu0 %vm1518_vm11, %v1463_v62 }
 0x2ed   :  { %1821 = vmatpush1.bf16.msra.mxu0 %v1727_v12  ;;  %1852 = vmatprep.mubr.bf16.mxu0 %v21635_v11 }
 0x2ee   :  { %15934 = vmatprep.subr.msk.bf16.mxu0 %vm1522_vm10, %v1954_v20  ;;  %2709 = vrot.lane.b32.xlu0 %v18228_v6, %s17088_s10  ;;  %v1949_v45 = vpop.permute.xlu1 %1948 }
 0x2ef   :  { %15928 = vmatmul.mubr.msk.bf16.vlgmr.msra.gmra.mrb[8].mxu1 %vm1518_vm11, %v1463_v62 }
 0x2f0   :  { %1862 = vmatpush1.bf16.msra.mxu1 %v1733_v56  ;;  %v1943_v40 = vpop.permute.xlu0 %1942  ;;  %1893 = vmatprep.mubr.bf16.mxu1 %v21635_v11 }
 0x2f1   :  { %v1956_v38 = vsel %vm285_vm1, %v1943_v40, %v1945_v42  ;;  %v1955_v23 = vsel %vm285_vm1, %v1941_v29, %v1943_v40 }
 0x2f2   :  { %2713 = vrot.lane.b32.xlu0 %v18240_v19, %s17088_s10  ;;  %15936 = vmatprep.subr.msk.bf16.mxu1 %vm1522_vm10, %v1956_v38  ;;  %v2194_v49 = vpop.permute.xlu1 %2193  ;;  %v1970_v4 = vsel %vm1522_vm10, %v1955_v23, 0  ;;  %v15951_v23 = vld [vmem:[%s21431_s4 + $0x10] sm:$0xf] }
 0x2f3   :  { %v2210_v59 = vsel %vm348_vm2, %v2194_v49, %v2196_v16 }
 0x2f4   :  { %v1947_v10 = vpop.permute.xlu0 %1946  ;;  %15930 = vmatmul.mubr.msk.bf16.vlgmr.msra.gmra.mrb[12].mxu0 %vm1518_vm11, %v1463_v62  ;;  %v2221_v28 = vsel %vm1522_vm10, %v2210_v59, 0 }
 0x2f5   :  { %1988 = vmatpush1.bf16.msra.mxu0 %v1964_v32  ;;  %v1958_v52 = vsel %vm285_vm1, %v1947_v10, %v1949_v45  ;;  %2019 = vmatprep.mubr.bf16.mxu0 %v21635_v11  ;;  %v1957_v1 = vsel %vm285_vm1, %v1945_v42, %v1947_v10 }
 0x2f6   :  { %2717 = vrot.lane.b32.xlu0 %v18259_v7, %s17088_s10  ;;  %15938 = vmatprep.subr.msk.bf16.mxu0 %vm1522_vm10, %v1958_v52  ;;  %v2198_v33 = vpop.permute.xlu1 %2197  ;;  %v1976_v47 = vsel %vm1522_vm10, %v1957_v1, 0 }
 0x2f7   :  { %15932 = vmatmul.mubr.msk.bf16.vlgmr.msra.gmra.mrb[12].mxu1 %vm1518_vm11, %v1463_v62  ;;  %v2211_v14 = vsel %vm348_vm2, %v2196_v16, %v2198_v33 }
 0x2f8   :  { %2029 = vmatpush1.bf16.msra.mxu1 %v1970_v4  ;;  %v1951_v41 = vpop.permute.xlu0 %1950  ;;  %2060 = vmatprep.mubr.bf16.mxu1 %v21635_v11 }
 0x2f9   :  { %15940 = vmatprep.subr.msk.bf16.mxu1 %vm1522_vm10, %v1951_v41  ;;  %v1959_v63 = vsel %vm285_vm1, %v1949_v45, %v1951_v41 }
 0x2fa   :  { %2721 = vrot.lane.b32.xlu0 %v21617_v58, %s17088_s10  ;;  %v2202_v17 = vpop.permute.xlu1 %2201  ;;  %v1982_v31 = vsel %vm1522_vm10, %v1959_v63, 0 }
 0x2fc   :  { %15935 = vmatmul.mubr.msk.bf16.vlgmr.msra.gmra.mrb[16].mxu0 %vm1518_vm11, %v15933_v30 }
 0x2fd   :  { %2070 = vmatpush1.bf16.msra.mxu0 %v1976_v47  ;;  %2101 = vmatprep.mubr.bf16.mxu0 %v21635_v11 }
 0x2fe   :  { %15943 = vmatprep.subr.msk.bf16.mxu0 %vm1522_vm10, %v2211_v14  ;;  %2966 = vrot.lane.b32.xlu0 %v18228_v6, %s17089_s21  ;;  %v2206_v43 = vpop.permute.xlu1 %2205 }
 0x2ff   :  { %15937 = vmatmul.mubr.msk.bf16.vlgmr.msra.gmra.mrb[16].mxu1 %vm1518_vm11, %v15933_v30 }
 0x300   :  { %2111 = vmatpush1.bf16.msra.mxu1 %v1982_v31  ;;  %2142 = vmatprep.mubr.bf16.mxu1 %v21635_v11 }
 0x302   :  { %2970 = vrot.lane.b32.xlu0 %v18240_v19, %s17089_s21  ;;  %v2451_v50 = vpop.permute.xlu1 %2450 }
 0x303   :  { %v2467_v29 = vsel %vm411_vm3, %v2451_v50, %v18629_v25 }
 0x304   :  { %15939 = vmatmul.mubr.msk.bf16.vlgmr.msra.gmra.mrb[20].mxu0 %vm1518_vm11, %v15933_v30 }
 0x305   :  { %2245 = vmatpush1.bf16.msra.mxu0 %v2221_v28  ;;  %2276 = vmatprep.mubr.bf16.mxu0 %v21635_v11 }
 0x306   :  { %v1431_v3 = vpop.permute.xlu0 %1430  ;;  %2974 = vrot.lane.b32.xlu0 %v18259_v7, %s17089_s21  ;;  %v2455_v34 = vpop.permute.xlu1 %2454 }
 0x307   :  { %v1438_v37 = vrot.slane %v1431_v3, 4  ;;  %15941 = vmatmul.mubr.msk.bf16.vlgmr.msra.gmra.mrb[20].mxu1 %vm1518_vm11, %v15933_v30  ;;  %v2468_v57 = vsel %vm411_vm3, %v18629_v25, %v2455_v34  ;;  %v2478_v25 = vsel %vm1522_vm10, %v2467_v29, 0 }
 0x308   :  { %2317 = vmatprep.mubr.bf16.mxu1 %v21635_v11 }
 0x309   :  { %v1442_v51 = vsel %vm804_vm13, %v1438_v37, %v1431_v3 }
 0x30a   :  { %1454 = vst.msk [vmem:[#allocation2 + $0x20] sm:$0xff] %vm18196_vm14, %v1442_v51  ;;  %v2200_v48 = vpop.permute.xlu0 %2199  ;;  %2978 = vrot.lane.b32.xlu0 %v21617_v58, %s17089_s21  ;;  %v18695_v61 = vpop.permute.xlu1 %2458  ;;  %vm3801_vm14 = vcmask 285696  }
 0x30b   :  { %v2212_v18 = vsel %vm348_vm2, %v2198_v33, %v2200_v48  ;;  %v2213_v54 = vsel %vm348_vm2, %v2200_v48, %v2202_v17 }
 0x30c   :  { %15944 = vmatmul.mubr.msk.bf16.vlgmr.msra.gmra.mrb[24].mxu0 %vm1518_vm11, %v15942_v13  ;;  %15945 = vmatprep.subr.msk.bf16.mxu1 %vm1522_vm10, %v2213_v54  ;;  %v2227_v44 = vsel %vm1522_vm10, %v2212_v18, 0 }
 0x30d   :  { %2286 = vmatpush1.bf16.msra.mxu1 %v2227_v44  ;;  %2358 = vmatprep.mubr.bf16.mxu0 %v21635_v11 }
 0x30e   :  { %v2204_v55 = vpop.permute.xlu0 %2203  ;;  %3223 = vrot.lane.b32.xlu0 %v18228_v6, %s17090_s22  ;;  %v1433_v26 = vpop.permute.xlu1 %1432 }
 0x30f   :  { %v2214_v15 = vsel %vm348_vm2, %v2202_v17, %v2204_v55  ;;  %v1439_v27 = vrot.slane %v1433_v26, 4  ;;  %v2215_v8 = vsel %vm348_vm2, %v2204_v55, %v2206_v43 }
 0x310   :  { %15946 = vmatmul.mubr.msk.bf16.vlgmr.msra.gmra.mrb[24].mxu1 %vm1518_vm11, %v15942_v13  ;;  %15947 = vmatprep.subr.msk.bf16.mxu0 %vm1522_vm10, %v2215_v8  ;;  %v2233_v36 = vsel %vm1522_vm10, %v2214_v15, 0  ;;  %v15960_v15 = vld [vmem:[%s21431_s4 + $0x14] sm:$0xf] }
 0x311   :  { %v1443_v0 = vsel %vm61_vm8, %v1438_v37, %v1439_v27  ;;  %2327 = vmatpush1.bf16.msra.mxu0 %v2233_v36  ;;  %v3803_v16 = vld [vmem:[#allocation2 + $0x20] sm:$0xff]  ;;  %2399 = vmatprep.mubr.bf16.mxu1 %v21635_v11 }
 0x312   :  { %v1444_v60 = vsel %vm804_vm13, %v1443_v0, %v1433_v26  ;;  %v2208_v62 = vpop.permute.xlu0 %2207  ;;  %3227 = vrot.lane.b32.xlu0 %v18240_v19, %s17090_s22  ;;  %15952 = vmatprep.subr.msk.bf16.mxu0 %vm1522_vm10, %v2468_v57  ;;  %v2463_v42 = vpop.permute.xlu1 %2462  ;;  %v18720_v12 = vpack.c.bf16 %v3803_v16, %v3803_v16 }
 0x313   :  { %v2216_v20 = vsel %vm348_vm2, %v2206_v43, %v2208_v62  ;;  %15949 = vmatprep.subr.msk.bf16.mxu1 %vm1522_vm10, %v2208_v62  ;;  %v18736_v21 = vpack.c.bf16 %v1444_v60, %v1444_v60 }
 0x314   :  { %3837 = vrot.lane.b32.xlu1 %v18720_v12, %s17084_s17  ;;  %15948 = vmatmul.mubr.msk.bf16.vlgmr.msra.gmra.mrb[28].mxu0 %vm1518_vm11, %v15942_v13  ;;  %v2239_v45 = vsel %vm1522_vm10, %v2216_v20, 0 }
 0x315   :  { %2368 = vmatpush1.bf16.msra.mxu1 %v2239_v45  ;;  %2502 = vmatpush1.bf16.msra.mxu0 %v2478_v25 }
 0x316   :  { %v18729_v56 = vpop.permute.xlu0 %1434  ;;  %3231 = vrot.lane.b32.xlu0 %v18259_v7, %s17090_s22  ;;  %v18733_v40 = vpop.permute.xlu1 %2707  ;;  %2533 = vmatprep.mubr.bf16.mxu0 %v21635_v11 }
 0x317   :  { %v1440_v38 = vrot.slane %v18729_v56, 4 }
 0x318   :  { %15950 = vmatmul.mubr.msk.bf16.vlgmr.msra.gmra.mrb[28].mxu1 %vm1518_vm11, %v15942_v13  ;;  %3841 = vrot.lane.b32.xlu1 %v18736_v21, %s17084_s17 }
 0x319   :  { %v1445_v49 = vsel %vm61_vm8, %v1439_v27, %v1440_v38  ;;  %2574 = vmatprep.mubr.bf16.mxu1 %v21635_v11 }
 0x31a   :  { %v1446_v10 = vsel %vm804_vm13, %v1445_v49, %v18729_v56  ;;  %v2457_v32 = vpop.permute.xlu0 %2456  ;;  %3235 = vrot.lane.b32.xlu0 %v21617_v58, %s17090_s22  ;;  %v2465_v52 = vpop.permute.xlu1 %2464 }
 0x31b   :  { %v2469_v33 = vsel %vm411_vm3, %v2455_v34, %v2457_v32  ;;  %v2470_v4 = vsel %vm411_vm3, %v2457_v32, %v18695_v61  ;;  %v18754_v41 = vpack.c.bf16 %v1446_v10, %v1446_v10  ;;  %v2473_v30 = vsel %vm411_vm3, %v2463_v42, %v2465_v52 }
 0x31c   :  { %15953 = vmatmul.mubr.msk.bf16.vlgmr.msra.gmra.mrb[32].mxu0 %vm1518_vm11, %v15951_v23  ;;  %15954 = vmatprep.subr.msk.bf16.mxu1 %vm1522_vm10, %v2470_v4  ;;  %v2484_v1 = vsel %vm1522_vm10, %v2469_v33, 0  ;;  %v2496_v43 = vsel %vm1522_vm10, %v2473_v30, 0  ;;  %v3814_v50 = vcombine.high %v1446_v10, %v1446_v10  ;;  %v15969_v4 = vld [vmem:[%s21431_s4 + $0x18] sm:$0xf] }
 0x31d   :  { %2543 = vmatpush1.bf16.msra.mxu1 %v2484_v1  ;;  %2615 = vmatprep.mubr.bf16.mxu0 %v21635_v11 }
 0x31e   :  { %v2461_v17 = vpop.permute.xlu0 %2460  ;;  %3480 = vrot.lane.b32.xlu0 %v18228_v6, %s17091_s23  ;;  %15958 = vmatprep.subr.msk.bf16.mxu1 %vm1522_vm10, %v2465_v52  ;;  %v3812_v6 = vcombine.high %v3803_v16, %v3803_v16  ;;  %v2712_v28 = vpop.permute.xlu1 %2711 }
 0x31f   :  { %v2471_v63 = vsel %vm411_vm3, %v18695_v61, %v2461_v17  ;;  %v2472_v47 = vsel %vm411_vm3, %v2461_v17, %v2463_v42  ;;  %3845 = vrot.lane.b32.xlu1 %v18754_v41, %s17084_s17 }
 0x320   :  { %15955 = vmatmul.mubr.msk.bf16.vlgmr.msra.gmra.mrb[32].mxu1 %vm1518_vm11, %v15951_v23  ;;  %15956 = vmatprep.subr.msk.bf16.mxu0 %vm1522_vm10, %v2472_v47  ;;  %v2490_v14 = vsel %vm1522_vm10, %v2471_v63, 0  ;;  %v18784_v31 = vpack.c.bf16 %v3812_v6, %v3812_v6 }
 0x321   :  { %2584 = vmatpush1.bf16.msra.mxu0 %v2490_v14  ;;  %2625 = vmatpush1.bf16.msra.mxu1 %v2496_v43 }
 0x322   :  { %3484 = vrot.lane.b32.xlu0 %v18240_v19, %s17091_s23  ;;  %2656 = vmatprep.mubr.bf16.mxu1 %v21635_v11  ;;  %v3813_v19 = vcombine.high %v1444_v60, %v1444_v60  ;;  %v2716_v3 = vpop.permute.xlu1 %2715 }
 0x324   :  { %15957 = vmatmul.mubr.msk.bf16.vlgmr.msra.gmra.mrb[36].mxu0 %vm1518_vm11, %v15951_v23  ;;  %v18788_v59 = vpack.c.bf16 %v3813_v19, %v3813_v19 }
 0x325   :  { %2790 = vmatprep.mubr.bf16.mxu0 %v21635_v11 }
 0x326   :  { %3488 = vrot.lane.b32.xlu0 %v18259_v7, %s17091_s23  ;;  %v18792_v7 = vpack.c.bf16 %v3814_v50, %v3814_v50 }
 0x328   :  { %15959 = vmatmul.mubr.msk.bf16.vlgmr.msra.gmra.mrb[36].mxu1 %vm1518_vm11, %v15951_v23 }
 0x329   :  { %2831 = vmatprep.mubr.bf16.mxu1 %v21635_v11 }
 0x32a   :  { %3492 = vrot.lane.b32.xlu0 %v21617_v58, %s17091_s23  ;;  %v2720_v58 = vpop.permute.xlu1 %2719 }
 0x32e   :  { %3839 = vrot.lane.b32.xlu0 %v18784_v31, %s17084_s17  ;;  %v2965_v34 = vpop.permute.xlu1 %2964 }
 0x332   :  { %3843 = vrot.lane.b32.xlu0 %v18788_v59, %s17084_s17  ;;  %v2969_v37 = vpop.permute.xlu1 %2968 }
 0x336   :  { %3847 = vrot.lane.b32.xlu0 %v18792_v7, %s17084_s17  ;;  %v18796_v39 = vpop.permute.xlu1 %2972 }
 0x33a   :  { %v18810_v27 = vpop.permute.xlu1 %2976 }
 0x33e   :  { %v3222_v25 = vpop.permute.xlu1 %3221 }
 0x342   :  { %v3226_v23 = vpop.permute.xlu1 %3225 }
 0x346   :  { %v3230_v63 = vpop.permute.xlu1 %3229 }
 0x34a   :  { %v3234_v50 = vpop.permute.xlu1 %3233 }
 0x35c   :  { %v1437_v51 = vpop.permute.xlu0 %1436 }
 0x35d   :  { %v1441_v13 = vrot.slane %v1437_v51, 4 }
 0x35f   :  { %v1447_v48 = vsel %vm61_vm8, %v1440_v38, %v1441_v13  ;;  %v3479_v13 = vpop.permute.xlu1 %3478 }
 0x360   :  { %v1448_v61 = vsel %vm804_vm13, %v1447_v48, %v1437_v51  ;;  %v2710_v18 = vpop.permute.xlu0 %2709  ;;  %v15978_v48 = vld [vmem:[%s21431_s4 + $0x1c] sm:$0xf] }
 0x361   :  { %1457 = vst.msk [vmem:[#allocation2 + $0x38] sm:$0xff] %vm18212_vm9, %v1448_v61  ;;  %v2724_v44 = vsel %vm474_vm4, %v18733_v40, %v2710_v18  ;;  %v2725_v55 = vsel %vm474_vm4, %v2710_v18, %v2712_v28 }
 0x362   :  { %15961 = vmatprep.subr.msk.bf16.mxu0 %vm1522_vm10, %v2725_v55  ;;  %v2735_v26 = vsel %vm1522_vm10, %v2724_v44, 0 }
 0x363   :  { %2759 = vmatpush1.bf16.msra.mxu0 %v2735_v26  ;;  %v3483_v55 = vpop.permute.xlu1 %3482 }
 0x364   :  { %v2714_v8 = vpop.permute.xlu0 %2713 }
 0x365   :  { %v2726_v36 = vsel %vm474_vm4, %v2712_v28, %v2714_v8  ;;  %v2727_v29 = vsel %vm474_vm4, %v2714_v8, %v2716_v3 }
 0x366   :  { %15962 = vmatmul.mubr.msk.bf16.vlgmr.msra.gmra.mrb[40].mxu0 %vm1518_vm11, %v15960_v15  ;;  %15963 = vmatprep.subr.msk.bf16.mxu1 %vm1522_vm10, %v2727_v29  ;;  %v2741_v0 = vsel %vm1522_vm10, %v2726_v36, 0 }
 0x367   :  { %2800 = vmatpush1.bf16.msra.mxu1 %v2741_v0  ;;  %2872 = vmatprep.mubr.bf16.mxu0 %v21635_v11  ;;  %v3487_v0 = vpop.permute.xlu1 %3486 }
 0x368   :  { %v2718_v57 = vpop.permute.xlu0 %2717  ;;  %v3806_v16 = vld [vmem:[#allocation2 + $0x38] sm:$0xff] }
 0x369   :  { %v2728_v60 = vsel %vm474_vm4, %v2716_v3, %v2718_v57  ;;  %v2729_v62 = vsel %vm474_vm4, %v2718_v57, %v2720_v58  ;;  %v18820_v42 = vpack.c.bf16 %v3806_v16, %v3806_v16  ;;  %v3815_v20 = vcombine.high %v3806_v16, %v3806_v16 }
 0x36a   :  { %15964 = vmatmul.mubr.msk.bf16.vlgmr.msra.gmra.mrb[40].mxu1 %vm1518_vm11, %v15960_v15  ;;  %15965 = vmatprep.subr.msk.bf16.mxu0 %vm1522_vm10, %v2729_v62  ;;  %v2747_v45 = vsel %vm1522_vm10, %v2728_v60, 0 }
 0x36b   :  { %3849 = vrot.lane.b32.xlu1 %v18820_v42, %s17084_s17  ;;  %2841 = vmatpush1.bf16.msra.mxu0 %v2747_v45  ;;  %v18827_v56 = vpack.c.bf16 %v3815_v20, %v3815_v20  ;;  %v3491_v45 = vpop.permute.xlu1 %3490 }
 0x36c   :  { %v2722_v40 = vpop.permute.xlu0 %2721  ;;  %2913 = vmatprep.mubr.bf16.mxu1 %v21635_v11 }
 0x36d   :  { %v2730_v38 = vsel %vm474_vm4, %v2720_v58, %v2722_v40  ;;  %3851 = vrot.lane.b32.xlu0 %v18827_v56, %s17084_s17  ;;  %15967 = vmatprep.subr.msk.bf16.mxu1 %vm1522_vm10, %v2722_v40 }
 0x36e   :  { %15966 = vmatmul.mubr.msk.bf16.vlgmr.msra.gmra.mrb[44].mxu0 %vm1518_vm11, %v15960_v15  ;;  %v2753_v49 = vsel %vm1522_vm10, %v2730_v38, 0 }
 0x36f   :  { %4275 = vrot.lane.b32.xlu1 %v18720_v12, %s17085_s18  ;;  %2882 = vmatpush1.bf16.msra.mxu1 %v2753_v49 }
 0x370   :  { %v2967_v10 = vpop.permute.xlu0 %2966  ;;  %3047 = vmatprep.mubr.bf16.mxu0 %v21635_v11 }
 0x371   :  { %v2981_v32 = vsel %vm537_vm5, %v2965_v34, %v2967_v10  ;;  %4277 = vrot.lane.b32.xlu0 %v18784_v31, %s17085_s18  ;;  %v2982_v52 = vsel %vm537_vm5, %v2967_v10, %v2969_v37 }
 0x372   :  { %15968 = vmatmul.mubr.msk.bf16.vlgmr.msra.gmra.mrb[44].mxu1 %vm1518_vm11, %v15960_v15  ;;  %15970 = vmatprep.subr.msk.bf16.mxu0 %vm1522_vm10, %v2982_v52  ;;  %v2992_v33 = vsel %vm1522_vm10, %v2981_v32, 0 }
 0x373   :  { %4279 = vrot.lane.b32.xlu1 %v18736_v21, %s17085_s18  ;;  %3016 = vmatpush1.bf16.msra.mxu0 %v2992_v33 }
 0x374   :  { %v2971_v1 = vpop.permute.xlu0 %2970  ;;  %3088 = vmatprep.mubr.bf16.mxu1 %v21635_v11 }
 0x375   :  { %v2983_v30 = vsel %vm537_vm5, %v2969_v37, %v2971_v1  ;;  %4281 = vrot.lane.b32.xlu0 %v18788_v59, %s17085_s18  ;;  %v2984_v17 = vsel %vm537_vm5, %v2971_v1, %v18796_v39 }
 0x376   :  { %15971 = vmatmul.mubr.msk.bf16.vlgmr.msra.gmra.mrb[48].mxu0 %vm1518_vm11, %v15969_v4  ;;  %15972 = vmatprep.subr.msk.bf16.mxu1 %vm1522_vm10, %v2984_v17  ;;  %v2998_v47 = vsel %vm1522_vm10, %v2983_v30, 0 }
 0x377   :  { %4283 = vrot.lane.b32.xlu1 %v18754_v41, %s17085_s18  ;;  %3057 = vmatpush1.bf16.msra.mxu1 %v2998_v47 }
 0x378   :  { %v2975_v14 = vpop.permute.xlu0 %2974  ;;  %3129 = vmatprep.mubr.bf16.mxu0 %v21635_v11 }
 0x379   :  { %v2985_v43 = vsel %vm537_vm5, %v18796_v39, %v2975_v14  ;;  %4285 = vrot.lane.b32.xlu0 %v18792_v7, %s17085_s18  ;;  %v2986_v6 = vsel %vm537_vm5, %v2975_v14, %v18810_v27 }
 0x37a   :  { %15973 = vmatmul.mubr.msk.bf16.vlgmr.msra.gmra.mrb[48].mxu1 %vm1518_vm11, %v15969_v4  ;;  %15974 = vmatprep.subr.msk.bf16.mxu0 %vm1522_vm10, %v2986_v6  ;;  %v3004_v19 = vsel %vm1522_vm10, %v2985_v43, 0 }
 0x37b   :  { %4287 = vrot.lane.b32.xlu1 %v18820_v42, %s17085_s18  ;;  %3098 = vmatpush1.bf16.msra.mxu0 %v3004_v19  ;;  %v18981_v19 = vld [vmem:[%s21431_s4 + $0x4] sm:$0xf] }
 0x37c   :  { %v2979_v28 = vpop.permute.xlu0 %2978  ;;  %3170 = vmatprep.mubr.bf16.mxu1 %v21635_v11 }
 0x37d   :  { %v2987_v3 = vsel %vm537_vm5, %v18810_v27, %v2979_v28  ;;  %4289 = vrot.lane.b32.xlu0 %v18827_v56, %s17085_s18  ;;  %15976 = vmatprep.subr.msk.bf16.mxu1 %vm1522_vm10, %v2979_v28 }
 0x37e   :  { %15975 = vmatmul.mubr.msk.bf16.vlgmr.msra.gmra.mrb[52].mxu0 %vm1518_vm11, %v15969_v4  ;;  %v3010_v58 = vsel %vm1522_vm10, %v2987_v3, 0 }
 0x37f   :  { %4530 = vrot.lane.b32.xlu1 %v18720_v12, %s17086_s19  ;;  %3139 = vmatpush1.bf16.msra.mxu1 %v3010_v58 }
 0x380   :  { %v3224_v34 = vpop.permute.xlu0 %3223  ;;  %3304 = vmatprep.mubr.bf16.mxu0 %v21635_v11 }
 0x381   :  { %v3238_v37 = vsel %vm600_vm6, %v3222_v25, %v3224_v34  ;;  %4532 = vrot.lane.b32.xlu0 %v18784_v31, %s17086_s19  ;;  %v3239_v51 = vsel %vm600_vm6, %v3224_v34, %v3226_v23  ;;  %v15987_v25 = vld [vmem:[%s21431_s4 + $0x20] sm:$0xf] }
 0x382   :  { %15977 = vmatmul.mubr.msk.bf16.vlgmr.msra.gmra.mrb[52].mxu1 %vm1518_vm11, %v15969_v4  ;;  %15979 = vmatprep.subr.msk.bf16.mxu0 %vm1522_vm10, %v3239_v51  ;;  %v3249_v39 = vsel %vm1522_vm10, %v3238_v37, 0 }
 0x383   :  { %4534 = vrot.lane.b32.xlu1 %v18736_v21, %s17086_s19  ;;  %3273 = vmatpush1.bf16.msra.mxu0 %v3249_v39 }
 0x384   :  { %v3228_v61 = vpop.permute.xlu0 %3227  ;;  %3345 = vmatprep.mubr.bf16.mxu1 %v21635_v11 }
 0x385   :  { %v3240_v18 = vsel %vm600_vm6, %v3226_v23, %v3228_v61  ;;  %4536 = vrot.lane.b32.xlu0 %v18788_v59, %s17086_s19  ;;  %v3241_v54 = vsel %vm600_vm6, %v3228_v61, %v3230_v63 }
 0x386   :  { %15980 = vmatmul.mubr.msk.bf16.vlgmr.msra.gmra.mrb[56].mxu0 %vm1518_vm11, %v15978_v48  ;;  %15981 = vmatprep.subr.msk.bf16.mxu1 %vm1522_vm10, %v3241_v54  ;;  %v3255_v44 = vsel %vm1522_vm10, %v3240_v18, 0  ;;  %v3838_v10 = vpop.permute.xlu1 %3837 }
 0x387   :  { %4538 = vrot.lane.b32.xlu1 %v18754_v41, %s17086_s19  ;;  %3314 = vmatpush1.bf16.msra.mxu1 %v3255_v44 }
 0x388   :  { %v3232_v26 = vpop.permute.xlu0 %3231  ;;  %3386 = vmatprep.mubr.bf16.mxu0 %v21635_v11 }
 0x389   :  { %v3242_v15 = vsel %vm600_vm6, %v3230_v63, %v3232_v26  ;;  %4540 = vrot.lane.b32.xlu0 %v18792_v7, %s17086_s19  ;;  %v3243_v27 = vsel %vm600_vm6, %v3232_v26, %v3234_v50 }
 0x38a   :  { %15982 = vmatmul.mubr.msk.bf16.vlgmr.msra.gmra.mrb[56].mxu1 %vm1518_vm11, %v15978_v48  ;;  %15983 = vmatprep.subr.msk.bf16.mxu0 %vm1522_vm10, %v3243_v27  ;;  %v3261_v8 = vsel %vm1522_vm10, %v3242_v15, 0  ;;  %v3842_v17 = vpop.permute.xlu1 %3841 }
 0x38b   :  { %4542 = vrot.lane.b32.xlu1 %v18820_v42, %s17086_s19  ;;  %3355 = vmatpush1.bf16.msra.mxu0 %v3261_v8 }
 0x38c   :  { %v3236_v36 = vpop.permute.xlu0 %3235  ;;  %3427 = vmatprep.mubr.bf16.mxu1 %v21635_v11 }
 0x38d   :  { %v3244_v29 = vsel %vm600_vm6, %v3234_v50, %v3236_v36  ;;  %4544 = vrot.lane.b32.xlu0 %v18827_v56, %s17086_s19  ;;  %15985 = vmatprep.subr.msk.bf16.mxu1 %vm1522_vm10, %v3236_v36 }
 0x38e   :  { %15984 = vmatmul.mubr.msk.bf16.vlgmr.msra.gmra.mrb[60].mxu0 %vm1518_vm11, %v15978_v48  ;;  %v3267_v57 = vsel %vm1522_vm10, %v3244_v29, 0 }
 0x38f   :  { %4785 = vrot.lane.b32.xlu1 %v18720_v12, %s17087_s20  ;;  %3396 = vmatpush1.bf16.msra.mxu1 %v3267_v57 }
 0x390   :  { %v3481_v16 = vpop.permute.xlu0 %3480  ;;  %3561 = vmatprep.mubr.bf16.mxu0 %v21635_v11 }
 0x391   :  { %v3495_v60 = vsel %vm76_vm7, %v3479_v13, %v3481_v16  ;;  %4787 = vrot.lane.b32.xlu0 %v18784_v31, %s17087_s20  ;;  %v3496_v62 = vsel %vm76_vm7, %v3481_v16, %v3483_v55  ;;  %v18983_v50 = vpop.permute.xlu1 %3845 }
 0x392   :  { %15986 = vmatmul.mubr.msk.bf16.vlgmr.msra.gmra.mrb[60].mxu1 %vm1518_vm11, %v15978_v48  ;;  %15988 = vmatprep.subr.msk.bf16.mxu0 %vm1522_vm10, %v3496_v62  ;;  %v3506_v20 = vsel %vm1522_vm10, %v3495_v60, 0 }
 0x393   :  { %4789 = vrot.lane.b32.xlu1 %v18736_v21, %s17087_s20  ;;  %3530 = vmatpush1.bf16.msra.mxu0 %v3506_v20 }
 0x394   :  { %v3485_v40 = vpop.permute.xlu0 %3484  ;;  %3602 = vmatprep.mubr.bf16.mxu1 %v21635_v11 }
 0x395   :  { %v3497_v38 = vsel %vm76_vm7, %v3483_v55, %v3485_v40  ;;  %4791 = vrot.lane.b32.xlu0 %v18788_v59, %s17087_s20  ;;  %v3498_v49 = vsel %vm76_vm7, %v3485_v40, %v3487_v0 }
 0x396   :  { %15989 = vmatmul.mubr.msk.bf16.vlgmr.msra.gmra.mrb[64].mxu0 %vm1518_vm11, %v15987_v25  ;;  %15990 = vmatprep.subr.msk.bf16.mxu1 %vm1522_vm10, %v3498_v49  ;;  %v3512_v23 = vsel %vm1522_vm10, %v3497_v38, 0 }
 0x397   :  { %4793 = vrot.lane.b32.xlu1 %v18754_v41, %s17087_s20  ;;  %3571 = vmatpush1.bf16.msra.mxu1 %v3512_v23 }
 0x398   :  { %v3489_v32 = vpop.permute.xlu0 %3488  ;;  %3643 = vmatprep.mubr.bf16.mxu0 %v21635_v11 }
 0x399   :  { %v3499_v52 = vsel %vm76_vm7, %v3487_v0, %v3489_v32  ;;  %4795 = vrot.lane.b32.xlu0 %v18792_v7, %s17087_s20  ;;  %v3500_v33 = vsel %vm76_vm7, %v3489_v32, %v3491_v45 }
 0x39a   :  { %15991 = vmatmul.mubr.msk.bf16.vlgmr.msra.gmra.mrb[64].mxu1 %vm1518_vm11, %v15987_v25  ;;  %15992 = vmatprep.subr.msk.bf16.mxu0 %vm1522_vm10, %v3500_v33  ;;  %v3518_v4 = vsel %vm1522_vm10, %v3499_v52, 0 }
 0x39b   :  { %4797 = vrot.lane.b32.xlu1 %v18820_v42, %s17087_s20  ;;  %3612 = vmatpush1.bf16.msra.mxu0 %v3518_v4 }
 0x39c   :  { %v3493_v1 = vpop.permute.xlu0 %3492  ;;  %3684 = vmatprep.mubr.bf16.mxu1 %v21635_v11 }
 0x39d   :  { %v3501_v30 = vsel %vm76_vm7, %v3491_v45, %v3493_v1  ;;  %4799 = vrot.lane.b32.xlu0 %v18827_v56, %s17087_s20  ;;  %15994 = vmatprep.subr.msk.bf16.mxu1 %vm1522_vm10, %v3493_v1 }
 0x39e   :  { %15993 = vmatmul.mubr.msk.bf16.vlgmr.msra.gmra.mrb[68].mxu0 %vm1518_vm11, %v15987_v25  ;;  %v3524_v63 = vsel %vm1522_vm10, %v3501_v30, 0 }
 0x39f   :  { %5040 = vrot.lane.b32.xlu1 %v18720_v12, %s17088_s10  ;;  %3653 = vmatpush1.bf16.msra.mxu1 %v3524_v63 }
 0x3a0   :  { %v3840_v47 = vpop.permute.xlu0 %3839  ;;  %3919 = vmatprep.mubr.bf16.mxu0 %v21635_v11 }
 0x3a1   :  { %v3853_v14 = vsel %vm222_vm0, %v3838_v10, %v3840_v47  ;;  %5042 = vrot.lane.b32.xlu0 %v18784_v31, %s17088_s10  ;;  %v3854_v43 = vsel %vm222_vm0, %v3840_v47, %v3842_v17 }
 0x3a2   :  { %15995 = vmatmul.mubr.msk.bf16.vlgmr.msra.gmra.mrb[68].mxu1 %vm1518_vm11, %v15987_v25  ;;  %15997 = vmatprep.subr.msk.bf16.mxu0 %vm1522_vm10, %v3854_v43  ;;  %v3864_v6 = vsel %vm1522_vm10, %v3853_v14, 0 }
 0x3a3   :  { %5044 = vrot.lane.b32.xlu1 %v18736_v21, %s17088_s10  ;;  %3888 = vmatpush1.bf16.msra.mxu0 %v3864_v6 }
 0x3a4   :  { %v3844_v28 = vpop.permute.xlu0 %3843  ;;  %3960 = vmatprep.mubr.bf16.mxu1 %v21635_v11 }
 0x3a5   :  { %v3855_v3 = vsel %vm222_vm0, %v3842_v17, %v3844_v28  ;;  %5046 = vrot.lane.b32.xlu0 %v18788_v59, %s17088_s10  ;;  %v3856_v58 = vsel %vm222_vm0, %v3844_v28, %v18983_v50 }
 0x3a6   :  { %15999 = vmatprep.subr.msk.bf16.mxu1 %vm1522_vm10, %v3856_v58  ;;  %v3870_v34 = vsel %vm1522_vm10, %v3855_v3, 0  ;;  %15998 = vmatmul.mubr.msk.bf16.vlgmr.msra.gmra.mrb[72].mxu0 %vm1518_vm11, %v18981_v19 }
 0x3a7   :  { %5048 = vrot.lane.b32.xlu1 %v18754_v41, %s17088_s10  ;;  %3929 = vmatpush1.bf16.msra.mxu1 %v3870_v34 }
 0x3a8   :  { %4001 = vmatprep.mubr.bf16.mxu0 %v21635_v11 }
 0x3a9   :  { %5050 = vrot.lane.b32.xlu0 %v18792_v7, %s17088_s10 }
 0x3aa   :  { %16000 = vmatmul.mubr.msk.bf16.vlgmr.msra.gmra.mrb[72].mxu1 %vm1518_vm11, %v18981_v19 }
 0x3ab   :  { %5052 = vrot.lane.b32.xlu1 %v18820_v42, %s17088_s10  ;;  %4042 = vmatprep.mubr.bf16.mxu1 %v21635_v11 }
 0x3ad   :  { %5054 = vrot.lane.b32.xlu0 %v18827_v56, %s17088_s10  ;;  %v1581_v37 = vpop.f32.mrb[0].mxu0 }
 0x3ae   :  { %v1583_v51 = vpop.f32.mrb[1].mxu0 }
 0x3af   :  { %5295 = vrot.lane.b32.xlu1 %v18720_v12, %s17089_s21  ;;  %v1585_v13 = vpop.f32.mrb[2].mxu0 }
 0x3b0   :  { %v1586_v39 = vpop.f32.mrb[3].mxu0 }
 0x3b1   :  { %5297 = vrot.lane.b32.xlu0 %v18784_v31, %s17089_s21  ;;  %v1622_v48 = vpop.f32.mrb[0].mxu1 }
 0x3b2   :  { %v1624_v61 = vpop.f32.mrb[1].mxu1 }
 0x3b3   :  { %5299 = vrot.lane.b32.xlu1 %v18736_v21, %s17089_s21  ;;  %v1626_v18 = vpop.f32.mrb[2].mxu1 }
 0x3b4   :  { %v1627_v54 = vpop.f32.mrb[3].mxu1 }
 0x3b5   :  { %5301 = vrot.lane.b32.xlu0 %v18788_v59, %s17089_s21 }
 0x3b7   :  { %5303 = vrot.lane.b32.xlu1 %v18754_v41, %s17089_s21  ;;  %v1663_v44 = vpop.f32.mrb[4].mxu0 }
 0x3b8   :  { %v1665_v55 = vpop.f32.mrb[5].mxu0 }
 0x3b9   :  { %5305 = vrot.lane.b32.xlu0 %v18792_v7, %s17089_s21  ;;  %v1667_v26 = vpop.f32.mrb[6].mxu0  ;;  %v1704_v15 = vpop.f32.mrb[4].mxu1 }
 0x3ba   :  { %v1668_v27 = vpop.f32.mrb[7].mxu0  ;;  %v1706_v8 = vpop.f32.mrb[5].mxu1 }
 0x3bb   :  { %5307 = vrot.lane.b32.xlu1 %v18820_v42, %s17089_s21  ;;  %v1708_v36 = vpop.f32.mrb[6].mxu1  ;;  %v3848_v26 = vpop.permute.xlu0 %3847 }
 0x3bc   :  { %v1709_v29 = vpop.f32.mrb[7].mxu1 }
 0x3bd   :  { %5309 = vrot.lane.b32.xlu0 %v18827_v56, %s17089_s21 }
 0x3bf   :  { %5550 = vrot.lane.b32.xlu1 %v18720_v12, %s17090_s22  ;;  %v1772_v0 = vpop.f32.mrb[8].mxu0 }
 0x3c0   :  { %v1773_v57 = vadd.f32 %v1772_v0, %v1581_v37  ;;  %v1774_v16 = vpop.f32.mrb[9].mxu0 }
 0x3c1   :  { %5552 = vrot.lane.b32.xlu0 %v18784_v31, %s17090_s22  ;;  %v1775_v60 = vadd.f32 %v1774_v16, %v1583_v51  ;;  %v1776_v62 = vpop.f32.mrb[10].mxu0  ;;  %v1458_v16 = vld [vmem:[%s21432_s5] sm:$0xff] }
 0x3c2   :  { %v1777_v20 = vpop.f32.mrb[11].mxu0  ;;  %v1813_v25 = vpop.f32.mrb[8].mxu1 }
 0x3c3   :  { %5554 = vrot.lane.b32.xlu1 %v18736_v21, %s17090_s22  ;;  %v1814_v45 = vadd.f32 %v1813_v25, %v1622_v48  ;;  %v1815_v40 = vpop.f32.mrb[9].mxu1 }
 0x3c4   :  { %v1816_v38 = vadd.f32 %v1815_v40, %v1624_v61  ;;  %v1817_v49 = vpop.f32.mrb[10].mxu1 }
 0x3c5   :  { %5556 = vrot.lane.b32.xlu0 %v18788_v59, %s17090_s22  ;;  %v1818_v23 = vpop.f32.mrb[11].mxu1 }
 0x3c7   :  { %5558 = vrot.lane.b32.xlu1 %v18754_v41, %s17090_s22  ;;  %v1854_v10 = vpop.f32.mrb[12].mxu0 }
 0x3c8   :  { %v1855_v32 = vadd.f32 %v1854_v10, %v1663_v44  ;;  %v1856_v52 = vpop.f32.mrb[13].mxu0 }
 0x3c9   :  { %5560 = vrot.lane.b32.xlu0 %v18792_v7, %s17090_s22  ;;  %v1857_v33 = vadd.f32 %v1856_v52, %v1665_v55  ;;  %v1858_v4 = vpop.f32.mrb[14].mxu0 }
 0x3ca   :  { %v1859_v1 = vpop.f32.mrb[15].mxu0  ;;  %v1895_v30 = vpop.f32.mrb[12].mxu1 }
 0x3cb   :  { %5562 = vrot.lane.b32.xlu1 %v18820_v42, %s17090_s22  ;;  %v1896_v17 = vadd.f32 %v1895_v30, %v1704_v15  ;;  %v1897_v63 = vpop.f32.mrb[13].mxu1 }
 0x3cc   :  { %v1898_v47 = vadd.f32 %v1897_v63, %v1706_v8  ;;  %v1899_v14 = vpop.f32.mrb[14].mxu1 }
 0x3cd   :  { %5564 = vrot.lane.b32.xlu0 %v18827_v56, %s17090_s22  ;;  %v1900_v43 = vpop.f32.mrb[15].mxu1 }
 0x3ce   :  { %v4061_v43 = vsel %vm1522_vm10, %v18736_v21, 0 }
 0x3cf   :  { %5805 = vrot.lane.b32.xlu1 %v18720_v12, %s17091_s23  ;;  %v2021_v6 = vpop.f32.mrb[16].mxu0 }
 0x3d0   :  { %v2151_v28 = vadd.f32 %v2021_v6, %v1773_v57  ;;  %v2023_v3 = vpop.f32.mrb[17].mxu0  ;;  %v3857_v57 = vsel %vm222_vm0, %v18983_v50, %v3848_v26 }
 0x3d1   :  { %5807 = vrot.lane.b32.xlu0 %v18784_v31, %s17091_s23  ;;  %v2152_v58 = vadd.f32 %v2023_v3, %v1775_v60  ;;  %v2025_v34 = vpop.f32.mrb[18].mxu0  ;;  %v3876_v50 = vsel %vm1522_vm10, %v3857_v57, 0 }
 0x3d2   :  { %v2026_v37 = vpop.f32.mrb[19].mxu0  ;;  %v2062_v51 = vpop.f32.mrb[16].mxu1 }
 0x3d3   :  { %5809 = vrot.lane.b32.xlu1 %v18736_v21, %s17091_s23  ;;  %v2153_v13 = vadd.f32 %v2062_v51, %v1814_v45  ;;  %v2064_v39 = vpop.f32.mrb[17].mxu1 }
 0x3d4   :  { %v2154_v48 = vadd.f32 %v2064_v39, %v1816_v38  ;;  %v2066_v61 = vpop.f32.mrb[18].mxu1 }
 0x3d5   :  { %5811 = vrot.lane.b32.xlu0 %v18788_v59, %s17091_s23  ;;  %v2067_v18 = vpop.f32.mrb[19].mxu1 }
 0x3d7   :  { %5813 = vrot.lane.b32.xlu1 %v18754_v41, %s17091_s23  ;;  %v2103_v54 = vpop.f32.mrb[20].mxu0 }
 0x3d8   :  { %v2155_v44 = vadd.f32 %v2103_v54, %v1855_v32  ;;  %v2105_v55 = vpop.f32.mrb[21].mxu0 }
 0x3d9   :  { %5815 = vrot.lane.b32.xlu0 %v18792_v7, %s17091_s23  ;;  %v2156_v15 = vadd.f32 %v2105_v55, %v1857_v33  ;;  %v2107_v27 = vpop.f32.mrb[22].mxu0 }
 0x3da   :  { %v2108_v8 = vpop.f32.mrb[23].mxu0  ;;  %v2144_v36 = vpop.f32.mrb[20].mxu1 }
 0x3db   :  { %5817 = vrot.lane.b32.xlu1 %v18820_v42, %s17091_s23  ;;  %v19053_v29 = vadd.f32 %v2144_v36, %v1896_v17  ;;  %v2146_v0 = vpop.f32.mrb[21].mxu1  ;;  %v4055_v17 = vsel %vm1522_vm10, %v18720_v12, 0 }
 0x3dc   :  { %v19060_v60 = vadd.f32 %v2146_v0, %v1898_v47  ;;  %v2148_v62 = vpop.f32.mrb[22].mxu1 }
 0x3dd   :  { %5819 = vrot.lane.b32.xlu0 %v18827_v56, %s17091_s23  ;;  %v3850_v20 = vpop.permute.xlu1 %3849  ;;  %v2149_v25 = vpop.f32.mrb[23].mxu1 }
 0x3de   :  { %v3858_v45 = vsel %vm222_vm0, %v3848_v26, %v3850_v20 }
 0x3df   :  { %v3852_v40 = vpop.permute.xlu0 %3851  ;;  %3703 = vperm.xlu1 %16884, %v1458_v16   ;;  %16001 = vmatprep.subr.msk.bf16.mxu0 %vm1522_vm10, %v3858_v45  ;;  %v2278_v38 = vpop.f32.mrb[24].mxu0 }
 0x3e0   :  { %v3859_v49 = vsel %vm222_vm0, %v3850_v20, %v3852_v40  ;;  %3970 = vmatpush1.bf16.msra.mxu0 %v3876_v50  ;;  %16003 = vmatprep.subr.msk.bf16.mxu1 %vm1522_vm10, %v3852_v40  ;;  %v19069_v23 = vadd.f32 %v2278_v38, %v2151_v28  ;;  %v2280_v10 = vpop.f32.mrb[25].mxu0 }
 0x3e1   :  { %16005 = vmatprep.subr.msk.bf16.mxu0 %vm1522_vm10, %v18784_v31  ;;  %v4276_v32 = vpop.permute.xlu1 %4275  ;;  %v3882_v52 = vsel %vm1522_vm10, %v3859_v49, 0  ;;  %v2409_v33 = vadd.f32 %v2280_v10, %v2152_v58  ;;  %v2282_v4 = vpop.f32.mrb[26].mxu0  ;;  %3723 = vperm.xlu0 %16885, %v1458_v16   ;;  %v21640_v58 = vmov 2  }
 0x3e2   :  { %4011 = vmatpush1.bf16.msra.mxu1 %v3882_v52  ;;  %v2283_v1 = vpop.f32.mrb[27].mxu0 }
 0x3e3   :  { %v4278_v30 = vpop.permute.xlu0 %4277  ;;  %16002 = vmatmul.mubr.msk.bf16.vlgmr.msra.gmra.mrb[76].mxu0 %vm1518_vm11, %v18981_v19  ;;  %16007 = vmatprep.subr.msk.bf16.mxu1 %vm1522_vm10, %v18788_v59  ;;  %v2319_v63 = vpop.f32.mrb[24].mxu1 }
 0x3e4   :  { %4079 = vmatpush1.bf16.msra.mxu0 %v4055_v17  ;;  %4110 = vmatprep.mubr.bf16.mxu0 %v21635_v11  ;;  %v2410_v31 = vadd.f32 %v2319_v63, %v2153_v13  ;;  %v2321_v47 = vpop.f32.mrb[25].mxu1 }
 0x3e5   :  { %16004 = vmatmul.mubr.msk.bf16.vlgmr.msra.gmra.mrb[76].mxu1 %vm1518_vm11, %v18981_v19  ;;  %16009 = vmatprep.subr.msk.bf16.mxu0 %vm1522_vm10, %v18792_v7  ;;  %v4280_v14 = vpop.permute.xlu1 %4279  ;;  %v2411_v59 = vadd.f32 %v2321_v47, %v2154_v48  ;;  %v2323_v6 = vpop.f32.mrb[26].mxu1  ;;  %v3807_v7 = vld [vmem:[%s21431_s4] sm:$0xf] }
 0x3e6   :  { %4120 = vmatpush1.bf16.msra.mxu1 %v4061_v43  ;;  %4151 = vmatprep.mubr.bf16.mxu1 %v21635_v11  ;;  %v2324_v12 = vpop.f32.mrb[27].mxu1  ;;  %v4292_v61 = vsel %vm285_vm1, %v4278_v30, %v4280_v14 }
 0x3e7   :  { %v4282_v28 = vpop.permute.xlu0 %4281  ;;  %16011 = vmatprep.subr.msk.bf16.mxu1 %vm1522_vm10, %v18827_v56  ;;  %v2360_v3 = vpop.f32.mrb[28].mxu0  ;;  %16886 = vset.pattern.permute.xlu1 %v21640_v58  ;;  %v4067_v56 = vsel %vm1522_vm10, %v18754_v41, 0 }
 0x3e8   :  { %v19091_v19 = vadd.f32 %v2360_v3, %v2155_v44  ;;  %v2362_v21 = vpop.f32.mrb[29].mxu0  ;;  %3735 = vperm.xlu1 %16886, %v1458_v16   ;;  %16888 = vset.pattern.permute.xlu0 %v21635_v11  ;;  %v4073_v44 = vsel %vm1522_vm10, %v18820_v42, 0  ;;  %v4293_v62 = vsel %vm285_vm1, %v4280_v14, %v4282_v28 }
 0x3e9   :  { %v4284_v34 = vpop.permute.xlu1 %4283  ;;  %v2413_v37 = vadd.f32 %v2362_v21, %v2156_v15  ;;  %v2364_v51 = vpop.f32.mrb[30].mxu0  ;;  %v4308_v10 = vsel %vm1522_vm10, %v4293_v62, 0 }
 0x3ea   :  { %v2365_v13 = vpop.f32.mrb[31].mxu0  ;;  %v4294_v15 = vsel %vm285_vm1, %v4282_v28, %v4284_v34 }
 0x3eb   :  { %v4286_v39 = vpop.permute.xlu0 %4285  ;;  %16006 = vmatmul.mubr.msk.bf16.vlgmr.msra.gmra.mrb[80].mxu0 %vm1518_vm11, %v3807_v7  ;;  %v2401_v48 = vpop.f32.mrb[28].mxu1 }
 0x3ec   :  { %4161 = vmatpush1.bf16.msra.mxu0 %v4067_v56  ;;  %v2414_v18 = vadd.f32 %v2401_v48, %v19053_v29  ;;  %v2403_v54 = vpop.f32.mrb[29].mxu1  ;;  %4192 = vmatprep.mubr.bf16.mxu0 %v21635_v11  ;;  %v4291_v29 = vsel %vm285_vm1, %v4276_v32, %v4278_v30  ;;  %v4295_v30 = vsel %vm285_vm1, %v4284_v34, %v4286_v39 }
 0x3ed   :  { %16014 = vmatprep.subr.msk.bf16.mxu0 %vm1522_vm10, %v4292_v61  ;;  %16008 = vmatmul.mubr.msk.bf16.vlgmr.msra.gmra.mrb[80].mxu1 %vm1518_vm11, %v3807_v7  ;;  %v4288_v55 = vpop.permute.xlu1 %4287  ;;  %v2415_v26 = vadd.f32 %v2403_v54, %v19060_v60  ;;  %v2405_v41 = vpop.f32.mrb[30].mxu1  ;;  %v4302_v40 = vsel %vm1522_vm10, %v4291_v29, 0  ;;  %v4314_v3 = vsel %vm1522_vm10, %v4295_v30, 0 }
 0x3ee   :  { %4202 = vmatpush1.bf16.msra.mxu1 %v4073_v44  ;;  %v2406_v27 = vpop.f32.mrb[31].mxu1  ;;  %4233 = vmatprep.mubr.bf16.mxu1 %v21635_v11  ;;  %v4296_v49 = vsel %vm285_vm1, %v4286_v39, %v4288_v55 }
 0x3ef   :  { %16016 = vmatprep.subr.msk.bf16.mxu1 %vm1522_vm10, %v4294_v15  ;;  %v2535_v8 = vpop.f32.mrb[32].mxu0  ;;  %v4290_v36 = vpop.permute.xlu0 %4289  ;;  %16887 = vset.pattern.permute.xlu1 %v21635_v11 }
 0x3f0   :  { %v19114_v42 = vadd.f32 %v2535_v8, %v19069_v23  ;;  %v2537_v0 = vpop.f32.mrb[33].mxu0 }
 0x3f1   :  { %v19116_v57 = vadd.f32 %v2537_v0, %v2409_v33  ;;  %v4531_v16 = vpop.permute.xlu1 %4530  ;;  %v2539_v60 = vpop.f32.mrb[34].mxu0 }
 0x3f2   :  { %v2540_v20 = vpop.f32.mrb[35].mxu0 }
 0x3f3   :  { %v2576_v25 = vpop.f32.mrb[32].mxu1  ;;  %v4533_v45 = vpop.permute.xlu0 %4532  ;;  %16010 = vmatmul.mubr.msk.bf16.vlgmr.msra.gmra.mrb[84].mxu0 %vm1518_vm11, %v3807_v7 }
 0x3f4   :  { %v19121_v50 = vadd.f32 %v2576_v25, %v2410_v31  ;;  %4326 = vmatpush1.bf16.msra.mxu0 %v4302_v40  ;;  %v2578_v38 = vpop.f32.mrb[33].mxu1  ;;  %4357 = vmatprep.mubr.bf16.mxu0 %v21635_v11  ;;  %v16013_v31 = vld [vmem:[%s21431_s4 + $0x8] sm:$0xf]  ;;  %v4546_v61 = vsel %vm348_vm2, %v4531_v16, %v4533_v45 }
 0x3f5   :  { %v19125_v23 = vadd.f32 %v2578_v38, %v2411_v59  ;;  %16018 = vmatprep.subr.msk.bf16.mxu0 %vm1522_vm10, %v4296_v49  ;;  %16012 = vmatmul.mubr.msk.bf16.vlgmr.msra.gmra.mrb[84].mxu1 %vm1518_vm11, %v3807_v7  ;;  %v4535_v32 = vpop.permute.xlu1 %4534  ;;  %v2580_v52 = vpop.f32.mrb[34].mxu1  ;;  %v4297_v59 = vsel %vm285_vm1, %v4288_v55, %v4290_v36  ;;  %v4557_v55 = vsel %vm1522_vm10, %v4546_v61, 0 }
 0x3f6   :  { %4367 = vmatpush1.bf16.msra.mxu1 %v4308_v10  ;;  %v2581_v33 = vpop.f32.mrb[35].mxu1  ;;  %4398 = vmatprep.mubr.bf16.mxu1 %v21635_v11  ;;  %v4547_v21 = vsel %vm348_vm2, %v4533_v45, %v4535_v32 }
 0x3f7   :  { %16020 = vmatprep.subr.msk.bf16.mxu1 %vm1522_vm10, %v4290_v36  ;;  %v4537_v4 = vpop.permute.xlu0 %4536  ;;  %v2617_v1 = vpop.f32.mrb[36].mxu0  ;;  %v16022_v36 = vld [vmem:[%s21431_s4 + $0xc] sm:$0xf] }
 0x3f8   :  { %v19134_v17 = vadd.f32 %v2617_v1, %v19091_v19  ;;  %v2619_v63 = vpop.f32.mrb[37].mxu0  ;;  %v4548_v54 = vsel %vm348_vm2, %v4535_v32, %v4537_v4 }
 0x3f9   :  { %v19139_v47 = vadd.f32 %v2619_v63, %v2413_v37  ;;  %v4539_v14 = vpop.permute.xlu1 %4538  ;;  %v2621_v43 = vpop.f32.mrb[38].mxu0  ;;  %v4320_v37 = vsel %vm1522_vm10, %v4297_v59, 0  ;;  %v4563_v41 = vsel %vm1522_vm10, %v4548_v54, 0 }
 0x3fa   :  { %v2622_v6 = vpop.f32.mrb[39].mxu0  ;;  %v4549_v39 = vsel %vm348_vm2, %v4537_v4, %v4539_v14 }
 0x3fb   :  { %v4541_v12 = vpop.permute.xlu0 %4540  ;;  %v2658_v28 = vpop.f32.mrb[36].mxu1  ;;  %16015 = vmatmul.mubr.msk.bf16.vlgmr.msra.gmra.mrb[88].mxu0 %vm1518_vm11, %v16013_v31 }
 0x3fc   :  { %v19144_v19 = vadd.f32 %v2658_v28, %v2414_v18  ;;  %4408 = vmatpush1.bf16.msra.mxu0 %v4314_v3  ;;  %v2660_v7 = vpop.f32.mrb[37].mxu1  ;;  %4439 = vmatprep.mubr.bf16.mxu0 %v21635_v11  ;;  %v4550_v8 = vsel %vm348_vm2, %v4539_v14, %v4541_v12 }
 0x3fd   :  { %v19148_v34 = vadd.f32 %v2660_v7, %v2415_v26  ;;  %16023 = vmatprep.subr.msk.bf16.mxu0 %vm1522_vm10, %v4547_v21  ;;  %16017 = vmatmul.mubr.msk.bf16.vlgmr.msra.gmra.mrb[88].mxu1 %vm1518_vm11, %v16013_v31  ;;  %v4543_v51 = vpop.permute.xlu1 %4542  ;;  %v2662_v13 = vpop.f32.mrb[38].mxu1  ;;  %v4569_v60 = vsel %vm1522_vm10, %v4550_v8, 0 }
 0x3fe   :  { %4449 = vmatpush1.bf16.msra.mxu1 %v4320_v37  ;;  %4480 = vmatprep.mubr.bf16.mxu1 %v21635_v11  ;;  %v2663_v56 = vpop.f32.mrb[39].mxu1  ;;  %v4551_v26 = vsel %vm348_vm2, %v4541_v12, %v4543_v51 }
 0x3ff   :  { %16025 = vmatprep.subr.msk.bf16.mxu1 %vm1522_vm10, %v4549_v39  ;;  %v4545_v48 = vpop.permute.xlu0 %4544 }
 0x400   :  { %v4552_v0 = vsel %vm348_vm2, %v4543_v51, %v4545_v48 }
 0x401   :  { %v4786_v18 = vpop.permute.xlu1 %4785  ;;  %v4575_v20 = vsel %vm1522_vm10, %v4552_v0, 0 }
 0x403   :  { %v4788_v44 = vpop.permute.xlu0 %4787  ;;  %16019 = vmatmul.mubr.msk.bf16.vlgmr.msra.gmra.mrb[92].mxu0 %vm1518_vm11, %v16013_v31 }
 0x404   :  { %4581 = vmatpush1.bf16.msra.mxu0 %v4557_v55  ;;  %4612 = vmatprep.mubr.bf16.mxu0 %v21635_v11  ;;  %v4801_v38 = vsel %vm411_vm3, %v4786_v18, %v4788_v44  ;;  %v16040_v55 = vld [vmem:[%s21431_s4 + $0x14] sm:$0xf] }
 0x405   :  { %16027 = vmatprep.subr.msk.bf16.mxu0 %vm1522_vm10, %v4551_v26  ;;  %16021 = vmatmul.mubr.msk.bf16.vlgmr.msra.gmra.mrb[92].mxu1 %vm1518_vm11, %v16013_v31  ;;  %v4790_v15 = vpop.permute.xlu1 %4789  ;;  %v4812_v52 = vsel %vm1522_vm10, %v4801_v38, 0  ;;  %v16031_v31 = vld [vmem:[%s21431_s4 + $0x10] sm:$0xf] }
 0x406   :  { %4622 = vmatpush1.bf16.msra.mxu1 %v4563_v41  ;;  %4653 = vmatprep.mubr.bf16.mxu1 %v21635_v11  ;;  %v4802_v62 = vsel %vm411_vm3, %v4788_v44, %v4790_v15 }
 0x407   :  { %16029 = vmatprep.subr.msk.bf16.mxu1 %vm1522_vm10, %v4545_v48  ;;  %v4792_v27 = vpop.permute.xlu0 %4791 }
 0x408   :  { %v4803_v10 = vsel %vm411_vm3, %v4790_v15, %v4792_v27 }
 0x409   :  { %v4794_v29 = vpop.permute.xlu1 %4793  ;;  %v4818_v4 = vsel %vm1522_vm10, %v4803_v10, 0 }
 0x40a   :  { %v4804_v45 = vsel %vm411_vm3, %v4792_v27, %v4794_v29 }
 0x40b   :  { %v4796_v16 = vpop.permute.xlu0 %4795  ;;  %16024 = vmatmul.mubr.msk.bf16.vlgmr.msra.gmra.mrb[96].mxu0 %vm1518_vm11, %v16022_v36 }
 0x40c   :  { %4663 = vmatpush1.bf16.msra.mxu0 %v4569_v60  ;;  %4694 = vmatprep.mubr.bf16.mxu0 %v21635_v11  ;;  %v4805_v63 = vsel %vm411_vm3, %v4794_v29, %v4796_v16 }
 0x40d   :  { %16032 = vmatprep.subr.msk.bf16.mxu0 %vm1522_vm10, %v4802_v62  ;;  %16026 = vmatmul.mubr.msk.bf16.vlgmr.msra.gmra.mrb[96].mxu1 %vm1518_vm11, %v16022_v36  ;;  %v4798_v25 = vpop.permute.xlu1 %4797  ;;  %v4824_v6 = vsel %vm1522_vm10, %v4805_v63, 0 }
 0x40e   :  { %4704 = vmatpush1.bf16.msra.mxu1 %v4575_v20  ;;  %4735 = vmatprep.mubr.bf16.mxu1 %v21635_v11  ;;  %v4806_v33 = vsel %vm411_vm3, %v4796_v16, %v4798_v25 }
 0x40f   :  { %16034 = vmatprep.subr.msk.bf16.mxu1 %vm1522_vm10, %v4804_v45  ;;  %v4800_v40 = vpop.permute.xlu0 %4799 }
 0x410   :  { %v4807_v43 = vsel %vm411_vm3, %v4798_v25, %v4800_v40 }
 0x411   :  { %v5041_v49 = vpop.permute.xlu1 %5040  ;;  %v4830_v28 = vsel %vm1522_vm10, %v4807_v43, 0 }
 0x413   :  { %v5043_v32 = vpop.permute.xlu0 %5042  ;;  %16028 = vmatmul.mubr.msk.bf16.vlgmr.msra.gmra.mrb[100].mxu0 %vm1518_vm11, %v16022_v36 }
 0x414   :  { %4836 = vmatpush1.bf16.msra.mxu0 %v4812_v52  ;;  %4867 = vmatprep.mubr.bf16.mxu0 %v21635_v11  ;;  %v5056_v37 = vsel %vm474_vm4, %v5041_v49, %v5043_v32  ;;  %v16049_v52 = vld [vmem:[%s21431_s4 + $0x18] sm:$0xf] }
 0x415   :  { %16036 = vmatprep.subr.msk.bf16.mxu0 %vm1522_vm10, %v4806_v33  ;;  %16030 = vmatmul.mubr.msk.bf16.vlgmr.msra.gmra.mrb[100].mxu1 %vm1518_vm11, %v16022_v36  ;;  %v5045_v1 = vpop.permute.xlu1 %5044  ;;  %v5067_v56 = vsel %vm1522_vm10, %v5056_v37, 0 }
 0x416   :  { %4877 = vmatpush1.bf16.msra.mxu1 %v4818_v4  ;;  %4908 = vmatprep.mubr.bf16.mxu1 %v21635_v11  ;;  %v5057_v12 = vsel %vm474_vm4, %v5043_v32, %v5045_v1 }
 0x417   :  { %16038 = vmatprep.subr.msk.bf16.mxu1 %vm1522_vm10, %v4800_v40  ;;  %v5047_v30 = vpop.permute.xlu0 %5046 }
 0x418   :  { %v5058_v13 = vsel %vm474_vm4, %v5045_v1, %v5047_v30 }
 0x419   :  { %v5049_v14 = vpop.permute.xlu1 %5048  ;;  %v5073_v61 = vsel %vm1522_vm10, %v5058_v13, 0 }
 0x41a   :  { %v5059_v7 = vsel %vm474_vm4, %v5047_v30, %v5049_v14 }
 0x41b   :  { %v5051_v59 = vpop.permute.xlu0 %5050  ;;  %16033 = vmatmul.mubr.msk.bf16.vlgmr.msra.gmra.mrb[104].mxu0 %vm1518_vm11, %v16031_v31 }
 0x41c   :  { %4918 = vmatpush1.bf16.msra.mxu0 %v4824_v6  ;;  %4949 = vmatprep.mubr.bf16.mxu0 %v21635_v11  ;;  %v5060_v44 = vsel %vm474_vm4, %v5049_v14, %v5051_v59 }
 0x41d   :  { %16041 = vmatprep.subr.msk.bf16.mxu0 %vm1522_vm10, %v5057_v12  ;;  %16035 = vmatmul.mubr.msk.bf16.vlgmr.msra.gmra.mrb[104].mxu1 %vm1518_vm11, %v16031_v31  ;;  %v5053_v3 = vpop.permute.xlu1 %5052  ;;  %v5079_v27 = vsel %vm1522_vm10, %v5060_v44, 0 }
 0x41e   :  { %4959 = vmatpush1.bf16.msra.mxu1 %v4830_v28  ;;  %4990 = vmatprep.mubr.bf16.mxu1 %v21635_v11  ;;  %v5061_v48 = vsel %vm474_vm4, %v5051_v59, %v5053_v3 }
 0x41f   :  { %16043 = vmatprep.subr.msk.bf16.mxu1 %vm1522_vm10, %v5059_v7  ;;  %v5055_v21 = vpop.permute.xlu0 %5054 }
 0x420   :  { %v5062_v41 = vsel %vm474_vm4, %v5053_v3, %v5055_v21 }
 0x421   :  { %v5296_v51 = vpop.permute.xlu1 %5295  ;;  %v5085_v36 = vsel %vm1522_vm10, %v5062_v41, 0 }
 0x423   :  { %v5298_v39 = vpop.permute.xlu0 %5297  ;;  %16037 = vmatmul.mubr.msk.bf16.vlgmr.msra.gmra.mrb[108].mxu0 %vm1518_vm11, %v16031_v31 }
 0x424   :  { %5091 = vmatpush1.bf16.msra.mxu0 %v5067_v56  ;;  %5122 = vmatprep.mubr.bf16.mxu0 %v21635_v11  ;;  %v5311_v60 = vsel %vm537_vm5, %v5296_v51, %v5298_v39 }
 0x425   :  { %16045 = vmatprep.subr.msk.bf16.mxu0 %vm1522_vm10, %v5061_v48  ;;  %16039 = vmatmul.mubr.msk.bf16.vlgmr.msra.gmra.mrb[108].mxu1 %vm1518_vm11, %v16031_v31  ;;  %v5300_v18 = vpop.permute.xlu1 %5299  ;;  %v5322_v45 = vsel %vm1522_vm10, %v5311_v60, 0 }
 0x426   :  { %5132 = vmatpush1.bf16.msra.mxu1 %v5073_v61  ;;  %5163 = vmatprep.mubr.bf16.mxu1 %v21635_v11  ;;  %v5312_v8 = vsel %vm537_vm5, %v5298_v39, %v5300_v18 }
 0x427   :  { %16047 = vmatprep.subr.msk.bf16.mxu1 %vm1522_vm10, %v5055_v21  ;;  %v5302_v54 = vpop.permute.xlu0 %5301 }
 0x428   :  { %v5313_v20 = vsel %vm537_vm5, %v5300_v18, %v5302_v54 }
 0x429   :  { %v5304_v26 = vpop.permute.xlu1 %5303  ;;  %v5328_v38 = vsel %vm1522_vm10, %v5313_v20, 0 }
 0x42a   :  { %v5314_v0 = vsel %vm537_vm5, %v5302_v54, %v5304_v26 }
 0x42b   :  { %v5306_v15 = vpop.permute.xlu0 %5305  ;;  %16042 = vmatmul.mubr.msk.bf16.vlgmr.msra.gmra.mrb[112].mxu0 %vm1518_vm11, %v16040_v55 }
 0x42c   :  { %5173 = vmatpush1.bf16.msra.mxu0 %v5079_v27  ;;  %5204 = vmatprep.mubr.bf16.mxu0 %v21635_v11  ;;  %v5315_v32 = vsel %vm537_vm5, %v5304_v26, %v5306_v15 }
 0x42d   :  { %16050 = vmatprep.subr.msk.bf16.mxu0 %vm1522_vm10, %v5312_v8  ;;  %16044 = vmatmul.mubr.msk.bf16.vlgmr.msra.gmra.mrb[112].mxu1 %vm1518_vm11, %v16040_v55  ;;  %v5308_v29 = vpop.permute.xlu1 %5307  ;;  %v5334_v59 = vsel %vm1522_vm10, %v5315_v32, 0 }
 0x42e   :  { %5214 = vmatpush1.bf16.msra.mxu1 %v5085_v36  ;;  %5245 = vmatprep.mubr.bf16.mxu1 %v21635_v11  ;;  %v5316_v40 = vsel %vm537_vm5, %v5306_v15, %v5308_v29 }
 0x42f   :  { %16052 = vmatprep.subr.msk.bf16.mxu1 %vm1522_vm10, %v5314_v0  ;;  %v5310_v16 = vpop.permute.xlu0 %5309 }
 0x430   :  { %v5317_v1 = vsel %vm537_vm5, %v5308_v29, %v5310_v16 }
 0x431   :  { %v5551_v62 = vpop.permute.xlu1 %5550 }
 0x433   :  { %v5553_v25 = vpop.permute.xlu0 %5552  ;;  %16046 = vmatmul.mubr.msk.bf16.vlgmr.msra.gmra.mrb[116].mxu0 %vm1518_vm11, %v16040_v55 }
 0x434   :  { %5346 = vmatpush1.bf16.msra.mxu0 %v5322_v45  ;;  %5377 = vmatprep.mubr.bf16.mxu0 %v21635_v11  ;;  %v5566_v39 = vsel %vm600_vm6, %v5551_v62, %v5553_v25  ;;  %v16058_v62 = vld [vmem:[%s21431_s4 + $0x1c] sm:$0xf] }
 0x435   :  { %16054 = vmatprep.subr.msk.bf16.mxu0 %vm1522_vm10, %v5316_v40  ;;  %16048 = vmatmul.mubr.msk.bf16.vlgmr.msra.gmra.mrb[116].mxu1 %vm1518_vm11, %v16040_v55  ;;  %v5555_v49 = vpop.permute.xlu1 %5554 }
 0x436   :  { %5387 = vmatpush1.bf16.msra.mxu1 %v5328_v38  ;;  %5418 = vmatprep.mubr.bf16.mxu1 %v21635_v11  ;;  %v5567_v12 = vsel %vm600_vm6, %v5553_v25, %v5555_v49 }
 0x437   :  { %16056 = vmatprep.subr.msk.bf16.mxu1 %vm1522_vm10, %v5310_v16  ;;  %v5557_v10 = vpop.permute.xlu0 %5556 }
 0x438   :  { %v5568_v18 = vsel %vm600_vm6, %v5555_v49, %v5557_v10 }
 0x439   :  { %v2792_v33 = vpop.f32.mrb[40].mxu0  ;;  %v5559_v4 = vpop.permute.xlu1 %5558 }
 0x43a   :  { %v2922_v30 = vadd.f32 %v2792_v33, %v19114_v42  ;;  %v2794_v63 = vpop.f32.mrb[41].mxu0  ;;  %v5340_v42 = vsel %vm1522_vm10, %v5317_v1, 0  ;;  %v5569_v21 = vsel %vm600_vm6, %v5557_v10, %v5559_v4 }
 0x43b   :  { %v2923_v31 = vadd.f32 %v2794_v63, %v19116_v57  ;;  %v5561_v14 = vpop.permute.xlu0 %5560  ;;  %v2796_v43 = vpop.f32.mrb[42].mxu0  ;;  %16051 = vmatmul.mubr.msk.bf16.vlgmr.msra.gmra.mrb[120].mxu0 %vm1518_vm11, %v16049_v52 }
 0x43c   :  { %5428 = vmatpush1.bf16.msra.mxu0 %v5334_v59  ;;  %v2797_v6 = vpop.f32.mrb[43].mxu0  ;;  %5459 = vmatprep.mubr.bf16.mxu0 %v21635_v11  ;;  %v5570_v16 = vsel %vm600_vm6, %v5559_v4, %v5561_v14 }
 0x43d   :  { %16059 = vmatprep.subr.msk.bf16.mxu0 %vm1522_vm10, %v5567_v12  ;;  %v2833_v28 = vpop.f32.mrb[40].mxu1  ;;  %16053 = vmatmul.mubr.msk.bf16.vlgmr.msra.gmra.mrb[120].mxu1 %vm1518_vm11, %v16049_v52  ;;  %v5563_v57 = vpop.permute.xlu1 %5562 }
 0x43e   :  { %v2924_v3 = vadd.f32 %v2833_v28, %v19121_v50  ;;  %5469 = vmatpush1.bf16.msra.mxu1 %v5340_v42  ;;  %v2835_v7 = vpop.f32.mrb[41].mxu1  ;;  %5500 = vmatprep.mubr.bf16.mxu1 %v21635_v11  ;;  %v5571_v15 = vsel %vm600_vm6, %v5561_v14, %v5563_v57 }
 0x43f   :  { %v2925_v37 = vadd.f32 %v2835_v7, %v19125_v23  ;;  %16061 = vmatprep.subr.msk.bf16.mxu1 %vm1522_vm10, %v5569_v21  ;;  %v5565_v51 = vpop.permute.xlu0 %5564  ;;  %v2837_v13 = vpop.f32.mrb[42].mxu1  ;;  %v5577_v23 = vsel %vm1522_vm10, %v5566_v39, 0 }
 0x440   :  { %v2838_v56 = vpop.f32.mrb[43].mxu1  ;;  %v5572_v25 = vsel %vm600_vm6, %v5563_v57, %v5565_v51 }
 0x441   :  { %v2874_v48 = vpop.f32.mrb[44].mxu0  ;;  %v5806_v61 = vpop.permute.xlu1 %5805  ;;  %v5595_v4 = vsel %vm1522_vm10, %v5572_v25, 0 }
 0x442   :  { %v2926_v50 = vadd.f32 %v2874_v48, %v19134_v17  ;;  %v2876_v54 = vpop.f32.mrb[45].mxu0  ;;  %v5583_v17 = vsel %vm1522_vm10, %v5568_v18, 0 }
 0x443   :  { %v2927_v44 = vadd.f32 %v2876_v54, %v19139_v47  ;;  %v2878_v55 = vpop.f32.mrb[46].mxu0  ;;  %16055 = vmatmul.mubr.msk.bf16.vlgmr.msra.gmra.mrb[124].mxu0 %vm1518_vm11, %v16049_v52  ;;  %v5808_v26 = vpop.permute.xlu0 %5807 }
 0x444   :  { %5601 = vmatpush1.bf16.msra.mxu0 %v5577_v23  ;;  %v2879_v41 = vpop.f32.mrb[47].mxu0  ;;  %5632 = vmatprep.mubr.bf16.mxu0 %v21635_v11  ;;  %v5821_v43 = vsel %vm76_vm7, %v5806_v61, %v5808_v26  ;;  %v16067_v23 = vld [vmem:[%s21431_s4 + $0x20] sm:$0xf] }
 0x445   :  { %16063 = vmatprep.subr.msk.bf16.mxu0 %vm1522_vm10, %v5571_v15  ;;  %v2915_v27 = vpop.f32.mrb[44].mxu1  ;;  %16057 = vmatmul.mubr.msk.bf16.vlgmr.msra.gmra.mrb[124].mxu1 %vm1518_vm11, %v16049_v52  ;;  %v5810_v47 = vpop.permute.xlu1 %5809 }
 0x446   :  { %v2928_v8 = vadd.f32 %v2915_v27, %v19144_v19  ;;  %5642 = vmatpush1.bf16.msra.mxu1 %v5583_v17  ;;  %v2917_v36 = vpop.f32.mrb[45].mxu1  ;;  %5673 = vmatprep.mubr.bf16.mxu1 %v21635_v11  ;;  %v5822_v52 = vsel %vm76_vm7, %v5808_v26, %v5810_v47 }
 0x447   :  { %v2929_v29 = vadd.f32 %v2917_v36, %v19148_v34  ;;  %16065 = vmatprep.subr.msk.bf16.mxu1 %vm1522_vm10, %v5565_v51  ;;  %v2919_v0 = vpop.f32.mrb[46].mxu1  ;;  %v5812_v19 = vpop.permute.xlu0 %5811  ;;  %v5589_v34 = vsel %vm1522_vm10, %v5570_v16, 0  ;;  %v5832_v51 = vsel %vm1522_vm10, %v5821_v43, 0 }
 0x448   :  { %v2920_v60 = vpop.f32.mrb[47].mxu1  ;;  %v5823_v42 = vsel %vm76_vm7, %v5810_v47, %v5812_v19 }
 0x449   :  { %v3049_v20 = vpop.f32.mrb[48].mxu0  ;;  %v5814_v38 = vpop.permute.xlu1 %5813  ;;  %v5838_v56 = vsel %vm1522_vm10, %v5823_v42, 0 }
 0x44a   :  { %v3179_v45 = vadd.f32 %v3049_v20, %v2922_v30  ;;  %v3051_v40 = vpop.f32.mrb[49].mxu0  ;;  %v5824_v63 = vsel %vm76_vm7, %v5812_v19, %v5814_v38 }
 0x44b   :  { %v3180_v49 = vadd.f32 %v3051_v40, %v2923_v31  ;;  %v3053_v10 = vpop.f32.mrb[50].mxu0  ;;  %16060 = vmatmul.mubr.msk.bf16.vlgmr.msra.gmra.mrb[128].mxu0 %vm1518_vm11, %v16058_v62  ;;  %v5816_v59 = vpop.permute.xlu0 %5815 }
 0x44c   :  { %5683 = vmatpush1.bf16.msra.mxu0 %v5589_v34  ;;  %v3054_v32 = vpop.f32.mrb[51].mxu0  ;;  %5714 = vmatprep.mubr.bf16.mxu0 %v21635_v11 }
 0x44d   :  { %16068 = vmatprep.subr.msk.bf16.mxu0 %vm1522_vm10, %v5822_v52  ;;  %v3090_v33 = vpop.f32.mrb[48].mxu1  ;;  %16062 = vmatmul.mubr.msk.bf16.vlgmr.msra.gmra.mrb[128].mxu1 %vm1518_vm11, %v16058_v62  ;;  %v5818_v12 = vpop.permute.xlu1 %5817 }
 0x44e   :  { %v3181_v1 = vadd.f32 %v3090_v33, %v2924_v3  ;;  %5724 = vmatpush1.bf16.msra.mxu1 %v5595_v4  ;;  %v3092_v30 = vpop.f32.mrb[49].mxu1  ;;  %5755 = vmatprep.mubr.bf16.mxu1 %v21635_v11  ;;  %v5826_v13 = vsel %vm76_vm7, %v5816_v59, %v5818_v12 }
 0x44f   :  { %v3182_v31 = vadd.f32 %v3092_v30, %v2925_v37  ;;  %16070 = vmatprep.subr.msk.bf16.mxu1 %vm1522_vm10, %v5824_v63  ;;  %v3094_v14 = vpop.f32.mrb[50].mxu1  ;;  %v5820_v48 = vpop.permute.xlu0 %5819 }
 0x450   :  { %v3095_v6 = vpop.f32.mrb[51].mxu1  ;;  %v5827_v41 = vsel %vm76_vm7, %v5818_v12, %v5820_v48 }
 0x451   :  { %v3131_v28 = vpop.f32.mrb[52].mxu0  ;;  %v5850_v0 = vsel %vm1522_vm10, %v5827_v41, 0 }
 0x452   :  { %v3183_v57 = vadd.f32 %v3131_v28, %v2926_v50  ;;  %v3133_v3 = vpop.f32.mrb[53].mxu0 }
 0x453   :  { %v3184_v7 = vadd.f32 %v3133_v3, %v2927_v44  ;;  %v3135_v21 = vpop.f32.mrb[54].mxu0  ;;  %16064 = vmatmul.mubr.msk.bf16.vlgmr.msra.gmra.mrb[132].mxu0 %vm1518_vm11, %v16058_v62  ;;  %v5825_v44 = vsel %vm76_vm7, %v5814_v38, %v5816_v59 }
 0x454   :  { %5856 = vmatpush1.bf16.msra.mxu0 %v5832_v51  ;;  %v3136_v37 = vpop.f32.mrb[55].mxu0  ;;  %5887 = vmatprep.mubr.bf16.mxu0 %v21635_v11  ;;  %v5844_v47 = vsel %vm1522_vm10, %v5825_v44, 0 }
 0x455   :  { %16072 = vmatprep.subr.msk.bf16.mxu0 %vm1522_vm10, %v5826_v13  ;;  %v3172_v39 = vpop.f32.mrb[52].mxu1  ;;  %16066 = vmatmul.mubr.msk.bf16.vlgmr.msra.gmra.mrb[132].mxu1 %vm1518_vm11, %v16058_v62 }
 0x456   :  { %5897 = vmatpush1.bf16.msra.mxu1 %v5838_v56  ;;  %v3174_v61 = vpop.f32.mrb[53].mxu1  ;;  %5928 = vmatprep.mubr.bf16.mxu1 %v21635_v11  ;;  %v3185_v18 = vadd.f32 %v3172_v39, %v2928_v8 }
 0x457   :  { %16074 = vmatprep.subr.msk.bf16.mxu1 %vm1522_vm10, %v5820_v48  ;;  %v3176_v50 = vpop.f32.mrb[54].mxu1  ;;  %v3186_v54 = vadd.f32 %v3174_v61, %v2929_v29 }
 0x458   :  { %v3177_v55 = vpop.f32.mrb[55].mxu1 }
 0x459   :  { %v3306_v26 = vpop.f32.mrb[56].mxu0 }
 0x45a   :  { %v3308_v15 = vpop.f32.mrb[57].mxu0  ;;  %v3436_v27 = vadd.f32 %v3306_v26, %v3179_v45 }
 0x45b   :  { %v3310_v17 = vpop.f32.mrb[58].mxu0  ;;  %16069 = vmatmul.mubr.msk.bf16.vlgmr.msra.gmra.mrb[136].mxu0 %vm1518_vm11, %v16067_v23  ;;  %v3437_v8 = vadd.f32 %v3308_v15, %v3180_v49 }
 0x45c   :  { %5938 = vmatpush1.bf16.msra.mxu0 %v5844_v47  ;;  %v3311_v36 = vpop.f32.mrb[59].mxu0  ;;  %5969 = vmatprep.mubr.bf16.mxu0 %v21635_v11 }
 0x45d   :  { %v3347_v29 = vpop.f32.mrb[56].mxu1  ;;  %16071 = vmatmul.mubr.msk.bf16.vlgmr.msra.gmra.mrb[136].mxu1 %vm1518_vm11, %v16067_v23 }
 0x45e   :  { %5979 = vmatpush1.bf16.msra.mxu1 %v5850_v0  ;;  %v3349_v16 = vpop.f32.mrb[57].mxu1  ;;  %6010 = vmatprep.mubr.bf16.mxu1 %v21635_v11  ;;  %v3438_v60 = vadd.f32 %v3347_v29, %v3181_v1  ;;  %v19320_v14 = vpop.permute.xlu1 %3703 }
 0x45f   :  { %v3351_v62 = vpop.f32.mrb[58].mxu1  ;;  %v3439_v20 = vadd.f32 %v3349_v16, %v3182_v31 }
 0x460   :  { %v3352_v25 = vpop.f32.mrb[59].mxu1 }
 0x461   :  { %v3388_v19 = vpop.f32.mrb[60].mxu0 }
 0x462   :  { %v3390_v45 = vpop.f32.mrb[61].mxu0  ;;  %v3440_v40 = vadd.f32 %v3388_v19, %v3183_v57  ;;  %v19324_v57 = vpop.permute.xlu0 %3723 }
 0x463   :  { %v3392_v38 = vpop.f32.mrb[62].mxu0  ;;  %16073 = vmatmul.mubr.msk.bf16.vlgmr.msra.gmra.mrb[140].mxu0 %vm1518_vm11, %v16067_v23  ;;  %v3441_v49 = vadd.f32 %v3390_v45, %v3184_v7 }
 0x464   :  { %v3393_v10 = vpop.f32.mrb[63].mxu0  ;;  %6234 = vmatprep.mubr.bf16.mxu0 %v21635_v11 }
 0x465   :  { %v3429_v34 = vpop.f32.mrb[60].mxu1  ;;  %16075 = vmatmul.mubr.msk.bf16.vlgmr.msra.gmra.mrb[140].mxu1 %vm1518_vm11, %v16067_v23 }
 0x466   :  { %v3442_v32 = vadd.f32 %v3429_v34, %v3185_v18  ;;  %v3431_v52 = vpop.f32.mrb[61].mxu1  ;;  %6277 = vmatprep.mubr.bf16.mxu1 %v21635_v11 }
 0x467   :  { %v3443_v33 = vadd.f32 %v3431_v52, %v3186_v54  ;;  %v3433_v4 = vpop.f32.mrb[62].mxu1  ;;  %v19326_v39 = vpop.permute.xlu1 %3735 }
 0x468   :  { %v3434_v1 = vpop.f32.mrb[63].mxu1 }
 0x469   :  { %v3563_v30 = vpop.f32.mrb[64].mxu0 }
 0x46a   :  { %v3693_v63 = vadd.f32 %v3563_v30, %v3436_v27  ;;  %v3565_v31 = vpop.f32.mrb[65].mxu0 }
 0x46b   :  { %v3694_v43 = vadd.f32 %v3565_v31, %v3437_v8  ;;  %v3567_v59 = vpop.f32.mrb[66].mxu0 }
 0x46c   :  { %v3706_v6 = vadd.f32 %v19320_v14, %v3693_v63  ;;  %v3568_v12 = vpop.f32.mrb[67].mxu0 }
 0x46d   :  { %v3707_v28 = vadd.f32 %v19320_v14, %v3694_v43  ;;  %v3604_v42 = vpop.f32.mrb[64].mxu1 }
 0x46e   :  { %v3714_v3 = vmax.f32 %v3706_v6, 0.0  ;;  %v3695_v7 = vadd.f32 %v3604_v42, %v3438_v60  ;;  %v3606_v21 = vpop.f32.mrb[65].mxu1 }
 0x46f   :  { %v3715_v51 = vmax.f32 %v3707_v28, 0.0  ;;  %v3696_v37 = vadd.f32 %v3606_v21, %v3439_v20  ;;  %v3608_v13 = vpop.f32.mrb[66].mxu1 }
 0x470   :  { %v3708_v56 = vadd.f32 %v19320_v14, %v3695_v7  ;;  %v3609_v48 = vpop.f32.mrb[67].mxu1  ;;  %v3726_v61 = vmul.f32 %v19324_v57, %v3714_v3 }
 0x471   :  { %v3709_v18 = vadd.f32 %v19320_v14, %v3696_v37  ;;  %v3645_v50 = vpop.f32.mrb[68].mxu0  ;;  %v3727_v54 = vmul.f32 %v19324_v57, %v3715_v51 }
 0x472   :  { %v3716_v44 = vmax.f32 %v3708_v56, 0.0  ;;  %v3697_v55 = vadd.f32 %v3645_v50, %v3440_v40  ;;  %v3647_v23 = vpop.f32.mrb[69].mxu0  ;;  %v3738_v26 = vadd.f32 %v19326_v39, %v3726_v61 }
 0x473   :  { %v3717_v41 = vmax.f32 %v3709_v18, 0.0  ;;  %v3698_v15 = vadd.f32 %v3647_v23, %v3441_v49  ;;  %v3649_v27 = vpop.f32.mrb[70].mxu0  ;;  %v3739_v17 = vadd.f32 %v19326_v39, %v3727_v54 }
 0x474   :  { %v3710_v47 = vadd.f32 %v19320_v14, %v3697_v55  ;;  %v3650_v8 = vpop.f32.mrb[71].mxu0  ;;  %v3746_v36 = vmul.f32 %v3738_v26, %v21624_v2  ;;  %v3728_v29 = vmul.f32 %v19324_v57, %v3716_v44 }
 0x475   :  { %v3711_v0 = vadd.f32 %v19320_v14, %v3698_v15  ;;  %v3686_v16 = vpop.f32.mrb[68].mxu1  ;;  %v3747_v60 = vmul.f32 %v3739_v17, %v21625_v5  ;;  %v3729_v62 = vmul.f32 %v19324_v57, %v3717_v41 }
 0x476   :  { %v3718_v20 = vmax.f32 %v3710_v47, 0.0  ;;  %v3699_v25 = vadd.f32 %v3686_v16, %v3442_v32  ;;  %v3688_v19 = vpop.f32.mrb[69].mxu1  ;;  %3762 = vrot.lane.b32.xlu1 %v3746_v36, %s17093_s1  ;;  %v3740_v45 = vadd.f32 %v19326_v39, %v3728_v29 }
 0x477   :  { %v3719_v40 = vmax.f32 %v3711_v0, 0.0  ;;  %v3700_v38 = vadd.f32 %v3688_v19, %v3443_v33  ;;  %v3690_v49 = vpop.f32.mrb[70].mxu1  ;;  %3764 = vrot.lane.b32.xlu0 %v3747_v60, %s17093_s1  ;;  %v3741_v10 = vadd.f32 %v19326_v39, %v3729_v62 }
 0x478   :  { %v3730_v34 = vmul.f32 %v19324_v57, %v3718_v20  ;;  %v3712_v52 = vadd.f32 %v19320_v14, %v3699_v25  ;;  %v3691_v4 = vpop.f32.mrb[71].mxu1  ;;  %v3748_v1 = vmul.f32 %v3740_v45, %v21626_v22 }
 0x479   :  { %v3731_v32 = vmul.f32 %v19324_v57, %v3719_v40  ;;  %v3713_v30 = vadd.f32 %v19320_v14, %v3700_v38  ;;  %v3749_v63 = vmul.f32 %v3741_v10, %v21627_v9  ;;  %v3921_v31 = vpop.f32.mrb[72].mxu0 }
 0x47a   :  { %v3720_v33 = vmax.f32 %v3712_v52, 0.0  ;;  %3766 = vrot.lane.b32.xlu1 %v3748_v1, %s17093_s1  ;;  %v3742_v43 = vadd.f32 %v19326_v39, %v3730_v34  ;;  %v3923_v59 = vpop.f32.mrb[73].mxu0 }
 0x47b   :  { %v3743_v6 = vadd.f32 %v19326_v39, %v3731_v32  ;;  %v3721_v12 = vmax.f32 %v3713_v30, 0.0  ;;  %3768 = vrot.lane.b32.xlu0 %v3749_v63, %s17093_s1  ;;  %v3925_v28 = vpop.f32.mrb[74].mxu0 }
 0x47c   :  { %v3732_v42 = vmul.f32 %v19324_v57, %v3720_v33  ;;  %v3750_v3 = vmul.f32 %v3742_v43, %v21628_v35  ;;  %v3926_v7 = vpop.f32.mrb[75].mxu0 }
 0x47d   :  { %v3733_v21 = vmul.f32 %v19324_v57, %v3721_v12  ;;  %v3751_v51 = vmul.f32 %v3743_v6, %v21629_v46  ;;  %v3962_v37 = vpop.f32.mrb[72].mxu1 }
 0x47e   :  { %v3744_v13 = vadd.f32 %v19326_v39, %v3732_v42  ;;  %3770 = vrot.lane.b32.xlu1 %v3750_v3, %s17093_s1  ;;  %v3964_v56 = vpop.f32.mrb[73].mxu1 }
 0x47f   :  { %v3745_v48 = vadd.f32 %v19326_v39, %v3733_v21  ;;  %3772 = vrot.lane.b32.xlu0 %v3751_v51, %s17093_s1  ;;  %v3966_v61 = vpop.f32.mrb[74].mxu1 }
 0x480   :  { %v3752_v18 = vmul.f32 %v3744_v13, %v21637_v53  ;;  %v3967_v50 = vpop.f32.mrb[75].mxu1 }
 0x481   :  { %v3753_v54 = vmul.f32 %v3745_v48, %v21636_v24 }
 0x482   :  { %3774 = vrot.lane.b32.xlu1 %v3752_v18, %s17093_s1 }
 0x483   :  { %3776 = vrot.lane.b32.xlu0 %v3753_v54, %s17093_s1 }
 0x4b6   :  { %v4003_v44 = vpop.f32.mrb[76].mxu0 }
 0x4b7   :  { %v4005_v55 = vpop.f32.mrb[77].mxu0 }
 0x4b8   :  { %v4007_v23 = vpop.f32.mrb[78].mxu0  ;;  %v4044_v26 = vpop.f32.mrb[76].mxu1 }
 0x4b9   :  { %v4008_v41 = vpop.f32.mrb[79].mxu0  ;;  %v4046_v15 = vpop.f32.mrb[77].mxu1 }
 0x4ba   :  { %v4048_v27 = vpop.f32.mrb[78].mxu1 }
 0x4bb   :  { %v4049_v17 = vpop.f32.mrb[79].mxu1 }
 0x4be   :  { %v4112_v47 = vpop.f32.mrb[80].mxu0 }
 0x4bf   :  { %v4113_v8 = vadd.f32 %v4112_v47, %v3921_v31  ;;  %v4114_v36 = vpop.f32.mrb[81].mxu0 }
 0x4c0   :  { %v4115_v29 = vadd.f32 %v4114_v36, %v3923_v59  ;;  %v4116_v0 = vpop.f32.mrb[82].mxu0  ;;  %v4153_v16 = vpop.f32.mrb[80].mxu1 }
 0x4c1   :  { %v4154_v60 = vadd.f32 %v4153_v16, %v3962_v37  ;;  %v4117_v62 = vpop.f32.mrb[83].mxu0  ;;  %v4155_v20 = vpop.f32.mrb[81].mxu1 }
 0x4c2   :  { %v4156_v25 = vadd.f32 %v4155_v20, %v3964_v56  ;;  %v4157_v19 = vpop.f32.mrb[82].mxu1 }
 0x4c3   :  { %v4158_v45 = vpop.f32.mrb[83].mxu1 }
 0x4c6   :  { %v4194_v40 = vpop.f32.mrb[84].mxu0 }
 0x4c7   :  { %v4195_v38 = vadd.f32 %v4194_v40, %v4003_v44  ;;  %v4196_v49 = vpop.f32.mrb[85].mxu0 }
 0x4c8   :  { %v4197_v10 = vadd.f32 %v4196_v49, %v4005_v55  ;;  %v4198_v34 = vpop.f32.mrb[86].mxu0  ;;  %v4235_v52 = vpop.f32.mrb[84].mxu1 }
 0x4c9   :  { %v4236_v4 = vadd.f32 %v4235_v52, %v4044_v26  ;;  %v4199_v1 = vpop.f32.mrb[87].mxu0  ;;  %v4237_v32 = vpop.f32.mrb[85].mxu1 }
 0x4ca   :  { %v4238_v30 = vadd.f32 %v4237_v32, %v4046_v15  ;;  %v4239_v63 = vpop.f32.mrb[86].mxu1 }
 0x4cb   :  { %v4240_v31 = vpop.f32.mrb[87].mxu1 }
 0x4ce   :  { %v4359_v33 = vpop.f32.mrb[88].mxu0 }
 0x4cf   :  { %v4489_v43 = vadd.f32 %v4359_v33, %v4113_v8  ;;  %v4361_v59 = vpop.f32.mrb[89].mxu0 }
 0x4d0   :  { %v4490_v6 = vadd.f32 %v4361_v59, %v4115_v29  ;;  %v4363_v12 = vpop.f32.mrb[90].mxu0  ;;  %v4400_v28 = vpop.f32.mrb[88].mxu1 }
 0x4d1   :  { %v4491_v42 = vadd.f32 %v4400_v28, %v4154_v60  ;;  %v4364_v3 = vpop.f32.mrb[91].mxu0  ;;  %v4402_v7 = vpop.f32.mrb[89].mxu1 }
 0x4d2   :  { %v4492_v21 = vadd.f32 %v4402_v7, %v4156_v25  ;;  %v4404_v51 = vpop.f32.mrb[90].mxu1 }
 0x4d3   :  { %v4405_v37 = vpop.f32.mrb[91].mxu1 }
 0x4d6   :  { %v4441_v13 = vpop.f32.mrb[92].mxu0 }
 0x4d7   :  { %v4493_v56 = vadd.f32 %v4441_v13, %v4195_v38  ;;  %v4443_v48 = vpop.f32.mrb[93].mxu0 }
 0x4d8   :  { %v4494_v61 = vadd.f32 %v4443_v48, %v4197_v10  ;;  %v4445_v18 = vpop.f32.mrb[94].mxu0  ;;  %v4482_v50 = vpop.f32.mrb[92].mxu1 }
 0x4d9   :  { %v4495_v54 = vadd.f32 %v4482_v50, %v4236_v4  ;;  %v4446_v44 = vpop.f32.mrb[95].mxu0  ;;  %v4484_v55 = vpop.f32.mrb[93].mxu1 }
 0x4da   :  { %v4496_v23 = vadd.f32 %v4484_v55, %v4238_v30  ;;  %v4486_v26 = vpop.f32.mrb[94].mxu1 }
 0x4db   :  { %v4487_v41 = vpop.f32.mrb[95].mxu1 }
 0x4de   :  { %v4614_v15 = vpop.f32.mrb[96].mxu0 }
 0x4df   :  { %v4744_v27 = vadd.f32 %v4614_v15, %v4489_v43  ;;  %v4616_v17 = vpop.f32.mrb[97].mxu0 }
 0x4e0   :  { %v4745_v47 = vadd.f32 %v4616_v17, %v4490_v6  ;;  %v4618_v8 = vpop.f32.mrb[98].mxu0  ;;  %v4655_v36 = vpop.f32.mrb[96].mxu1 }
 0x4e1   :  { %v4746_v29 = vadd.f32 %v4655_v36, %v4491_v42  ;;  %v4619_v0 = vpop.f32.mrb[99].mxu0  ;;  %v4657_v16 = vpop.f32.mrb[97].mxu1 }
 0x4e2   :  { %v4747_v60 = vadd.f32 %v4657_v16, %v4492_v21  ;;  %v4659_v62 = vpop.f32.mrb[98].mxu1 }
 0x4e3   :  { %v4660_v20 = vpop.f32.mrb[99].mxu1 }
 0x4e6   :  { %v4696_v25 = vpop.f32.mrb[100].mxu0 }
 0x4e7   :  { %v4748_v19 = vadd.f32 %v4696_v25, %v4493_v56  ;;  %v4698_v45 = vpop.f32.mrb[101].mxu0 }
 0x4e8   :  { %v4749_v40 = vadd.f32 %v4698_v45, %v4494_v61  ;;  %v4700_v38 = vpop.f32.mrb[102].mxu0  ;;  %v4737_v49 = vpop.f32.mrb[100].mxu1 }
 0x4e9   :  { %v4750_v10 = vadd.f32 %v4737_v49, %v4495_v54  ;;  %v3763_v34 = vpop.permute.xlu1 %3762  ;;  %v4701_v52 = vpop.f32.mrb[103].mxu0 }
 0x4ea   :  { %3794 = vst.msk [vmem:[#allocation3] sm:$0xff] %vm3793_vm12, %v3763_v34  ;;  %v4739_v4 = vpop.f32.mrb[101].mxu1  ;;  %v3765_v1 = vpop.permute.xlu0 %3764 }
 0x4eb   :  { %v4751_v32 = vadd.f32 %v4739_v4, %v4496_v23  ;;  %v3778_v30 = vsel %vm804_vm13, %v3763_v34, %v3765_v1  ;;  %v4741_v63 = vpop.f32.mrb[102].mxu1 }
 0x4ec   :  { %v19368_v31 = vpack.c.bf16 %v3778_v30, %v3778_v30  ;;  %v4742_v33 = vpop.f32.mrb[103].mxu1 }
 0x4ed   :  { %v3767_v43 = vpop.permute.xlu1 %3766 }
 0x4ee   :  { %v3779_v59 = vsel %vm804_vm13, %v3765_v1, %v3767_v43  ;;  %v3769_v6 = vpop.permute.xlu0 %3768  ;;  %v4869_v12 = vpop.f32.mrb[104].mxu0  ;;  %6153 = vrot.lane.b32.xlu0 %v19368_v31, %s17084_s17 }
 0x4ef   :  { %v3780_v28 = vsel %vm804_vm13, %v3767_v43, %v3769_v6  ;;  %v4999_v42 = vadd.f32 %v4869_v12, %v4744_v27  ;;  %v4871_v3 = vpop.f32.mrb[105].mxu0  ;;  %v19386_v17 = vpack.c.bf16 %v3779_v59, %v3779_v59 }
 0x4f0   :  { %v19374_v7 = vpack.c.bf16 %v3780_v28, %v3780_v28  ;;  %v5000_v21 = vadd.f32 %v4871_v3, %v4745_v47  ;;  %v4873_v51 = vpop.f32.mrb[106].mxu0  ;;  %v4910_v37 = vpop.f32.mrb[104].mxu1 }
 0x4f1   :  { %v6117_v13 = vld [vmem:[#allocation3] sm:$0xff]  ;;  %v5001_v56 = vadd.f32 %v4910_v37, %v4746_v29  ;;  %v3771_v48 = vpop.permute.xlu1 %3770  ;;  %v4874_v61 = vpop.f32.mrb[107].mxu0 }
 0x4f2   :  { %v19376_v18 = vpack.c.bf16 %v6117_v13, %v6117_v13  ;;  %v3781_v50 = vsel %vm804_vm13, %v3769_v6, %v3771_v48  ;;  %v4912_v54 = vpop.f32.mrb[105].mxu1  ;;  %v3773_v44 = vpop.permute.xlu0 %3772  ;;  %6157 = vrot.lane.b32.xlu0 %v19374_v7, %s17084_s17 }
 0x4f3   :  { %v5002_v55 = vadd.f32 %v4912_v54, %v4747_v60  ;;  %v3782_v23 = vsel %vm804_vm13, %v3771_v48, %v3773_v44  ;;  %v4914_v26 = vpop.f32.mrb[106].mxu1  ;;  %v19395_v49 = vpack.c.bf16 %v3781_v50, %v3781_v50 }
 0x4f4   :  { %v19382_v41 = vpack.c.bf16 %v3782_v23, %v3782_v23  ;;  %v4915_v15 = vpop.f32.mrb[107].mxu1  ;;  %6151 = vrot.lane.b32.xlu1 %v19376_v18, %s17084_s17 }
 0x4f5   :  { %v3775_v27 = vpop.permute.xlu1 %3774 }
 0x4f6   :  { %v3783_v47 = vsel %vm804_vm13, %v3773_v44, %v3775_v27  ;;  %v3777_v8 = vpop.permute.xlu0 %3776  ;;  %v4951_v36 = vpop.f32.mrb[108].mxu0  ;;  %6161 = vrot.lane.b32.xlu0 %v19382_v41, %s17084_s17 }
 0x4f7   :  { %v3784_v29 = vsel %vm804_vm13, %v3775_v27, %v3777_v8  ;;  %v5003_v0 = vadd.f32 %v4951_v36, %v4748_v19  ;;  %v4953_v16 = vpop.f32.mrb[109].mxu0  ;;  %v19399_v19 = vpack.c.bf16 %v3783_v47, %v3783_v47 }
 0x4f8   :  { %3802 = vst.msk [vmem:[#allocation3 + $0x38] sm:$0xff] %vm3801_vm14, %v3784_v29  ;;  %v5004_v60 = vadd.f32 %v4953_v16, %v4749_v40  ;;  %v4955_v62 = vpop.f32.mrb[110].mxu0  ;;  %v4992_v20 = vpop.f32.mrb[108].mxu1  ;;  %6155 = vrot.lane.b32.xlu1 %v19386_v17, %s17084_s17 }
 0x4f9   :  { %v5005_v25 = vadd.f32 %v4992_v20, %v4750_v10  ;;  %v4956_v45 = vpop.f32.mrb[111].mxu0  ;;  %v4994_v38 = vpop.f32.mrb[109].mxu1 }
 0x4fa   :  { %v5006_v34 = vadd.f32 %v4994_v38, %v4751_v32  ;;  %v4996_v52 = vpop.f32.mrb[110].mxu1 }
 0x4fb   :  { %v4997_v4 = vpop.f32.mrb[111].mxu1 }
 0x4fc   :  { %6159 = vrot.lane.b32.xlu1 %v19395_v49, %s17084_s17 }
 0x4fe   :  { %v5124_v1 = vpop.f32.mrb[112].mxu0 }
 0x4ff   :  { %v6124_v40 = vld [vmem:[#allocation3 + $0x38] sm:$0xff]  ;;  %v5254_v30 = vadd.f32 %v5124_v1, %v4999_v42  ;;  %v5126_v63 = vpop.f32.mrb[113].mxu0 }
 0x500   :  { %v19401_v33 = vpack.c.bf16 %v6124_v40, %v6124_v40  ;;  %v5255_v43 = vadd.f32 %v5126_v63, %v5000_v21  ;;  %v5128_v10 = vpop.f32.mrb[114].mxu0  ;;  %v5165_v59 = vpop.f32.mrb[112].mxu1  ;;  %6163 = vrot.lane.b32.xlu1 %v19399_v19, %s17084_s17 }
 0x501   :  { %v5256_v32 = vadd.f32 %v5165_v59, %v5001_v56  ;;  %v5129_v6 = vpop.f32.mrb[115].mxu0  ;;  %v5167_v12 = vpop.f32.mrb[113].mxu1 }
 0x502   :  { %v5257_v28 = vadd.f32 %v5167_v12, %v5002_v55  ;;  %6165 = vrot.lane.b32.xlu0 %v19401_v33, %s17084_s17  ;;  %v5169_v3 = vpop.f32.mrb[114].mxu1 }
 0x503   :  { %v5170_v51 = vpop.f32.mrb[115].mxu1 }
 0x504   :  { %6586 = vrot.lane.b32.xlu1 %v19376_v18, %s17085_s18 }
 0x506   :  { %6588 = vrot.lane.b32.xlu0 %v19368_v31, %s17085_s18  ;;  %v5206_v42 = vpop.f32.mrb[116].mxu0 }
 0x507   :  { %v5258_v21 = vadd.f32 %v5206_v42, %v5003_v0  ;;  %v5208_v37 = vpop.f32.mrb[117].mxu0 }
 0x508   :  { %v5259_v13 = vadd.f32 %v5208_v37, %v5004_v60  ;;  %v5210_v48 = vpop.f32.mrb[118].mxu0  ;;  %v5247_v56 = vpop.f32.mrb[116].mxu1  ;;  %6590 = vrot.lane.b32.xlu1 %v19386_v17, %s17085_s18 }
 0x509   :  { %v5260_v61 = vadd.f32 %v5247_v56, %v5005_v25  ;;  %v5211_v50 = vpop.f32.mrb[119].mxu0  ;;  %v5249_v54 = vpop.f32.mrb[117].mxu1 }
 0x50a   :  { %v5261_v44 = vadd.f32 %v5249_v54, %v5006_v34  ;;  %6592 = vrot.lane.b32.xlu0 %v19374_v7, %s17085_s18  ;;  %v5251_v55 = vpop.f32.mrb[118].mxu1 }
 0x50b   :  { %v5252_v23 = vpop.f32.mrb[119].mxu1 }
 0x50c   :  { %6594 = vrot.lane.b32.xlu1 %v19395_v49, %s17085_s18 }
 0x50e   :  { %6596 = vrot.lane.b32.xlu0 %v19382_v41, %s17085_s18  ;;  %v5379_v26 = vpop.f32.mrb[120].mxu0 }
 0x50f   :  { %v5509_v15 = vadd.f32 %v5379_v26, %v5254_v30  ;;  %v5381_v27 = vpop.f32.mrb[121].mxu0 }
 0x510   :  { %v5510_v47 = vadd.f32 %v5381_v27, %v5255_v43  ;;  %v5383_v8 = vpop.f32.mrb[122].mxu0  ;;  %v5420_v36 = vpop.f32.mrb[120].mxu1  ;;  %6598 = vrot.lane.b32.xlu1 %v19399_v19, %s17085_s18 }
 0x511   :  { %v5511_v29 = vadd.f32 %v5420_v36, %v5256_v32  ;;  %v5384_v0 = vpop.f32.mrb[123].mxu0  ;;  %v5422_v16 = vpop.f32.mrb[121].mxu1 }
 0x512   :  { %v5512_v60 = vadd.f32 %v5422_v16, %v5257_v28  ;;  %6834 = vrot.lane.b32.xlu0 %v19368_v31, %s17086_s19  ;;  %v5424_v62 = vpop.f32.mrb[122].mxu1 }
 0x513   :  { %v5425_v20 = vpop.f32.mrb[123].mxu1 }
 0x514   :  { %6832 = vrot.lane.b32.xlu1 %v19376_v18, %s17086_s19 }
 0x516   :  { %6838 = vrot.lane.b32.xlu0 %v19374_v7, %s17086_s19  ;;  %v5461_v25 = vpop.f32.mrb[124].mxu0 }
 0x517   :  { %v5513_v45 = vadd.f32 %v5461_v25, %v5258_v21  ;;  %v5463_v38 = vpop.f32.mrb[125].mxu0 }
 0x518   :  { %v5514_v34 = vadd.f32 %v5463_v38, %v5259_v13  ;;  %v5465_v52 = vpop.f32.mrb[126].mxu0  ;;  %v5502_v4 = vpop.f32.mrb[124].mxu1  ;;  %6836 = vrot.lane.b32.xlu1 %v19386_v17, %s17086_s19 }
 0x519   :  { %v5515_v1 = vadd.f32 %v5502_v4, %v5260_v61  ;;  %v5466_v40 = vpop.f32.mrb[127].mxu0  ;;  %v5504_v30 = vpop.f32.mrb[125].mxu1 }
 0x51a   :  { %v5516_v63 = vadd.f32 %v5504_v30, %v5261_v44  ;;  %6842 = vrot.lane.b32.xlu0 %v19382_v41, %s17086_s19  ;;  %v5506_v43 = vpop.f32.mrb[126].mxu1 }
 0x51b   :  { %v5507_v10 = vpop.f32.mrb[127].mxu1 }
 0x51c   :  { %6840 = vrot.lane.b32.xlu1 %v19395_v49, %s17086_s19 }
 0x51e   :  { %7080 = vrot.lane.b32.xlu0 %v19368_v31, %s17087_s20  ;;  %v5634_v59 = vpop.f32.mrb[128].mxu0 }
 0x51f   :  { %v5764_v32 = vadd.f32 %v5634_v59, %v5509_v15  ;;  %v5636_v6 = vpop.f32.mrb[129].mxu0 }
 0x520   :  { %v5765_v12 = vadd.f32 %v5636_v6, %v5510_v47  ;;  %v5638_v28 = vpop.f32.mrb[130].mxu0  ;;  %v5675_v3 = vpop.f32.mrb[128].mxu1  ;;  %6844 = vrot.lane.b32.xlu1 %v19399_v19, %s17086_s19 }
 0x521   :  { %v5766_v51 = vadd.f32 %v5675_v3, %v5511_v29  ;;  %v5639_v42 = vpop.f32.mrb[131].mxu0  ;;  %v5677_v21 = vpop.f32.mrb[129].mxu1 }
 0x522   :  { %v5767_v37 = vadd.f32 %v5677_v21, %v5512_v60  ;;  %6600 = vrot.lane.b32.xlu0 %v19401_v33, %s17085_s18  ;;  %v5679_v13 = vpop.f32.mrb[130].mxu1 }
 0x523   :  { %v5680_v48 = vpop.f32.mrb[131].mxu1 }
 0x524   :  { %7078 = vrot.lane.b32.xlu1 %v19376_v18, %s17087_s20 }
 0x526   :  { %7084 = vrot.lane.b32.xlu0 %v19374_v7, %s17087_s20  ;;  %v5716_v56 = vpop.f32.mrb[132].mxu0 }
 0x527   :  { %v5768_v61 = vadd.f32 %v5716_v56, %v5513_v45  ;;  %v5718_v50 = vpop.f32.mrb[133].mxu0 }
 0x528   :  { %v5769_v54 = vadd.f32 %v5718_v50, %v5514_v34  ;;  %v5720_v44 = vpop.f32.mrb[134].mxu0  ;;  %v5757_v55 = vpop.f32.mrb[132].mxu1  ;;  %7082 = vrot.lane.b32.xlu1 %v19386_v17, %s17087_s20 }
 0x529   :  { %v5770_v23 = vadd.f32 %v5757_v55, %v5515_v1  ;;  %v5721_v26 = vpop.f32.mrb[135].mxu0  ;;  %v5759_v15 = vpop.f32.mrb[133].mxu1 }
 0x52a   :  { %v5771_v27 = vadd.f32 %v5759_v15, %v5516_v63  ;;  %7088 = vrot.lane.b32.xlu0 %v19382_v41, %s17087_s20  ;;  %v5761_v47 = vpop.f32.mrb[134].mxu1 }
 0x52b   :  { %v5762_v8 = vpop.f32.mrb[135].mxu1 }
 0x52c   :  { %7086 = vrot.lane.b32.xlu1 %v19395_v49, %s17087_s20 }
 0x52e   :  { %7324 = vrot.lane.b32.xlu0 %v19376_v18, %s17088_s10  ;;  %v5889_v36 = vpop.f32.mrb[136].mxu0 }
 0x52f   :  { %v6019_v29 = vadd.f32 %v5889_v36, %v5764_v32  ;;  %v5891_v0 = vpop.f32.mrb[137].mxu0 }
 0x530   :  { %v6020_v16 = vadd.f32 %v5891_v0, %v5765_v12  ;;  %v5893_v60 = vpop.f32.mrb[138].mxu0  ;;  %v5930_v62 = vpop.f32.mrb[136].mxu1  ;;  %7090 = vrot.lane.b32.xlu1 %v19399_v19, %s17087_s20 }
 0x531   :  { %v6027_v20 = vadd.f32 %v6019_v29, %v19320_v14  ;;  %v6021_v25 = vadd.f32 %v5930_v62, %v5766_v51  ;;  %v5894_v45 = vpop.f32.mrb[139].mxu0  ;;  %v5932_v38 = vpop.f32.mrb[137].mxu1 }
 0x532   :  { %v6028_v34 = vadd.f32 %v6020_v16, %v19320_v14  ;;  %v6022_v52 = vadd.f32 %v5932_v38, %v5767_v37  ;;  %6846 = vrot.lane.b32.xlu0 %v19401_v33, %s17086_s19  ;;  %v5934_v4 = vpop.f32.mrb[138].mxu1 }
 0x533   :  { %v6035_v1 = vmax.f32 %v6027_v20, 0.0  ;;  %v6029_v40 = vadd.f32 %v6021_v25, %v19320_v14  ;;  %v5935_v30 = vpop.f32.mrb[139].mxu1 }
 0x534   :  { %v6036_v63 = vmax.f32 %v6028_v34, 0.0  ;;  %v6030_v43 = vadd.f32 %v6022_v52, %v19320_v14  ;;  %7326 = vrot.lane.b32.xlu1 %v19368_v31, %s17088_s10 }
 0x535   :  { %v6043_v10 = vmul.f32 %v6035_v1, %v19324_v57  ;;  %v6037_v59 = vmax.f32 %v6029_v40, 0.0 }
 0x536   :  { %v6044_v32 = vmul.f32 %v6036_v63, %v19324_v57  ;;  %v6038_v6 = vmax.f32 %v6030_v43, 0.0  ;;  %7328 = vrot.lane.b32.xlu0 %v19386_v17, %s17088_s10  ;;  %v5971_v12 = vpop.f32.mrb[140].mxu0 }
 0x537   :  { %v6051_v28 = vadd.f32 %v6043_v10, %v19326_v39  ;;  %v6045_v3 = vmul.f32 %v6037_v59, %v19324_v57  ;;  %v6023_v51 = vadd.f32 %v5971_v12, %v5768_v61  ;;  %v5973_v42 = vpop.f32.mrb[141].mxu0 }
 0x538   :  { %v6024_v21 = vadd.f32 %v5973_v42, %v5769_v54  ;;  %v5975_v37 = vpop.f32.mrb[142].mxu0  ;;  %v6012_v13 = vpop.f32.mrb[140].mxu1  ;;  %7330 = vrot.lane.b32.xlu1 %v19374_v7, %s17088_s10  ;;  %v6052_v15 = vadd.f32 %v6044_v32, %v19326_v39  ;;  %v6046_v61 = vmul.f32 %v6038_v6, %v19324_v57 }
 0x539   :  { %v6053_v48 = vadd.f32 %v6045_v3, %v19326_v39  ;;  %v6031_v56 = vadd.f32 %v6023_v51, %v19320_v14  ;;  %v6025_v50 = vadd.f32 %v6012_v13, %v5770_v23  ;;  %v5976_v44 = vpop.f32.mrb[143].mxu0  ;;  %v6014_v55 = vpop.f32.mrb[141].mxu1  ;;  %v6059_v26 = vmul.f32 %v6051_v28, %v21624_v2  ;;  %v16898_v51 = vld [vmem:[%s21433_s6 + $0x8] sm:$0xff]  }
 0x53a   :  { %v6032_v54 = vadd.f32 %v6024_v21, %v19320_v14  ;;  %v6026_v47 = vadd.f32 %v6014_v55, %v5771_v27  ;;  %v6016_v8 = vpop.f32.mrb[142].mxu1  ;;  %v6054_v20 = vadd.f32 %v6046_v61, %v19326_v39  ;;  %v6060_v45 = vmul.f32 %v6052_v15, %v21625_v5 }
 0x53b   :  { %v6039_v36 = vmax.f32 %v6031_v56, 0.0  ;;  %v6033_v29 = vadd.f32 %v6025_v50, %v19320_v14  ;;  %v6017_v0 = vpop.f32.mrb[143].mxu1  ;;  %6075 = vrot.lane.b32.xlu0 %v6059_v26, %s17093_s1  ;;  %v6061_v62 = vmul.f32 %v6053_v48, %v21626_v22  ;;  %v6383_v8 = vsel %vm61_vm8, %v19376_v18, 0 }
 0x53c   :  { %v6040_v16 = vmax.f32 %v6032_v54, 0.0  ;;  %7092 = vrot.lane.b32.xlu1 %v19401_v33, %s17087_s20  ;;  %v6034_v25 = vadd.f32 %v6026_v47, %v19320_v14  ;;  %v6062_v30 = vmul.f32 %v6054_v20, %v21627_v9 }
 0x53d   :  { %v6047_v23 = vmul.f32 %v6039_v36, %v19324_v57  ;;  %v6041_v60 = vmax.f32 %v6033_v29, 0.0 }
 0x53e   :  { %v6048_v27 = vmul.f32 %v6040_v16, %v19324_v57  ;;  %v6042_v40 = vmax.f32 %v6034_v25, 0.0 }
 0x53f   :  { %v6055_v38 = vadd.f32 %v6047_v23, %v19326_v39  ;;  %v6049_v34 = vmul.f32 %v6041_v60, %v19324_v57  ;;  %6079 = vrot.lane.b32.xlu0 %v6061_v62, %s17093_s1 }
 0x540   :  { %6077 = vrot.lane.b32.xlu1 %v6060_v45, %s17093_s1  ;;  %v6056_v1 = vadd.f32 %v6048_v27, %v19326_v39  ;;  %v6050_v63 = vmul.f32 %v6042_v40, %v19324_v57 }
 0x541   :  { %v6057_v52 = vadd.f32 %v6049_v34, %v19326_v39  ;;  %v6063_v4 = vmul.f32 %v6055_v38, %v21628_v35 }
 0x542   :  { %v6064_v43 = vmul.f32 %v6056_v1, %v21629_v46  ;;  %v6058_v10 = vadd.f32 %v6050_v63, %v19326_v39 }
 0x543   :  { %6083 = vrot.lane.b32.xlu0 %v6063_v4, %s17093_s1  ;;  %v6065_v14 = vmul.f32 %v6057_v52, %v21637_v53  ;;  %v16900_v52 = vld [vmem:[%s21433_s6 + $0x10] sm:$0xff]  }
 0x544   :  { %6081 = vrot.lane.b32.xlu1 %v6062_v30, %s17093_s1  ;;  %v6066_v59 = vmul.f32 %v6058_v10, %v21636_v24 }
 0x547   :  { %6087 = vrot.lane.b32.xlu0 %v6065_v14, %s17093_s1 }
 0x548   :  { %6085 = vrot.lane.b32.xlu1 %v6064_v43, %s17093_s1 }
 0x54b   :  { %7332 = vrot.lane.b32.xlu0 %v19395_v49, %s17088_s10 }
 0x54c   :  { %7334 = vrot.lane.b32.xlu1 %v19382_v41, %s17088_s10 }
 0x54f   :  { %7336 = vrot.lane.b32.xlu0 %v19399_v19, %s17088_s10 }
 0x550   :  { %6089 = vrot.lane.b32.xlu1 %v6066_v59, %s17093_s1 }
 0x553   :  { %7338 = vrot.lane.b32.xlu0 %v19401_v33, %s17088_s10 }
 0x554   :  { %7570 = vrot.lane.b32.xlu1 %v19376_v18, %s17089_s21 }
 0x557   :  { %7572 = vrot.lane.b32.xlu0 %v19368_v31, %s17089_s21 }
 0x558   :  { %7574 = vrot.lane.b32.xlu1 %v19386_v17, %s17089_s21 }
 0x55b   :  { %7576 = vrot.lane.b32.xlu0 %v19374_v7, %s17089_s21 }
 0x55c   :  { %7578 = vrot.lane.b32.xlu1 %v19395_v49, %s17089_s21 }
 0x55f   :  { %7580 = vrot.lane.b32.xlu0 %v19382_v41, %s17089_s21 }
 0x560   :  { %7582 = vrot.lane.b32.xlu1 %v19399_v19, %s17089_s21  ;;  %v6154_v57 = vpop.permute.xlu0 %6153 }
 0x563   :  { %7584 = vrot.lane.b32.xlu0 %v19401_v33, %s17089_s21 }
 0x564   :  { %7816 = vrot.lane.b32.xlu1 %v19376_v18, %s17090_s22  ;;  %v6158_v12 = vpop.permute.xlu0 %6157 }
 0x566   :  { %v6152_v39 = vpop.permute.xlu1 %6151 }
 0x567   :  { %7818 = vrot.lane.b32.xlu0 %v19368_v31, %s17090_s22  ;;  %v6167_v32 = vsel %vm222_vm0, %v6152_v39, %v6154_v57 }
 0x568   :  { %7820 = vrot.lane.b32.xlu1 %v19386_v17, %s17090_s22  ;;  %v6179_v3 = vsel %vm61_vm8, %v6167_v32, 0  ;;  %v6162_v13 = vpop.permute.xlu0 %6161 }
 0x56a   :  { %v6156_v6 = vpop.permute.xlu1 %6155 }
 0x56b   :  { %7822 = vrot.lane.b32.xlu0 %v19374_v7, %s17090_s22  ;;  %v6168_v28 = vsel %vm222_vm0, %v6154_v57, %v6156_v6  ;;  %v6169_v42 = vsel %vm222_vm0, %v6156_v6, %v6158_v12 }
 0x56c   :  { %16079 = vmatprep.subr.msk.bf16.mxu0 %vm61_vm8, %v6168_v28  ;;  %7824 = vrot.lane.b32.xlu1 %v19395_v49, %s17090_s22  ;;  %v6185_v48 = vsel %vm61_vm8, %v6169_v42, 0 }
 0x56d   :  { %6203 = vmatpush1.bf16.msra.mxu0 %v6179_v3 }
 0x56e   :  { %v6160_v21 = vpop.permute.xlu1 %6159 }
 0x56f   :  { %7826 = vrot.lane.b32.xlu0 %v19382_v41, %s17090_s22  ;;  %v6170_v37 = vsel %vm222_vm0, %v6158_v12, %v6160_v21  ;;  %v6171_v56 = vsel %vm222_vm0, %v6160_v21, %v6162_v13 }
 0x570   :  { %16080 = vmatmul.mubr.msk.bf16.vlgmr.msra.gmra.mrb[144].mxu0 %vm6174_vm15, %v16898_v51  ;;  %16081 = vmatprep.subr.msk.bf16.mxu1 %vm61_vm8, %v6170_v37  ;;  %v6191_v15 = vsel %vm61_vm8, %v6171_v56, 0  ;;  %v16901_v37 = vld [vmem:[%s21433_s6 + $0x18] sm:$0xff]  }
 0x571   :  { %7828 = vrot.lane.b32.xlu1 %v19399_v19, %s17090_s22  ;;  %6246 = vmatpush1.bf16.msra.mxu1 %v6185_v48 }
 0x572   :  { %v6164_v50 = vpop.permute.xlu1 %6163  ;;  %6320 = vmatprep.mubr.bf16.mxu0 %v21635_v11 }
 0x573   :  { %7830 = vrot.lane.b32.xlu0 %v19401_v33, %s17090_s22  ;;  %v6172_v44 = vsel %vm222_vm0, %v6162_v13, %v6164_v50 }
 0x574   :  { %v6166_v55 = vpop.permute.xlu0 %6165  ;;  %16082 = vmatmul.mubr.msk.bf16.vlgmr.msra.gmra.mrb[144].mxu1 %vm6174_vm15, %v16898_v51  ;;  %16083 = vmatprep.subr.msk.bf16.mxu0 %vm61_vm8, %v6172_v44 }
 0x575   :  { %v6173_v26 = vsel %vm222_vm0, %v6164_v50, %v6166_v55  ;;  %16085 = vmatprep.subr.msk.bf16.mxu1 %vm61_vm8, %v6166_v55  ;;  %8062 = vrot.lane.b32.xlu1 %v19376_v18, %s17091_s23  ;;  %v16899_v18 = vld [vmem:[%s21433_s6] sm:$0xff]  }
 0x576   :  { %6289 = vmatpush1.bf16.msra.mxu0 %v6191_v15  ;;  %v6197_v61 = vsel %vm61_vm8, %v6173_v26, 0  ;;  %v6587_v54 = vpop.permute.xlu1 %6586  ;;  %6363 = vmatprep.mubr.bf16.mxu1 %v21635_v11 }
 0x577   :  { %6332 = vmatpush1.bf16.msra.mxu1 %v6197_v61  ;;  %16088 = vmatprep.subr.msk.bf16.mxu0 %vm61_vm8, %v19368_v31 }
 0x578   :  { %v6589_v47 = vpop.permute.xlu0 %6588  ;;  %16090 = vmatprep.subr.msk.bf16.mxu1 %vm61_vm8, %v19374_v7  ;;  %8064 = vrot.lane.b32.xlu0 %v19368_v31, %s17091_s23  ;;  %v6389_v31 = vsel %vm61_vm8, %v19386_v17, 0 }
 0x579   :  { %16084 = vmatmul.mubr.msk.bf16.vlgmr.msra.gmra.mrb[148].mxu0 %vm6174_vm15, %v16898_v51  ;;  %8066 = vrot.lane.b32.xlu1 %v19386_v17, %s17091_s23  ;;  %v6395_v17 = vsel %vm61_vm8, %v19395_v49, 0  ;;  %v6602_v62 = vsel %vm285_vm1, %v6587_v54, %v6589_v47 }
 0x57a   :  { %6407 = vmatpush1.bf16.msra.mxu0 %v6383_v8  ;;  %v6591_v36 = vpop.permute.xlu1 %6590  ;;  %6438 = vmatprep.mubr.bf16.mxu0 %v21635_v11 }
 0x57b   :  { %16092 = vmatprep.subr.msk.bf16.mxu0 %vm61_vm8, %v19382_v41  ;;  %v6603_v16 = vsel %vm285_vm1, %v6589_v47, %v6591_v36 }
 0x57c   :  { %v6593_v29 = vpop.permute.xlu0 %6592  ;;  %8068 = vrot.lane.b32.xlu0 %v19374_v7, %s17091_s23  ;;  %16086 = vmatmul.mubr.msk.bf16.vlgmr.msra.gmra.mrb[148].mxu1 %vm6174_vm15, %v16898_v51 }
 0x57d   :  { %6450 = vmatpush1.bf16.msra.mxu1 %v6389_v31  ;;  %8070 = vrot.lane.b32.xlu1 %v19395_v49, %s17091_s23  ;;  %v6604_v25 = vsel %vm285_vm1, %v6591_v36, %v6593_v29 }
 0x57e   :  { %16094 = vmatprep.subr.msk.bf16.mxu1 %vm61_vm8, %v19401_v33  ;;  %v6595_v0 = vpop.permute.xlu1 %6594  ;;  %6481 = vmatprep.mubr.bf16.mxu1 %v21635_v11  ;;  %v6619_v34 = vsel %vm61_vm8, %v6604_v25, 0 }
 0x57f   :  { %v6605_v49 = vsel %vm285_vm1, %v6593_v29, %v6595_v0 }
 0x580   :  { %v6597_v7 = vpop.permute.xlu0 %6596  ;;  %8072 = vrot.lane.b32.xlu0 %v19382_v41, %s17091_s23  ;;  %v6401_v41 = vsel %vm61_vm8, %v19399_v19, 0 }
 0x581   :  { %16089 = vmatmul.mubr.msk.bf16.vlgmr.msra.gmra.mrb[144].mxu0 %vm6174_vm15, %v16899_v18  ;;  %8074 = vrot.lane.b32.xlu1 %v19399_v19, %s17091_s23  ;;  %v6606_v4 = vsel %vm285_vm1, %v6595_v0, %v6597_v7 }
 0x582   :  { %6493 = vmatpush1.bf16.msra.mxu0 %v6395_v17  ;;  %v6599_v23 = vpop.permute.xlu1 %6598  ;;  %6524 = vmatprep.mubr.bf16.mxu0 %v21635_v11  ;;  %v6625_v30 = vsel %vm61_vm8, %v6606_v4, 0 }
 0x583   :  { %16099 = vmatprep.subr.msk.bf16.mxu0 %vm61_vm8, %v6603_v16  ;;  %v6607_v19 = vsel %vm285_vm1, %v6597_v7, %v6599_v23  ;;  %v16902_v16 = vld [vmem:[%s21433_s6 + $0x20] sm:$0xff]  }
 0x584   :  { %v6835_v60 = vpop.permute.xlu0 %6834  ;;  %8076 = vrot.lane.b32.xlu0 %v19401_v33, %s17091_s23  ;;  %16091 = vmatmul.mubr.msk.bf16.vlgmr.msra.gmra.mrb[144].mxu1 %vm6174_vm15, %v16899_v18  ;;  %v6613_v33 = vsel %vm61_vm8, %v6602_v62, 0 }
 0x585   :  { %6536 = vmatpush1.bf16.msra.mxu1 %v6401_v41  ;;  %6567 = vmatprep.mubr.bf16.mxu1 %v21635_v11 }
 0x586   :  { %16101 = vmatprep.subr.msk.bf16.mxu1 %vm61_vm8, %v6605_v49  ;;  %v6833_v20 = vpop.permute.xlu1 %6832 }
 0x587   :  { %v6848_v59 = vsel %vm348_vm2, %v6833_v20, %v6835_v60 }
 0x588   :  { %v6839_v27 = vpop.permute.xlu0 %6838  ;;  %v6859_v12 = vsel %vm61_vm8, %v6848_v59, 0 }
 0x589   :  { %16093 = vmatmul.mubr.msk.bf16.vlgmr.msra.gmra.mrb[148].mxu0 %vm6174_vm15, %v16899_v18 }
 0x58a   :  { %6637 = vmatpush1.bf16.msra.mxu0 %v6613_v33  ;;  %v6837_v45 = vpop.permute.xlu1 %6836  ;;  %6668 = vmatprep.mubr.bf16.mxu0 %v21635_v11 }
 0x58b   :  { %16103 = vmatprep.subr.msk.bf16.mxu0 %vm61_vm8, %v6607_v19  ;;  %v6849_v14 = vsel %vm348_vm2, %v6835_v60, %v6837_v45  ;;  %v6850_v28 = vsel %vm348_vm2, %v6837_v45, %v6839_v27 }
 0x58c   :  { %v6843_v38 = vpop.permute.xlu0 %6842  ;;  %16095 = vmatmul.mubr.msk.bf16.vlgmr.msra.gmra.mrb[148].mxu1 %vm6174_vm15, %v16899_v18  ;;  %v6865_v21 = vsel %vm61_vm8, %v6850_v28, 0  ;;  %v16903_v28 = vld [vmem:[%s21433_s6 + $0x28] sm:$0xff]  }
 0x58d   :  { %6680 = vmatpush1.bf16.msra.mxu1 %v6619_v34  ;;  %6711 = vmatprep.mubr.bf16.mxu1 %v21635_v11 }
 0x58e   :  { %v6841_v1 = vpop.permute.xlu1 %6840 }
 0x58f   :  { %v6851_v32 = vsel %vm348_vm2, %v6839_v27, %v6841_v1  ;;  %v6852_v13 = vsel %vm348_vm2, %v6841_v1, %v6843_v38 }
 0x590   :  { %v7081_v40 = vpop.permute.xlu0 %7080  ;;  %v6871_v50 = vsel %vm61_vm8, %v6852_v13, 0 }
 0x591   :  { %16100 = vmatmul.mubr.msk.bf16.vlgmr.msra.gmra.mrb[144].mxu0 %vm6174_vm15, %v16900_v52 }
 0x592   :  { %6723 = vmatpush1.bf16.msra.mxu0 %v6625_v30  ;;  %v6845_v63 = vpop.permute.xlu1 %6844  ;;  %6754 = vmatprep.mubr.bf16.mxu0 %v21635_v11 }
 0x593   :  { %16110 = vmatprep.subr.msk.bf16.mxu0 %vm61_vm8, %v6849_v14  ;;  %v6853_v3 = vsel %vm348_vm2, %v6843_v38, %v6845_v63 }
 0x594   :  { %v6601_v43 = vpop.permute.xlu0 %6600  ;;  %16102 = vmatmul.mubr.msk.bf16.vlgmr.msra.gmra.mrb[144].mxu1 %vm6174_vm15, %v16900_v52 }
 0x595   :  { %v6608_v10 = vsel %vm285_vm1, %v6599_v23, %v6601_v43  ;;  %16105 = vmatprep.subr.msk.bf16.mxu1 %vm61_vm8, %v6601_v43  ;;  %6797 = vmatprep.mubr.bf16.mxu1 %v21635_v11 }
 0x596   :  { %v6631_v57 = vsel %vm61_vm8, %v6608_v10, 0  ;;  %v7079_v39 = vpop.permute.xlu1 %7078 }
 0x597   :  { %6766 = vmatpush1.bf16.msra.mxu1 %v6631_v57  ;;  %v7094_v61 = vsel %vm411_vm3, %v7079_v39, %v7081_v40 }
 0x598   :  { %v7085_v6 = vpop.permute.xlu0 %7084  ;;  %16112 = vmatprep.subr.msk.bf16.mxu1 %vm61_vm8, %v6851_v32  ;;  %v7105_v36 = vsel %vm61_vm8, %v7094_v61, 0 }
 0x599   :  { %16104 = vmatmul.mubr.msk.bf16.vlgmr.msra.gmra.mrb[148].mxu0 %vm6174_vm15, %v16900_v52 }
 0x59a   :  { %6883 = vmatpush1.bf16.msra.mxu0 %v6859_v12  ;;  %v7083_v51 = vpop.permute.xlu1 %7082  ;;  %6914 = vmatprep.mubr.bf16.mxu0 %v21635_v11 }
 0x59b   :  { %16114 = vmatprep.subr.msk.bf16.mxu0 %vm61_vm8, %v6853_v3  ;;  %v7095_v44 = vsel %vm411_vm3, %v7081_v40, %v7083_v51  ;;  %v7096_v29 = vsel %vm411_vm3, %v7083_v51, %v7085_v6 }
 0x59c   :  { %v7089_v42 = vpop.permute.xlu0 %7088  ;;  %16106 = vmatmul.mubr.msk.bf16.vlgmr.msra.gmra.mrb[148].mxu1 %vm6174_vm15, %v16900_v52  ;;  %v7111_v7 = vsel %vm61_vm8, %v7096_v29, 0 }
 0x59d   :  { %6926 = vmatpush1.bf16.msra.mxu1 %v6865_v21  ;;  %6957 = vmatprep.mubr.bf16.mxu1 %v21635_v11 }
 0x59e   :  { %v7087_v48 = vpop.permute.xlu1 %7086 }
 0x59f   :  { %v7097_v8 = vsel %vm411_vm3, %v7085_v6, %v7087_v48  ;;  %v7098_v23 = vsel %vm411_vm3, %v7087_v48, %v7089_v42 }
 0x5a0   :  { %v7325_v56 = vpop.permute.xlu0 %7324  ;;  %v7117_v49 = vsel %vm61_vm8, %v7098_v23, 0 }
 0x5a1   :  { %16111 = vmatmul.mubr.msk.bf16.vlgmr.msra.gmra.mrb[144].mxu0 %vm6174_vm15, %v16901_v37 }
 0x5a2   :  { %6969 = vmatpush1.bf16.msra.mxu0 %v6871_v50  ;;  %v7091_v55 = vpop.permute.xlu1 %7090  ;;  %7000 = vmatprep.mubr.bf16.mxu0 %v21635_v11 }
 0x5a3   :  { %16121 = vmatprep.subr.msk.bf16.mxu0 %vm61_vm8, %v7095_v44  ;;  %v7099_v18 = vsel %vm411_vm3, %v7089_v42, %v7091_v55 }
 0x5a4   :  { %v6847_v26 = vpop.permute.xlu0 %6846  ;;  %16113 = vmatmul.mubr.msk.bf16.vlgmr.msra.gmra.mrb[144].mxu1 %vm6174_vm15, %v16901_v37 }
 0x5a5   :  { %v6854_v15 = vsel %vm348_vm2, %v6845_v63, %v6847_v26  ;;  %16116 = vmatprep.subr.msk.bf16.mxu1 %vm61_vm8, %v6847_v26  ;;  %7043 = vmatprep.mubr.bf16.mxu1 %v21635_v11 }
 0x5a6   :  { %v6877_v54 = vsel %vm61_vm8, %v6854_v15, 0  ;;  %v7327_v47 = vpop.permute.xlu1 %7326 }
 0x5a7   :  { %7012 = vmatpush1.bf16.msra.mxu1 %v6877_v54  ;;  %v7340_v52 = vsel %vm474_vm4, %v7325_v56, %v7327_v47 }
 0x5a8   :  { %16123 = vmatprep.subr.msk.bf16.mxu1 %vm61_vm8, %v7097_v8  ;;  %v7329_v31 = vpop.permute.xlu0 %7328  ;;  %v7351_v63 = vsel %vm61_vm8, %v7340_v52, 0 }
 0x5a9   :  { %16115 = vmatmul.mubr.msk.bf16.vlgmr.msra.gmra.mrb[148].mxu0 %vm6174_vm15, %v16901_v37  ;;  %v7341_v20 = vsel %vm474_vm4, %v7327_v47, %v7329_v31 }
 0x5aa   :  { %7129 = vmatpush1.bf16.msra.mxu0 %v7105_v36  ;;  %v7331_v0 = vpop.permute.xlu1 %7330  ;;  %7160 = vmatprep.mubr.bf16.mxu0 %v21635_v11 }
 0x5ab   :  { %16125 = vmatprep.subr.msk.bf16.mxu0 %vm61_vm8, %v7099_v18  ;;  %v7342_v32 = vsel %vm474_vm4, %v7329_v31, %v7331_v0 }
 0x5ac   :  { %16117 = vmatmul.mubr.msk.bf16.vlgmr.msra.gmra.mrb[148].mxu1 %vm6174_vm15, %v16901_v37  ;;  %v7357_v21 = vsel %vm61_vm8, %v7342_v32, 0 }
 0x5ad   :  { %7172 = vmatpush1.bf16.msra.mxu1 %v7111_v7  ;;  %v6076_v17 = vpop.permute.xlu0 %6075  ;;  %7203 = vmatprep.mubr.bf16.mxu1 %v21635_v11 }
 0x5ae   :  { %6107 = vst.msk [vmem:[#allocation3 + $0x40] sm:$0xff] %vm3793_vm12, %v6076_v17  ;;  %v7093_v60 = vpop.permute.xlu1 %7092 }
 0x5af   :  { %16127 = vmatprep.subr.msk.bf16.mxu1 %vm61_vm8, %v7093_v60  ;;  %v7100_v41 = vsel %vm411_vm3, %v7091_v55, %v7093_v60 }
 0x5b0   :  { %v7123_v45 = vsel %vm61_vm8, %v7100_v41, 0 }
 0x5b1   :  { %16122 = vmatmul.mubr.msk.bf16.vlgmr.msra.gmra.mrb[144].mxu0 %vm6174_vm15, %v16902_v16  ;;  %v6080_v62 = vpop.permute.xlu0 %6079 }
 0x5b2   :  { %7215 = vmatpush1.bf16.msra.mxu0 %v7117_v49  ;;  %v6078_v27 = vpop.permute.xlu1 %6077  ;;  %7246 = vmatprep.mubr.bf16.mxu0 %v21635_v11 }
 0x5b3   :  { %16132 = vmatprep.subr.msk.bf16.mxu0 %vm61_vm8, %v7341_v20  ;;  %v6091_v25 = vsel %vm804_vm13, %v6076_v17, %v6078_v27  ;;  %v6092_v33 = vsel %vm804_vm13, %v6078_v27, %v6080_v62  ;;  %v16904_v17 = vld [vmem:[%s21433_s6 + $0x30] sm:$0xff]  }
 0x5b4   :  { %v19688_v19 = vpack.c.bf16 %v6091_v25, %v6091_v25  ;;  %16124 = vmatmul.mubr.msk.bf16.vlgmr.msra.gmra.mrb[144].mxu1 %vm6174_vm15, %v16902_v16  ;;  %v19706_v10 = vpack.c.bf16 %v6092_v33, %v6092_v33 }
 0x5b5   :  { %v8500_v38 = vld [vmem:[#allocation3 + $0x40] sm:$0xff]  ;;  %7258 = vmatpush1.bf16.msra.mxu1 %v7123_v45  ;;  %v6084_v34 = vpop.permute.xlu0 %6083  ;;  %7289 = vmatprep.mubr.bf16.mxu1 %v21635_v11 }
 0x5b6   :  { %v19694_v4 = vpack.c.bf16 %v8500_v38, %v8500_v38  ;;  %v6082_v1 = vpop.permute.xlu1 %6081  ;;  %8535 = vrot.lane.b32.xlu0 %v19688_v19, %s17084_s17 }
 0x5b7   :  { %v6093_v40 = vsel %vm804_vm13, %v6080_v62, %v6082_v1  ;;  %v6094_v30 = vsel %vm804_vm13, %v6082_v1, %v6084_v34 }
 0x5b8   :  { %v19700_v14 = vpack.c.bf16 %v6093_v40, %v6093_v40  ;;  %8533 = vrot.lane.b32.xlu1 %v19694_v4, %s17084_s17  ;;  %v19723_v3 = vpack.c.bf16 %v6094_v30, %v6094_v30 }
 0x5b9   :  { %16126 = vmatmul.mubr.msk.bf16.vlgmr.msra.gmra.mrb[148].mxu0 %vm6174_vm15, %v16902_v16  ;;  %v6088_v43 = vpop.permute.xlu0 %6087 }
 0x5ba   :  { %7375 = vmatpush1.bf16.msra.mxu0 %v7351_v63  ;;  %v6086_v59 = vpop.permute.xlu1 %6085  ;;  %7406 = vmatprep.mubr.bf16.mxu0 %v21635_v11 }
 0x5bb   :  { %v6095_v57 = vsel %vm804_vm13, %v6084_v34, %v6086_v59  ;;  %v6096_v39 = vsel %vm804_vm13, %v6086_v59, %v6088_v43  ;;  %8539 = vrot.lane.b32.xlu0 %v19700_v14, %s17084_s17  ;;  %v16905_v59 = vld [vmem:[%s21433_s6 + $0x38] sm:$0xff]  }
 0x5bc   :  { %v19714_v6 = vpack.c.bf16 %v6095_v57, %v6095_v57  ;;  %16128 = vmatmul.mubr.msk.bf16.vlgmr.msra.gmra.mrb[148].mxu1 %vm6174_vm15, %v16902_v16  ;;  %8537 = vrot.lane.b32.xlu1 %v19706_v10, %s17084_s17  ;;  %v19736_v50 = vpack.c.bf16 %v6096_v39, %v6096_v39 }
 0x5bd   :  { %v7333_v12 = vpop.permute.xlu0 %7332  ;;  %7449 = vmatprep.mubr.bf16.mxu1 %v21635_v11 }
 0x5be   :  { %v7335_v51 = vpop.permute.xlu1 %7334  ;;  %v7343_v42 = vsel %vm474_vm4, %v7331_v0, %v7333_v12 }
 0x5bf   :  { %16134 = vmatprep.subr.msk.bf16.mxu1 %vm61_vm8, %v7343_v42  ;;  %8543 = vrot.lane.b32.xlu0 %v19714_v6, %s17084_s17  ;;  %v7344_v37 = vsel %vm474_vm4, %v7333_v12, %v7335_v51 }
 0x5c0   :  { %7418 = vmatpush1.bf16.msra.mxu1 %v7357_v21  ;;  %8541 = vrot.lane.b32.xlu1 %v19723_v3, %s17084_s17  ;;  %v7363_v55 = vsel %vm61_vm8, %v7344_v37, 0 }
 0x5c1   :  { %16133 = vmatmul.mubr.msk.bf16.vlgmr.msra.gmra.mrb[144].mxu0 %vm6174_vm15, %v16903_v28  ;;  %v7337_v13 = vpop.permute.xlu0 %7336 }
 0x5c2   :  { %v6090_v48 = vpop.permute.xlu1 %6089  ;;  %v7345_v56 = vsel %vm474_vm4, %v7335_v51, %v7337_v13  ;;  %7492 = vmatprep.mubr.bf16.mxu0 %v21635_v11 }
 0x5c3   :  { %v6097_v44 = vsel %vm804_vm13, %v6088_v43, %v6090_v48  ;;  %16136 = vmatprep.subr.msk.bf16.mxu0 %vm61_vm8, %v7345_v56 }
 0x5c4   :  { %6114 = vst.msk [vmem:[#allocation3 + $0x78] sm:$0xff] %vm3801_vm14, %v6097_v44  ;;  %16135 = vmatmul.mubr.msk.bf16.vlgmr.msra.gmra.mrb[144].mxu1 %vm6174_vm15, %v16903_v28  ;;  %7461 = vmatpush1.bf16.msra.mxu0 %v7363_v55 }
 0x5c5   :  { %v7339_v26 = vpop.permute.xlu0 %7338  ;;  %8545 = vrot.lane.b32.xlu1 %v19736_v50, %s17084_s17  ;;  %7535 = vmatprep.mubr.bf16.mxu1 %v21635_v11 }
 0x5c6   :  { %v7346_v15 = vsel %vm474_vm4, %v7337_v13, %v7339_v26  ;;  %v7571_v61 = vpop.permute.xlu1 %7570  ;;  %16138 = vmatprep.subr.msk.bf16.mxu1 %vm61_vm8, %v7339_v26 }
 0x5c7   :  { %v7369_v54 = vsel %vm61_vm8, %v7346_v15, 0 }
 0x5c8   :  { %7504 = vmatpush1.bf16.msra.mxu1 %v7369_v54 }
 0x5c9   :  { %16137 = vmatmul.mubr.msk.bf16.vlgmr.msra.gmra.mrb[148].mxu0 %vm6174_vm15, %v16903_v28  ;;  %v7573_v47 = vpop.permute.xlu0 %7572  ;;  %8966 = vrot.lane.b32.xlu1 %v19694_v4, %s17085_s18 }
 0x5ca   :  { %v7586_v8 = vsel %vm537_vm5, %v7571_v61, %v7573_v47  ;;  %v7575_v36 = vpop.permute.xlu1 %7574  ;;  %7652 = vmatprep.mubr.bf16.mxu0 %v21635_v11 }
 0x5cb   :  { %v8507_v29 = vld [vmem:[#allocation3 + $0x78] sm:$0xff]  ;;  %v7587_v31 = vsel %vm537_vm5, %v7573_v47, %v7575_v36  ;;  %v7597_v18 = vsel %vm61_vm8, %v7586_v8, 0  ;;  %v16906_v47 = vld [vmem:[%s21433_s6 + $0x40] sm:$0xff]  }
 0x5cc   :  { %v19756_v0 = vpack.c.bf16 %v8507_v29, %v8507_v29  ;;  %16139 = vmatmul.mubr.msk.bf16.vlgmr.msra.gmra.mrb[148].mxu1 %vm6174_vm15, %v16903_v28  ;;  %16143 = vmatprep.subr.msk.bf16.mxu0 %vm61_vm8, %v7587_v31 }
 0x5cd   :  { %7621 = vmatpush1.bf16.msra.mxu0 %v7597_v18  ;;  %v7577_v7 = vpop.permute.xlu0 %7576  ;;  %8970 = vrot.lane.b32.xlu1 %v19706_v10, %s17085_s18 }
 0x5ce   :  { %v7588_v16 = vsel %vm537_vm5, %v7575_v36, %v7577_v7  ;;  %v7579_v23 = vpop.permute.xlu1 %7578  ;;  %8547 = vrot.lane.b32.xlu0 %v19756_v0, %s17084_s17  ;;  %7695 = vmatprep.mubr.bf16.mxu1 %v21635_v11 }
 0x5cf   :  { %v7589_v60 = vsel %vm537_vm5, %v7577_v7, %v7579_v23  ;;  %v7603_v41 = vsel %vm61_vm8, %v7588_v16, 0 }
 0x5d0   :  { %16145 = vmatprep.subr.msk.bf16.mxu1 %vm61_vm8, %v7589_v60 }
 0x5d1   :  { %16144 = vmatmul.mubr.msk.bf16.vlgmr.msra.gmra.mrb[144].mxu0 %vm6174_vm15, %v16904_v17  ;;  %7664 = vmatpush1.bf16.msra.mxu1 %v7603_v41  ;;  %v7581_v49 = vpop.permute.xlu0 %7580 }
 0x5d2   :  { %v7590_v62 = vsel %vm537_vm5, %v7579_v23, %v7581_v49  ;;  %v7583_v20 = vpop.permute.xlu1 %7582  ;;  %8968 = vrot.lane.b32.xlu0 %v19688_v19, %s17085_s18  ;;  %8974 = vrot.lane.b32.xlu1 %v19723_v3, %s17085_s18 }
 0x5d3   :  { %v7591_v27 = vsel %vm537_vm5, %v7581_v49, %v7583_v20  ;;  %v7609_v25 = vsel %vm61_vm8, %v7590_v62, 0  ;;  %7738 = vmatprep.mubr.bf16.mxu0 %v21635_v11 }
 0x5d4   :  { %16146 = vmatmul.mubr.msk.bf16.vlgmr.msra.gmra.mrb[144].mxu1 %vm6174_vm15, %v16904_v17  ;;  %16147 = vmatprep.subr.msk.bf16.mxu0 %vm61_vm8, %v7591_v27 }
 0x5d5   :  { %7707 = vmatpush1.bf16.msra.mxu0 %v7609_v25  ;;  %v7585_v33 = vpop.permute.xlu0 %7584  ;;  %7781 = vmatprep.mubr.bf16.mxu1 %v21635_v11 }
 0x5d6   :  { %v7592_v45 = vsel %vm537_vm5, %v7583_v20, %v7585_v33  ;;  %v7817_v38 = vpop.permute.xlu1 %7816  ;;  %8972 = vrot.lane.b32.xlu0 %v19700_v14, %s17085_s18  ;;  %8978 = vrot.lane.b32.xlu1 %v19736_v50, %s17085_s18 }
 0x5d7   :  { %16149 = vmatprep.subr.msk.bf16.mxu1 %vm61_vm8, %v7585_v33  ;;  %v7615_v34 = vsel %vm61_vm8, %v7592_v45, 0 }
 0x5d8   :  { %7750 = vmatpush1.bf16.msra.mxu1 %v7615_v34 }
 0x5d9   :  { %16148 = vmatmul.mubr.msk.bf16.vlgmr.msra.gmra.mrb[148].mxu0 %vm6174_vm15, %v16904_v17  ;;  %v7819_v52 = vpop.permute.xlu0 %7818 }
 0x5da   :  { %v7832_v1 = vsel %vm600_vm6, %v7817_v38, %v7819_v52  ;;  %v7821_v40 = vpop.permute.xlu1 %7820  ;;  %8976 = vrot.lane.b32.xlu0 %v19714_v6, %s17085_s18  ;;  %9211 = vrot.lane.b32.xlu1 %v19694_v4, %s17086_s19 }
 0x5db   :  { %v7833_v30 = vsel %vm600_vm6, %v7819_v52, %v7821_v40  ;;  %v7843_v63 = vsel %vm61_vm8, %v7832_v1, 0  ;;  %7898 = vmatprep.mubr.bf16.mxu0 %v21635_v11  ;;  %v16907_v52 = vld [vmem:[%s21433_s6 + $0x8] sm:$0xff]  }
 0x5dc   :  { %16150 = vmatmul.mubr.msk.bf16.vlgmr.msra.gmra.mrb[148].mxu1 %vm6174_vm15, %v16904_v17  ;;  %16154 = vmatprep.subr.msk.bf16.mxu0 %vm61_vm8, %v7833_v30 }
 0x5dd   :  { %7867 = vmatpush1.bf16.msra.mxu0 %v7843_v63  ;;  %v7823_v43 = vpop.permute.xlu0 %7822  ;;  %7941 = vmatprep.mubr.bf16.mxu1 %v21635_v11 }
 0x5de   :  { %v7834_v57 = vsel %vm600_vm6, %v7821_v40, %v7823_v43  ;;  %v7825_v39 = vpop.permute.xlu1 %7824  ;;  %8980 = vrot.lane.b32.xlu0 %v19756_v0, %s17085_s18  ;;  %9215 = vrot.lane.b32.xlu1 %v19706_v10, %s17086_s19 }
 0x5df   :  { %v7835_v32 = vsel %vm600_vm6, %v7823_v43, %v7825_v39  ;;  %v7849_v12 = vsel %vm61_vm8, %v7834_v57, 0 }
 0x5e0   :  { %16156 = vmatprep.subr.msk.bf16.mxu1 %vm61_vm8, %v7835_v32  ;;  %v6115_v32 = vld [vmem:[%s21434_s7] sm:$0xff] }
 0x5e1   :  { %16155 = vmatmul.mubr.msk.bf16.vlgmr.msra.gmra.mrb[144].mxu0 %vm6174_vm15, %v16905_v59  ;;  %7910 = vmatpush1.bf16.msra.mxu1 %v7849_v12  ;;  %v7827_v28 = vpop.permute.xlu0 %7826 }
 0x5e2   :  { %v7836_v51 = vsel %vm600_vm6, %v7825_v39, %v7827_v28  ;;  %9213 = vrot.lane.b32.xlu0 %v19688_v19, %s17086_s19  ;;  %9219 = vrot.lane.b32.xlu1 %v19723_v3, %s17086_s19 }
 0x5e3   :  { %v7829_v42 = vpop.permute.xlu1 %7828  ;;  %v7855_v21 = vsel %vm61_vm8, %v7836_v51, 0  ;;  %7984 = vmatprep.mubr.bf16.mxu0 %v21635_v11  ;;  %v8764_v51 = vsel %vm61_vm8, %v19694_v4, 0 }
 0x5e4   :  { %16157 = vmatmul.mubr.msk.bf16.vlgmr.msra.gmra.mrb[144].mxu1 %vm6174_vm15, %v16905_v59  ;;  %v7837_v37 = vsel %vm600_vm6, %v7827_v28, %v7829_v42 }
 0x5e5   :  { %16158 = vmatprep.subr.msk.bf16.mxu0 %vm61_vm8, %v7837_v37  ;;  %v7831_v13 = vpop.permute.xlu0 %7830  ;;  %8027 = vmatprep.mubr.bf16.mxu1 %v21635_v11 }
 0x5e6   :  { %7953 = vmatpush1.bf16.msra.mxu0 %v7855_v21  ;;  %v7838_v48 = vsel %vm600_vm6, %v7829_v42, %v7831_v13  ;;  %9217 = vrot.lane.b32.xlu0 %v19700_v14, %s17086_s19  ;;  %v21641_v21 = vmov 1  }
 0x5e7   :  { %v8063_v56 = vpop.permute.xlu1 %8062  ;;  %9223 = vrot.lane.b32.xlu1 %v19736_v50, %s17086_s19  ;;  %16160 = vmatprep.subr.msk.bf16.mxu1 %vm61_vm8, %v7831_v13  ;;  %v7861_v44 = vsel %vm61_vm8, %v7838_v48, 0  ;;  %v16908_v13 = vld [vmem:[%s21433_s6] sm:$0xff]  }
 0x5e8   :  { %7996 = vmatpush1.bf16.msra.mxu1 %v7861_v44  ;;  %v8776_v44 = vsel %vm61_vm8, %v19723_v3, 0 }
 0x5e9   :  { %16159 = vmatmul.mubr.msk.bf16.vlgmr.msra.gmra.mrb[148].mxu0 %vm6174_vm15, %v16905_v59 }
 0x5ea   :  { %v8065_v55 = vpop.permute.xlu0 %8064  ;;  %9221 = vrot.lane.b32.xlu0 %v19714_v6, %s17086_s19  ;;  %8144 = vmatprep.mubr.bf16.mxu0 %v21635_v11 }
 0x5eb   :  { %v8078_v26 = vsel %vm76_vm7, %v8063_v56, %v8065_v55  ;;  %v8067_v15 = vpop.permute.xlu1 %8066  ;;  %9456 = vrot.lane.b32.xlu1 %v19694_v4, %s17087_s20 }
 0x5ec   :  { %16161 = vmatmul.mubr.msk.bf16.vlgmr.msra.gmra.mrb[148].mxu1 %vm6174_vm15, %v16905_v59  ;;  %v8079_v61 = vsel %vm76_vm7, %v8065_v55, %v8067_v15  ;;  %v8089_v54 = vsel %vm61_vm8, %v8078_v26, 0  ;;  %v8770_v26 = vsel %vm61_vm8, %v19706_v10, 0 }
 0x5ed   :  { %16165 = vmatprep.subr.msk.bf16.mxu0 %vm61_vm8, %v8079_v61  ;;  %8187 = vmatprep.mubr.bf16.mxu1 %v21635_v11 }
 0x5ee   :  { %8113 = vmatpush1.bf16.msra.mxu0 %v8089_v54  ;;  %v8069_v8 = vpop.permute.xlu0 %8068  ;;  %9225 = vrot.lane.b32.xlu0 %v19756_v0, %s17086_s19 }
 0x5ef   :  { %v8080_v36 = vsel %vm76_vm7, %v8067_v15, %v8069_v8  ;;  %v8071_v29 = vpop.permute.xlu1 %8070  ;;  %9460 = vrot.lane.b32.xlu1 %v19706_v10, %s17087_s20 }
 0x5f0   :  { %v8081_v31 = vsel %vm76_vm7, %v8069_v8, %v8071_v29  ;;  %v8095_v18 = vsel %vm61_vm8, %v8080_v36, 0 }
 0x5f1   :  { %16166 = vmatmul.mubr.msk.bf16.vlgmr.msra.gmra.mrb[144].mxu0 %vm6174_vm15, %v16906_v47  ;;  %16167 = vmatprep.subr.msk.bf16.mxu1 %vm61_vm8, %v8081_v31 }
 0x5f2   :  { %8156 = vmatpush1.bf16.msra.mxu1 %v8095_v18  ;;  %v8073_v7 = vpop.permute.xlu0 %8072  ;;  %9458 = vrot.lane.b32.xlu0 %v19688_v19, %s17087_s20 }
 0x5f3   :  { %v8082_v17 = vsel %vm76_vm7, %v8071_v29, %v8073_v7  ;;  %v8075_v16 = vpop.permute.xlu1 %8074  ;;  %9464 = vrot.lane.b32.xlu1 %v19723_v3, %s17087_s20  ;;  %8230 = vmatprep.mubr.bf16.mxu0 %v21635_v11  ;;  %v16909_v29 = vld [vmem:[%s21433_s6 + $0x10] sm:$0xff]  }
 0x5f4   :  { %v8083_v23 = vsel %vm76_vm7, %v8073_v7, %v8075_v16  ;;  %v8101_v60 = vsel %vm61_vm8, %v8082_v17, 0 }
 0x5f5   :  { %16168 = vmatmul.mubr.msk.bf16.vlgmr.msra.gmra.mrb[144].mxu1 %vm6174_vm15, %v16906_v47  ;;  %16169 = vmatprep.subr.msk.bf16.mxu0 %vm61_vm8, %v8083_v23 }
 0x5f6   :  { %8199 = vmatpush1.bf16.msra.mxu0 %v8101_v60  ;;  %v8077_v41 = vpop.permute.xlu0 %8076  ;;  %9462 = vrot.lane.b32.xlu0 %v19700_v14, %s17087_s20 }
 0x5f7   :  { %v8084_v49 = vsel %vm76_vm7, %v8075_v16, %v8077_v41  ;;  %9468 = vrot.lane.b32.xlu1 %v19736_v50, %s17087_s20  ;;  %16171 = vmatprep.subr.msk.bf16.mxu1 %vm61_vm8, %v8077_v41 }
 0x5f8   :  { %v8107_v62 = vsel %vm61_vm8, %v8084_v49, 0  ;;  %8273 = vmatprep.mubr.bf16.mxu1 %v21635_v11 }
 0x5f9   :  { %16170 = vmatmul.mubr.msk.bf16.vlgmr.msra.gmra.mrb[148].mxu0 %vm6174_vm15, %v16906_v47  ;;  %8242 = vmatpush1.bf16.msra.mxu1 %v8107_v62 }
 0x5fa   :  { %9466 = vrot.lane.b32.xlu0 %v19714_v6, %s17087_s20  ;;  %8615 = vmatprep.mubr.bf16.mxu0 %v21635_v11 }
 0x5fb   :  { %9701 = vrot.lane.b32.xlu1 %v19694_v4, %s17088_s10 }
 0x5fd   :  { %16172 = vmatmul.mubr.msk.bf16.vlgmr.msra.gmra.mrb[148].mxu1 %vm6174_vm15, %v16906_v47 }
 0x5fe   :  { %9470 = vrot.lane.b32.xlu0 %v19756_v0, %s17087_s20  ;;  %8658 = vmatprep.mubr.bf16.mxu1 %v21635_v11 }
 0x5ff   :  { %9705 = vrot.lane.b32.xlu1 %v19706_v10, %s17088_s10 }
 0x602   :  { %9703 = vrot.lane.b32.xlu0 %v19688_v19, %s17088_s10 }
 0x603   :  { %9709 = vrot.lane.b32.xlu1 %v19723_v3, %s17088_s10 }
 0x606   :  { %9707 = vrot.lane.b32.xlu0 %v19700_v14, %s17088_s10 }
 0x607   :  { %9713 = vrot.lane.b32.xlu1 %v19736_v50, %s17088_s10 }
 0x60a   :  { %9711 = vrot.lane.b32.xlu0 %v19714_v6, %s17088_s10 }
 0x60b   :  { %9946 = vrot.lane.b32.xlu1 %v19694_v4, %s17089_s21 }
 0x60e   :  { %9715 = vrot.lane.b32.xlu0 %v19756_v0, %s17088_s10 }
 0x60f   :  { %9950 = vrot.lane.b32.xlu1 %v19706_v10, %s17089_s21 }
 0x612   :  { %9948 = vrot.lane.b32.xlu0 %v19688_v19, %s17089_s21 }
 0x613   :  { %9954 = vrot.lane.b32.xlu1 %v19723_v3, %s17089_s21 }
 0x616   :  { %9952 = vrot.lane.b32.xlu0 %v19700_v14, %s17089_s21 }
 0x617   :  { %9958 = vrot.lane.b32.xlu1 %v19736_v50, %s17089_s21 }
 0x61a   :  { %9956 = vrot.lane.b32.xlu0 %v19714_v6, %s17089_s21 }
 0x61b   :  { %10191 = vrot.lane.b32.xlu1 %v19694_v4, %s17090_s22 }
 0x61e   :  { %9960 = vrot.lane.b32.xlu0 %v19756_v0, %s17089_s21 }
 0x61f   :  { %10195 = vrot.lane.b32.xlu1 %v19706_v10, %s17090_s22 }
 0x622   :  { %10193 = vrot.lane.b32.xlu0 %v19688_v19, %s17090_s22 }
 0x623   :  { %10199 = vrot.lane.b32.xlu1 %v19723_v3, %s17090_s22 }
 0x626   :  { %10197 = vrot.lane.b32.xlu0 %v19700_v14, %s17090_s22 }
 0x627   :  { %10203 = vrot.lane.b32.xlu1 %v19736_v50, %s17090_s22 }
 0x628   :  { %v8536_v20 = vpop.permute.xlu0 %8535 }
 0x62a   :  { %v8534_v27 = vpop.permute.xlu1 %8533  ;;  %10201 = vrot.lane.b32.xlu0 %v19714_v6, %s17090_s22 }
 0x62b   :  { %10436 = vrot.lane.b32.xlu1 %v19694_v4, %s17091_s23  ;;  %v8549_v25 = vsel %vm222_vm0, %v8534_v27, %v8536_v20 }
 0x62c   :  { %v8560_v34 = vsel %vm61_vm8, %v8549_v25, 0 }
 0x62d   :  { %v8540_v38 = vpop.permute.xlu0 %8539 }
 0x62e   :  { %10205 = vrot.lane.b32.xlu0 %v19756_v0, %s17090_s22  ;;  %v8538_v33 = vpop.permute.xlu1 %8537 }
 0x62f   :  { %10440 = vrot.lane.b32.xlu1 %v19706_v10, %s17091_s23  ;;  %v8550_v45 = vsel %vm222_vm0, %v8536_v20, %v8538_v33  ;;  %v8551_v1 = vsel %vm222_vm0, %v8538_v33, %v8540_v38 }
 0x630   :  { %16176 = vmatprep.subr.msk.bf16.mxu0 %vm61_vm8, %v8550_v45  ;;  %v8566_v63 = vsel %vm61_vm8, %v8551_v1, 0  ;;  %v16910_v1 = vld [vmem:[%s21433_s6 + $0x18] sm:$0xff]  }
 0x631   :  { %8584 = vmatpush1.bf16.msra.mxu0 %v8560_v34  ;;  %v8544_v43 = vpop.permute.xlu0 %8543 }
 0x632   :  { %10438 = vrot.lane.b32.xlu0 %v19688_v19, %s17091_s23  ;;  %v8542_v40 = vpop.permute.xlu1 %8541 }
 0x633   :  { %10444 = vrot.lane.b32.xlu1 %v19723_v3, %s17091_s23  ;;  %v8552_v30 = vsel %vm222_vm0, %v8540_v38, %v8542_v40  ;;  %v8553_v59 = vsel %vm222_vm0, %v8542_v40, %v8544_v43 }
 0x634   :  { %16177 = vmatmul.mubr.msk.bf16.vlgmr.msra.gmra.mrb[152].mxu0 %vm6174_vm15, %v16907_v52  ;;  %16178 = vmatprep.subr.msk.bf16.mxu1 %vm61_vm8, %v8552_v30  ;;  %v8572_v12 = vsel %vm61_vm8, %v8553_v59, 0 }
 0x635   :  { %8627 = vmatpush1.bf16.msra.mxu1 %v8566_v63  ;;  %8701 = vmatprep.mubr.bf16.mxu0 %v21635_v11 }
 0x636   :  { %10442 = vrot.lane.b32.xlu0 %v19700_v14, %s17091_s23 }
 0x637   :  { %10448 = vrot.lane.b32.xlu1 %v19736_v50, %s17091_s23  ;;  %v8546_v57 = vpop.permute.xlu1 %8545 }
 0x638   :  { %v8554_v39 = vsel %vm222_vm0, %v8544_v43, %v8546_v57  ;;  %16179 = vmatmul.mubr.msk.bf16.vlgmr.msra.gmra.mrb[152].mxu1 %vm6174_vm15, %v16907_v52 }
 0x639   :  { %16180 = vmatprep.subr.msk.bf16.mxu0 %vm61_vm8, %v8554_v39  ;;  %8744 = vmatprep.mubr.bf16.mxu1 %v21635_v11 }
 0x63a   :  { %10446 = vrot.lane.b32.xlu0 %v19714_v6, %s17091_s23  ;;  %8670 = vmatpush1.bf16.msra.mxu0 %v8572_v12 }
 0x63b   :  { %v8967_v28 = vpop.permute.xlu1 %8966  ;;  %16185 = vmatprep.subr.msk.bf16.mxu0 %vm61_vm8, %v19688_v19  ;;  %8302 = vperm.xlu1 %16887, %v6115_v32   ;;  %v6116_v19 = vld [vmem:[%s21434_s7 + $0x8] sm:$0xff] }
 0x63d   :  { %16181 = vmatmul.mubr.msk.bf16.vlgmr.msra.gmra.mrb[156].mxu0 %vm6174_vm15, %v16907_v52 }
 0x63e   :  { %10450 = vrot.lane.b32.xlu0 %v19756_v0, %s17091_s23  ;;  %8788 = vmatpush1.bf16.msra.mxu0 %v8764_v51 }
 0x63f   :  { %v8971_v42 = vpop.permute.xlu1 %8970  ;;  %16189 = vmatprep.subr.msk.bf16.mxu0 %vm61_vm8, %v19714_v6  ;;  %16889 = vset.pattern.permute.xlu1 %v21641_v21 }
 0x640   :  { %v8548_v37 = vpop.permute.xlu0 %8547  ;;  %8343 = vperm.xlu1 %16889, %v6115_v32   ;;  %8819 = vmatprep.mubr.bf16.mxu0 %v21635_v11 }
 0x641   :  { %v8555_v4 = vsel %vm222_vm0, %v8546_v57, %v8548_v37  ;;  %16182 = vmatprep.subr.msk.bf16.mxu1 %vm61_vm8, %v8548_v37 }
 0x642   :  { %v8578_v6 = vsel %vm61_vm8, %v8555_v4, 0  ;;  %8307 = vperm.xlu0 %16888, %v6116_v19  }
 0x643   :  { %8713 = vmatpush1.bf16.msra.mxu1 %v8578_v6 }
 0x644   :  { %v8975_v48 = vpop.permute.xlu1 %8974  ;;  %16187 = vmatprep.subr.msk.bf16.mxu1 %vm61_vm8, %v19700_v14  ;;  %v8969_v56 = vpop.permute.xlu0 %8968  ;;  %8347 = vperm.xlu1 %16889, %v6116_v19  }
 0x645   :  { %16186 = vmatmul.mubr.msk.bf16.vlgmr.msra.gmra.mrb[152].mxu0 %vm6174_vm15, %v16908_v13  ;;  %v8983_v55 = vsel %vm285_vm1, %v8969_v56, %v8971_v42  ;;  %v8982_v3 = vsel %vm285_vm1, %v8967_v28, %v8969_v56  ;;  %v16911_v56 = vld [vmem:[%s21433_s6 + $0x20] sm:$0xff]  }
 0x646   :  { %16183 = vmatmul.mubr.msk.bf16.vlgmr.msra.gmra.mrb[156].mxu1 %vm6174_vm15, %v16907_v52  ;;  %8874 = vmatpush1.bf16.msra.mxu0 %v8776_v44  ;;  %v8993_v54 = vsel %vm61_vm8, %v8982_v3, 0 }
 0x647   :  { %8831 = vmatpush1.bf16.msra.mxu1 %v8770_v26  ;;  %16196 = vmatprep.subr.msk.bf16.mxu0 %vm61_vm8, %v8983_v55 }
 0x648   :  { %v8979_v15 = vpop.permute.xlu1 %8978  ;;  %16191 = vmatprep.subr.msk.bf16.mxu1 %vm61_vm8, %v19756_v0  ;;  %v8973_v14 = vpop.permute.xlu0 %8972  ;;  %16890 = vset.pattern.permute.xlu0 %v21640_v58 }
 0x649   :  { %8367 = vperm.xlu0 %16890, %v6115_v32   ;;  %16891 = vset.pattern.permute.xlu1 %v21640_v58  ;;  %v8782_v58 = vsel %vm61_vm8, %v19736_v50, 0  ;;  %v8985_v47 = vsel %vm285_vm1, %v8973_v14, %v8975_v48  ;;  %v8984_v31 = vsel %vm285_vm1, %v8971_v42, %v8973_v14 }
 0x64a   :  { %8371 = vperm.xlu1 %16891, %v6116_v19   ;;  %8862 = vmatprep.mubr.bf16.mxu1 %v21635_v11  ;;  %v8999_v23 = vsel %vm61_vm8, %v8984_v31, 0 }
 0x64b   :  { %8905 = vmatprep.mubr.bf16.mxu0 %v21635_v11 }
 0x64c   :  { %v9212_v10 = vpop.permute.xlu1 %9211  ;;  %v8977_v61 = vpop.permute.xlu0 %8976 }
 0x64d   :  { %16190 = vmatmul.mubr.msk.bf16.vlgmr.msra.gmra.mrb[156].mxu0 %vm6174_vm15, %v16908_v13  ;;  %v8987_v0 = vsel %vm285_vm1, %v8977_v61, %v8979_v15  ;;  %16893 = vset.pattern.permute.xlu0 %v21635_v11  ;;  %v8986_v50 = vsel %vm285_vm1, %v8975_v48, %v8977_v61 }
 0x64e   :  { %16188 = vmatmul.mubr.msk.bf16.vlgmr.msra.gmra.mrb[152].mxu1 %vm6174_vm15, %v16908_v13  ;;  %9017 = vmatpush1.bf16.msra.mxu0 %v8993_v54  ;;  %v9005_v17 = vsel %vm61_vm8, %v8986_v50, 0 }
 0x64f   :  { %8917 = vmatpush1.bf16.msra.mxu1 %v8782_v58  ;;  %16200 = vmatprep.subr.msk.bf16.mxu0 %vm61_vm8, %v8987_v0 }
 0x650   :  { %16198 = vmatprep.subr.msk.bf16.mxu1 %vm61_vm8, %v8985_v47  ;;  %v9216_v8 = vpop.permute.xlu1 %9215  ;;  %v8981_v36 = vpop.permute.xlu0 %8980  ;;  %8948 = vmatprep.mubr.bf16.mxu1 %v21635_v11 }
 0x651   :  { %9048 = vmatprep.mubr.bf16.mxu0 %v21635_v11  ;;  %16892 = vset.pattern.permute.xlu1 %v21635_v11  ;;  %v8988_v62 = vsel %vm285_vm1, %v8979_v15, %v8981_v36 }
 0x652   :  { %v9011_v45 = vsel %vm61_vm8, %v8988_v62, 0 }
 0x654   :  { %v9220_v18 = vpop.permute.xlu1 %9219  ;;  %v9214_v7 = vpop.permute.xlu0 %9213 }
 0x655   :  { %16197 = vmatmul.mubr.msk.bf16.vlgmr.msra.gmra.mrb[152].mxu0 %vm6174_vm15, %v16909_v29  ;;  %v9228_v16 = vsel %vm348_vm2, %v9214_v7, %v9216_v8  ;;  %v9227_v49 = vsel %vm348_vm2, %v9212_v10, %v9214_v7 }
 0x656   :  { %16192 = vmatmul.mubr.msk.bf16.vlgmr.msra.gmra.mrb[156].mxu1 %vm6174_vm15, %v16908_v13  ;;  %9103 = vmatpush1.bf16.msra.mxu0 %v9005_v17  ;;  %v9238_v25 = vsel %vm61_vm8, %v9227_v49, 0  ;;  %v16912_v17 = vld [vmem:[%s21433_s6 + $0x28] sm:$0xff]  }
 0x657   :  { %9060 = vmatpush1.bf16.msra.mxu1 %v8999_v23  ;;  %16207 = vmatprep.subr.msk.bf16.mxu0 %vm61_vm8, %v9228_v16 }
 0x658   :  { %16202 = vmatprep.subr.msk.bf16.mxu1 %vm61_vm8, %v8981_v36  ;;  %v9218_v60 = vpop.permute.xlu0 %9217  ;;  %9091 = vmatprep.mubr.bf16.mxu1 %v21635_v11 }
 0x659   :  { %v9224_v41 = vpop.permute.xlu1 %9223  ;;  %9134 = vmatprep.mubr.bf16.mxu0 %v21635_v11  ;;  %v9230_v38 = vsel %vm348_vm2, %v9218_v60, %v9220_v18  ;;  %v9229_v30 = vsel %vm348_vm2, %v9216_v8, %v9218_v60 }
 0x65a   :  { %v9244_v39 = vsel %vm61_vm8, %v9229_v30, 0 }
 0x65c   :  { %v9222_v20 = vpop.permute.xlu0 %9221 }
 0x65d   :  { %v9457_v27 = vpop.permute.xlu1 %9456  ;;  %16201 = vmatmul.mubr.msk.bf16.vlgmr.msra.gmra.mrb[156].mxu0 %vm6174_vm15, %v16909_v29  ;;  %v9232_v33 = vsel %vm348_vm2, %v9222_v20, %v9224_v41  ;;  %v9231_v40 = vsel %vm348_vm2, %v9220_v18, %v9222_v20 }
 0x65e   :  { %16199 = vmatmul.mubr.msk.bf16.vlgmr.msra.gmra.mrb[152].mxu1 %vm6174_vm15, %v16909_v29  ;;  %9262 = vmatpush1.bf16.msra.mxu0 %v9238_v25  ;;  %v9250_v59 = vsel %vm61_vm8, %v9231_v40, 0 }
 0x65f   :  { %9146 = vmatpush1.bf16.msra.mxu1 %v9011_v45  ;;  %16211 = vmatprep.subr.msk.bf16.mxu0 %vm61_vm8, %v9232_v33 }
 0x660   :  { %16209 = vmatprep.subr.msk.bf16.mxu1 %vm61_vm8, %v9230_v38  ;;  %v9226_v34 = vpop.permute.xlu0 %9225  ;;  %9177 = vmatprep.mubr.bf16.mxu1 %v21635_v11 }
 0x661   :  { %v9461_v52 = vpop.permute.xlu1 %9460  ;;  %9293 = vmatprep.mubr.bf16.mxu0 %v21635_v11  ;;  %v9233_v51 = vsel %vm348_vm2, %v9224_v41, %v9226_v34 }
 0x662   :  { %v9256_v4 = vsel %vm61_vm8, %v9233_v51, 0 }
 0x664   :  { %v9459_v63 = vpop.permute.xlu0 %9458 }
 0x665   :  { %v9465_v43 = vpop.permute.xlu1 %9464  ;;  %16208 = vmatmul.mubr.msk.bf16.vlgmr.msra.gmra.mrb[152].mxu0 %vm6174_vm15, %v16910_v1  ;;  %v9473_v57 = vsel %vm411_vm3, %v9459_v63, %v9461_v52  ;;  %v9472_v28 = vsel %vm411_vm3, %v9457_v27, %v9459_v63 }
 0x666   :  { %16203 = vmatmul.mubr.msk.bf16.vlgmr.msra.gmra.mrb[156].mxu1 %vm6174_vm15, %v16909_v29  ;;  %9348 = vmatpush1.bf16.msra.mxu0 %v9250_v59  ;;  %v9483_v19 = vsel %vm61_vm8, %v9472_v28, 0  ;;  %v16913_v59 = vld [vmem:[%s21433_s6 + $0x30] sm:$0xff]  }
 0x667   :  { %9305 = vmatpush1.bf16.msra.mxu1 %v9244_v39  ;;  %16218 = vmatprep.subr.msk.bf16.mxu0 %vm61_vm8, %v9473_v57 }
 0x668   :  { %16213 = vmatprep.subr.msk.bf16.mxu1 %vm61_vm8, %v9226_v34  ;;  %v9463_v32 = vpop.permute.xlu0 %9462  ;;  %9336 = vmatprep.mubr.bf16.mxu1 %v21635_v11 }
 0x669   :  { %v9469_v12 = vpop.permute.xlu1 %9468  ;;  %9379 = vmatprep.mubr.bf16.mxu0 %v21635_v11  ;;  %v9475_v13 = vsel %vm411_vm3, %v9463_v32, %v9465_v43  ;;  %v9474_v55 = vsel %vm411_vm3, %v9461_v52, %v9463_v32 }
 0x66a   :  { %v9489_v10 = vsel %vm61_vm8, %v9474_v55, 0 }
 0x66c   :  { %v9467_v42 = vpop.permute.xlu0 %9466 }
 0x66d   :  { %v9702_v21 = vpop.permute.xlu1 %9701  ;;  %16212 = vmatmul.mubr.msk.bf16.vlgmr.msra.gmra.mrb[156].mxu0 %vm6174_vm15, %v16910_v1  ;;  %v9477_v37 = vsel %vm411_vm3, %v9467_v42, %v9469_v12  ;;  %v9476_v44 = vsel %vm411_vm3, %v9465_v43, %v9467_v42 }
 0x66e   :  { %16210 = vmatmul.mubr.msk.bf16.vlgmr.msra.gmra.mrb[152].mxu1 %vm6174_vm15, %v16910_v1  ;;  %9507 = vmatpush1.bf16.msra.mxu0 %v9483_v19  ;;  %v9495_v14 = vsel %vm61_vm8, %v9476_v44, 0 }
 0x66f   :  { %9391 = vmatpush1.bf16.msra.mxu1 %v9256_v4  ;;  %16222 = vmatprep.subr.msk.bf16.mxu0 %vm61_vm8, %v9477_v37 }
 0x670   :  { %16220 = vmatprep.subr.msk.bf16.mxu1 %vm61_vm8, %v9475_v13  ;;  %v9471_v6 = vpop.permute.xlu0 %9470  ;;  %9422 = vmatprep.mubr.bf16.mxu1 %v21635_v11 }
 0x671   :  { %v9706_v48 = vpop.permute.xlu1 %9705  ;;  %9538 = vmatprep.mubr.bf16.mxu0 %v21635_v11  ;;  %v9478_v58 = vsel %vm411_vm3, %v9469_v12, %v9471_v6 }
 0x672   :  { %v9501_v50 = vsel %vm61_vm8, %v9478_v58, 0 }
 0x674   :  { %v9704_v26 = vpop.permute.xlu0 %9703 }
 0x675   :  { %v9710_v15 = vpop.permute.xlu1 %9709  ;;  %16219 = vmatmul.mubr.msk.bf16.vlgmr.msra.gmra.mrb[152].mxu0 %vm6174_vm15, %v16911_v56  ;;  %v9718_v3 = vsel %vm474_vm4, %v9704_v26, %v9706_v48  ;;  %v9717_v0 = vsel %vm474_vm4, %v9702_v21, %v9704_v26 }
 0x676   :  { %16214 = vmatmul.mubr.msk.bf16.vlgmr.msra.gmra.mrb[156].mxu1 %vm6174_vm15, %v16910_v1  ;;  %9593 = vmatpush1.bf16.msra.mxu0 %v9495_v14  ;;  %v9728_v36 = vsel %vm61_vm8, %v9717_v0, 0  ;;  %v16914_v14 = vld [vmem:[%s21433_s6 + $0x38] sm:$0xff]  }
 0x677   :  { %9550 = vmatpush1.bf16.msra.mxu1 %v9489_v10  ;;  %16229 = vmatprep.subr.msk.bf16.mxu0 %vm61_vm8, %v9718_v3 }
 0x678   :  { %16224 = vmatprep.subr.msk.bf16.mxu1 %vm61_vm8, %v9471_v6  ;;  %v9708_v61 = vpop.permute.xlu0 %9707  ;;  %9581 = vmatprep.mubr.bf16.mxu1 %v21635_v11 }
 0x679   :  { %v9714_v54 = vpop.permute.xlu1 %9713  ;;  %9624 = vmatprep.mubr.bf16.mxu0 %v21635_v11  ;;  %v9720_v31 = vsel %vm474_vm4, %v9708_v61, %v9710_v15  ;;  %v9719_v23 = vsel %vm474_vm4, %v9706_v48, %v9708_v61 }
 0x67a   :  { %v9734_v20 = vsel %vm61_vm8, %v9719_v23, 0  ;;  %v16915_v23 = vld [vmem:[%s21433_s6 + $0x40] sm:$0xff]  }
 0x67c   :  { %v9712_v47 = vpop.permute.xlu0 %9711 }
 0x67d   :  { %v9947_v8 = vpop.permute.xlu1 %9946  ;;  %16223 = vmatmul.mubr.msk.bf16.vlgmr.msra.gmra.mrb[156].mxu0 %vm6174_vm15, %v16911_v56  ;;  %v9722_v29 = vsel %vm474_vm4, %v9712_v47, %v9714_v54  ;;  %v9721_v16 = vsel %vm474_vm4, %v9710_v15, %v9712_v47 }
 0x67e   :  { %16221 = vmatmul.mubr.msk.bf16.vlgmr.msra.gmra.mrb[152].mxu1 %vm6174_vm15, %v16911_v56  ;;  %9752 = vmatpush1.bf16.msra.mxu0 %v9728_v36  ;;  %v9740_v49 = vsel %vm61_vm8, %v9721_v16, 0 }
 0x67f   :  { %9636 = vmatpush1.bf16.msra.mxu1 %v9501_v50  ;;  %16233 = vmatprep.subr.msk.bf16.mxu0 %vm61_vm8, %v9722_v29 }
 0x680   :  { %16231 = vmatprep.subr.msk.bf16.mxu1 %vm61_vm8, %v9720_v31  ;;  %v9716_v18 = vpop.permute.xlu0 %9715  ;;  %9667 = vmatprep.mubr.bf16.mxu1 %v21635_v11 }
 0x681   :  { %v9951_v7 = vpop.permute.xlu1 %9950  ;;  %9783 = vmatprep.mubr.bf16.mxu0 %v21635_v11  ;;  %v9723_v45 = vsel %vm474_vm4, %v9714_v54, %v9716_v18 }
 0x682   :  { %v9746_v40 = vsel %vm61_vm8, %v9723_v45, 0 }
 0x684   :  { %v9949_v60 = vpop.permute.xlu0 %9948 }
 0x685   :  { %v9955_v41 = vpop.permute.xlu1 %9954  ;;  %16230 = vmatmul.mubr.msk.bf16.vlgmr.msra.gmra.mrb[152].mxu0 %vm6174_vm15, %v16912_v17  ;;  %v9963_v62 = vsel %vm537_vm5, %v9949_v60, %v9951_v7  ;;  %v9962_v33 = vsel %vm537_vm5, %v9947_v8, %v9949_v60 }
 0x686   :  { %16225 = vmatmul.mubr.msk.bf16.vlgmr.msra.gmra.mrb[156].mxu1 %vm6174_vm15, %v16911_v56  ;;  %9838 = vmatpush1.bf16.msra.mxu0 %v9740_v49  ;;  %v9973_v52 = vsel %vm61_vm8, %v9962_v33, 0 }
 0x687   :  { %9795 = vmatpush1.bf16.msra.mxu1 %v9734_v20  ;;  %16240 = vmatprep.subr.msk.bf16.mxu0 %vm61_vm8, %v9963_v62 }
 0x688   :  { %16235 = vmatprep.subr.msk.bf16.mxu1 %vm61_vm8, %v9716_v18  ;;  %v9953_v27 = vpop.permute.xlu0 %9952  ;;  %9826 = vmatprep.mubr.bf16.mxu1 %v21635_v11 }
 0x689   :  { %v9959_v25 = vpop.permute.xlu1 %9958  ;;  %9869 = vmatprep.mubr.bf16.mxu0 %v21635_v11  ;;  %v9965_v30 = vsel %vm537_vm5, %v9953_v27, %v9955_v41  ;;  %v9964_v39 = vsel %vm537_vm5, %v9951_v7, %v9953_v27 }
 0x68a   :  { %v9979_v42 = vsel %vm61_vm8, %v9964_v39, 0 }
 0x68c   :  { %v9957_v38 = vpop.permute.xlu0 %9956 }
 0x68d   :  { %v10192_v34 = vpop.permute.xlu1 %10191  ;;  %16234 = vmatmul.mubr.msk.bf16.vlgmr.msra.gmra.mrb[156].mxu0 %vm6174_vm15, %v16912_v17  ;;  %v9967_v1 = vsel %vm537_vm5, %v9957_v38, %v9959_v25  ;;  %v9966_v57 = vsel %vm537_vm5, %v9955_v41, %v9957_v38 }
 0x68e   :  { %16232 = vmatmul.mubr.msk.bf16.vlgmr.msra.gmra.mrb[152].mxu1 %vm6174_vm15, %v16912_v17  ;;  %9997 = vmatpush1.bf16.msra.mxu0 %v9973_v52  ;;  %v9985_v28 = vsel %vm61_vm8, %v9966_v57, 0 }
 0x68f   :  { %9881 = vmatpush1.bf16.msra.mxu1 %v9746_v40  ;;  %16244 = vmatprep.subr.msk.bf16.mxu0 %vm61_vm8, %v9967_v1 }
 0x690   :  { %16242 = vmatprep.subr.msk.bf16.mxu1 %vm61_vm8, %v9965_v30  ;;  %v9961_v63 = vpop.permute.xlu0 %9960  ;;  %9912 = vmatprep.mubr.bf16.mxu1 %v21635_v11 }
 0x691   :  { %v10196_v43 = vpop.permute.xlu1 %10195  ;;  %10028 = vmatprep.mubr.bf16.mxu0 %v21635_v11  ;;  %v9968_v4 = vsel %vm537_vm5, %v9959_v25, %v9961_v63 }
 0x692   :  { %v9991_v44 = vsel %vm61_vm8, %v9968_v4, 0 }
 0x694   :  { %v10194_v32 = vpop.permute.xlu0 %10193 }
 0x695   :  { %v10200_v12 = vpop.permute.xlu1 %10199  ;;  %16241 = vmatmul.mubr.msk.bf16.vlgmr.msra.gmra.mrb[152].mxu0 %vm6174_vm15, %v16913_v59  ;;  %v10208_v51 = vsel %vm600_vm6, %v10194_v32, %v10196_v43  ;;  %v10207_v37 = vsel %vm600_vm6, %v10192_v34, %v10194_v32 }
 0x696   :  { %16236 = vmatmul.mubr.msk.bf16.vlgmr.msra.gmra.mrb[156].mxu1 %vm6174_vm15, %v16912_v17  ;;  %10083 = vmatpush1.bf16.msra.mxu0 %v9985_v28  ;;  %v10218_v48 = vsel %vm61_vm8, %v10207_v37, 0 }
 0x697   :  { %10040 = vmatpush1.bf16.msra.mxu1 %v9979_v42  ;;  %16251 = vmatprep.subr.msk.bf16.mxu0 %vm61_vm8, %v10208_v51 }
 0x698   :  { %16246 = vmatprep.subr.msk.bf16.mxu1 %vm61_vm8, %v9961_v63  ;;  %v10198_v21 = vpop.permute.xlu0 %10197  ;;  %10071 = vmatprep.mubr.bf16.mxu1 %v21635_v11 }
 0x699   :  { %v10204_v19 = vpop.permute.xlu1 %10203  ;;  %10114 = vmatprep.mubr.bf16.mxu0 %v21635_v11  ;;  %v10210_v55 = vsel %vm600_vm6, %v10198_v21, %v10200_v12  ;;  %v10209_v10 = vsel %vm600_vm6, %v10196_v43, %v10198_v21 }
 0x69a   :  { %v10224_v47 = vsel %vm61_vm8, %v10209_v10, 0 }
 0x69c   :  { %v10202_v13 = vpop.permute.xlu0 %10201 }
 0x69d   :  { %v10437_v6 = vpop.permute.xlu1 %10436  ;;  %16245 = vmatmul.mubr.msk.bf16.vlgmr.msra.gmra.mrb[156].mxu0 %vm6174_vm15, %v16913_v59  ;;  %v10212_v56 = vsel %vm600_vm6, %v10202_v13, %v10204_v19  ;;  %v10211_v3 = vsel %vm600_vm6, %v10200_v12, %v10202_v13 }
 0x69e   :  { %16243 = vmatmul.mubr.msk.bf16.vlgmr.msra.gmra.mrb[152].mxu1 %vm6174_vm15, %v16913_v59  ;;  %10242 = vmatpush1.bf16.msra.mxu0 %v10218_v48  ;;  %v10230_v54 = vsel %vm61_vm8, %v10211_v3, 0 }
 0x69f   :  { %10126 = vmatpush1.bf16.msra.mxu1 %v9991_v44  ;;  %16255 = vmatprep.subr.msk.bf16.mxu0 %vm61_vm8, %v10212_v56 }
 0x6a0   :  { %16253 = vmatprep.subr.msk.bf16.mxu1 %vm61_vm8, %v10210_v55  ;;  %v10206_v26 = vpop.permute.xlu0 %10205  ;;  %10157 = vmatprep.mubr.bf16.mxu1 %v21635_v11 }
 0x6a1   :  { %v10441_v15 = vpop.permute.xlu1 %10440  ;;  %10273 = vmatprep.mubr.bf16.mxu0 %v21635_v11  ;;  %v10213_v29 = vsel %vm600_vm6, %v10204_v19, %v10206_v26 }
 0x6a2   :  { %v10236_v17 = vsel %vm61_vm8, %v10213_v29, 0 }
 0x6a4   :  { %v10439_v61 = vpop.permute.xlu0 %10438 }
 0x6a5   :  { %16252 = vmatmul.mubr.msk.bf16.vlgmr.msra.gmra.mrb[152].mxu0 %vm6174_vm15, %v16914_v14  ;;  %v10453_v0 = vsel %vm76_vm7, %v10439_v61, %v10441_v15  ;;  %v10445_v58 = vpop.permute.xlu1 %10444  ;;  %v10452_v36 = vsel %vm76_vm7, %v10437_v6, %v10439_v61 }
 0x6a6   :  { %16247 = vmatmul.mubr.msk.bf16.vlgmr.msra.gmra.mrb[156].mxu1 %vm6174_vm15, %v16913_v59  ;;  %10328 = vmatpush1.bf16.msra.mxu0 %v10230_v54  ;;  %v10463_v18 = vsel %vm61_vm8, %v10452_v36, 0 }
 0x6a7   :  { %10285 = vmatpush1.bf16.msra.mxu1 %v10224_v47  ;;  %16262 = vmatprep.subr.msk.bf16.mxu0 %vm61_vm8, %v10453_v0 }
 0x6a8   :  { %16257 = vmatprep.subr.msk.bf16.mxu1 %vm61_vm8, %v10206_v26  ;;  %v10443_v8 = vpop.permute.xlu0 %10442  ;;  %10316 = vmatprep.mubr.bf16.mxu1 %v21635_v11 }
 0x6a9   :  { %10359 = vmatprep.mubr.bf16.mxu0 %v21635_v11  ;;  %v10449_v50 = vpop.permute.xlu1 %10448  ;;  %v10455_v16 = vsel %vm76_vm7, %v10443_v8, %v10445_v58  ;;  %v10454_v41 = vsel %vm76_vm7, %v10441_v15, %v10443_v8 }
 0x6aa   :  { %v10469_v62 = vsel %vm61_vm8, %v10454_v41, 0 }
 0x6ac   :  { %v10447_v31 = vpop.permute.xlu0 %10446 }
 0x6ad   :  { %16256 = vmatmul.mubr.msk.bf16.vlgmr.msra.gmra.mrb[156].mxu0 %vm6174_vm15, %v16914_v14  ;;  %v10457_v7 = vsel %vm76_vm7, %v10447_v31, %v10449_v50  ;;  %v10456_v60 = vsel %vm76_vm7, %v10445_v58, %v10447_v31 }
 0x6ae   :  { %16254 = vmatmul.mubr.msk.bf16.vlgmr.msra.gmra.mrb[152].mxu1 %vm6174_vm15, %v16914_v14  ;;  %10487 = vmatpush1.bf16.msra.mxu0 %v10463_v18  ;;  %v10475_v49 = vsel %vm61_vm8, %v10456_v60, 0 }
 0x6af   :  { %10371 = vmatpush1.bf16.msra.mxu1 %v10236_v17  ;;  %16266 = vmatprep.subr.msk.bf16.mxu0 %vm61_vm8, %v10457_v7 }
 0x6b0   :  { %16264 = vmatprep.subr.msk.bf16.mxu1 %vm61_vm8, %v10455_v16  ;;  %10402 = vmatprep.mubr.bf16.mxu1 %v21635_v11  ;;  %v10451_v20 = vpop.permute.xlu0 %10450 }
 0x6b1   :  { %10518 = vmatprep.mubr.bf16.mxu0 %v21635_v11  ;;  %v10458_v27 = vsel %vm76_vm7, %v10449_v50, %v10451_v20 }
 0x6b2   :  { %v10481_v33 = vsel %vm61_vm8, %v10458_v27, 0 }
 0x6b5   :  { %16263 = vmatmul.mubr.msk.bf16.vlgmr.msra.gmra.mrb[152].mxu0 %vm6174_vm15, %v16915_v23 }
 0x6b6   :  { %16258 = vmatmul.mubr.msk.bf16.vlgmr.msra.gmra.mrb[156].mxu1 %vm6174_vm15, %v16914_v14  ;;  %10573 = vmatpush1.bf16.msra.mxu0 %v10475_v49 }
 0x6b7   :  { %10530 = vmatpush1.bf16.msra.mxu1 %v10469_v62  ;;  %10561 = vmatprep.mubr.bf16.mxu1 %v21635_v11 }
 0x6b8   :  { %16268 = vmatprep.subr.msk.bf16.mxu1 %vm61_vm8, %v10451_v20  ;;  %10604 = vmatprep.mubr.bf16.mxu0 %v21635_v11  ;;  %vm10916_vm8 = vcmask 130048  }
 0x6ba   :  { %v20186_v25 = vpop.permute.xlu1 %8302 }
 0x6bd   :  { %16267 = vmatmul.mubr.msk.bf16.vlgmr.msra.gmra.mrb[156].mxu0 %vm6174_vm15, %v16915_v23 }
 0x6be   :  { %16265 = vmatmul.mubr.msk.bf16.vlgmr.msra.gmra.mrb[152].mxu1 %vm6174_vm15, %v16915_v23  ;;  %10952 = vmatprep.mubr.bf16.mxu0 %v21635_v11 }
 0x6bf   :  { %10616 = vmatpush1.bf16.msra.mxu1 %v10481_v33  ;;  %10647 = vmatprep.mubr.bf16.mxu1 %v21635_v11  ;;  %v20193_v45 = vpop.permute.xlu1 %8343 }
 0x6c1   :  { %v20195_v38 = vpop.permute.xlu0 %8307 }
 0x6c3   :  { %v20200_v43 = vpop.permute.xlu1 %8347 }
 0x6c4   :  { %v8146_v34 = vpop.f32.mrb[144].mxu0 }
 0x6c5   :  { %v8310_v52 = vadd.f32 %v20186_v25, %v8146_v34  ;;  %v8148_v1 = vpop.f32.mrb[145].mxu0 }
 0x6c6   :  { %v8311_v40 = vadd.f32 %v20186_v25, %v8148_v1  ;;  %v8150_v30 = vpop.f32.mrb[146].mxu0  ;;  %16269 = vmatmul.mubr.msk.bf16.vlgmr.msra.gmra.mrb[156].mxu1 %vm6174_vm15, %v16915_v23 }
 0x6c7   :  { %v8326_v63 = vmax.f32 %v8310_v52, 0.0  ;;  %v8152_v59 = vpop.f32.mrb[147].mxu0  ;;  %v8318_v57 = vadd.f32 %v20195_v38, %v8150_v30  ;;  %10993 = vmatprep.mubr.bf16.mxu1 %v21635_v11 }
 0x6c8   :  { %v8327_v39 = vmax.f32 %v8311_v40, 0.0  ;;  %v8319_v32 = vadd.f32 %v20195_v38, %v8152_v59  ;;  %v8189_v12 = vpop.f32.mrb[144].mxu1  ;;  %v20205_v28 = vpop.permute.xlu0 %8367 }
 0x6c9   :  { %v8350_v51 = vmul.f32 %v20193_v45, %v8326_v63  ;;  %v8191_v42 = vpop.f32.mrb[145].mxu1  ;;  %v8334_v21 = vmax.f32 %v8318_v57, 0.0  ;;  %v8312_v13 = vadd.f32 %v20186_v25, %v8189_v12  ;;  %v20214_v26 = vpop.permute.xlu1 %8371 }
 0x6ca   :  { %v8351_v19 = vmul.f32 %v20193_v45, %v8327_v39  ;;  %v8335_v37 = vmax.f32 %v8319_v32, 0.0  ;;  %v8193_v4 = vpop.f32.mrb[146].mxu1  ;;  %v8313_v55 = vadd.f32 %v20186_v25, %v8191_v42 }
 0x6cb   :  { %v8195_v6 = vpop.f32.mrb[147].mxu1  ;;  %v8374_v48 = vadd.f32 %v20205_v28, %v8350_v51  ;;  %v8358_v56 = vmul.f32 %v20200_v43, %v8334_v21  ;;  %v8320_v54 = vadd.f32 %v20195_v38, %v8193_v4  ;;  %v8328_v47 = vmax.f32 %v8312_v13, 0.0 }
 0x6cc   :  { %v8359_v44 = vmul.f32 %v20200_v43, %v8335_v37  ;;  %v8232_v15 = vpop.f32.mrb[148].mxu0  ;;  %v8375_v14 = vadd.f32 %v20205_v28, %v8351_v19  ;;  %v8329_v29 = vmax.f32 %v8313_v55, 0.0  ;;  %v8321_v18 = vadd.f32 %v20195_v38, %v8195_v6 }
 0x6cd   :  { %v8314_v3 = vadd.f32 %v20186_v25, %v8232_v15  ;;  %v8234_v10 = vpop.f32.mrb[149].mxu0  ;;  %v8390_v61 = vmul.f32 %v8374_v48, %v21624_v2  ;;  %v8382_v36 = vadd.f32 %v20214_v26, %v8358_v56  ;;  %v8336_v23 = vmax.f32 %v8320_v54, 0.0 }
 0x6ce   :  { %v8236_v0 = vpop.f32.mrb[150].mxu0  ;;  %v8391_v58 = vmul.f32 %v8375_v14, %v21625_v5  ;;  %v8383_v31 = vadd.f32 %v20214_v26, %v8359_v44  ;;  %v8352_v62 = vmul.f32 %v20193_v45, %v8328_v47  ;;  %v8353_v27 = vmul.f32 %v20193_v45, %v8329_v29 }
 0x6cf   :  { %v8238_v8 = vpop.f32.mrb[151].mxu0  ;;  %8422 = vrot.lane.b32.xlu1 %v8390_v61, %s17093_s1  ;;  %v8330_v7 = vmax.f32 %v8314_v3, 0.0  ;;  %v8398_v16 = vmul.f32 %v8382_v36, %v21624_v2  ;;  %v8322_v60 = vadd.f32 %v20195_v38, %v8236_v0  ;;  %v8315_v33 = vadd.f32 %v20186_v25, %v8234_v10 }
 0x6d0   :  { %v8275_v50 = vpop.f32.mrb[148].mxu1  ;;  %8424 = vrot.lane.b32.xlu0 %v8391_v58, %s17093_s1  ;;  %v8399_v49 = vmul.f32 %v8383_v31, %v21625_v5  ;;  %v8337_v34 = vmax.f32 %v8321_v18, 0.0  ;;  %v8360_v1 = vmul.f32 %v20200_v43, %v8336_v23  ;;  %v8323_v30 = vadd.f32 %v20195_v38, %v8238_v8 }
 0x6d1   :  { %v8277_v17 = vpop.f32.mrb[149].mxu1  ;;  %v8354_v52 = vmul.f32 %v20193_v45, %v8330_v7  ;;  %v8338_v40 = vmax.f32 %v8322_v60, 0.0  ;;  %v8376_v63 = vadd.f32 %v20205_v28, %v8352_v62  ;;  %v8331_v59 = vmax.f32 %v8315_v33, 0.0 }
 0x6d2   :  { %v8279_v41 = vpop.f32.mrb[150].mxu1  ;;  %v8316_v57 = vadd.f32 %v20186_v25, %v8275_v50  ;;  %v8377_v39 = vadd.f32 %v20205_v28, %v8353_v27  ;;  %v8361_v32 = vmul.f32 %v20200_v43, %v8337_v34  ;;  %v8317_v51 = vadd.f32 %v20186_v25, %v8277_v17 }
 0x6d3   :  { %v8281_v20 = vpop.f32.mrb[151].mxu1  ;;  %8438 = vrot.lane.b32.xlu1 %v8398_v16, %s17093_s1  ;;  %v8378_v12 = vadd.f32 %v20205_v28, %v8354_v52  ;;  %v8392_v42 = vmul.f32 %v8376_v63, %v21626_v22  ;;  %v8362_v21 = vmul.f32 %v20200_v43, %v8338_v40  ;;  %v8339_v19 = vmax.f32 %v8323_v30, 0.0 }
 0x6d4   :  { %8440 = vrot.lane.b32.xlu0 %v8399_v49, %s17093_s1  ;;  %v8393_v37 = vmul.f32 %v8377_v39, %v21627_v9  ;;  %v8384_v4 = vadd.f32 %v20214_v26, %v8360_v1  ;;  %v8355_v13 = vmul.f32 %v20193_v45, %v8331_v59  ;;  %v8332_v6 = vmax.f32 %v8316_v57, 0.0 }
 0x6d5   :  { %v8394_v48 = vmul.f32 %v8378_v12, %v21628_v35  ;;  %v8333_v56 = vmax.f32 %v8317_v51, 0.0  ;;  %v8324_v44 = vadd.f32 %v20195_v38, %v8279_v41  ;;  %v8385_v55 = vadd.f32 %v20214_v26, %v8361_v32 }
 0x6d6   :  { %v8386_v15 = vadd.f32 %v20214_v26, %v8362_v21  ;;  %v8363_v14 = vmul.f32 %v20200_v43, %v8339_v19  ;;  %v8325_v3 = vadd.f32 %v20195_v38, %v8281_v20  ;;  %v8400_v10 = vmul.f32 %v8384_v4, %v21626_v22 }
 0x6d7   :  { %8426 = vrot.lane.b32.xlu1 %v8392_v42, %s17093_s1  ;;  %v8379_v61 = vadd.f32 %v20205_v28, %v8355_v13  ;;  %v8357_v54 = vmul.f32 %v20193_v45, %v8333_v56  ;;  %v8340_v0 = vmax.f32 %v8324_v44, 0.0  ;;  %v8401_v58 = vmul.f32 %v8385_v55, %v21627_v9 }
 0x6d8   :  { %8428 = vrot.lane.b32.xlu0 %v8393_v37, %s17093_s1  ;;  %v8402_v47 = vmul.f32 %v8386_v15, %v21628_v35  ;;  %v8387_v8 = vadd.f32 %v20214_v26, %v8363_v14  ;;  %v8356_v36 = vmul.f32 %v20193_v45, %v8332_v6  ;;  %v8341_v29 = vmax.f32 %v8325_v3, 0.0 }
 0x6d9   :  { %v8395_v50 = vmul.f32 %v8379_v61, %v21629_v46  ;;  %v8381_v31 = vadd.f32 %v20205_v28, %v8357_v54  ;;  %v8364_v18 = vmul.f32 %v20200_v43, %v8340_v0 }
 0x6da   :  { %v8403_v7 = vmul.f32 %v8387_v8, %v21629_v46  ;;  %v8380_v17 = vadd.f32 %v20205_v28, %v8356_v36  ;;  %v8365_v16 = vmul.f32 %v20200_v43, %v8341_v29 }
 0x6db   :  { %8430 = vrot.lane.b32.xlu1 %v8394_v48, %s17093_s1  ;;  %v8397_v23 = vmul.f32 %v8381_v31, %v21636_v24  ;;  %v8388_v60 = vadd.f32 %v20214_v26, %v8364_v18 }
 0x6dc   :  { %8442 = vrot.lane.b32.xlu0 %v8400_v10, %s17093_s1  ;;  %v8396_v41 = vmul.f32 %v8380_v17, %v21637_v53  ;;  %v8389_v49 = vadd.f32 %v20214_v26, %v8365_v16 }
 0x6dd   :  { %v8404_v62 = vmul.f32 %v8388_v60, %v21637_v53 }
 0x6de   :  { %v8405_v20 = vmul.f32 %v8389_v49, %v21636_v24 }
 0x6df   :  { %8444 = vrot.lane.b32.xlu1 %v8401_v58, %s17093_s1 }
 0x6e0   :  { %8446 = vrot.lane.b32.xlu0 %v8402_v47, %s17093_s1 }
 0x6e3   :  { %8432 = vrot.lane.b32.xlu1 %v8395_v50, %s17093_s1 }
 0x6e4   :  { %8448 = vrot.lane.b32.xlu0 %v8403_v7, %s17093_s1 }
 0x6e7   :  { %8436 = vrot.lane.b32.xlu1 %v8397_v23, %s17093_s1 }
 0x6e8   :  { %8434 = vrot.lane.b32.xlu0 %v8396_v41, %s17093_s1 }
 0x6eb   :  { %8450 = vrot.lane.b32.xlu1 %v8404_v62, %s17093_s1 }
 0x6ec   :  { %8452 = vrot.lane.b32.xlu0 %v8405_v20, %s17093_s1 }
 0x741   :  { %v8423_v27 = vpop.permute.xlu1 %8422 }
 0x742   :  { %8484 = vst.msk [vmem:[#allocation4] sm:$0xff] %vm3793_vm12, %v8423_v27  ;;  %v8425_v33 = vpop.permute.xlu0 %8424 }
 0x743   :  { %v8454_v34 = vsel %vm804_vm13, %v8423_v27, %v8425_v33 }
 0x745   :  { %v8439_v52 = vpop.permute.xlu1 %8438 }
 0x746   :  { %8492 = vst.msk [vmem:[#allocation4 + $0x40] sm:$0xff] %vm3793_vm12, %v8439_v52  ;;  %v8441_v1 = vpop.permute.xlu0 %8440 }
 0x747   :  { %v8461_v40 = vsel %vm804_vm13, %v8439_v52, %v8441_v1 }
 0x748   :  { %v20301_v13 = vpack.c.bf16 %v8461_v40, %v8454_v34 }
 0x749   :  { %v10850_v30 = vld [vmem:[#allocation4] sm:$0xff]  ;;  %v8427_v59 = vpop.permute.xlu1 %8426 }
 0x74a   :  { %v8455_v39 = vsel %vm804_vm13, %v8425_v33, %v8427_v59  ;;  %v8429_v32 = vpop.permute.xlu0 %8428 }
 0x74b   :  { %v8456_v12 = vsel %vm804_vm13, %v8427_v59, %v8429_v32 }
 0x74d   :  { %v10858_v63 = vld [vmem:[#allocation4 + $0x40] sm:$0xff]  ;;  %v8431_v51 = vpop.permute.xlu1 %8430 }
 0x74e   :  { %v20289_v57 = vpack.c.bf16 %v10858_v63, %v10850_v30  ;;  %v8457_v42 = vsel %vm804_vm13, %v8429_v32, %v8431_v51  ;;  %v8443_v21 = vpop.permute.xlu0 %8442 }
 0x74f   :  { %v8462_v19 = vsel %vm804_vm13, %v8441_v1, %v8443_v21 }
 0x750   :  { %10885 = vrot.lane.b32.xlu1 %v20289_v57, %s17084_s17  ;;  %v20297_v37 = vpack.c.bf16 %v8462_v19, %v8455_v39 }
 0x751   :  { %v8445_v4 = vpop.permute.xlu1 %8444 }
 0x752   :  { %v8463_v6 = vsel %vm804_vm13, %v8443_v21, %v8445_v4  ;;  %v8447_v48 = vpop.permute.xlu0 %8446  ;;  %10889 = vrot.lane.b32.xlu0 %v20297_v37, %s17084_s17 }
 0x753   :  { %v8464_v56 = vsel %vm804_vm13, %v8445_v4, %v8447_v48  ;;  %v20317_v61 = vpack.c.bf16 %v8463_v6, %v8456_v12 }
 0x754   :  { %11253 = vrot.lane.b32.xlu1 %v20289_v57, %s17085_s18  ;;  %v20313_v3 = vpack.c.bf16 %v8464_v56, %v8457_v42 }
 0x755   :  { %v8433_v44 = vpop.permute.xlu1 %8432 }
 0x756   :  { %v8458_v55 = vsel %vm804_vm13, %v8431_v51, %v8433_v44  ;;  %v8449_v15 = vpop.permute.xlu0 %8448  ;;  %11257 = vrot.lane.b32.xlu0 %v20297_v37, %s17085_s18 }
 0x757   :  { %v8465_v14 = vsel %vm804_vm13, %v8447_v48, %v8449_v15 }
 0x758   :  { %10887 = vrot.lane.b32.xlu1 %v20301_v13, %s17084_s17  ;;  %v20335_v50 = vpack.c.bf16 %v8465_v14, %v8458_v55 }
 0x759   :  { %v8437_v10 = vpop.permute.xlu1 %8436 }
 0x75a   :  { %v8435_v54 = vpop.permute.xlu0 %8434  ;;  %10893 = vrot.lane.b32.xlu0 %v20313_v3, %s17084_s17 }
 0x75b   :  { %v8459_v0 = vsel %vm804_vm13, %v8433_v44, %v8435_v54  ;;  %v8460_v58 = vsel %vm804_vm13, %v8435_v54, %v8437_v10 }
 0x75c   :  { %11255 = vrot.lane.b32.xlu1 %v20301_v13, %s17085_s18  ;;  %8491 = vst.msk [vmem:[#allocation4 + $0x38] sm:$0xff] %vm3801_vm14, %v8460_v58 }
 0x75d   :  { %v8451_v47 = vpop.permute.xlu1 %8450 }
 0x75e   :  { %v8466_v8 = vsel %vm804_vm13, %v8449_v15, %v8451_v47  ;;  %v8453_v36 = vpop.permute.xlu0 %8452  ;;  %11261 = vrot.lane.b32.xlu0 %v20313_v3, %s17085_s18 }
 0x75f   :  { %v8467_v29 = vsel %vm804_vm13, %v8451_v47, %v8453_v36  ;;  %v20339_v31 = vpack.c.bf16 %v8466_v8, %v8459_v0 }
 0x760   :  { %10891 = vrot.lane.b32.xlu1 %v20317_v61, %s17084_s17  ;;  %8499 = vst.msk [vmem:[#allocation4 + $0x78] sm:$0xff] %vm3801_vm14, %v8467_v29 }
 0x762   :  { %11469 = vrot.lane.b32.xlu0 %v20313_v3, %s17086_s19 }
 0x763   :  { %v10857_v7 = vld [vmem:[#allocation4 + $0x38] sm:$0xff] }
 0x764   :  { %11259 = vrot.lane.b32.xlu1 %v20317_v61, %s17085_s18 }
 0x766   :  { %10895 = vrot.lane.b32.xlu0 %v20335_v50, %s17084_s17 }
 0x767   :  { %v10865_v18 = vld [vmem:[#allocation4 + $0x78] sm:$0xff] }
 0x768   :  { %11467 = vrot.lane.b32.xlu1 %v20317_v61, %s17086_s19  ;;  %v20347_v17 = vpack.c.bf16 %v10865_v18, %v10857_v7 }
 0x76a   :  { %11263 = vrot.lane.b32.xlu0 %v20335_v50, %s17085_s18 }
 0x76c   :  { %10897 = vrot.lane.b32.xlu1 %v20339_v31, %s17084_s17 }
 0x76e   :  { %10899 = vrot.lane.b32.xlu0 %v20347_v17, %s17084_s17 }
 0x770   :  { %11463 = vrot.lane.b32.xlu1 %v20301_v13, %s17086_s19 }
 0x772   :  { %11465 = vrot.lane.b32.xlu0 %v20297_v37, %s17086_s19 }
 0x774   :  { %11265 = vrot.lane.b32.xlu1 %v20339_v31, %s17085_s18 }
 0x776   :  { %11471 = vrot.lane.b32.xlu0 %v20335_v50, %s17086_s19 }
 0x778   :  { %11461 = vrot.lane.b32.xlu1 %v20289_v57, %s17086_s19 }
 0x77a   :  { %11677 = vrot.lane.b32.xlu0 %v20313_v3, %s17087_s20 }
 0x77c   :  { %11473 = vrot.lane.b32.xlu1 %v20339_v31, %s17086_s19 }
 0x77e   :  { %11673 = vrot.lane.b32.xlu0 %v20297_v37, %s17087_s20 }
 0x780   :  { %11675 = vrot.lane.b32.xlu1 %v20317_v61, %s17087_s20 }
 0x782   :  { %11679 = vrot.lane.b32.xlu0 %v20335_v50, %s17087_s20 }
 0x784   :  { %11671 = vrot.lane.b32.xlu1 %v20301_v13, %s17087_s20 }
 0x786   :  { %11885 = vrot.lane.b32.xlu0 %v20313_v3, %s17088_s10 }
 0x788   :  { %11669 = vrot.lane.b32.xlu1 %v20289_v57, %s17087_s20  ;;  %v10520_v16 = vpop.f32.mrb[152].mxu0 }
 0x789   :  { %v10522_v23 = vpop.f32.mrb[153].mxu0  ;;  %v10674_v60 = vadd.f32 %v10520_v16, %v20186_v25 }
 0x78a   :  { %v10524_v41 = vpop.f32.mrb[154].mxu0  ;;  %v10675_v49 = vadd.f32 %v10522_v23, %v20186_v25  ;;  %11881 = vrot.lane.b32.xlu0 %v20297_v37, %s17088_s10 }
 0x78b   :  { %v10526_v62 = vpop.f32.mrb[155].mxu0  ;;  %v10690_v20 = vmax.f32 %v10674_v60, 0.0  ;;  %v10682_v27 = vadd.f32 %v10524_v41, %v20195_v38 }
 0x78c   :  { %11681 = vrot.lane.b32.xlu1 %v20339_v31, %s17087_s20  ;;  %v10691_v33 = vmax.f32 %v10675_v49, 0.0  ;;  %v10683_v34 = vadd.f32 %v10526_v62, %v20195_v38 }
 0x78d   :  { %v10706_v30 = vmul.f32 %v10690_v20, %v20193_v45  ;;  %v10698_v63 = vmax.f32 %v10682_v27, 0.0 }
 0x78e   :  { %11267 = vrot.lane.b32.xlu0 %v20347_v17, %s17085_s18  ;;  %v10707_v12 = vmul.f32 %v10691_v33, %v20193_v45  ;;  %v10699_v21 = vmax.f32 %v10683_v34, 0.0 }
 0x78f   :  { %v10722_v48 = vadd.f32 %v10706_v30, %v20205_v28  ;;  %v10714_v56 = vmul.f32 %v10698_v63, %v20200_v43 }
 0x790   :  { %11883 = vrot.lane.b32.xlu1 %v20317_v61, %s17088_s10  ;;  %v10606_v52 = vpop.f32.mrb[156].mxu0  ;;  %v10723_v55 = vadd.f32 %v10707_v12, %v20205_v28  ;;  %v10715_v15 = vmul.f32 %v10699_v21, %v20200_v43 }
 0x791   :  { %v10563_v1 = vpop.f32.mrb[152].mxu1  ;;  %v10608_v40 = vpop.f32.mrb[157].mxu0  ;;  %v10678_v6 = vadd.f32 %v10606_v52, %v20186_v25  ;;  %v10738_v58 = vmul.f32 %v10722_v48, %v21624_v2  ;;  %v10730_v47 = vadd.f32 %v10714_v56, %v20214_v26 }
 0x792   :  { %v10676_v59 = vadd.f32 %v10563_v1, %v20186_v25  ;;  %v10565_v39 = vpop.f32.mrb[153].mxu1  ;;  %v10610_v32 = vpop.f32.mrb[158].mxu0  ;;  %11475 = vrot.lane.b32.xlu0 %v20347_v17, %s17086_s19  ;;  %v10739_v18 = vmul.f32 %v10723_v55, %v21625_v5  ;;  %v10731_v16 = vadd.f32 %v10715_v15, %v20214_v26  ;;  %v10679_v60 = vadd.f32 %v10608_v40, %v20186_v25 }
 0x793   :  { %v10567_v51 = vpop.f32.mrb[154].mxu1  ;;  %v10612_v42 = vpop.f32.mrb[159].mxu0  ;;  %v10677_v19 = vadd.f32 %v10565_v39, %v20186_v25  ;;  %v10694_v54 = vmax.f32 %v10678_v6, 0.0  ;;  %v10746_v20 = vmul.f32 %v10730_v47, %v21624_v2  ;;  %v10686_v52 = vadd.f32 %v10610_v32, %v20195_v38 }
 0x794   :  { %11879 = vrot.lane.b32.xlu1 %v20301_v13, %s17088_s10  ;;  %v10569_v4 = vpop.f32.mrb[155].mxu1  ;;  %v10692_v44 = vmax.f32 %v10676_v59, 0.0  ;;  %v10684_v10 = vadd.f32 %v10567_v51, %v20195_v38  ;;  %v10687_v34 = vadd.f32 %v10612_v42, %v20195_v38  ;;  %v10747_v1 = vmul.f32 %v10731_v16, %v21625_v5 }
 0x795   :  { %v10693_v14 = vmax.f32 %v10677_v19, 0.0  ;;  %v10685_v36 = vadd.f32 %v10569_v4, %v20195_v38  ;;  %v10710_v62 = vmul.f32 %v10694_v54, %v20193_v45  ;;  %v10695_v30 = vmax.f32 %v10679_v60, 0.0 }
 0x796   :  { %v10708_v8 = vmul.f32 %v10692_v44, %v20193_v45  ;;  %11683 = vrot.lane.b32.xlu0 %v20347_v17, %s17087_s20  ;;  %v10700_v41 = vmax.f32 %v10684_v10, 0.0  ;;  %v10703_v12 = vmax.f32 %v10687_v34, 0.0  ;;  %v10702_v32 = vmax.f32 %v10686_v52, 0.0 }
 0x797   :  { %v10709_v23 = vmul.f32 %v10693_v14, %v20193_v45  ;;  %v10701_v33 = vmax.f32 %v10685_v36, 0.0  ;;  %v10726_v2 = vadd.f32 %v10710_v62, %v20205_v28  ;;  %v10711_v42 = vmul.f32 %v10695_v30, %v20193_v45 }
 0x798   :  { %11877 = vrot.lane.b32.xlu1 %v20289_v57, %s17088_s10  ;;  %v10724_v27 = vadd.f32 %v10708_v8, %v20205_v28  ;;  %v10716_v63 = vmul.f32 %v10700_v41, %v20200_v43  ;;  %v10719_v48 = vmul.f32 %v10703_v12, %v20200_v43  ;;  %v10718_v55 = vmul.f32 %v10702_v32, %v20200_v43 }
 0x799   :  { %v10649_v0 = vpop.f32.mrb[156].mxu1  ;;  %v10725_v40 = vadd.f32 %v10709_v23, %v20205_v28  ;;  %v10717_v39 = vmul.f32 %v10701_v33, %v20200_v43  ;;  %v10742_v4 = vmul.f32 %v10726_v2, %v21628_v35  ;;  %v10727_v15 = vadd.f32 %v10711_v42, %v20205_v28 }
 0x79a   :  { %v10651_v29 = vpop.f32.mrb[157].mxu1  ;;  %10772 = vrot.lane.b32.xlu0 %v10739_v18, %s17093_s1  ;;  %v10740_v59 = vmul.f32 %v10724_v27, %v21626_v22  ;;  %v10680_v51 = vadd.f32 %v10649_v0, %v20186_v25  ;;  %v10732_v21 = vadd.f32 %v10716_v63, %v20214_v26  ;;  %v10735_v0 = vadd.f32 %v10719_v48, %v20214_v26  ;;  %v20500_v27 = vld [vmem:[%s21435_s8 + $0x1] sm:$0x1] }
 0x79b   :  { %v10653_v7 = vpop.f32.mrb[158].mxu1  ;;  %v10741_v5 = vmul.f32 %v10725_v40, %v21627_v9  ;;  %v10681_v19 = vadd.f32 %v10651_v29, %v20186_v25  ;;  %v10733_v6 = vadd.f32 %v10717_v39, %v20214_v26  ;;  %v10743_v8 = vmul.f32 %v10727_v15, %v21629_v46 }
 0x79c   :  { %10770 = vrot.lane.b32.xlu1 %v10738_v58, %s17093_s1  ;;  %v10655_v49 = vpop.f32.mrb[159].mxu1  ;;  %v10696_v56 = vmax.f32 %v10680_v51, 0.0  ;;  %v10748_v14 = vmul.f32 %v10732_v21, %v21626_v22  ;;  %v10688_v10 = vadd.f32 %v10653_v7, %v20195_v38  ;;  %v10734_v36 = vadd.f32 %v10718_v55, %v20214_v26 }
 0x79d   :  { %v10689_v44 = vadd.f32 %v10655_v49, %v20195_v38  ;;  %v10697_v25 = vmax.f32 %v10681_v19, 0.0  ;;  %v10749_v54 = vmul.f32 %v10733_v6, %v21627_v9  ;;  %v10751_v38 = vmul.f32 %v10735_v0, %v21629_v46  ;;  %v20569_v6 = vld [vmem:[%s21435_s8] sm:$0x1] }
 0x79e   :  { %10788 = vrot.lane.b32.xlu0 %v10747_v1, %s17093_s1  ;;  %v10712_v58 = vmul.f32 %v10696_v56, %v20193_v45  ;;  %v10704_v29 = vmax.f32 %v10688_v10, 0.0  ;;  %v10750_v7 = vmul.f32 %v10734_v36, %v21628_v35 }
 0x79f   :  { %v10705_v47 = vmax.f32 %v10689_v44, 0.0  ;;  %v10713_v22 = vmul.f32 %v10697_v25, %v20193_v45  ;;  %v20624_v25 = vld [vmem:[%s21435_s8 + $0x2] sm:$0x1] }
 0x7a0   :  { %10786 = vrot.lane.b32.xlu1 %v10746_v20, %s17093_s1  ;;  %v10728_v9 = vadd.f32 %v10712_v58, %v20205_v28  ;;  %v10720_v23 = vmul.f32 %v10704_v29, %v20200_v43 }
 0x7a1   :  { %v10721_v18 = vmul.f32 %v10705_v47, %v20200_v43  ;;  %v10729_v16 = vadd.f32 %v10713_v22, %v20205_v28 }
 0x7a2   :  { %10776 = vrot.lane.b32.xlu0 %v10741_v5, %s17093_s1  ;;  %v10744_v45 = vmul.f32 %v10728_v9, %v21637_v53  ;;  %v10736_v41 = vadd.f32 %v10720_v23, %v20214_v26  ;;  %v20666_v23 = vld [vmem:[%s21435_s8 + $0x3] sm:$0x1] }
 0x7a3   :  { %v10737_v60 = vadd.f32 %v10721_v18, %v20214_v26  ;;  %v10745_v46 = vmul.f32 %v10729_v16, %v21636_v24 }
 0x7a4   :  { %10774 = vrot.lane.b32.xlu1 %v10740_v59, %s17093_s1  ;;  %v10752_v43 = vmul.f32 %v10736_v41, %v21637_v53 }
 0x7a5   :  { %v10753_v35 = vmul.f32 %v10737_v60, %v21636_v24 }
 0x7a6   :  { %10790 = vrot.lane.b32.xlu0 %v10748_v14, %s17093_s1 }
 0x7a8   :  { %10778 = vrot.lane.b32.xlu1 %v10742_v4, %s17093_s1 }
 0x7aa   :  { %10780 = vrot.lane.b32.xlu0 %v10743_v8, %s17093_s1 }
 0x7ac   :  { %10792 = vrot.lane.b32.xlu1 %v10749_v54, %s17093_s1 }
 0x7ae   :  { %10794 = vrot.lane.b32.xlu0 %v10750_v7, %s17093_s1 }
 0x7b0   :  { %10796 = vrot.lane.b32.xlu1 %v10751_v38, %s17093_s1 }
 0x7b2   :  { %10784 = vrot.lane.b32.xlu0 %v10745_v46, %s17093_s1 }
 0x7b4   :  { %10782 = vrot.lane.b32.xlu1 %v10744_v45, %s17093_s1 }
 0x7b6   :  { %10798 = vrot.lane.b32.xlu0 %v10752_v43, %s17093_s1 }
 0x7b8   :  { %10800 = vrot.lane.b32.xlu1 %v10753_v35, %s17093_s1 }
 0x7ba   :  { %11887 = vrot.lane.b32.xlu0 %v20335_v50, %s17088_s10 }
 0x7bc   :  { %11889 = vrot.lane.b32.xlu1 %v20339_v31, %s17088_s10 }
 0x7be   :  { %11891 = vrot.lane.b32.xlu0 %v20347_v17, %s17088_s10 }
 0x7c0   :  { %12091 = vrot.lane.b32.xlu1 %v20317_v61, %s17089_s21 }
 0x7c2   :  { %v10886_v28 = vpop.permute.xlu1 %10885  ;;  %12093 = vrot.lane.b32.xlu0 %v20313_v3, %s17089_s21 }
 0x7c4   :  { %12087 = vrot.lane.b32.xlu1 %v20301_v13, %s17089_s21  ;;  %v10890_v53 = vpop.permute.xlu0 %10889 }
 0x7c6   :  { %v20483_v24 = vpop.permute.xlu1 %11253  ;;  %12089 = vrot.lane.b32.xlu0 %v20297_v37, %s17089_s21 }
 0x7c8   :  { %12085 = vrot.lane.b32.xlu1 %v20289_v57, %s17089_s21  ;;  %v20495_v20 = vpop.permute.xlu0 %11257 }
 0x7ca   :  { %v10888_v26 = vpop.permute.xlu1 %10887  ;;  %12095 = vrot.lane.b32.xlu0 %v20335_v50, %s17089_s21 }
 0x7cb   :  { %v10902_v49 = vsel %vm222_vm0, %v10888_v26, %v10890_v53  ;;  %v10901_v62 = vsel %vm222_vm0, %v10886_v28, %v10888_v26 }
 0x7cc   :  { %12097 = vrot.lane.b32.xlu1 %v20339_v31, %s17089_s21  ;;  %10920 = vmatprep.subr.bf16.mxu0 %v10902_v49  ;;  %v10894_v34 = vpop.permute.xlu0 %10893 }
 0x7cd   :  { %10921 = vmatpush1.bf16.msra.mxu0 %v10901_v62 }
 0x7ce   :  { %v20502_v33 = vpop.permute.xlu1 %11255  ;;  %12099 = vrot.lane.b32.xlu0 %v20347_v17, %s17089_s21 }
 0x7d0   :  { %12299 = vrot.lane.b32.xlu1 %v20317_v61, %s17090_s22  ;;  %16271 = vmatmul.mubr.msk.bf16.vlgmr.msra.gmra.mrb[160].mxu0 %vm10916_vm8, %v20500_v27  ;;  %v20517_v30 = vpop.permute.xlu0 %11261 }
 0x7d1   :  { %11034 = vmatprep.mubr.bf16.mxu0 %v21635_v11 }
 0x7d2   :  { %v10892_v52 = vpop.permute.xlu1 %10891  ;;  %12301 = vrot.lane.b32.xlu0 %v20313_v3, %s17090_s22 }
 0x7d3   :  { %v10904_v1 = vsel %vm222_vm0, %v10892_v52, %v10894_v34  ;;  %v10903_v40 = vsel %vm222_vm0, %v10890_v53, %v10892_v52 }
 0x7d4   :  { %12295 = vrot.lane.b32.xlu1 %v20301_v13, %s17090_s22  ;;  %10961 = vmatprep.subr.bf16.mxu1 %v10904_v1  ;;  %v20525_v2 = vpop.permute.xlu0 %11469 }
 0x7d5   :  { %10962 = vmatpush1.bf16.msra.mxu1 %v10903_v40 }
 0x7d6   :  { %v20519_v63 = vpop.permute.xlu1 %11259  ;;  %12297 = vrot.lane.b32.xlu0 %v20297_v37, %s17090_s22 }
 0x7d8   :  { %12293 = vrot.lane.b32.xlu1 %v20289_v57, %s17090_s22  ;;  %16272 = vmatmul.mubr.msk.bf16.vlgmr.msra.gmra.mrb[160].mxu1 %vm10916_vm8, %v20500_v27  ;;  %v10896_v39 = vpop.permute.xlu0 %10895 }
 0x7d9   :  { %11075 = vmatprep.mubr.bf16.mxu1 %v21635_v11  ;;  %v10905_v32 = vsel %vm222_vm0, %v10894_v34, %v10896_v39 }
 0x7da   :  { %v20530_v59 = vpop.permute.xlu1 %11467  ;;  %12303 = vrot.lane.b32.xlu0 %v20335_v50, %s17090_s22 }
 0x7db   :  { %v11480_v7 = vsel %vm348_vm2, %v20530_v59, %v20525_v2 }
 0x7dc   :  { %12305 = vrot.lane.b32.xlu1 %v20339_v31, %s17090_s22  ;;  %v11264_v5 = vpop.permute.xlu0 %11263 }
 0x7dd   :  { %v11273_v54 = vsel %vm285_vm1, %v20517_v30, %v11264_v5 }
 0x7de   :  { %v10898_v12 = vpop.permute.xlu1 %10897  ;;  %12307 = vrot.lane.b32.xlu0 %v20347_v17, %s17090_s22 }
 0x7df   :  { %v10906_v51 = vsel %vm222_vm0, %v10896_v39, %v10898_v12 }
 0x7e0   :  { %12507 = vrot.lane.b32.xlu1 %v20317_v61, %s17091_s23  ;;  %11002 = vmatprep.subr.bf16.mxu0 %v10906_v51  ;;  %v10900_v21 = vpop.permute.xlu0 %10899 }
 0x7e1   :  { %11003 = vmatpush1.bf16.msra.mxu0 %v10905_v32  ;;  %11043 = vmatprep.subr.bf16.mxu1 %v10900_v21  ;;  %v10907_v19 = vsel %vm222_vm0, %v10898_v12, %v10900_v21 }
 0x7e2   :  { %v20542_v42 = vpop.permute.xlu1 %11463  ;;  %11087 = vmatprep.subr.bf16.mxu0 %v20301_v13  ;;  %11044 = vmatpush1.bf16.msra.mxu1 %v10907_v19 }
 0x7e3   :  { %12509 = vrot.lane.b32.xlu0 %v20313_v3, %s17091_s23  ;;  %11128 = vmatprep.subr.bf16.mxu1 %v20317_v61  ;;  %v11270_v61 = vsel %vm285_vm1, %v20502_v33, %v20495_v20 }
 0x7e4   :  { %12503 = vrot.lane.b32.xlu1 %v20301_v13, %s17091_s23  ;;  %16273 = vmatmul.mubr.msk.bf16.vlgmr.msra.gmra.mrb[164].mxu0 %vm10916_vm8, %v20500_v27  ;;  %v20561_v13 = vpop.permute.xlu0 %11465 }
 0x7e5   :  { %11088 = vmatpush1.bf16.msra.mxu0 %v20289_v57  ;;  %11119 = vmatprep.mubr.bf16.mxu0 %v21635_v11  ;;  %v11478_v58 = vsel %vm348_vm2, %v20542_v42, %v20561_v13  ;;  %v11479_v45 = vsel %vm348_vm2, %v20561_v13, %v20530_v59  ;;  %v20715_v59 = vld [vmem:[%s21435_s8 + $0x4] sm:$0x1] }
 0x7e6   :  { %v20553_v4 = vpop.permute.xlu1 %11265  ;;  %11169 = vmatprep.subr.bf16.mxu0 %v20335_v50  ;;  %16274 = vmatmul.mubr.msk.bf16.vlgmr.msra.gmra.mrb[164].mxu1 %vm10916_vm8, %v20500_v27 }
 0x7e7   :  { %11129 = vmatpush1.bf16.msra.mxu1 %v20297_v37  ;;  %11160 = vmatprep.mubr.bf16.mxu1 %v21635_v11 }
 0x7e8   :  { %12501 = vrot.lane.b32.xlu1 %v20289_v57, %s17091_s23  ;;  %12505 = vrot.lane.b32.xlu0 %v20297_v37, %s17091_s23  ;;  %v20580_v57 = vpop.permute.xlu0 %11471 }
 0x7e9   :  { %11210 = vmatprep.subr.bf16.mxu1 %v20347_v17  ;;  %v11481_v46 = vsel %vm348_vm2, %v20525_v2, %v20580_v57 }
 0x7ea   :  { %v11462_v48 = vpop.permute.xlu1 %11461 }
 0x7eb   :  { %v11477_v22 = vsel %vm348_vm2, %v11462_v48, %v20542_v42 }
 0x7ec   :  { %12513 = vrot.lane.b32.xlu1 %v20339_v31, %s17091_s23  ;;  %16275 = vmatmul.mubr.msk.bf16.vlgmr.msra.gmra.mrb[168].mxu0 %vm10916_vm8, %v20569_v6  ;;  %v20591_v37 = vpop.permute.xlu0 %11677 }
 0x7ed   :  { %11170 = vmatpush1.bf16.msra.mxu0 %v20313_v3  ;;  %11201 = vmatprep.mubr.bf16.mxu0 %v21635_v11  ;;  %v11272_v3 = vsel %vm285_vm1, %v20519_v63, %v20517_v30 }
 0x7ee   :  { %v20587_v56 = vpop.permute.xlu1 %11473  ;;  %11287 = vmatprep.subr.bf16.mxu0 %v11270_v61  ;;  %12511 = vrot.lane.b32.xlu0 %v20335_v50, %s17091_s23  ;;  %v11269_v50 = vsel %vm285_vm1, %v20483_v24, %v20502_v33 }
 0x7ef   :  { %16276 = vmatmul.mubr.msk.bf16.vlgmr.msra.gmra.mrb[168].mxu1 %vm10916_vm8, %v20569_v6  ;;  %v11482_v38 = vsel %vm348_vm2, %v20580_v57, %v20587_v56 }
 0x7f0   :  { %11211 = vmatpush1.bf16.msra.mxu1 %v20339_v31  ;;  %11242 = vmatprep.mubr.bf16.mxu1 %v21635_v11  ;;  %v20609_v55 = vpop.permute.xlu0 %11673  ;;  %v11274_v31 = vsel %vm285_vm1, %v11264_v5, %v20553_v4 }
 0x7f1   :  { %11328 = vmatprep.subr.bf16.mxu1 %v11272_v3 }
 0x7f2   :  { %v20595_v44 = vpop.permute.xlu1 %11675  ;;  %12515 = vrot.lane.b32.xlu0 %v20347_v17, %s17091_s23  ;;  %v11271_v17 = vsel %vm285_vm1, %v20495_v20, %v20519_v63 }
 0x7f3   :  { %v11688_v49 = vsel %vm411_vm3, %v20595_v44, %v20591_v37  ;;  %v11687_v2 = vsel %vm411_vm3, %v20609_v55, %v20595_v44 }
 0x7f4   :  { %16277 = vmatmul.mubr.msk.bf16.vlgmr.msra.gmra.mrb[172].mxu0 %vm10916_vm8, %v20569_v6  ;;  %v20614_v14 = vpop.permute.xlu0 %11679 }
 0x7f5   :  { %11288 = vmatpush1.bf16.msra.mxu0 %v11269_v50  ;;  %11319 = vmatprep.mubr.bf16.mxu0 %v21635_v11  ;;  %v11689_v51 = vsel %vm411_vm3, %v20591_v37, %v20614_v14 }
 0x7f6   :  { %v11672_v15 = vpop.permute.xlu1 %11671  ;;  %11369 = vmatprep.subr.bf16.mxu0 %v11274_v31 }
 0x7f7   :  { %16278 = vmatmul.mubr.msk.bf16.vlgmr.msra.gmra.mrb[172].mxu1 %vm10916_vm8, %v20569_v6  ;;  %v11686_v35 = vsel %vm411_vm3, %v11672_v15, %v20609_v55 }
 0x7f8   :  { %11329 = vmatpush1.bf16.msra.mxu1 %v11271_v17  ;;  %11360 = vmatprep.mubr.bf16.mxu1 %v21635_v11  ;;  %v20631_v0 = vpop.permute.xlu0 %11885 }
 0x7fa   :  { %v11670_v10 = vpop.permute.xlu1 %11669 }
 0x7fb   :  { %v11685_v62 = vsel %vm411_vm3, %v11670_v10, %v11672_v15 }
 0x7fc   :  { %16280 = vmatmul.mubr.msk.bf16.vlgmr.msra.gmra.mrb[176].mxu0 %vm10916_vm8, %v20624_v25  ;;  %v20639_v8 = vpop.permute.xlu0 %11881 }
 0x7fd   :  { %11370 = vmatpush1.bf16.msra.mxu0 %v11273_v54  ;;  %11401 = vmatprep.mubr.bf16.mxu0 %v21635_v11 }
 0x7fe   :  { %v20637_v47 = vpop.permute.xlu1 %11681  ;;  %11495 = vmatprep.subr.bf16.mxu0 %v11478_v58 }
 0x7ff   :  { %16281 = vmatmul.mubr.msk.bf16.vlgmr.msra.gmra.mrb[176].mxu1 %vm10916_vm8, %v20624_v25  ;;  %v11690_v33 = vsel %vm411_vm3, %v20614_v14, %v20637_v47 }
 0x800   :  { %11442 = vmatprep.mubr.bf16.mxu1 %v21635_v11  ;;  %v11268_v29 = vpop.permute.xlu0 %11267 }
 0x801   :  { %11410 = vmatprep.subr.bf16.mxu1 %v11268_v29  ;;  %v11275_v9 = vsel %vm285_vm1, %v20553_v4, %v11268_v29 }
 0x802   :  { %v20643_v36 = vpop.permute.xlu1 %11883  ;;  %11411 = vmatpush1.bf16.msra.mxu1 %v11275_v9 }
 0x803   :  { %11536 = vmatprep.subr.bf16.mxu1 %v11480_v7  ;;  %v11896_v37 = vsel %vm474_vm4, %v20643_v36, %v20631_v0 }
 0x804   :  { %16282 = vmatmul.mubr.msk.bf16.vlgmr.msra.gmra.mrb[180].mxu0 %vm10916_vm8, %v20624_v25  ;;  %v11476_v16 = vpop.permute.xlu0 %11475 }
 0x805   :  { %11496 = vmatpush1.bf16.msra.mxu0 %v11477_v22  ;;  %11527 = vmatprep.mubr.bf16.mxu0 %v21635_v11  ;;  %v11483_v53 = vsel %vm348_vm2, %v20587_v56, %v11476_v16  ;;  %v20769_v22 = vld [vmem:[%s21435_s8 + $0x5] sm:$0x1] }
 0x806   :  { %v20655_v18 = vpop.permute.xlu1 %11879  ;;  %11577 = vmatprep.subr.bf16.mxu0 %v11482_v38 }
 0x807   :  { %16283 = vmatmul.mubr.msk.bf16.vlgmr.msra.gmra.mrb[180].mxu1 %vm10916_vm8, %v20624_v25  ;;  %v11894_v5 = vsel %vm474_vm4, %v20655_v18, %v20639_v8 }
 0x808   :  { %11537 = vmatpush1.bf16.msra.mxu1 %v11479_v45  ;;  %11568 = vmatprep.mubr.bf16.mxu1 %v21635_v11  ;;  %v11684_v41 = vpop.permute.xlu0 %11683 }
 0x809   :  { %11618 = vmatprep.subr.bf16.mxu1 %v11476_v16  ;;  %v11691_v57 = vsel %vm411_vm3, %v20637_v47, %v11684_v41  ;;  %v11895_v47 = vsel %vm474_vm4, %v20639_v8, %v20643_v36 }
 0x80a   :  { %v20671_v60 = vpop.permute.xlu1 %11877 }
 0x80b   :  { %v11893_v44 = vsel %vm474_vm4, %v20671_v60, %v20655_v18 }
 0x80c   :  { %16285 = vmatmul.mubr.msk.bf16.vlgmr.msra.gmra.mrb[184].mxu0 %vm10916_vm8, %v20666_v23  ;;  %v10773_v28 = vpop.permute.xlu0 %10772 }
 0x80d   :  { %11578 = vmatpush1.bf16.msra.mxu0 %v11481_v46  ;;  %11609 = vmatprep.mubr.bf16.mxu0 %v21635_v11 }
 0x80e   :  { %v10771_v43 = vpop.permute.xlu1 %10770  ;;  %11703 = vmatprep.subr.bf16.mxu0 %v11686_v35 }
 0x80f   :  { %10833 = vst.msk [vmem:[#allocation4 + $0x80] sm:$0xff] %vm3793_vm12, %v10771_v43  ;;  %v10802_v24 = vsel %vm804_vm13, %v10771_v43, %v10773_v28  ;;  %16286 = vmatmul.mubr.msk.bf16.vlgmr.msra.gmra.mrb[184].mxu1 %vm10916_vm8, %v20666_v23 }
 0x810   :  { %11619 = vmatpush1.bf16.msra.mxu1 %v11483_v53  ;;  %11650 = vmatprep.mubr.bf16.mxu1 %v21635_v11  ;;  %v10789_v20 = vpop.permute.xlu0 %10788 }
 0x811   :  { %11744 = vmatprep.subr.bf16.mxu1 %v11688_v49 }
 0x812   :  { %v10787_v26 = vpop.permute.xlu1 %10786 }
 0x813   :  { %10841 = vst.msk [vmem:[#allocation4 + $0xc0] sm:$0xff] %vm3793_vm12, %v10787_v26  ;;  %v10809_v34 = vsel %vm804_vm13, %v10787_v26, %v10789_v20 }
 0x814   :  { %16287 = vmatmul.mubr.msk.bf16.vlgmr.msra.gmra.mrb[188].mxu0 %vm10916_vm8, %v20666_v23  ;;  %v20701_v1 = vpack.c.bf16 %v10809_v34, %v10802_v24  ;;  %v10777_v30 = vpop.permute.xlu0 %10776 }
 0x815   :  { %11704 = vmatpush1.bf16.msra.mxu0 %v11685_v62  ;;  %11735 = vmatprep.mubr.bf16.mxu0 %v21635_v11 }
 0x816   :  { %v10775_v52 = vpop.permute.xlu1 %10774  ;;  %11785 = vmatprep.subr.bf16.mxu0 %v11690_v33  ;;  %12762 = vrot.lane.b32.xlu1 %v20701_v1, %s17084_s17  ;;  %v12728_v3 = vld [vmem:[#allocation4 + $0x80] sm:$0xff] }
 0x817   :  { %v10803_v40 = vsel %vm804_vm13, %v10773_v28, %v10775_v52  ;;  %v10804_v63 = vsel %vm804_vm13, %v10775_v52, %v10777_v30  ;;  %16288 = vmatmul.mubr.msk.bf16.vlgmr.msra.gmra.mrb[188].mxu1 %vm10916_vm8, %v20666_v23 }
 0x818   :  { %11745 = vmatpush1.bf16.msra.mxu1 %v11687_v2  ;;  %11776 = vmatprep.mubr.bf16.mxu1 %v21635_v11  ;;  %v10791_v32 = vpop.permute.xlu0 %10790 }
 0x819   :  { %11826 = vmatprep.subr.bf16.mxu1 %v11684_v41  ;;  %v10810_v42 = vsel %vm804_vm13, %v10789_v20, %v10791_v32 }
 0x81a   :  { %v10779_v39 = vpop.permute.xlu1 %10778  ;;  %v12736_v61 = vld [vmem:[#allocation4 + $0xc0] sm:$0xff]  ;;  %v20771_v29 = vpack.c.bf16 %v10810_v42, %v10803_v40 }
 0x81b   :  { %v10805_v12 = vsel %vm804_vm13, %v10777_v30, %v10779_v39  ;;  %v20748_v55 = vpack.c.bf16 %v12736_v61, %v12728_v3  ;;  %v20823_v30 = vld [vmem:[%s21435_s8 + $0x6] sm:$0x1] }
 0x81c   :  { %16290 = vmatmul.mubr.msk.bf16.vlgmr.msra.gmra.mrb[192].mxu0 %vm10916_vm8, %v20715_v59  ;;  %v10781_v13 = vpop.permute.xlu0 %10780 }
 0x81d   :  { %11786 = vmatpush1.bf16.msra.mxu0 %v11689_v51  ;;  %11817 = vmatprep.mubr.bf16.mxu0 %v21635_v11  ;;  %v10806_v48 = vsel %vm804_vm13, %v10779_v39, %v10781_v13 }
 0x81e   :  { %v10793_v21 = vpop.permute.xlu1 %10792  ;;  %11911 = vmatprep.subr.bf16.mxu0 %v11894_v5 }
 0x81f   :  { %v10811_v19 = vsel %vm804_vm13, %v10791_v32, %v10793_v21  ;;  %16291 = vmatmul.mubr.msk.bf16.vlgmr.msra.gmra.mrb[192].mxu1 %vm10916_vm8, %v20715_v59 }
 0x820   :  { %v20730_v4 = vpack.c.bf16 %v10811_v19, %v10804_v63  ;;  %11827 = vmatpush1.bf16.msra.mxu1 %v11691_v57  ;;  %11858 = vmatprep.mubr.bf16.mxu1 %v21635_v11  ;;  %v10795_v50 = vpop.permute.xlu0 %10794 }
 0x821   :  { %11952 = vmatprep.subr.bf16.mxu1 %v11896_v37  ;;  %v10812_v31 = vsel %vm804_vm13, %v10793_v21, %v10795_v50  ;;  %v20863_v37 = vld [vmem:[%s21435_s8 + $0x7] sm:$0x1] }
 0x822   :  { %v10797_v56 = vpop.permute.xlu1 %10796  ;;  %12766 = vrot.lane.b32.xlu1 %v20730_v4, %s17084_s17  ;;  %v20753_v17 = vpack.c.bf16 %v10812_v31, %v10805_v12 }
 0x823   :  { %v10813_v15 = vsel %vm804_vm13, %v10795_v50, %v10797_v56 }
 0x824   :  { %16292 = vmatmul.mubr.msk.bf16.vlgmr.msra.gmra.mrb[196].mxu0 %vm10916_vm8, %v20715_v59  ;;  %v10785_v54 = vpop.permute.xlu0 %10784  ;;  %12768 = vrot.lane.b32.xlu0 %v20753_v17, %s17084_s17  ;;  %v20782_v18 = vpack.c.bf16 %v10813_v15, %v10806_v48 }
 0x825   :  { %11912 = vmatpush1.bf16.msra.mxu0 %v11893_v44  ;;  %11943 = vmatprep.mubr.bf16.mxu0 %v21635_v11 }
 0x826   :  { %v10783_v14 = vpop.permute.xlu1 %10782  ;;  %12760 = vrot.lane.b32.xlu1 %v20748_v55, %s17084_s17 }
 0x827   :  { %v10807_v10 = vsel %vm804_vm13, %v10781_v13, %v10783_v14  ;;  %v10808_v58 = vsel %vm804_vm13, %v10783_v14, %v10785_v54  ;;  %16293 = vmatmul.mubr.msk.bf16.vlgmr.msra.gmra.mrb[196].mxu1 %vm10916_vm8, %v20715_v59 }
 0x828   :  { %10840 = vst.msk [vmem:[#allocation4 + $0xb8] sm:$0xff] %vm3801_vm14, %v10808_v58  ;;  %11953 = vmatpush1.bf16.msra.mxu1 %v11895_v47  ;;  %11984 = vmatprep.mubr.bf16.mxu1 %v21635_v11  ;;  %v10799_v9 = vpop.permute.xlu0 %10798 }
 0x829   :  { %12764 = vrot.lane.b32.xlu0 %v20771_v29, %s17084_s17  ;;  %v10814_v8 = vsel %vm804_vm13, %v10797_v56, %v10799_v9 }
 0x82a   :  { %v10801_v38 = vpop.permute.xlu1 %10800  ;;  %v20785_v16 = vpack.c.bf16 %v10814_v8, %v10807_v10 }
 0x82b   :  { %v10815_v36 = vsel %vm804_vm13, %v10799_v9, %v10801_v38 }
 0x82c   :  { %16295 = vmatmul.mubr.msk.bf16.vlgmr.msra.gmra.mrb[200].mxu0 %vm10916_vm8, %v20769_v22  ;;  %10848 = vst.msk [vmem:[#allocation4 + $0xf8] sm:$0xff] %vm3801_vm14, %v10815_v36  ;;  %v11888_v45 = vpop.permute.xlu0 %11887  ;;  %12772 = vrot.lane.b32.xlu1 %v20785_v16, %s17084_s17 }
 0x82d   :  { %12025 = vmatprep.mubr.bf16.mxu0 %v21635_v11  ;;  %12770 = vrot.lane.b32.xlu0 %v20782_v18, %s17084_s17  ;;  %v11897_v41 = vsel %vm474_vm4, %v20631_v0, %v11888_v45 }
 0x82e   :  { %v11890_v7 = vpop.permute.xlu1 %11889 }
 0x82f   :  { %16296 = vmatmul.mubr.msk.bf16.vlgmr.msra.gmra.mrb[200].mxu1 %vm10916_vm8, %v20769_v22  ;;  %v11898_v60 = vsel %vm474_vm4, %v11888_v45, %v11890_v7  ;;  %v12735_v43 = vld [vmem:[#allocation4 + $0xb8] sm:$0xff]  ;;  %v20903_v45 = vld [vmem:[%s21435_s8 + $0x8] sm:$0x1] }
 0x830   :  { %11993 = vmatprep.subr.bf16.mxu0 %v11898_v60  ;;  %12066 = vmatprep.mubr.bf16.mxu1 %v21635_v11  ;;  %v11892_v35 = vpop.permute.xlu0 %11891 }
 0x831   :  { %11994 = vmatpush1.bf16.msra.mxu0 %v11897_v41  ;;  %13125 = vrot.lane.b32.xlu1 %v20730_v4, %s17085_s18  ;;  %v11899_v24 = vsel %vm474_vm4, %v11890_v7, %v11892_v35 }
 0x832   :  { %v12092_v46 = vpop.permute.xlu1 %12091  ;;  %12034 = vmatprep.subr.bf16.mxu1 %v11892_v35 }
 0x833   :  { %v12743_v28 = vld [vmem:[#allocation4 + $0xf8] sm:$0xff]  ;;  %12035 = vmatpush1.bf16.msra.mxu1 %v11899_v24 }
 0x834   :  { %v20800_v53 = vpack.c.bf16 %v12743_v28, %v12735_v43  ;;  %16297 = vmatmul.mubr.msk.bf16.vlgmr.msra.gmra.mrb[204].mxu0 %vm10916_vm8, %v20769_v22  ;;  %v12094_v0 = vpop.permute.xlu0 %12093 }
 0x835   :  { %12151 = vmatprep.mubr.bf16.mxu0 %v21635_v11  ;;  %13121 = vrot.lane.b32.xlu1 %v20701_v1, %s17085_s18  ;;  %v12104_v49 = vsel %vm537_vm5, %v12092_v46, %v12094_v0 }
 0x836   :  { %v12088_v26 = vpop.permute.xlu1 %12087  ;;  %12774 = vrot.lane.b32.xlu0 %v20800_v53, %s17084_s17  ;;  %12160 = vmatprep.subr.bf16.mxu1 %v12104_v49 }
 0x837   :  { %16298 = vmatmul.mubr.msk.bf16.vlgmr.msra.gmra.mrb[204].mxu1 %vm10916_vm8, %v20769_v22 }
 0x838   :  { %12192 = vmatprep.mubr.bf16.mxu1 %v21635_v11  ;;  %v12090_v33 = vpop.permute.xlu0 %12089 }
 0x839   :  { %13119 = vrot.lane.b32.xlu1 %v20748_v55, %s17085_s18  ;;  %v12103_v34 = vsel %vm537_vm5, %v12090_v33, %v12092_v46  ;;  %v12102_v52 = vsel %vm537_vm5, %v12088_v26, %v12090_v33 }
 0x83a   :  { %v12086_v62 = vpop.permute.xlu1 %12085  ;;  %13127 = vrot.lane.b32.xlu0 %v20753_v17, %s17085_s18  ;;  %12119 = vmatprep.subr.bf16.mxu0 %v12102_v52 }
 0x83b   :  { %v12101_v20 = vsel %vm537_vm5, %v12086_v62, %v12088_v26  ;;  %12161 = vmatpush1.bf16.msra.mxu1 %v12103_v34 }
 0x83c   :  { %12120 = vmatpush1.bf16.msra.mxu0 %v12101_v20  ;;  %v12096_v63 = vpop.permute.xlu0 %12095 }
 0x83d   :  { %13131 = vrot.lane.b32.xlu1 %v20785_v16, %s17085_s18  ;;  %v12105_v12 = vsel %vm537_vm5, %v12094_v0, %v12096_v63 }
 0x83e   :  { %v12098_v40 = vpop.permute.xlu1 %12097  ;;  %13123 = vrot.lane.b32.xlu0 %v20771_v29, %s17085_s18 }
 0x83f   :  { %16301 = vmatmul.mubr.msk.bf16.vlgmr.msra.gmra.mrb[208].mxu1 %vm10916_vm8, %v20823_v30  ;;  %v12106_v2 = vsel %vm537_vm5, %v12096_v63, %v12098_v40  ;;  %16300 = vmatmul.mubr.msk.bf16.vlgmr.msra.gmra.mrb[208].mxu0 %vm10916_vm8, %v20823_v30 }
 0x840   :  { %12201 = vmatprep.subr.bf16.mxu0 %v12106_v2  ;;  %12274 = vmatprep.mubr.bf16.mxu1 %v21635_v11  ;;  %v12100_v51 = vpop.permute.xlu0 %12099 }
 0x841   :  { %12202 = vmatpush1.bf16.msra.mxu0 %v12105_v12  ;;  %12233 = vmatprep.mubr.bf16.mxu0 %v21635_v11  ;;  %v12107_v32 = vsel %vm537_vm5, %v12098_v40, %v12100_v51 }
 0x842   :  { %v12300_v39 = vpop.permute.xlu1 %12299  ;;  %13129 = vrot.lane.b32.xlu0 %v20782_v18, %s17085_s18  ;;  %12242 = vmatprep.subr.bf16.mxu1 %v12100_v51  ;;  %v10849_v51 = vld [vmem:[%s21436_s9] sm:$0x3] }
 0x843   :  { %13328 = vrot.lane.b32.xlu1 %v20730_v4, %s17086_s19  ;;  %12243 = vmatpush1.bf16.msra.mxu1 %v12107_v32 }
 0x844   :  { %v12302_v42 = vpop.permute.xlu0 %12301 }
 0x845   :  { %v12312_v21 = vsel %vm600_vm6, %v12300_v39, %v12302_v42 }
 0x846   :  { %v12296_v5 = vpop.permute.xlu1 %12295  ;;  %13133 = vrot.lane.b32.xlu0 %v20800_v53, %s17085_s18  ;;  %12368 = vmatprep.subr.bf16.mxu1 %v12312_v21 }
 0x847   :  { %16303 = vmatmul.mubr.msk.bf16.vlgmr.msra.gmra.mrb[212].mxu1 %vm10916_vm8, %v20823_v30  ;;  %13324 = vrot.lane.b32.xlu1 %v20701_v1, %s17086_s19 }
 0x848   :  { %16302 = vmatmul.mubr.msk.bf16.vlgmr.msra.gmra.mrb[212].mxu0 %vm10916_vm8, %v20823_v30  ;;  %12400 = vmatprep.mubr.bf16.mxu1 %v21635_v11  ;;  %v12298_v48 = vpop.permute.xlu0 %12297 }
 0x849   :  { %12359 = vmatprep.mubr.bf16.mxu0 %v21635_v11  ;;  %v12311_v57 = vsel %vm600_vm6, %v12298_v48, %v12300_v39  ;;  %v12310_v61 = vsel %vm600_vm6, %v12296_v5, %v12298_v48 }
 0x84a   :  { %v12294_v19 = vpop.permute.xlu1 %12293  ;;  %13330 = vrot.lane.b32.xlu0 %v20753_v17, %s17086_s19  ;;  %12327 = vmatprep.subr.bf16.mxu0 %v12310_v61 }
 0x84b   :  { %v12309_v13 = vsel %vm600_vm6, %v12294_v19, %v12296_v5  ;;  %13322 = vrot.lane.b32.xlu1 %v20748_v55, %s17086_s19  ;;  %12369 = vmatpush1.bf16.msra.mxu1 %v12311_v57 }
 0x84c   :  { %12328 = vmatpush1.bf16.msra.mxu0 %v12309_v13  ;;  %v12304_v44 = vpop.permute.xlu0 %12303 }
 0x84d   :  { %v12313_v31 = vsel %vm600_vm6, %v12302_v42, %v12304_v44 }
 0x84e   :  { %v12306_v56 = vpop.permute.xlu1 %12305  ;;  %13326 = vrot.lane.b32.xlu0 %v20771_v29, %s17086_s19 }
 0x84f   :  { %16306 = vmatmul.mubr.msk.bf16.vlgmr.msra.gmra.mrb[216].mxu1 %vm10916_vm8, %v20863_v37  ;;  %v12314_v3 = vsel %vm600_vm6, %v12304_v44, %v12306_v56  ;;  %13334 = vrot.lane.b32.xlu1 %v20785_v16, %s17086_s19 }
 0x850   :  { %16305 = vmatmul.mubr.msk.bf16.vlgmr.msra.gmra.mrb[216].mxu0 %vm10916_vm8, %v20863_v37  ;;  %12409 = vmatprep.subr.bf16.mxu0 %v12314_v3  ;;  %v12308_v15 = vpop.permute.xlu0 %12307 }
 0x851   :  { %12410 = vmatpush1.bf16.msra.mxu0 %v12313_v31  ;;  %12482 = vmatprep.mubr.bf16.mxu1 %v21635_v11  ;;  %v12315_v14 = vsel %vm600_vm6, %v12306_v56, %v12308_v15 }
 0x852   :  { %v12508_v50 = vpop.permute.xlu1 %12507  ;;  %13332 = vrot.lane.b32.xlu0 %v20782_v18, %s17086_s19  ;;  %12441 = vmatprep.mubr.bf16.mxu0 %v21635_v11 }
 0x853   :  { %12450 = vmatprep.subr.bf16.mxu1 %v12308_v15  ;;  %13531 = vrot.lane.b32.xlu1 %v20730_v4, %s17087_s20 }
 0x854   :  { %12451 = vmatpush1.bf16.msra.mxu1 %v12315_v14 }
 0x855   :  { %v12510_v54 = vpop.permute.xlu0 %12509 }
 0x856   :  { %v12504_v10 = vpop.permute.xlu1 %12503  ;;  %13336 = vrot.lane.b32.xlu0 %v20800_v53, %s17086_s19  ;;  %v12520_v47 = vsel %vm76_vm7, %v12508_v50, %v12510_v54 }
 0x857   :  { %16308 = vmatmul.mubr.msk.bf16.vlgmr.msra.gmra.mrb[220].mxu1 %vm10916_vm8, %v20863_v37  ;;  %13527 = vrot.lane.b32.xlu1 %v20701_v1, %s17087_s20 }
 0x858   :  { %16307 = vmatmul.mubr.msk.bf16.vlgmr.msra.gmra.mrb[220].mxu0 %vm10916_vm8, %v20863_v37  ;;  %12608 = vmatprep.mubr.bf16.mxu1 %v21635_v11 }
 0x859   :  { %12576 = vmatprep.subr.bf16.mxu1 %v12520_v47  ;;  %12567 = vmatprep.mubr.bf16.mxu0 %v21635_v11 }
 0x85a   :  { %v12502_v58 = vpop.permute.xlu1 %12501  ;;  %13533 = vrot.lane.b32.xlu0 %v20753_v17, %s17087_s20  ;;  %v12506_v9 = vpop.permute.xlu0 %12505 }
 0x85b   :  { %v12517_v38 = vsel %vm76_vm7, %v12502_v58, %v12504_v10  ;;  %13525 = vrot.lane.b32.xlu1 %v20748_v55, %s17087_s20  ;;  %v12519_v8 = vsel %vm76_vm7, %v12506_v9, %v12508_v50  ;;  %v12518_v36 = vsel %vm76_vm7, %v12504_v10, %v12506_v9 }
 0x85c   :  { %12535 = vmatprep.subr.bf16.mxu0 %v12518_v36  ;;  %12577 = vmatpush1.bf16.msra.mxu1 %v12519_v8 }
 0x85d   :  { %12536 = vmatpush1.bf16.msra.mxu0 %v12517_v38 }
 0x85e   :  { %v12514_v7 = vpop.permute.xlu1 %12513  ;;  %13529 = vrot.lane.b32.xlu0 %v20771_v29, %s17087_s20 }
 0x85f   :  { %13537 = vrot.lane.b32.xlu1 %v20785_v16, %s17087_s20  ;;  %16311 = vmatmul.mubr.msk.bf16.vlgmr.msra.gmra.mrb[224].mxu1 %vm10916_vm8, %v20903_v45 }
 0x860   :  { %v12512_v60 = vpop.permute.xlu0 %12511  ;;  %16310 = vmatmul.mubr.msk.bf16.vlgmr.msra.gmra.mrb[224].mxu0 %vm10916_vm8, %v20903_v45  ;;  %12690 = vmatprep.mubr.bf16.mxu1 %v21635_v11 }
 0x861   :  { %v12522_v46 = vsel %vm76_vm7, %v12512_v60, %v12514_v7  ;;  %v12521_v41 = vsel %vm76_vm7, %v12510_v54, %v12512_v60  ;;  %12649 = vmatprep.mubr.bf16.mxu0 %v21635_v11 }
 0x862   :  { %12617 = vmatprep.subr.bf16.mxu0 %v12522_v46  ;;  %13535 = vrot.lane.b32.xlu0 %v20782_v18, %s17087_s20 }
 0x863   :  { %12618 = vmatpush1.bf16.msra.mxu0 %v12521_v41  ;;  %13734 = vrot.lane.b32.xlu1 %v20730_v4, %s17088_s10 }
 0x864   :  { %v12516_v35 = vpop.permute.xlu0 %12515 }
 0x865   :  { %v12523_v43 = vsel %vm76_vm7, %v12514_v7, %v12516_v35  ;;  %12658 = vmatprep.subr.bf16.mxu1 %v12516_v35 }
 0x866   :  { %12659 = vmatpush1.bf16.msra.mxu1 %v12523_v43  ;;  %13539 = vrot.lane.b32.xlu0 %v20800_v53, %s17087_s20 }
 0x867   :  { %13730 = vrot.lane.b32.xlu1 %v20701_v1, %s17088_s10 }
 0x868   :  { %16312 = vmatmul.mubr.msk.bf16.vlgmr.msra.gmra.mrb[228].mxu0 %vm10916_vm8, %v20903_v45 }
 0x869   :  { %16313 = vmatmul.mubr.msk.bf16.vlgmr.msra.gmra.mrb[228].mxu1 %vm10916_vm8, %v20903_v45  ;;  %12823 = vmatprep.mubr.bf16.mxu0 %v21635_v11 }
 0x86a   :  { %12864 = vmatprep.mubr.bf16.mxu1 %v21635_v11  ;;  %13736 = vrot.lane.b32.xlu0 %v20753_v17, %s17088_s10 }
 0x86b   :  { %13728 = vrot.lane.b32.xlu1 %v20748_v55, %s17088_s10 }
 0x86e   :  { %13732 = vrot.lane.b32.xlu0 %v20771_v29, %s17088_s10 }
 0x86f   :  { %13740 = vrot.lane.b32.xlu1 %v20785_v16, %s17088_s10 }
 0x872   :  { %13738 = vrot.lane.b32.xlu0 %v20782_v18, %s17088_s10 }
 0x873   :  { %13937 = vrot.lane.b32.xlu1 %v20730_v4, %s17089_s21 }
 0x876   :  { %13742 = vrot.lane.b32.xlu0 %v20800_v53, %s17088_s10 }
 0x877   :  { %13933 = vrot.lane.b32.xlu1 %v20701_v1, %s17089_s21 }
 0x87a   :  { %13939 = vrot.lane.b32.xlu0 %v20753_v17, %s17089_s21 }
 0x87b   :  { %13931 = vrot.lane.b32.xlu1 %v20748_v55, %s17089_s21 }
 0x87e   :  { %13935 = vrot.lane.b32.xlu0 %v20771_v29, %s17089_s21 }
 0x87f   :  { %13943 = vrot.lane.b32.xlu1 %v20785_v16, %s17089_s21 }
 0x882   :  { %13941 = vrot.lane.b32.xlu0 %v20782_v18, %s17089_s21 }
 0x883   :  { %14140 = vrot.lane.b32.xlu1 %v20730_v4, %s17090_s22 }
 0x886   :  { %13945 = vrot.lane.b32.xlu0 %v20800_v53, %s17089_s21  ;;  %s17094_s21 = smov [#allocation8]  }
 0x887   :  { %14136 = vrot.lane.b32.xlu1 %v20701_v1, %s17090_s22 }
 0x888   :  { %v12763_v28 = vpop.permute.xlu1 %12762 }
 0x88a   :  { %14142 = vrot.lane.b32.xlu0 %v20753_v17, %s17090_s22 }
 0x88b   :  { %14134 = vrot.lane.b32.xlu1 %v20748_v55, %s17090_s22 }
 0x88e   :  { %14138 = vrot.lane.b32.xlu0 %v20771_v29, %s17090_s22 }
 0x88f   :  { %14146 = vrot.lane.b32.xlu1 %v20785_v16, %s17090_s22 }
 0x892   :  { %14144 = vrot.lane.b32.xlu0 %v20782_v18, %s17090_s22 }
 0x893   :  { %14343 = vrot.lane.b32.xlu1 %v20730_v4, %s17091_s23 }
 0x894   :  { %v12767_v24 = vpop.permute.xlu1 %12766 }
 0x896   :  { %14148 = vrot.lane.b32.xlu0 %v20800_v53, %s17090_s22  ;;  %v12769_v26 = vpop.permute.xlu0 %12768  ;;  %s15890_s22 = sshll.u32 %s17094_s21, 4  ;;  %s15891_s22 = int_to_ptr.vmem [resolvable:$true] %s15890_s22 }
 0x897   :  { %14339 = vrot.lane.b32.xlu1 %v20701_v1, %s17091_s23  ;;  %v12779_v0 = vsel %vm222_vm0, %v12767_v24, %v12769_v26  ;;  %p17057_p9 = scmp.lt.s32.totalorder %s15891_s22, %s15891_s22 }
 0x898   :  { %12832 = vmatprep.subr.bf16.mxu1 %v12779_v0  ;;  %v12761_v49 = vpop.permute.xlu1 %12760 }
 0x899   :  { %v12776_v34 = vsel %vm222_vm0, %v12761_v49, %v12763_v28 }
 0x89a   :  { %14345 = vrot.lane.b32.xlu0 %v20753_v17, %s17091_s23 }
 0x89b   :  { %14337 = vrot.lane.b32.xlu1 %v20748_v55, %s17091_s23  ;;  %v12765_v62 = vpop.permute.xlu0 %12764 }
 0x89c   :  { %v12778_v20 = vsel %vm222_vm0, %v12765_v62, %v12767_v24  ;;  %v12777_v33 = vsel %vm222_vm0, %v12763_v28, %v12765_v62 }
 0x89d   :  { %12791 = vmatprep.subr.bf16.mxu0 %v12777_v33  ;;  %12833 = vmatpush1.bf16.msra.mxu1 %v12778_v20 }
 0x89e   :  { %14341 = vrot.lane.b32.xlu0 %v20771_v29, %s17091_s23  ;;  %12792 = vmatpush1.bf16.msra.mxu0 %v12776_v34  ;;  %v12773_v40 = vpop.permute.xlu1 %12772 }
 0x89f   :  { %14349 = vrot.lane.b32.xlu1 %v20785_v16, %s17091_s23  ;;  %v12771_v52 = vpop.permute.xlu0 %12770 }
 0x8a0   :  { %v12780_v63 = vsel %vm222_vm0, %v12769_v26, %v12771_v52  ;;  %v12781_v2 = vsel %vm222_vm0, %v12771_v52, %v12773_v40  ;;  %16315 = vmatmul.mubr.msk.bf16.vlgmr.msra.gmra.mrb[232].mxu1 %vm10916_vm8, %v20500_v27 }
 0x8a1   :  { %16314 = vmatmul.mubr.msk.bf16.vlgmr.msra.gmra.mrb[232].mxu0 %vm10916_vm8, %v20500_v27  ;;  %12873 = vmatprep.subr.bf16.mxu0 %v12781_v2 }
 0x8a2   :  { %14347 = vrot.lane.b32.xlu0 %v20782_v18, %s17091_s23  ;;  %12874 = vmatpush1.bf16.msra.mxu0 %v12780_v63 }
 0x8a3   :  { %v20994_v39 = vpop.f32.mrb[160].mxu0  ;;  %v13126_v5 = vpop.permute.xlu1 %13125  ;;  %12946 = vmatprep.mubr.bf16.mxu1 %v21635_v11  ;;  %12955 = vmatprep.subr.bf16.mxu0 %v20701_v1 }
 0x8a4   :  { %v21000_v12 = vpop.f32.mrb[161].mxu0  ;;  %12905 = vmatprep.mubr.bf16.mxu0 %v21635_v11  ;;  %12709 = vperm.xlu1 %16892, %v10849_v51  }
 0x8a5   :  { %v10958_v32 = vpop.f32.mrb[162].mxu0 }
 0x8a6   :  { %v10959_v42 = vpop.f32.mrb[163].mxu0  ;;  %14351 = vrot.lane.b32.xlu0 %v20800_v53, %s17091_s23  ;;  %s17052_s23 = scalar_lea.vmem %s15891_s22, 32 }
 0x8a7   :  { %v13122_v19 = vpop.permute.xlu1 %13121  ;;  %p17053_p8 = scmp.ne.s32.totalorder %s15891_s22, %s17052_s23  ;;  %p17058_p10 = scmp.lt.s32.totalorder %s17052_s23, %s17052_s23 }
 0x8a8   :  { %v12775_v21 = vpop.permute.xlu0 %12774 }
 0x8a9   :  { %v12782_v13 = vsel %vm222_vm0, %v12773_v40, %v12775_v21  ;;  %12914 = vmatprep.subr.bf16.mxu1 %v12775_v21  ;;  %16316 = vmatmul.mubr.msk.bf16.vlgmr.msra.gmra.mrb[236].mxu0 %vm10916_vm8, %v20500_v27  ;;  %vm14581_vm0 = vcmask 1040384   ;;  %p17059_p11 = por %p17058_p10, %p17057_p9 }
 0x8aa   :  { %12915 = vmatpush1.bf16.msra.mxu1 %v12782_v13  ;;  %12956 = vmatpush1.bf16.msra.mxu0 %v20748_v55 }
 0x8ab   :  { %v21013_v48 = vpop.f32.mrb[160].mxu1  ;;  %12996 = vmatprep.subr.bf16.mxu1 %v20730_v4  ;;  %v13120_v56 = vpop.permute.xlu1 %13119  ;;  %12987 = vmatprep.mubr.bf16.mxu0 %v21635_v11  ;;  %p17060_p12 = pnand %p17059_p11, %p17053_p8 }
 0x8ac   :  { %v21015_v57 = vpop.f32.mrb[161].mxu1  ;;  %v13128_v61 = vpop.permute.xlu0 %13127  ;;  %13037 = vmatprep.subr.bf16.mxu0 %v20782_v18  ;;  %v13135_v54 = vsel %vm285_vm1, %v13120_v56, %v13122_v19 }
 0x8ad   :  { %v10999_v1 = vpop.f32.mrb[162].mxu1  ;;  %16317 = vmatmul.mubr.msk.bf16.vlgmr.msra.gmra.mrb[236].mxu1 %vm10916_vm8, %v20500_v27  ;;  %v13138_v18 = vsel %vm285_vm1, %v13126_v5, %v13128_v61 }
 0x8ae   :  { %v11000_v44 = vpop.f32.mrb[163].mxu1  ;;  %12997 = vmatpush1.bf16.msra.mxu1 %v20771_v29  ;;  %13028 = vmatprep.mubr.bf16.mxu1 %v21635_v11 }
 0x8af   :  { %13078 = vmatprep.subr.bf16.mxu1 %v20800_v53  ;;  %v13132_v3 = vpop.permute.xlu1 %13131 }
 0x8b0   :  { %v13124_v4 = vpop.permute.xlu0 %13123 }
 0x8b1   :  { %v13136_v50 = vsel %vm285_vm1, %v13122_v19, %v13124_v4  ;;  %16318 = vmatmul.mubr.msk.bf16.vlgmr.msra.gmra.mrb[240].mxu0 %vm10916_vm8, %v20569_v6  ;;  %v13137_v9 = vsel %vm285_vm1, %v13124_v4, %v13126_v5 }
 0x8b2   :  { %13038 = vmatpush1.bf16.msra.mxu0 %v20753_v17  ;;  %13069 = vmatprep.mubr.bf16.mxu0 %v21635_v11 }
 0x8b3   :  { %13150 = vmatprep.subr.bf16.mxu0 %v13136_v50 }
 0x8b4   :  { %v13130_v55 = vpop.permute.xlu0 %13129 }
 0x8b5   :  { %16319 = vmatmul.mubr.msk.bf16.vlgmr.msra.gmra.mrb[240].mxu1 %vm10916_vm8, %v20569_v6  ;;  %v21035_v27 = vpop.permute.xlu1 %13328  ;;  %v13139_v0 = vsel %vm285_vm1, %v13128_v61, %v13130_v55 }
 0x8b6   :  { %13079 = vmatpush1.bf16.msra.mxu1 %v20785_v16  ;;  %13110 = vmatprep.mubr.bf16.mxu1 %v21635_v11  ;;  %v13140_v16 = vsel %vm285_vm1, %v13130_v55, %v13132_v3 }
 0x8b7   :  { %v11036_v29 = vpop.f32.mrb[164].mxu0  ;;  %13191 = vmatprep.subr.bf16.mxu1 %v13138_v18 }
 0x8b8   :  { %v11038_v53 = vpop.f32.mrb[165].mxu0  ;;  %v13134_v15 = vpop.permute.xlu0 %13133 }
 0x8b9   :  { %v11040_v31 = vpop.f32.mrb[166].mxu0  ;;  %v13325_v14 = vpop.permute.xlu1 %13324  ;;  %16320 = vmatmul.mubr.msk.bf16.vlgmr.msra.gmra.mrb[244].mxu0 %vm10916_vm8, %v20569_v6  ;;  %v13141_v52 = vsel %vm285_vm1, %v13132_v3, %v13134_v15 }
 0x8ba   :  { %v11041_v17 = vpop.f32.mrb[167].mxu0  ;;  %v11077_v10 = vpop.f32.mrb[164].mxu1  ;;  %13151 = vmatpush1.bf16.msra.mxu0 %v13135_v54  ;;  %13182 = vmatprep.mubr.bf16.mxu0 %v21635_v11 }
 0x8bb   :  { %v11079_v58 = vpop.f32.mrb[165].mxu1  ;;  %13232 = vmatprep.subr.bf16.mxu0 %v13140_v16 }
 0x8bc   :  { %v21043_v47 = vpop.permute.xlu0 %13330  ;;  %v11081_v38 = vpop.f32.mrb[166].mxu1 }
 0x8bd   :  { %16321 = vmatmul.mubr.msk.bf16.vlgmr.msra.gmra.mrb[244].mxu1 %vm10916_vm8, %v20569_v6  ;;  %v13323_v8 = vpop.permute.xlu1 %13322  ;;  %v11082_v46 = vpop.f32.mrb[167].mxu1  ;;  %v13341_v2 = vsel %vm348_vm2, %v21035_v27, %v21043_v47 }
 0x8be   :  { %13192 = vmatpush1.bf16.msra.mxu1 %v13137_v9  ;;  %13223 = vmatprep.mubr.bf16.mxu1 %v21635_v11 }
 0x8bf   :  { %v11121_v36 = vpop.f32.mrb[168].mxu0  ;;  %13273 = vmatprep.subr.bf16.mxu1 %v13134_v15 }
 0x8c0   :  { %v11122_v7 = vadd.f32 %v11121_v36, %v20994_v39  ;;  %v11123_v60 = vpop.f32.mrb[169].mxu0  ;;  %v13327_v43 = vpop.permute.xlu0 %13326 }
 0x8c1   :  { %v11124_v41 = vadd.f32 %v11123_v60, %v21000_v12  ;;  %v11125_v35 = vpop.f32.mrb[170].mxu0  ;;  %v21053_v24 = vpop.permute.xlu1 %13334  ;;  %v13339_v6 = vsel %vm348_vm2, %v13325_v14, %v13327_v43  ;;  %16322 = vmatmul.mubr.msk.bf16.vlgmr.msra.gmra.mrb[248].mxu0 %vm10916_vm8, %v20624_v25  ;;  %v13340_v3 = vsel %vm348_vm2, %v13327_v43, %v21035_v27 }
 0x8c2   :  { %v11126_v28 = vpop.f32.mrb[171].mxu0  ;;  %v11162_v26 = vpop.f32.mrb[168].mxu1  ;;  %13233 = vmatpush1.bf16.msra.mxu0 %v13139_v0  ;;  %13264 = vmatprep.mubr.bf16.mxu0 %v21635_v11 }
 0x8c3   :  { %v11163_v49 = vadd.f32 %v11162_v26, %v21013_v48  ;;  %v11164_v62 = vpop.f32.mrb[169].mxu1  ;;  %13353 = vmatprep.subr.bf16.mxu0 %v13339_v6  ;;  %v13338_v48 = vsel %vm348_vm2, %v13323_v8, %v13325_v14 }
 0x8c4   :  { %v13333_v20 = vpop.permute.xlu0 %13332  ;;  %v11165_v33 = vadd.f32 %v11164_v62, %v21015_v57  ;;  %v11166_v34 = vpop.f32.mrb[170].mxu1 }
 0x8c5   :  { %16323 = vmatmul.mubr.msk.bf16.vlgmr.msra.gmra.mrb[248].mxu1 %vm10916_vm8, %v20624_v25  ;;  %v21065_v40 = vpop.permute.xlu1 %13531  ;;  %v11167_v51 = vpop.f32.mrb[171].mxu1  ;;  %v13343_v56 = vsel %vm348_vm2, %v13333_v20, %v21053_v24 }
 0x8c6   :  { %13274 = vmatpush1.bf16.msra.mxu1 %v13141_v52  ;;  %13305 = vmatprep.mubr.bf16.mxu1 %v21635_v11 }
 0x8c7   :  { %v11203_v63 = vpop.f32.mrb[172].mxu0  ;;  %13394 = vmatprep.subr.bf16.mxu1 %v13341_v2 }
 0x8c8   :  { %v11204_v39 = vadd.f32 %v11203_v63, %v11036_v29  ;;  %v11205_v12 = vpop.f32.mrb[173].mxu0  ;;  %v13337_v42 = vpop.permute.xlu0 %13336 }
 0x8c9   :  { %v11206_v32 = vadd.f32 %v11205_v12, %v11038_v53  ;;  %v11207_v5 = vpop.f32.mrb[174].mxu0  ;;  %v13528_v19 = vpop.permute.xlu1 %13527  ;;  %16324 = vmatmul.mubr.msk.bf16.vlgmr.msra.gmra.mrb[252].mxu0 %vm10916_vm8, %v20624_v25  ;;  %v13344_v36 = vsel %vm348_vm2, %v21053_v24, %v13337_v42 }
 0x8ca   :  { %v11208_v21 = vpop.f32.mrb[175].mxu0  ;;  %v11244_v13 = vpop.f32.mrb[172].mxu1  ;;  %13354 = vmatpush1.bf16.msra.mxu0 %v13338_v48  ;;  %13385 = vmatprep.mubr.bf16.mxu0 %v21635_v11 }
 0x8cb   :  { %v11245_v57 = vadd.f32 %v11244_v13, %v11077_v10  ;;  %v11246_v1 = vpop.f32.mrb[173].mxu1  ;;  %13435 = vmatprep.subr.bf16.mxu0 %v13343_v56 }
 0x8cc   :  { %v21074_v61 = vpop.permute.xlu0 %13533  ;;  %v11247_v44 = vadd.f32 %v11246_v1, %v11079_v58  ;;  %v11248_v4 = vpop.f32.mrb[174].mxu1 }
 0x8cd   :  { %16325 = vmatmul.mubr.msk.bf16.vlgmr.msra.gmra.mrb[252].mxu1 %vm10916_vm8, %v20624_v25  ;;  %v13526_v50 = vpop.permute.xlu1 %13525  ;;  %v11249_v53 = vpop.f32.mrb[175].mxu1  ;;  %v13342_v25 = vsel %vm348_vm2, %v21043_v47, %v13333_v20  ;;  %v13544_v60 = vsel %vm411_vm3, %v21065_v40, %v21074_v61 }
 0x8ce   :  { %13395 = vmatpush1.bf16.msra.mxu1 %v13340_v3  ;;  %13426 = vmatprep.mubr.bf16.mxu1 %v21635_v11 }
 0x8cf   :  { %v11321_v55 = vpop.f32.mrb[176].mxu0  ;;  %13476 = vmatprep.subr.bf16.mxu1 %v13337_v42 }
 0x8d0   :  { %v11451_v29 = vadd.f32 %v11321_v55, %v11122_v7  ;;  %v11323_v18 = vpop.f32.mrb[177].mxu0  ;;  %v13530_v17 = vpop.permute.xlu0 %13529 }
 0x8d1   :  { %v11452_v31 = vadd.f32 %v11323_v18, %v11124_v41  ;;  %v11325_v15 = vpop.f32.mrb[178].mxu0  ;;  %v21084_v10 = vpop.permute.xlu1 %13537  ;;  %v13542_v27 = vsel %vm411_vm3, %v13528_v19, %v13530_v17  ;;  %16326 = vmatmul.mubr.msk.bf16.vlgmr.msra.gmra.mrb[0].mxu0 %vm10916_vm8, %v20666_v23  ;;  %v13543_v2 = vsel %vm411_vm3, %v13530_v17, %v21065_v40 }
 0x8d2   :  { %v11326_v14 = vpop.f32.mrb[179].mxu0  ;;  %v11362_v54 = vpop.f32.mrb[176].mxu1  ;;  %13436 = vmatpush1.bf16.msra.mxu0 %v13342_v25  ;;  %13467 = vmatprep.mubr.bf16.mxu0 %v21635_v11 }
 0x8d3   :  { %v11453_v58 = vadd.f32 %v11362_v54, %v11163_v49  ;;  %v11364_v16 = vpop.f32.mrb[177].mxu1  ;;  %13556 = vmatprep.subr.bf16.mxu0 %v13542_v27  ;;  %v13541_v49 = vsel %vm411_vm3, %v13526_v50, %v13528_v19 }
 0x8d4   :  { %v13536_v38 = vpop.permute.xlu0 %13535  ;;  %v11454_v9 = vadd.f32 %v11364_v16, %v11165_v33  ;;  %v11366_v8 = vpop.f32.mrb[178].mxu1 }
 0x8d5   :  { %16327 = vmatmul.mubr.msk.bf16.vlgmr.msra.gmra.mrb[0].mxu1 %vm10916_vm8, %v20666_v23  ;;  %v11367_v47 = vpop.f32.mrb[179].mxu1  ;;  %v21099_v46 = vpop.permute.xlu1 %13734  ;;  %v13546_v34 = vsel %vm411_vm3, %v13536_v38, %v21084_v10 }
 0x8d6   :  { %13477 = vmatpush1.bf16.msra.mxu1 %v13344_v36  ;;  %13508 = vmatprep.mubr.bf16.mxu1 %v21635_v11 }
 0x8d7   :  { %v11403_v7 = vpop.f32.mrb[180].mxu0  ;;  %13597 = vmatprep.subr.bf16.mxu1 %v13544_v60 }
 0x8d8   :  { %v11455_v41 = vadd.f32 %v11403_v7, %v11204_v39  ;;  %v11405_v35 = vpop.f32.mrb[181].mxu0  ;;  %v13540_v24 = vpop.permute.xlu0 %13539 }
 0x8d9   :  { %v11456_v43 = vadd.f32 %v11405_v35, %v11206_v32  ;;  %v11407_v28 = vpop.f32.mrb[182].mxu0  ;;  %v13731_v26 = vpop.permute.xlu1 %13730  ;;  %16328 = vmatmul.mubr.msk.bf16.vlgmr.msra.gmra.mrb[4].mxu0 %vm10916_vm8, %v20666_v23  ;;  %v13547_v50 = vsel %vm411_vm3, %v21084_v10, %v13540_v24 }
 0x8da   :  { %v11408_v6 = vpop.f32.mrb[183].mxu0  ;;  %v11444_v0 = vpop.f32.mrb[180].mxu1  ;;  %13557 = vmatpush1.bf16.msra.mxu0 %v13541_v49  ;;  %13588 = vmatprep.mubr.bf16.mxu0 %v21635_v11 }
 0x8db   :  { %v11457_v62 = vadd.f32 %v11444_v0, %v11245_v57  ;;  %v11446_v20 = vpop.f32.mrb[181].mxu1  ;;  %13638 = vmatprep.subr.bf16.mxu0 %v13546_v34 }
 0x8dc   :  { %v21105_v33 = vpop.permute.xlu0 %13736  ;;  %v11458_v52 = vadd.f32 %v11446_v20, %v11247_v44  ;;  %v11448_v63 = vpop.f32.mrb[182].mxu1 }
 0x8dd   :  { %16329 = vmatmul.mubr.msk.bf16.vlgmr.msra.gmra.mrb[4].mxu1 %vm10916_vm8, %v20666_v23  ;;  %v11449_v12 = vpop.f32.mrb[183].mxu1  ;;  %v13729_v51 = vpop.permute.xlu1 %13728  ;;  %v13545_v23 = vsel %vm411_vm3, %v21074_v61, %v13536_v38 }
 0x8de   :  { %13598 = vmatpush1.bf16.msra.mxu1 %v13543_v2  ;;  %13629 = vmatprep.mubr.bf16.mxu1 %v21635_v11  ;;  %v13744_v25 = vsel %vm474_vm4, %v13729_v51, %v13731_v26 }
 0x8df   :  { %v11529_v39 = vpop.f32.mrb[184].mxu0  ;;  %13679 = vmatprep.subr.bf16.mxu1 %v13540_v24 }
 0x8e0   :  { %v11659_v32 = vadd.f32 %v11529_v39, %v11451_v29  ;;  %v11531_v5 = vpop.f32.mrb[185].mxu0  ;;  %v13733_v19 = vpop.permute.xlu0 %13732  ;;  %v13747_v29 = vsel %vm474_vm4, %v21099_v46, %v21105_v33 }
 0x8e1   :  { %v11660_v42 = vadd.f32 %v11531_v5, %v11452_v31  ;;  %v11533_v21 = vpop.f32.mrb[186].mxu0  ;;  %v21115_v48 = vpop.permute.xlu1 %13740  ;;  %v13745_v40 = vsel %vm474_vm4, %v13731_v26, %v13733_v19  ;;  %16330 = vmatmul.mubr.msk.bf16.vlgmr.msra.gmra.mrb[8].mxu0 %vm10916_vm8, %v20715_v59  ;;  %v13746_v7 = vsel %vm474_vm4, %v13733_v19, %v21099_v46 }
 0x8e2   :  { %v11534_v13 = vpop.f32.mrb[187].mxu0  ;;  %v11570_v57 = vpop.f32.mrb[184].mxu1  ;;  %13639 = vmatpush1.bf16.msra.mxu0 %v13545_v23  ;;  %13670 = vmatprep.mubr.bf16.mxu0 %v21635_v11 }
 0x8e3   :  { %v11661_v1 = vadd.f32 %v11570_v57, %v11453_v58  ;;  %v11572_v56 = vpop.f32.mrb[185].mxu1  ;;  %13759 = vmatprep.subr.bf16.mxu0 %v13745_v40 }
 0x8e4   :  { %v13739_v44 = vpop.permute.xlu0 %13738  ;;  %v11662_v4 = vadd.f32 %v11572_v56, %v11454_v9  ;;  %v11574_v3 = vpop.f32.mrb[186].mxu1 }
 0x8e5   :  { %16331 = vmatmul.mubr.msk.bf16.vlgmr.msra.gmra.mrb[8].mxu1 %vm10916_vm8, %v20715_v59  ;;  %v11575_v61 = vpop.f32.mrb[187].mxu1  ;;  %v21130_v18 = vpop.permute.xlu1 %13937  ;;  %v13749_v8 = vsel %vm474_vm4, %v13739_v44, %v21115_v48 }
 0x8e6   :  { %13680 = vmatpush1.bf16.msra.mxu1 %v13547_v50  ;;  %13711 = vmatprep.mubr.bf16.mxu1 %v21635_v11 }
 0x8e7   :  { %v11611_v55 = vpop.f32.mrb[188].mxu0  ;;  %13800 = vmatprep.subr.bf16.mxu1 %v13747_v29 }
 0x8e8   :  { %v11663_v53 = vadd.f32 %v11611_v55, %v11455_v41  ;;  %v11613_v31 = vpop.f32.mrb[189].mxu0  ;;  %v13743_v14 = vpop.permute.xlu0 %13742 }
 0x8e9   :  { %v11664_v15 = vadd.f32 %v11613_v31, %v11456_v43  ;;  %v11615_v17 = vpop.f32.mrb[190].mxu0  ;;  %v13934_v27 = vpop.permute.xlu1 %13933  ;;  %16332 = vmatmul.mubr.msk.bf16.vlgmr.msra.gmra.mrb[12].mxu0 %vm10916_vm8, %v20715_v59  ;;  %v13750_v2 = vsel %vm474_vm4, %v21115_v48, %v13743_v14 }
 0x8ea   :  { %v11616_v10 = vpop.f32.mrb[191].mxu0  ;;  %v11652_v54 = vpop.f32.mrb[188].mxu1  ;;  %13760 = vmatpush1.bf16.msra.mxu0 %v13744_v25  ;;  %13791 = vmatprep.mubr.bf16.mxu0 %v21635_v11 }
 0x8eb   :  { %v11665_v58 = vadd.f32 %v11652_v54, %v11457_v62  ;;  %v11654_v16 = vpop.f32.mrb[189].mxu1  ;;  %13841 = vmatprep.subr.bf16.mxu0 %v13749_v8 }
 0x8ec   :  { %v21136_v38 = vpop.permute.xlu0 %13939  ;;  %v11666_v9 = vadd.f32 %v11654_v16, %v11458_v52  ;;  %v11656_v36 = vpop.f32.mrb[190].mxu1 }
 0x8ed   :  { %16333 = vmatmul.mubr.msk.bf16.vlgmr.msra.gmra.mrb[12].mxu1 %vm10916_vm8, %v20715_v59  ;;  %v11657_v60 = vpop.f32.mrb[191].mxu1  ;;  %v13932_v43 = vpop.permute.xlu1 %13931  ;;  %v13748_v59 = vsel %vm474_vm4, %v21105_v33, %v13739_v44 }
 0x8ee   :  { %13801 = vmatpush1.bf16.msra.mxu1 %v13746_v7  ;;  %13832 = vmatprep.mubr.bf16.mxu1 %v21635_v11  ;;  %v13947_v57 = vsel %vm537_vm5, %v13932_v43, %v13934_v27 }
 0x8ef   :  { %v11737_v47 = vpop.f32.mrb[192].mxu0  ;;  %13882 = vmatprep.subr.bf16.mxu1 %v13743_v14 }
 0x8f0   :  { %v11867_v41 = vadd.f32 %v11737_v47, %v11659_v32  ;;  %v11739_v35 = vpop.f32.mrb[193].mxu0  ;;  %v13936_v6 = vpop.permute.xlu0 %13935  ;;  %v13950_v32 = vsel %vm537_vm5, %v21130_v18, %v21136_v38 }
 0x8f1   :  { %v11868_v28 = vadd.f32 %v11739_v35, %v11660_v42  ;;  %v11741_v24 = vpop.f32.mrb[194].mxu0  ;;  %v21146_v49 = vpop.permute.xlu1 %13943  ;;  %v13948_v46 = vsel %vm537_vm5, %v13934_v27, %v13936_v6  ;;  %16334 = vmatmul.mubr.msk.bf16.vlgmr.msra.gmra.mrb[16].mxu0 %vm10916_vm8, %v20769_v22  ;;  %v13949_v50 = vsel %vm537_vm5, %v13936_v6, %v21130_v18 }
 0x8f2   :  { %v11742_v26 = vpop.f32.mrb[195].mxu0  ;;  %v11778_v0 = vpop.f32.mrb[192].mxu1  ;;  %13842 = vmatpush1.bf16.msra.mxu0 %v13748_v59  ;;  %13873 = vmatprep.mubr.bf16.mxu0 %v21635_v11 }
 0x8f3   :  { %v11869_v62 = vadd.f32 %v11778_v0, %v11661_v1  ;;  %v11780_v20 = vpop.f32.mrb[193].mxu1  ;;  %13962 = vmatprep.subr.bf16.mxu0 %v13948_v46 }
 0x8f4   :  { %v11870_v34 = vadd.f32 %v11780_v20, %v11662_v4  ;;  %v13942_v52 = vpop.permute.xlu0 %13941  ;;  %v11782_v63 = vpop.f32.mrb[194].mxu1 }
 0x8f5   :  { %16335 = vmatmul.mubr.msk.bf16.vlgmr.msra.gmra.mrb[16].mxu1 %vm10916_vm8, %v20769_v22  ;;  %v11783_v33 = vpop.f32.mrb[195].mxu1  ;;  %v21161_v5 = vpop.permute.xlu1 %14140  ;;  %v13952_v3 = vsel %vm537_vm5, %v13942_v52, %v21146_v49 }
 0x8f6   :  { %13883 = vmatpush1.bf16.msra.mxu1 %v13750_v2  ;;  %13914 = vmatprep.mubr.bf16.mxu1 %v21635_v11 }
 0x8f7   :  { %v11819_v39 = vpop.f32.mrb[196].mxu0  ;;  %14003 = vmatprep.subr.bf16.mxu1 %v13950_v32 }
 0x8f8   :  { %v11871_v12 = vadd.f32 %v11819_v39, %v11663_v53  ;;  %v11821_v51 = vpop.f32.mrb[197].mxu0  ;;  %v13946_v13 = vpop.permute.xlu0 %13945 }
 0x8f9   :  { %v11872_v42 = vadd.f32 %v11821_v51, %v11664_v15  ;;  %v11823_v21 = vpop.f32.mrb[198].mxu0  ;;  %v14137_v40 = vpop.permute.xlu1 %14136  ;;  %16336 = vmatmul.mubr.msk.bf16.vlgmr.msra.gmra.mrb[20].mxu0 %vm10916_vm8, %v20769_v22  ;;  %v13953_v36 = vsel %vm537_vm5, %v21146_v49, %v13946_v13 }
 0x8fa   :  { %v11824_v19 = vpop.f32.mrb[199].mxu0  ;;  %v11860_v48 = vpop.f32.mrb[196].mxu1  ;;  %13963 = vmatpush1.bf16.msra.mxu0 %v13947_v57  ;;  %13994 = vmatprep.mubr.bf16.mxu0 %v21635_v11 }
 0x8fb   :  { %v11873_v23 = vadd.f32 %v11860_v48, %v11665_v58  ;;  %v11862_v1 = vpop.f32.mrb[197].mxu1  ;;  %14044 = vmatprep.subr.bf16.mxu0 %v13952_v3 }
 0x8fc   :  { %v11874_v56 = vadd.f32 %v11862_v1, %v11666_v9  ;;  %v11864_v44 = vpop.f32.mrb[198].mxu1  ;;  %v21167_v4 = vpop.permute.xlu0 %14142 }
 0x8fd   :  { %v11865_v61 = vpop.f32.mrb[199].mxu1  ;;  %16337 = vmatmul.mubr.msk.bf16.vlgmr.msra.gmra.mrb[20].mxu1 %vm10916_vm8, %v20769_v22  ;;  %v14135_v31 = vpop.permute.xlu1 %14134  ;;  %v13951_v22 = vsel %vm537_vm5, %v21136_v38, %v13942_v52  ;;  %v14153_v38 = vsel %vm600_vm6, %v21161_v5, %v21167_v4 }
 0x8fe   :  { %14004 = vmatpush1.bf16.msra.mxu1 %v13949_v50  ;;  %14035 = vmatprep.mubr.bf16.mxu1 %v21635_v11  ;;  %v14150_v26 = vsel %vm600_vm6, %v14135_v31, %v14137_v40 }
 0x8ff   :  { %v11945_v55 = vpop.f32.mrb[200].mxu0  ;;  %14085 = vmatprep.subr.bf16.mxu1 %v13946_v13 }
 0x900   :  { %v21176_v29 = vadd.f32 %v11945_v55, %v11867_v41  ;;  %v11947_v53 = vpop.f32.mrb[201].mxu0  ;;  %v14139_v14 = vpop.permute.xlu0 %14138 }
 0x901   :  { %v21179_v15 = vadd.f32 %v11947_v53, %v11868_v28  ;;  %v11949_v17 = vpop.f32.mrb[202].mxu0  ;;  %v14147_v27 = vpop.permute.xlu1 %14146  ;;  %v14151_v54 = vsel %vm600_vm6, %v14137_v40, %v14139_v14  ;;  %16338 = vmatmul.mubr.msk.bf16.vlgmr.msra.gmra.mrb[24].mxu0 %vm10916_vm8, %v20823_v30  ;;  %v14152_v52 = vsel %vm600_vm6, %v14139_v14, %v21161_v5 }
 0x902   :  { %v11950_v10 = vpop.f32.mrb[203].mxu0  ;;  %v11986_v18 = vpop.f32.mrb[200].mxu1  ;;  %14045 = vmatpush1.bf16.msra.mxu0 %v13951_v22  ;;  %14076 = vmatprep.mubr.bf16.mxu0 %v21635_v11 }
 0x903   :  { %v12077_v25 = vadd.f32 %v11986_v18, %v11869_v62  ;;  %v11988_v58 = vpop.f32.mrb[201].mxu1  ;;  %14165 = vmatprep.subr.bf16.mxu0 %v14151_v54 }
 0x904   :  { %v12078_v16 = vadd.f32 %v11988_v58, %v11870_v34  ;;  %v11990_v9 = vpop.f32.mrb[202].mxu1  ;;  %v14145_v8 = vpop.permute.xlu0 %14144 }
 0x905   :  { %v11991_v7 = vpop.f32.mrb[203].mxu1  ;;  %16339 = vmatmul.mubr.msk.bf16.vlgmr.msra.gmra.mrb[24].mxu1 %vm10916_vm8, %v20823_v30  ;;  %v21195_v60 = vpop.permute.xlu1 %14343  ;;  %v14155_v34 = vsel %vm600_vm6, %v14145_v8, %v14147_v27  ;;  %v14154_v51 = vsel %vm600_vm6, %v21167_v4, %v14145_v8 }
 0x906   :  { %14086 = vmatpush1.bf16.msra.mxu1 %v13953_v36  ;;  %14117 = vmatprep.mubr.bf16.mxu1 %v21635_v11 }
 0x907   :  { %v12027_v47 = vpop.f32.mrb[204].mxu0  ;;  %14206 = vmatprep.subr.bf16.mxu1 %v14153_v38 }
 0x908   :  { %v12079_v41 = vadd.f32 %v12027_v47, %v11871_v12  ;;  %v12029_v35 = vpop.f32.mrb[205].mxu0  ;;  %v14149_v43 = vpop.permute.xlu0 %14148 }
 0x909   :  { %v21197_v28 = vadd.f32 %v12029_v35, %v11872_v42  ;;  %v12031_v24 = vpop.f32.mrb[206].mxu0  ;;  %16340 = vmatmul.mubr.msk.bf16.vlgmr.msra.gmra.mrb[28].mxu0 %vm10916_vm8, %v20823_v30  ;;  %v14340_v2 = vpop.permute.xlu1 %14339  ;;  %v14156_v48 = vsel %vm600_vm6, %v14147_v27, %v14149_v43 }
 0x90a   :  { %v12068_v6 = vpop.f32.mrb[204].mxu1  ;;  %v12032_v46 = vpop.f32.mrb[207].mxu0  ;;  %14166 = vmatpush1.bf16.msra.mxu0 %v14150_v26  ;;  %14197 = vmatprep.mubr.bf16.mxu0 %v21635_v11 }
 0x90b   :  { %v12081_v0 = vadd.f32 %v12068_v6, %v11873_v23  ;;  %v12070_v49 = vpop.f32.mrb[205].mxu1  ;;  %14247 = vmatprep.subr.bf16.mxu0 %v14155_v34 }
 0x90c   :  { %v12082_v59 = vadd.f32 %v12070_v49, %v11874_v56  ;;  %v21202_v62 = vpop.permute.xlu0 %14345  ;;  %v12072_v20 = vpop.f32.mrb[206].mxu1 }
 0x90d   :  { %v12073_v63 = vpop.f32.mrb[207].mxu1  ;;  %16341 = vmatmul.mubr.msk.bf16.vlgmr.msra.gmra.mrb[28].mxu1 %vm10916_vm8, %v20823_v30  ;;  %v14338_v13 = vpop.permute.xlu1 %14337  ;;  %v14356_v44 = vsel %vm76_vm7, %v21195_v60, %v21202_v62 }
 0x90e   :  { %14207 = vmatpush1.bf16.msra.mxu1 %v14152_v52  ;;  %14238 = vmatprep.mubr.bf16.mxu1 %v21635_v11  ;;  %v14353_v55 = vsel %vm76_vm7, %v14338_v13, %v14340_v2 }
 0x90f   :  { %14288 = vmatprep.subr.bf16.mxu1 %v14149_v43 }
 0x910   :  { %v14342_v39 = vpop.permute.xlu0 %14341 }
 0x911   :  { %v14354_v12 = vsel %vm76_vm7, %v14340_v2, %v14342_v39  ;;  %16342 = vmatmul.mubr.msk.bf16.vlgmr.msra.gmra.mrb[32].mxu0 %vm10916_vm8, %v20863_v37  ;;  %v14350_v3 = vpop.permute.xlu1 %14349  ;;  %v14355_v18 = vsel %vm76_vm7, %v14342_v39, %v21195_v60 }
 0x912   :  { %v12194_v33 = vpop.f32.mrb[208].mxu1  ;;  %v12153_v42 = vpop.f32.mrb[208].mxu0  ;;  %14248 = vmatpush1.bf16.msra.mxu0 %v14154_v51  ;;  %14279 = vmatprep.mubr.bf16.mxu0 %v21635_v11 }
 0x913   :  { %v12285_v32 = vadd.f32 %v12194_v33, %v12077_v25  ;;  %v12196_v5 = vpop.f32.mrb[209].mxu1  ;;  %v12283_v30 = vadd.f32 %v12153_v42, %v21176_v29  ;;  %v12155_v19 = vpop.f32.mrb[209].mxu0  ;;  %14368 = vmatprep.subr.bf16.mxu0 %v14354_v12 }
 0x914   :  { %v12286_v21 = vadd.f32 %v12196_v5, %v12078_v16  ;;  %v12284_v40 = vadd.f32 %v12155_v19, %v21179_v15  ;;  %v12198_v57 = vpop.f32.mrb[210].mxu1  ;;  %v12157_v23 = vpop.f32.mrb[210].mxu0 }
 0x915   :  { %16343 = vmatmul.mubr.msk.bf16.vlgmr.msra.gmra.mrb[32].mxu1 %vm10916_vm8, %v20863_v37  ;;  %v12199_v1 = vpop.f32.mrb[211].mxu1  ;;  %v12158_v56 = vpop.f32.mrb[211].mxu0 }
 0x916   :  { %14289 = vmatpush1.bf16.msra.mxu1 %v14156_v48  ;;  %14320 = vmatprep.mubr.bf16.mxu1 %v21635_v11  ;;  %v14348_v4 = vpop.permute.xlu0 %14347 }
 0x917   :  { %14409 = vmatprep.subr.bf16.mxu1 %v14356_v44  ;;  %v14358_v10 = vsel %vm76_vm7, %v14348_v4, %v14350_v3  ;;  %v14357_v9 = vsel %vm76_vm7, %v21202_v62, %v14348_v4 }
 0x919   :  { %16344 = vmatmul.mubr.msk.bf16.vlgmr.msra.gmra.mrb[36].mxu0 %vm10916_vm8, %v20863_v37 }
 0x91a   :  { %v12276_v50 = vpop.f32.mrb[212].mxu1  ;;  %14369 = vmatpush1.bf16.msra.mxu0 %v14353_v55  ;;  %14400 = vmatprep.mubr.bf16.mxu0 %v21635_v11  ;;  %v14352_v25 = vpop.permute.xlu0 %14351 }
 0x91b   :  { %v12289_v61 = vadd.f32 %v12276_v50, %v12081_v0  ;;  %v12235_v29 = vpop.f32.mrb[212].mxu0  ;;  %v12278_v53 = vpop.f32.mrb[213].mxu1  ;;  %14450 = vmatprep.subr.bf16.mxu0 %v14358_v10  ;;  %v16922_v10 = vld [vmem:[#allocation5 + $0x88] sm:$0xff]  }
 0x91c   :  { %v12287_v31 = vadd.f32 %v12235_v29, %v12079_v41  ;;  %v12290_v15 = vadd.f32 %v12278_v53, %v12082_v59  ;;  %v12237_v17 = vpop.f32.mrb[213].mxu0  ;;  %v12280_v14 = vpop.f32.mrb[214].mxu1  ;;  %v14359_v41 = vsel %vm76_vm7, %v14350_v3, %v14352_v25  ;;  %v16916_v29 = vld [vmem:[#allocation5 + $0xc0] sm:$0xff]  }
 0x91d   :  { %v12288_v27 = vadd.f32 %v12237_v17, %v21197_v28  ;;  %v12239_v54 = vpop.f32.mrb[214].mxu0  ;;  %v12281_v22 = vpop.f32.mrb[215].mxu1  ;;  %16345 = vmatmul.mubr.msk.bf16.vlgmr.msra.gmra.mrb[36].mxu1 %vm10916_vm8, %v20863_v37  ;;  %v16917_v53 = vld [vmem:[#allocation5 + $0x40] sm:$0xff]   ;;  %v16920_v17 = vld [vmem:[#allocation5 + $0xc8] sm:$0xff]  }
 0x91e   :  { %14410 = vmatpush1.bf16.msra.mxu1 %v14355_v18  ;;  %v12240_v58 = vpop.f32.mrb[215].mxu0  ;;  %14441 = vmatprep.mubr.bf16.mxu1 %v21635_v11  ;;  %v16921_v14 = vld [vmem:[#allocation5 + $0x48] sm:$0xff]   ;;  %v16925_v54 = vld [vmem:[#allocation5 + $0x50] sm:$0xff]  }
 0x91f   :  { %14491 = vmatprep.subr.bf16.mxu1 %v14352_v25  ;;  %v16923_v18 = vld [vmem:[#allocation5 + $0x8] sm:$0xff]   ;;  %v16926_v22 = vld [vmem:[#allocation5 + $0x90] sm:$0xff]   ;;  %v16928_v58 = vld [vmem:[#allocation5 + $0xd8] sm:$0xff]  }
 0x920   :  { %v16927_v25 = vld [vmem:[#allocation5 + $0x10] sm:$0xff]  }
 0x921   :  { %16346 = vmatmul.mubr.msk.bf16.vlgmr.msra.gmra.mrb[40].mxu0 %vm10916_vm8, %v20903_v45 }
 0x922   :  { %v12402_v16 = vpop.f32.mrb[216].mxu1  ;;  %14451 = vmatpush1.bf16.msra.mxu0 %v14357_v9  ;;  %14482 = vmatprep.mubr.bf16.mxu0 %v21635_v11  ;;  %v16930_v9 = vld [vmem:[#allocation5 + $0x98] sm:$0xff]  }
 0x923   :  { %v12493_v8 = vadd.f32 %v12402_v16, %v12285_v32  ;;  %v12361_v36 = vpop.f32.mrb[216].mxu0  ;;  %v12404_v7 = vpop.f32.mrb[217].mxu1  ;;  %16467 = vmatprep.subr.bf16.mxu0 %v16917_v53  ;;  %v16929_v16 = vld [vmem:[#allocation5 + $0x58] sm:$0xff]  }
 0x924   :  { %v12491_v38 = vadd.f32 %v12361_v36, %v12283_v30  ;;  %v12494_v47 = vadd.f32 %v12404_v7, %v12286_v21  ;;  %v12363_v37 = vpop.f32.mrb[217].mxu0  ;;  %v12406_v60 = vpop.f32.mrb[218].mxu1  ;;  %v16932_v36 = vld [vmem:[#allocation5 + $0xe0] sm:$0xff]   ;;  %v16945_v53 = vld [vmem:[#allocation5 + $0x78] sm:$0xff]  }
 0x925   :  { %v12492_v35 = vadd.f32 %v12363_v37, %v12284_v40  ;;  %v12365_v43 = vpop.f32.mrb[218].mxu0  ;;  %v12407_v28 = vpop.f32.mrb[219].mxu1  ;;  %16347 = vmatmul.mubr.msk.bf16.vlgmr.msra.gmra.mrb[40].mxu1 %vm10916_vm8, %v20903_v45  ;;  %v16933_v7 = vld [vmem:[#allocation5 + $0x60] sm:$0xff]  }
 0x926   :  { %14492 = vmatpush1.bf16.msra.mxu1 %v14359_v41  ;;  %v12366_v24 = vpop.f32.mrb[219].mxu0  ;;  %14523 = vmatprep.mubr.bf16.mxu1 %v21635_v11  ;;  %v16935_v37 = vld [vmem:[#allocation5 + $0x20] sm:$0xff]  }
 0x927   :  { %16489 = vmatprep.subr.bf16.mxu1 %v16916_v29  ;;  %v16944_v29 = vld [vmem:[#allocation5 + $0xf8] sm:$0xff]  }
 0x929   :  { %16348 = vmatmul.mubr.msk.bf16.vlgmr.msra.gmra.mrb[44].mxu0 %vm10916_vm8, %v20903_v45 }
 0x92a   :  { %v12484_v6 = vpop.f32.mrb[220].mxu1 }
 0x92b   :  { %v12497_v26 = vadd.f32 %v12484_v6, %v12289_v61  ;;  %v12443_v0 = vpop.f32.mrb[220].mxu0  ;;  %v12486_v49 = vpop.f32.mrb[221].mxu1 }
 0x92c   :  { %v12495_v46 = vadd.f32 %v12443_v0, %v12287_v31  ;;  %v12498_v59 = vadd.f32 %v12486_v49, %v12290_v15  ;;  %v12445_v62 = vpop.f32.mrb[221].mxu0  ;;  %v12488_v20 = vpop.f32.mrb[222].mxu1  ;;  %v16918_v31 = vld [vmem:[#allocation5 + $0x80] sm:$0xff]  }
 0x92d   :  { %v12496_v34 = vadd.f32 %v12445_v62, %v12288_v27  ;;  %v12447_v52 = vpop.f32.mrb[222].mxu0  ;;  %v12489_v63 = vpop.f32.mrb[223].mxu1  ;;  %16349 = vmatmul.mubr.msk.bf16.vlgmr.msra.gmra.mrb[44].mxu1 %vm10916_vm8, %v20903_v45  ;;  %v16919_v15 = vld [vmem:[#allocation5] sm:$0xff]   ;;  %v16924_v27 = vld [vmem:[#allocation5 + $0xd0] sm:$0xff]  }
 0x92e   :  { %v12448_v2 = vpop.f32.mrb[223].mxu0  ;;  %16490 = vmatpush3.bf16.msra.mxu1 %v16918_v31  ;;  %16468 = vmatpush3.bf16.msra.mxu0 %v16919_v15  ;;  %v16937_v52 = vld [vmem:[#allocation5 + $0x68] sm:$0xff]   ;;  %v16946_v31 = vld [vmem:[#allocation5 + $0xb8] sm:$0xff]  }
 0x92f   :  { %16491 = vmatprep.subr.bf16.mxu1 %v16920_v17  ;;  %16469 = vmatprep.subr.bf16.mxu0 %v16921_v14  ;;  %v16938_v63 = vld [vmem:[#allocation5 + $0xa8] sm:$0xff]   ;;  %v16947_v17 = vld [vmem:[#allocation5 + $0x38] sm:$0xff]   ;;  %v16948_v14 = vld [vmem:[#allocation5 + $0x140] sm:$0xff]  }
 0x932   :  { %v12610_v39 = vpop.f32.mrb[224].mxu1  ;;  %16492 = vmatpush3.bf16.msra.mxu1 %v16922_v10  ;;  %16470 = vmatpush3.bf16.msra.mxu0 %v16923_v18 }
 0x933   :  { %v21250_v33 = vadd.f32 %v12610_v39, %v12493_v8  ;;  %v12569_v12 = vpop.f32.mrb[224].mxu0  ;;  %v12612_v51 = vpop.f32.mrb[225].mxu1  ;;  %16493 = vmatprep.subr.bf16.mxu1 %v16924_v27  ;;  %16471 = vmatprep.subr.bf16.mxu0 %v16925_v54  ;;  %v16931_v8 = vld [vmem:[#allocation5 + $0x18] sm:$0xff]   ;;  %v16939_v39 = vld [vmem:[#allocation5 + $0x28] sm:$0xff]  }
 0x934   :  { %v21252_v32 = vadd.f32 %v12569_v12, %v12491_v38  ;;  %v21254_v42 = vadd.f32 %v12612_v51, %v12494_v47  ;;  %v12571_v5 = vpop.f32.mrb[225].mxu0  ;;  %v12614_v30 = vpop.f32.mrb[226].mxu1  ;;  %v16934_v47 = vld [vmem:[#allocation5 + $0xa0] sm:$0xff]   ;;  %v16940_v12 = vld [vmem:[#allocation5 + $0xf0] sm:$0xff]  }
 0x935   :  { %v21256_v21 = vadd.f32 %v12571_v5, %v12492_v35  ;;  %v12573_v19 = vpop.f32.mrb[226].mxu0  ;;  %v12615_v13 = vpop.f32.mrb[227].mxu1  ;;  %v16941_v51 = vld [vmem:[#allocation5 + $0x70] sm:$0xff]  }
 0x936   :  { %v12574_v48 = vpop.f32.mrb[227].mxu0  ;;  %16494 = vmatpush3.bf16.msra.mxu1 %v16926_v22  ;;  %16472 = vmatpush3.bf16.msra.mxu0 %v16927_v25  ;;  %v16942_v5 = vld [vmem:[#allocation5 + $0xb0] sm:$0xff]  }
 0x937   :  { %16495 = vmatprep.subr.bf16.mxu1 %v16928_v58  ;;  %16473 = vmatprep.subr.bf16.mxu0 %v16929_v16  ;;  %v16943_v30 = vld [vmem:[#allocation5 + $0x30] sm:$0xff]  }
 0x93a   :  { %16496 = vmatpush3.bf16.msra.mxu1 %v16930_v9  ;;  %16474 = vmatpush3.bf16.msra.mxu0 %v16931_v8 }
 0x93b   :  { %v12651_v45 = vpop.f32.mrb[228].mxu0  ;;  %16497 = vmatprep.subr.bf16.mxu1 %v16932_v36  ;;  %16475 = vmatprep.subr.bf16.mxu0 %v16933_v7 }
 0x93c   :  { %v12692_v40 = vpop.f32.mrb[228].mxu1  ;;  %v21260_v1 = vadd.f32 %v12651_v45, %v12495_v46  ;;  %v12653_v44 = vpop.f32.mrb[229].mxu0 }
 0x93d   :  { %v21258_v57 = vadd.f32 %v12692_v40, %v12497_v26  ;;  %v12694_v23 = vpop.f32.mrb[229].mxu1  ;;  %v21264_v3 = vadd.f32 %v12653_v44, %v12496_v34  ;;  %v12655_v50 = vpop.f32.mrb[230].mxu0  ;;  %v16936_v34 = vld [vmem:[#allocation5 + $0xe8] sm:$0xff]  }
 0x93e   :  { %v21262_v56 = vadd.f32 %v12694_v23, %v12498_v59  ;;  %v12696_v4 = vpop.f32.mrb[230].mxu1  ;;  %v12656_v61 = vpop.f32.mrb[231].mxu0  ;;  %16498 = vmatpush3.bf16.msra.mxu1 %v16934_v47  ;;  %16476 = vmatpush3.bf16.msra.mxu0 %v16935_v37 }
 0x93f   :  { %v12697_v55 = vpop.f32.mrb[231].mxu1  ;;  %16499 = vmatprep.subr.bf16.mxu1 %v16936_v34  ;;  %16477 = vmatprep.subr.bf16.mxu0 %v16937_v52 }
 0x942   :  { %16500 = vmatpush3.bf16.msra.mxu1 %v16938_v63  ;;  %16478 = vmatpush3.bf16.msra.mxu0 %v16939_v39 }
 0x943   :  { %16501 = vmatprep.subr.bf16.mxu1 %v16940_v12  ;;  %16479 = vmatprep.subr.bf16.mxu0 %v16941_v51 }
 0x946   :  { %16502 = vmatpush3.bf16.msra.mxu1 %v16942_v5  ;;  %16480 = vmatpush3.bf16.msra.mxu0 %v16943_v30 }
 0x947   :  { %16503 = vmatprep.subr.bf16.mxu1 %v16944_v29  ;;  %16481 = vmatprep.subr.bf16.mxu0 %v16945_v53 }
 0x94a   :  { %16504 = vmatpush3.bf16.msra.mxu1 %v16946_v31  ;;  %16482 = vmatpush3.bf16.msra.mxu0 %v16947_v17 }
 0x94b   :  { %15176 = vmatprep.subr.bf16.mxu1 %v21635_v11  ;;  %16511 = vmatprep.subr.bf16.mxu0 %v16948_v14 }
 0x973   :  { %v12866_v38 = vpop.f32.mrb[232].mxu1 }
 0x974   :  { %v12825_v60 = vpop.f32.mrb[232].mxu0  ;;  %v12868_v41 = vpop.f32.mrb[233].mxu1 }
 0x975   :  { %v12827_v35 = vpop.f32.mrb[233].mxu0  ;;  %v12870_v43 = vpop.f32.mrb[234].mxu1 }
 0x976   :  { %v12829_v28 = vpop.f32.mrb[234].mxu0  ;;  %v12871_v24 = vpop.f32.mrb[235].mxu1 }
 0x977   :  { %v12830_v6 = vpop.f32.mrb[235].mxu0 }
 0x97c   :  { %v12907_v26 = vpop.f32.mrb[236].mxu0 }
 0x97d   :  { %v12909_v0 = vpop.f32.mrb[237].mxu0 }
 0x97e   :  { %v12911_v46 = vpop.f32.mrb[238].mxu0 }
 0x97f   :  { %v12912_v62 = vpop.f32.mrb[239].mxu0 }
 0x980   :  { %v12948_v49 = vpop.f32.mrb[236].mxu1 }
 0x981   :  { %v12950_v59 = vpop.f32.mrb[237].mxu1 }
 0x982   :  { %v12952_v20 = vpop.f32.mrb[238].mxu1 }
 0x983   :  { %v12953_v2 = vpop.f32.mrb[239].mxu1 }
 0x984   :  { %v12989_v19 = vpop.f32.mrb[240].mxu0 }
 0x985   :  { %v12990_v13 = vadd.f32 %v12989_v19, %v12825_v60  ;;  %v12991_v48 = vpop.f32.mrb[241].mxu0 }
 0x986   :  { %v12992_v45 = vadd.f32 %v12991_v48, %v12827_v35  ;;  %v12993_v23 = vpop.f32.mrb[242].mxu0 }
 0x987   :  { %v12994_v50 = vpop.f32.mrb[243].mxu0 }
 0x988   :  { %v13030_v40 = vpop.f32.mrb[240].mxu1 }
 0x989   :  { %v13031_v44 = vadd.f32 %v13030_v40, %v12866_v38  ;;  %v13032_v4 = vpop.f32.mrb[241].mxu1 }
 0x98a   :  { %v13033_v55 = vadd.f32 %v13032_v4, %v12868_v41  ;;  %v13034_v61 = vpop.f32.mrb[242].mxu1 }
 0x98b   :  { %v13035_v15 = vpop.f32.mrb[243].mxu1 }
 0x98c   :  { %v13071_v10 = vpop.f32.mrb[244].mxu0 }
 0x98d   :  { %v13072_v18 = vadd.f32 %v13071_v10, %v12907_v26  ;;  %v13073_v27 = vpop.f32.mrb[245].mxu0 }
 0x98e   :  { %v13074_v22 = vadd.f32 %v13073_v27, %v12909_v0  ;;  %v13075_v25 = vpop.f32.mrb[246].mxu0 }
 0x98f   :  { %v13076_v9 = vpop.f32.mrb[247].mxu0 }
 0x990   :  { %v13112_v54 = vpop.f32.mrb[244].mxu1 }
 0x991   :  { %v13113_v58 = vadd.f32 %v13112_v54, %v12948_v49  ;;  %v13114_v16 = vpop.f32.mrb[245].mxu1 }
 0x992   :  { %v13115_v8 = vadd.f32 %v13114_v16, %v12950_v59  ;;  %v13116_v36 = vpop.f32.mrb[246].mxu1 }
 0x993   :  { %v13117_v7 = vpop.f32.mrb[247].mxu1 }
 0x994   :  { %v13184_v38 = vpop.f32.mrb[248].mxu0 }
 0x995   :  { %v13314_v47 = vadd.f32 %v13184_v38, %v12990_v13  ;;  %v13186_v37 = vpop.f32.mrb[249].mxu0 }
 0x996   :  { %v13315_v41 = vadd.f32 %v13186_v37, %v12992_v45  ;;  %v13188_v35 = vpop.f32.mrb[250].mxu0 }
 0x997   :  { %v13189_v24 = vpop.f32.mrb[251].mxu0 }
 0x998   :  { %v13225_v60 = vpop.f32.mrb[248].mxu1 }
 0x999   :  { %v13316_v43 = vadd.f32 %v13225_v60, %v13031_v44  ;;  %v13227_v28 = vpop.f32.mrb[249].mxu1 }
 0x99a   :  { %v13317_v6 = vadd.f32 %v13227_v28, %v13033_v55  ;;  %v13229_v26 = vpop.f32.mrb[250].mxu1 }
 0x99b   :  { %v13230_v46 = vpop.f32.mrb[251].mxu1 }
 0x99c   :  { %v13266_v0 = vpop.f32.mrb[252].mxu0 }
 0x99d   :  { %v13318_v62 = vadd.f32 %v13266_v0, %v13072_v18  ;;  %v13268_v49 = vpop.f32.mrb[253].mxu0 }
 0x99e   :  { %v13319_v34 = vadd.f32 %v13268_v49, %v13074_v22  ;;  %v13270_v59 = vpop.f32.mrb[254].mxu0 }
 0x99f   :  { %v13271_v2 = vpop.f32.mrb[255].mxu0 }
 0x9a0   :  { %v13307_v20 = vpop.f32.mrb[252].mxu1 }
 0x9a1   :  { %v13320_v52 = vadd.f32 %v13307_v20, %v13113_v58  ;;  %v13309_v63 = vpop.f32.mrb[253].mxu1 }
 0x9a2   :  { %v13321_v39 = vadd.f32 %v13309_v63, %v13115_v8  ;;  %v13311_v12 = vpop.f32.mrb[254].mxu1 }
 0x9a3   :  { %v13312_v51 = vpop.f32.mrb[255].mxu1 }
 0x9a4   :  { %v13387_v5 = vpop.f32.mrb[0].mxu0 }
 0x9a5   :  { %v13517_v30 = vadd.f32 %v13387_v5, %v13314_v47  ;;  %v13389_v19 = vpop.f32.mrb[1].mxu0 }
 0x9a6   :  { %v13518_v48 = vadd.f32 %v13389_v19, %v13315_v41  ;;  %v13391_v40 = vpop.f32.mrb[2].mxu0 }
 0x9a7   :  { %v13392_v44 = vpop.f32.mrb[3].mxu0 }
 0x9a8   :  { %v13428_v13 = vpop.f32.mrb[0].mxu1 }
 0x9a9   :  { %v13519_v45 = vadd.f32 %v13428_v13, %v13316_v43  ;;  %v13430_v23 = vpop.f32.mrb[1].mxu1 }
 0x9aa   :  { %v13520_v4 = vadd.f32 %v13430_v23, %v13317_v6  ;;  %v13432_v50 = vpop.f32.mrb[2].mxu1 }
 0x9ab   :  { %v13433_v55 = vpop.f32.mrb[3].mxu1 }
 0x9ac   :  { %v13469_v61 = vpop.f32.mrb[4].mxu0 }
 0x9ad   :  { %v13521_v29 = vadd.f32 %v13469_v61, %v13318_v62  ;;  %v13471_v53 = vpop.f32.mrb[5].mxu0 }
 0x9ae   :  { %v13522_v15 = vadd.f32 %v13471_v53, %v13319_v34  ;;  %v13473_v17 = vpop.f32.mrb[6].mxu0 }
 0x9af   :  { %v13474_v18 = vpop.f32.mrb[7].mxu0 }
 0x9b0   :  { %v13510_v31 = vpop.f32.mrb[4].mxu1 }
 0x9b1   :  { %v13523_v14 = vadd.f32 %v13510_v31, %v13320_v52  ;;  %v13512_v10 = vpop.f32.mrb[5].mxu1 }
 0x9b2   :  { %v13524_v27 = vadd.f32 %v13512_v10, %v13321_v39  ;;  %v13514_v54 = vpop.f32.mrb[6].mxu1 }
 0x9b3   :  { %v13515_v22 = vpop.f32.mrb[7].mxu1 }
 0x9b4   :  { %v13590_v25 = vpop.f32.mrb[8].mxu0 }
 0x9b5   :  { %v13720_v58 = vadd.f32 %v13590_v25, %v13517_v30  ;;  %v13592_v16 = vpop.f32.mrb[9].mxu0 }
 0x9b6   :  { %v13721_v8 = vadd.f32 %v13592_v16, %v13518_v48  ;;  %v13594_v36 = vpop.f32.mrb[10].mxu0 }
 0x9b7   :  { %v13595_v47 = vpop.f32.mrb[11].mxu0 }
 0x9b8   :  { %v13631_v9 = vpop.f32.mrb[8].mxu1 }
 0x9b9   :  { %v13722_v7 = vadd.f32 %v13631_v9, %v13519_v45  ;;  %v13633_v38 = vpop.f32.mrb[9].mxu1 }
 0x9ba   :  { %v13723_v37 = vadd.f32 %v13633_v38, %v13520_v4  ;;  %v13635_v60 = vpop.f32.mrb[10].mxu1 }
 0x9bb   :  { %v13636_v41 = vpop.f32.mrb[11].mxu1 }
 0x9bc   :  { %v13672_v35 = vpop.f32.mrb[12].mxu0 }
 0x9bd   :  { %v13724_v43 = vadd.f32 %v13672_v35, %v13521_v29  ;;  %v13674_v28 = vpop.f32.mrb[13].mxu0 }
 0x9be   :  { %v13725_v6 = vadd.f32 %v13674_v28, %v13522_v15  ;;  %v13676_v26 = vpop.f32.mrb[14].mxu0 }
 0x9bf   :  { %v13677_v62 = vpop.f32.mrb[15].mxu0 }
 0x9c0   :  { %v13713_v24 = vpop.f32.mrb[12].mxu1 }
 0x9c1   :  { %v13726_v46 = vadd.f32 %v13713_v24, %v13523_v14  ;;  %v13715_v0 = vpop.f32.mrb[13].mxu1 }
 0x9c2   :  { %v13727_v49 = vadd.f32 %v13715_v0, %v13524_v27  ;;  %v13717_v20 = vpop.f32.mrb[14].mxu1 }
 0x9c3   :  { %v13718_v34 = vpop.f32.mrb[15].mxu1 }
 0x9c4   :  { %v13793_v59 = vpop.f32.mrb[16].mxu0 }
 0x9c5   :  { %v13923_v52 = vadd.f32 %v13793_v59, %v13720_v58  ;;  %v13795_v63 = vpop.f32.mrb[17].mxu0 }
 0x9c6   :  { %v13924_v39 = vadd.f32 %v13795_v63, %v13721_v8  ;;  %v13797_v12 = vpop.f32.mrb[18].mxu0 }
 0x9c7   :  { %v13798_v30 = vpop.f32.mrb[19].mxu0  ;;  %v21267_v12 = vpop.permute.xlu1 %12709 }
 0x9c8   :  { %v13834_v2 = vpop.f32.mrb[16].mxu1 }
 0x9c9   :  { %v13925_v51 = vadd.f32 %v13834_v2, %v13722_v7  ;;  %v13836_v5 = vpop.f32.mrb[17].mxu1 }
 0x9ca   :  { %v13926_v19 = vadd.f32 %v13836_v5, %v13723_v37  ;;  %v13838_v13 = vpop.f32.mrb[18].mxu1 }
 0x9cb   :  { %v13839_v48 = vpop.f32.mrb[19].mxu1 }
 0x9cc   :  { %v13875_v40 = vpop.f32.mrb[20].mxu0 }
 0x9cd   :  { %v13927_v45 = vadd.f32 %v13875_v40, %v13724_v43  ;;  %v13877_v23 = vpop.f32.mrb[21].mxu0  ;;  %v21273_v40 = vadd.f32 %v21267_v12, %v21250_v33 }
 0x9ce   :  { %v13928_v4 = vadd.f32 %v13877_v23, %v13725_v6  ;;  %v13879_v50 = vpop.f32.mrb[22].mxu0 }
 0x9cf   :  { %v13880_v29 = vpop.f32.mrb[23].mxu0  ;;  %v12722_v33 = vmax.f32 %v21273_v40, 0.0 }
 0x9d0   :  { %v13916_v44 = vpop.f32.mrb[20].mxu1  ;;  %v21283_v29 = vadd.f32 %v21267_v12, %v21254_v42  ;;  %v21295_v42 = vadd.f32 %v21267_v12, %v21264_v3 }
 0x9d1   :  { %v13929_v55 = vadd.f32 %v13916_v44, %v13726_v46  ;;  %v13918_v61 = vpop.f32.mrb[21].mxu1 }
 0x9d2   :  { %v13930_v53 = vadd.f32 %v13918_v61, %v13727_v49  ;;  %v13920_v31 = vpop.f32.mrb[22].mxu1 }
 0x9d3   :  { %v13921_v15 = vpop.f32.mrb[23].mxu1 }
 0x9d4   :  { %v13996_v17 = vpop.f32.mrb[24].mxu0 }
 0x9d5   :  { %v14126_v14 = vadd.f32 %v13996_v17, %v13923_v52  ;;  %v13998_v10 = vpop.f32.mrb[25].mxu0 }
 0x9d6   :  { %v14127_v27 = vadd.f32 %v13998_v10, %v13924_v39  ;;  %v14000_v54 = vpop.f32.mrb[26].mxu0  ;;  %v12723_v10 = vmax.f32 %v21283_v29, 0.0 }
 0x9d7   :  { %v14001_v58 = vpop.f32.mrb[27].mxu0  ;;  %v15233_v54 = vrot.slane %v12722_v33, 1 }
 0x9d8   :  { %v14037_v18 = vpop.f32.mrb[24].mxu1 }
 0x9d9   :  { %v14128_v22 = vadd.f32 %v14037_v18, %v13925_v51  ;;  %v14039_v25 = vpop.f32.mrb[25].mxu1  ;;  %v21291_v18 = vadd.f32 %v21267_v12, %v21260_v1  ;;  %v21304_v1 = vadd.f32 %v21267_v12, %v21262_v56 }
 0x9da   :  { %v14129_v16 = vadd.f32 %v14039_v25, %v13926_v19  ;;  %v14041_v9 = vpop.f32.mrb[26].mxu1  ;;  %v21299_v25 = vadd.f32 %v21267_v12, %v21258_v57 }
 0x9db   :  { %v14042_v8 = vpop.f32.mrb[27].mxu1 }
 0x9dc   :  { %v14078_v36 = vpop.f32.mrb[28].mxu0  ;;  %v12726_v56 = vmax.f32 %v21299_v25, 0.0  ;;  %v16980_v25 = vld [vmem:[#allocation5 + $0x214] sm:$0xff]  }
 0x9dd   :  { %v14130_v7 = vadd.f32 %v14078_v36, %v13927_v45  ;;  %v14080_v38 = vpop.f32.mrb[29].mxu0 }
 0x9de   :  { %v14131_v37 = vadd.f32 %v14080_v38, %v13928_v4  ;;  %v14082_v60 = vpop.f32.mrb[30].mxu0  ;;  %v12712_v4 = vadd.f32 %v21267_v12, %v21252_v32 }
 0x9df   :  { %v14083_v43 = vpop.f32.mrb[31].mxu0 }
 0x9e0   :  { %v14119_v47 = vpop.f32.mrb[28].mxu1  ;;  %v12720_v31 = vmax.f32 %v12712_v4, 0.0  ;;  %v12725_v43 = vmax.f32 %v21295_v42, 0.0  ;;  %v16958_v42 = vld [vmem:[#allocation5 + $0x198] sm:$0xff]  }
 0x9e1   :  { %v14132_v41 = vadd.f32 %v14119_v47, %v13929_v55  ;;  %v14121_v35 = vpop.f32.mrb[29].mxu1 }
 0x9e2   :  { %v14133_v28 = vadd.f32 %v14121_v35, %v13930_v53  ;;  %v14123_v24 = vpop.f32.mrb[30].mxu1  ;;  %v12713_v53 = vadd.f32 %v21267_v12, %v21256_v21  ;;  %v15231_v9 = vrot.slane %v12720_v31, 1  ;;  %v12724_v35 = vmax.f32 %v21291_v18, 0.0 }
 0x9e3   :  { %v14124_v6 = vpop.f32.mrb[31].mxu1 }
 0x9e4   :  { %v14199_v26 = vpop.f32.mrb[32].mxu0  ;;  %v12721_v32 = vmax.f32 %v12713_v53, 0.0 }
 0x9e5   :  { %v14329_v46 = vadd.f32 %v14199_v26, %v14126_v14  ;;  %v14201_v0 = vpop.f32.mrb[33].mxu0 }
 0x9e6   :  { %v14330_v49 = vadd.f32 %v14201_v0, %v14127_v27  ;;  %v14203_v20 = vpop.f32.mrb[34].mxu0  ;;  %v15232_v60 = vrot.slane %v12721_v32, 1  ;;  %v12727_v0 = vmax.f32 %v21304_v1, 0.0  ;;  %v16960_v1 = vld [vmem:[#allocation5 + $0x160] sm:$0xff]  }
 0x9e7   :  { %v14204_v52 = vpop.f32.mrb[35].mxu0 }
 0x9e8   :  { %v14240_v62 = vpop.f32.mrb[32].mxu1 }
 0x9e9   :  { %v14331_v34 = vadd.f32 %v14240_v62, %v14128_v22  ;;  %v14242_v59 = vpop.f32.mrb[33].mxu1 }
 0x9ea   :  { %v14332_v63 = vadd.f32 %v14242_v59, %v14129_v16  ;;  %v14244_v2 = vpop.f32.mrb[34].mxu1 }
 0x9eb   :  { %v14245_v39 = vpop.f32.mrb[35].mxu1 }
 0x9ec   :  { %v14281_v51 = vpop.f32.mrb[36].mxu0 }
 0x9ed   :  { %v14333_v5 = vadd.f32 %v14281_v51, %v14130_v7  ;;  %v14283_v30 = vpop.f32.mrb[37].mxu0  ;;  %v15235_v51 = vrot.slane %v12724_v35, 1 }
 0x9ee   :  { %v21269_v13 = vadd.f32 %v14283_v30, %v14131_v37  ;;  %v14285_v48 = vpop.f32.mrb[38].mxu0  ;;  %v15236_v30 = vrot.slane %v12725_v43, 1 }
 0x9ef   :  { %v14286_v44 = vpop.f32.mrb[39].mxu0 }
 0x9f0   :  { %v14322_v19 = vpop.f32.mrb[36].mxu1 }
 0x9f1   :  { %v21275_v45 = vadd.f32 %v14322_v19, %v14132_v41  ;;  %v14324_v23 = vpop.f32.mrb[37].mxu1  ;;  %v15234_v41 = vrot.slane %v12723_v10, 1 }
 0x9f2   :  { %v21279_v50 = vadd.f32 %v14324_v23, %v14133_v28  ;;  %v14326_v55 = vpop.f32.mrb[38].mxu1 }
 0x9f3   :  { %v14327_v61 = vpop.f32.mrb[39].mxu1 }
 0x9f4   :  { %v14402_v15 = vpop.f32.mrb[40].mxu0 }
 0x9f5   :  { %v14532_v17 = vadd.f32 %v14402_v15, %v14329_v46  ;;  %v14404_v14 = vpop.f32.mrb[41].mxu0 }
 0x9f6   :  { %v14533_v21 = vadd.f32 %v14404_v14, %v14330_v49  ;;  %v14406_v22 = vpop.f32.mrb[42].mxu0 }
 0x9f7   :  { %v14540_v16 = vadd.f32 %v14532_v17, %v21267_v12  ;;  %v14407_v36 = vpop.f32.mrb[43].mxu0 }
 0x9f8   :  { %v14443_v27 = vpop.f32.mrb[40].mxu1  ;;  %v14541_v7 = vadd.f32 %v14533_v21, %v21267_v12 }
 0x9f9   :  { %v14534_v58 = vadd.f32 %v14443_v27, %v14331_v34  ;;  %v14445_v8 = vpop.f32.mrb[41].mxu1  ;;  %v14548_v37 = vmax.f32 %v14540_v16, 0.0  ;;  %v16949_v27 = vld [vmem:[#allocation5 + $0x180] sm:$0xff]   ;;  %v16951_v16 = vld [vmem:[#allocation5 + $0x148] sm:$0xff]  }
 0x9fa   :  { %v14535_v3 = vadd.f32 %v14445_v8, %v14332_v63  ;;  %v14447_v38 = vpop.f32.mrb[42].mxu1  ;;  %v14549_v24 = vmax.f32 %v14541_v7, 0.0 }
 0x9fb   :  { %v14542_v47 = vadd.f32 %v14534_v58, %v21267_v12  ;;  %v14448_v57 = vpop.f32.mrb[43].mxu1  ;;  %v14565_v26 = vrot.slane %v14548_v37, 7  ;;  %v21313_v46 = vsel %vm14581_vm0, %v15231_v9, %v14548_v37 }
 0x9fc   :  { %v14543_v28 = vadd.f32 %v14535_v3, %v21267_v12  ;;  %v14566_v49 = vrot.slane %v14549_v24, 7  ;;  %v14484_v20 = vpop.f32.mrb[44].mxu0  ;;  %v21317_v34 = vsel %vm14581_vm0, %v15232_v60, %v14549_v24  ;;  %v15238_v3 = vrot.slane %v12727_v0, 1  ;;  %v16952_v57 = vld [vmem:[#allocation5 + $0x188] sm:$0xff]   ;;  %v16954_v24 = vld [vmem:[#allocation5 + $0x150] sm:$0xff]  }
 0x9fd   :  { %v14550_v6 = vmax.f32 %v14542_v47, 0.0  ;;  %v14582_v63 = vsel %vm14581_vm0, %v12720_v31, %v14565_v26  ;;  %v14536_v2 = vadd.f32 %v14484_v20, %v14333_v5  ;;  %v14486_v39 = vpop.f32.mrb[45].mxu0  ;;  %v16953_v60 = vld [vmem:[#allocation5 + $0x108] sm:$0xff]   ;;  %v16956_v20 = vld [vmem:[#allocation5 + $0x110] sm:$0xff]  }
 0x9fe   :  { %v14551_v62 = vmax.f32 %v14543_v28, 0.0  ;;  %v14537_v40 = vadd.f32 %v14486_v39, %v21269_v13  ;;  %v14488_v23 = vpop.f32.mrb[46].mxu0  ;;  %v14583_v29 = vsel %vm14581_vm0, %v12721_v32, %v14566_v49  ;;  %v14590_v53 = vpack.c.bf16 %v14582_v63, %v14582_v63  ;;  %v16955_v49 = vld [vmem:[#allocation5 + $0x190] sm:$0xff]   ;;  %v16962_v63 = vld [vmem:[#allocation5 + $0x120] sm:$0xff]   ;;  %v16964_v39 = vld [vmem:[#allocation5 + $0x1a8] sm:$0xff]  }
 0x9ff   :  { %v14567_v59 = vrot.slane %v14550_v6, 7  ;;  %v21320_v52 = vsel %vm14581_vm0, %v15233_v54, %v14550_v6  ;;  %v14544_v55 = vadd.f32 %v14536_v2, %v21267_v12  ;;  %v14489_v5 = vpop.f32.mrb[47].mxu0  ;;  %v16950_v54 = vld [vmem:[#allocation5 + $0x100] sm:$0xff]   ;;  %v16963_v2 = vld [vmem:[#allocation5 + $0x168] sm:$0xff]   ;;  %v16970_v23 = vld [vmem:[#allocation5 + $0x1b8] sm:$0xff]  }
 0xa00   :  { %v14568_v19 = vrot.slane %v14551_v62, 7  ;;  %v14525_v48 = vpop.f32.mrb[44].mxu1  ;;  %v14545_v15 = vadd.f32 %v14537_v40, %v21267_v12  ;;  %v16969_v40 = vld [vmem:[#allocation5 + $0x178] sm:$0xff]  }
 0xa01   :  { %v14584_v44 = vsel %vm14581_vm0, %v12722_v33, %v14567_v59  ;;  %v14538_v4 = vadd.f32 %v14525_v48, %v21275_v45  ;;  %v14527_v61 = vpop.f32.mrb[45].mxu1  ;;  %v14552_v33 = vmax.f32 %v14544_v55, 0.0  ;;  %v14591_v45 = vpack.c.bf16 %v14583_v29, %v14583_v29  ;;  %v16957_v59 = vld [vmem:[#allocation5 + $0x158] sm:$0xff]   ;;  %v16968_v48 = vld [vmem:[#allocation5 + $0x130] sm:$0xff]   ;;  %v16973_v55 = vld [vmem:[#allocation5 + $0x204] sm:$0xff]  }
 0xa02   :  { %v14539_v31 = vadd.f32 %v14527_v61, %v21279_v50  ;;  %v14585_v17 = vsel %vm14581_vm0, %v12723_v10, %v14568_v19  ;;  %v14529_v14 = vpop.f32.mrb[46].mxu1  ;;  %v14592_v22 = vpack.c.bf16 %v14584_v44, %v14584_v44  ;;  %v14553_v58 = vmax.f32 %v14545_v15, 0.0  ;;  %v16967_v19 = vld [vmem:[#allocation5 + $0x1b0] sm:$0xff]   ;;  %v16971_v44 = vld [vmem:[#allocation5 + $0x138] sm:$0xff]   ;;  %v16974_v29 = vld [vmem:[#allocation5 + $0x1c4] sm:$0xff]  }
 0xa03   :  { %v21334_v13 = vadd.f32 %v14538_v4, %v21267_v12  ;;  %v14593_v18 = vpack.c.bf16 %v14585_v17, %v14585_v17  ;;  %v14530_v21 = vpop.f32.mrb[47].mxu1  ;;  %v21338_v50 = vsel %vm14581_vm0, %v15234_v41, %v14551_v62  ;;  %v15237_v10 = vrot.slane %v12726_v56, 1  ;;  %15088 = vmatprep.mubr.bf16.mxu0 %v14591_v45  ;;  %v16972_v4 = vld [vmem:[#allocation5 + $0x1c0] ss:$0 sps:$4 sm:$0x33]   ;;  %v16976_v17 = vld [vmem:[#allocation5 + $0x20c] sm:$0xff]  }
 0xa04   :  { %v14547_v32 = vadd.f32 %v14539_v31, %v21267_v12  ;;  %v14569_v8 = vrot.slane %v14552_v33, 7  ;;  %v21344_v36 = vsel %vm14581_vm0, %v15235_v51, %v14552_v33  ;;  %v14570_v7 = vrot.slane %v14553_v58, 7  ;;  %15089 = vmatmul.mubr.bf16.vlgmr.msra.gmra.mrb[48].mxu0 %v14590_v53  ;;  %v16965_v51 = vld [vmem:[#allocation5 + $0x128] sm:$0xff]   ;;  %v16984_v21 = vld [vmem:[#allocation5 + $0x21c] sm:$0xff]  }
 0xa05   :  { %v14554_v9 = vmax.f32 %v21334_v13, 0.0  ;;  %15128 = vmatprep.mubr.bf16.mxu1 %v14593_v18  ;;  %v21349_v38 = vsel %vm14581_vm0, %v15236_v30, %v14553_v58  ;;  %16512 = vmatpush3.bf16.msra.mxu0 %v16950_v54  ;;  %v16966_v30 = vld [vmem:[#allocation5 + $0x170] sm:$0xff]   ;;  %v15054_v53 = vsel %vm1522_vm10, %v16972_v4, 0  ;;  %v16975_v31 = vld [vmem:[#allocation5 + $0x284] sm:$0xff]   ;;  %v15256_v14 = vpack.c.bf16 %v21317_v34, %v21317_v34  ;;  %v16987_v58 = vld [vmem:[#allocation5 + $0x29c] sm:$0xff]  }
 0xa06   :  { %v14555_v12 = vmax.f32 %v14547_v32, 0.0  ;;  %15129 = vmatmul.mubr.bf16.vlgmr.msra.gmra.mrb[48].mxu1 %v14592_v22  ;;  %v21357_v37 = vsel %vm14581_vm0, %v12724_v35, %v14569_v8  ;;  %16513 = vmatprep.subr.bf16.mxu0 %v16951_v16  ;;  %v14587_v6 = vsel %vm14581_vm0, %v12725_v43, %v14570_v7  ;;  %v16959_v43 = vld [vmem:[#allocation5 + $0x118] sm:$0xff]   ;;  %v16977_v13 = vld [vmem:[#allocation5 + $0x244] sm:$0xff]   ;;  %v16978_v18 = vld [vmem:[#allocation5 + $0x1cc] sm:$0xff]  }
 0xa07   :  { %v21354_v47 = vsel %vm14581_vm0, %v15237_v10, %v14554_v9  ;;  %15177 = vmatpush1.bf16.msra.mxu1 %v16949_v27  ;;  %v14595_v26 = vpack.c.bf16 %v14587_v6, %v14587_v6  ;;  %v14571_v61 = vrot.slane %v14554_v9, 7  ;;  %v14594_v5 = vpack.c.bf16 %v21357_v37, %v21357_v37  ;;  %v16979_v45 = vld [vmem:[#allocation5 + $0x28c] sm:$0xff]   ;;  %v16982_v34 = vld [vmem:[#allocation5 + $0x1d4] sm:$0xff]   ;;  %v16986_v32 = vld [vmem:[#allocation5 + $0x1dc] sm:$0xff]  }
 0xa08   :  { %v14572_v41 = vrot.slane %v14555_v12, 7  ;;  %v21360_v28 = vsel %vm14581_vm0, %v15238_v3, %v14555_v12  ;;  %15178 = vmatprep.subr.bf16.mxu1 %v21635_v11  ;;  %v15258_v27 = vpack.c.bf16 %v21338_v50, %v21338_v50  ;;  %v16983_v54 = vld [vmem:[#allocation5 + $0x294] sm:$0xff]   ;;  %v16988_v16 = vld [vmem:[#allocation5 + $0x224] sm:$0xff]   ;;  %v16989_v50 = vld [vmem:[#allocation5 + $0x25c] sm:$0xff]  }
 0xa09   :  { %16514 = vmatpush3.bf16.msra.mxu0 %v16953_v60  ;;  %15168 = vmatprep.mubr.bf16.mxu0 %v14595_v26  ;;  %v14588_v15 = vsel %vm14581_vm0, %v12726_v56, %v14571_v61  ;;  %v16981_v56 = vld [vmem:[#allocation5 + $0x24c] sm:$0xff]   ;;  %v16985_v22 = vld [vmem:[#allocation5 + $0x254] sm:$0xff]   ;;  %v16990_v10 = vld [vmem:[#allocation5 + $0x1e4] sm:$0xff]  }
 0xa0a   :  { %v14589_v35 = vsel %vm14581_vm0, %v12727_v0, %v14572_v41  ;;  %16515 = vmatprep.subr.bf16.mxu0 %v16954_v24  ;;  %v16961_v0 = vld [vmem:[#allocation5 + $0x1a0] sm:$0xff]   ;;  %v14596_v33 = vpack.c.bf16 %v14588_v15, %v14588_v15  ;;  %v16992_v8 = vld [vmem:[#allocation5 + $0x22c] sm:$0xff]   ;;  %v16996_v37 = vld [vmem:[#allocation5 + $0x234] sm:$0xff]  }
 0xa0b   :  { %15179 = vmatpush1.bf16.msra.mxu1 %v16952_v57  ;;  %v14597_v62 = vpack.c.bf16 %v14589_v35, %v14589_v35  ;;  %v16991_v9 = vld [vmem:[#allocation5 + $0x2a4] sm:$0xff]   ;;  %v16994_v12 = vld [vmem:[#allocation5 + $0x1ec] sm:$0xff]   ;;  %v16998_v60 = vld [vmem:[#allocation5 + $0x1f4] sm:$0xff]  }
 0xa0c   :  { %15180 = vmatprep.subr.bf16.mxu1 %v21635_v11  ;;  %v16993_v3 = vld [vmem:[#allocation5 + $0x264] sm:$0xff]   ;;  %v16995_v7 = vld [vmem:[#allocation5 + $0x2ac] sm:$0xff]   ;;  %v16999_v41 = vld [vmem:[#allocation5 + $0x2b4] sm:$0xff]  }
 0xa0d   :  { %16407 = vmatprep.mubr.msk.bf16.mxu1 %vm1518_vm11, %v14597_v62  ;;  %16516 = vmatpush3.bf16.msra.mxu0 %v16956_v20  ;;  %v16997_v57 = vld [vmem:[#allocation5 + $0x26c] sm:$0xff]   ;;  %v17000_v24 = vld [vmem:[#allocation5 + $0x23c] sm:$0xff]   ;;  %v17001_v6 = vld [vmem:[#allocation5 + $0x274] sm:$0xff]  }
 0xa0e   :  { %16517 = vmatprep.subr.bf16.mxu0 %v16957_v59  ;;  %v17002_v35 = vld [vmem:[#allocation5 + $0x1fc] sm:$0xff]   ;;  %v17005_v62 = vld [vmem:[#allocation5 + $0x304] sm:$0xff]   ;;  %v15255_v59 = vpack.c.bf16 %v21313_v46, %v21313_v46  ;;  %v15262_v46 = vpack.c.bf16 %v21360_v28, %v21360_v28  ;;  %v17022_v4 = vld [vmem:[#allocation5 + $0x334] sm:$0xff]  }
 0xa0f   :  { %15181 = vmatpush1.bf16.msra.mxu1 %v16955_v49  ;;  %v17003_v26 = vld [vmem:[#allocation5 + $0x2bc] sm:$0xff]   ;;  %v17006_v20 = vld [vmem:[#allocation5 + $0x2c4] sm:$0xff]   ;;  %v17024_v61 = vld [vmem:[#allocation5 + $0x2f4] sm:$0xff]  }
 0xa10   :  { %15182 = vmatprep.subr.bf16.mxu1 %v21635_v11  ;;  %v17004_v49 = vld [vmem:[#allocation5 + $0x27c] sm:$0xff]   ;;  %v17016_v28 = vld [vmem:[#allocation5 + $0x324] sm:$0xff]  }
 0xa11   :  { %16518 = vmatpush3.bf16.msra.mxu0 %v16959_v43  ;;  %v15260_v43 = vpack.c.bf16 %v21349_v38, %v21349_v38  ;;  %v17011_v38 = vld [vmem:[#allocation5 + $0x34c] sm:$0xff]   ;;  %v17029_v15 = vld [vmem:[#allocation5 + $0x384] ss:$0 sps:$4 sm:$0x33]  }
 0xa12   :  { %16519 = vmatprep.subr.bf16.mxu0 %v16960_v1  ;;  %v17008_v1 = vld [vmem:[#allocation5 + $0x344] sm:$0xff]  }
 0xa13   :  { %15183 = vmatpush1.bf16.msra.mxu1 %v16958_v42  ;;  %v17007_v42 = vld [vmem:[#allocation5 + $0x30c] sm:$0xff]  }
 0xa14   :  { %15184 = vmatprep.subr.bf16.mxu1 %v21635_v11 }
 0xa15   :  { %16520 = vmatpush3.bf16.msra.mxu0 %v16962_v63  ;;  %v17009_v63 = vld [vmem:[#allocation5 + $0x2cc] sm:$0xff]  }
 0xa16   :  { %16521 = vmatprep.subr.bf16.mxu0 %v16963_v2  ;;  %v17010_v2 = vld [vmem:[#allocation5 + $0x314] sm:$0xff]  }
 0xa17   :  { %15185 = vmatpush1.bf16.msra.mxu1 %v16961_v0  ;;  %v15257_v0 = vpack.c.bf16 %v21320_v52, %v21320_v52  ;;  %v17013_v52 = vld [vmem:[#allocation5 + $0x31c] sm:$0xff]  }
 0xa18   :  { %15186 = vmatprep.subr.bf16.mxu1 %v21635_v11 }
 0xa19   :  { %16522 = vmatpush3.bf16.msra.mxu0 %v16965_v51  ;;  %v17014_v51 = vld [vmem:[#allocation5 + $0x354] sm:$0xff]  }
 0xa1a   :  { %16523 = vmatprep.subr.bf16.mxu0 %v16966_v30  ;;  %v17015_v30 = vld [vmem:[#allocation5 + $0x2dc] sm:$0xff]  }
 0xa1b   :  { %15187 = vmatpush1.bf16.msra.mxu1 %v16964_v39  ;;  %v17012_v39 = vld [vmem:[#allocation5 + $0x2d4] sm:$0xff]  }
 0xa1c   :  { %15188 = vmatprep.subr.bf16.mxu1 %v21635_v11 }
 0xa1d   :  { %16524 = vmatpush3.bf16.msra.mxu0 %v16968_v48  ;;  %v17018_v48 = vld [vmem:[#allocation5 + $0x2e4] sm:$0xff]  }
 0xa1e   :  { %16525 = vmatprep.subr.bf16.mxu0 %v16969_v40  ;;  %v17019_v40 = vld [vmem:[#allocation5 + $0x32c] sm:$0xff]  }
 0xa1f   :  { %15189 = vmatpush1.bf16.msra.mxu1 %v16967_v19  ;;  %v17017_v19 = vld [vmem:[#allocation5 + $0x35c] sm:$0xff]  }
 0xa20   :  { %15190 = vmatprep.subr.bf16.mxu1 %v21635_v11 }
 0xa21   :  { %16526 = vmatpush3.bf16.msra.mxu0 %v16971_v44  ;;  %v17021_v44 = vld [vmem:[#allocation5 + $0x2ec] sm:$0xff]  }
 0xa22   :  { %16533 = vmatprep.subr.bf16.mxu0 %v16973_v55  ;;  %v17023_v55 = vld [vmem:[#allocation5 + $0x36c] sm:$0xff]  }
 0xa23   :  { %15191 = vmatpush1.bf16.msra.mxu1 %v16970_v23  ;;  %v17020_v23 = vld [vmem:[#allocation5 + $0x364] sm:$0xff]  }
 0xa24   :  { %15192 = vmatprep.subr.bf16.mxu1 %v21635_v11  ;;  %15169 = vmatmul.mubr.bf16.vlgmr.msra.gmra.mrb[52].mxu0 %v14594_v5  ;;  %v17026_v5 = vld [vmem:[#allocation5 + $0x374] sm:$0xff]  }
 0xa25   :  { %16534 = vmatpush3.bf16.msra.mxu0 %v16974_v29  ;;  %15754 = vmatprep.mubr.bf16.mxu0 %v15256_v14  ;;  %v17025_v29 = vld [vmem:[#allocation5 + $0x33c] sm:$0xff]   ;;  %v15720_v14 = vsel %vm1522_vm10, %v17029_v15, 0 }
 0xa26   :  { %16535 = vmatprep.subr.bf16.mxu0 %v16976_v17  ;;  %v15259_v17 = vpack.c.bf16 %v21344_v36, %v21344_v36 }
 0xa27   :  { %15193 = vmatpush1.bf16.msra.mxu1 %v15054_v53  ;;  %v17027_v53 = vld [vmem:[#allocation5 + $0x2fc] sm:$0xff]  }
 0xa28   :  { %16555 = vmatprep.subr.bf16.mxu1 %v16975_v31  ;;  %v17028_v31 = vld [vmem:[#allocation5 + $0x37c] sm:$0xff]  }
 0xa29   :  { %16536 = vmatpush3.bf16.msra.mxu0 %v16978_v18 }
 0xa2a   :  { %15209 = vmatmul.mubr.bf16.vlgmr.msra.gmra.mrb[52].mxu1 %v14596_v33  ;;  %16537 = vmatprep.subr.bf16.mxu0 %v16980_v25 }
 0xa2b   :  { %16556 = vmatpush3.bf16.msra.mxu1 %v16977_v13  ;;  %15794 = vmatprep.mubr.bf16.mxu1 %v15258_v27  ;;  %v15261_v13 = vpack.c.bf16 %v21354_v47, %v21354_v47 }
 0xa2c   :  { %16557 = vmatprep.subr.bf16.mxu1 %v16979_v45 }
 0xa2d   :  { %16538 = vmatpush3.bf16.msra.mxu0 %v16982_v34 }
 0xa2e   :  { %16539 = vmatprep.subr.bf16.mxu0 %v16984_v21 }
 0xa2f   :  { %16558 = vmatpush3.bf16.msra.mxu1 %v16981_v56 }
 0xa30   :  { %16559 = vmatprep.subr.bf16.mxu1 %v16983_v54 }
 0xa31   :  { %16540 = vmatpush3.bf16.msra.mxu0 %v16986_v32 }
 0xa32   :  { %16541 = vmatprep.subr.bf16.mxu0 %v16988_v16 }
 0xa33   :  { %16560 = vmatpush3.bf16.msra.mxu1 %v16985_v22 }
 0xa34   :  { %16561 = vmatprep.subr.bf16.mxu1 %v16987_v58 }
 0xa35   :  { %16542 = vmatpush3.bf16.msra.mxu0 %v16990_v10 }
 0xa36   :  { %16543 = vmatprep.subr.bf16.mxu0 %v16992_v8 }
 0xa37   :  { %16562 = vmatpush3.bf16.msra.mxu1 %v16989_v50 }
 0xa38   :  { %16563 = vmatprep.subr.bf16.mxu1 %v16991_v9 }
 0xa39   :  { %16544 = vmatpush3.bf16.msra.mxu0 %v16994_v12 }
 0xa3a   :  { %16545 = vmatprep.subr.bf16.mxu0 %v16996_v37 }
 0xa3b   :  { %16564 = vmatpush3.bf16.msra.mxu1 %v16993_v3 }
 0xa3c   :  { %16565 = vmatprep.subr.bf16.mxu1 %v16995_v7 }
 0xa3d   :  { %16546 = vmatpush3.bf16.msra.mxu0 %v16998_v60 }
 0xa3e   :  { %16547 = vmatprep.subr.bf16.mxu0 %v17000_v24 }
 0xa3f   :  { %16566 = vmatpush3.bf16.msra.mxu1 %v16997_v57 }
 0xa40   :  { %16567 = vmatprep.subr.bf16.mxu1 %v16999_v41 }
 0xa41   :  { %16548 = vmatpush3.bf16.msra.mxu0 %v17002_v35 }
 0xa42   :  { %16577 = vmatprep.subr.bf16.mxu0 %v17005_v62 }
 0xa43   :  { %16568 = vmatpush3.bf16.msra.mxu1 %v17001_v6 }
 0xa44   :  { %16569 = vmatprep.subr.bf16.mxu1 %v17003_v26  ;;  %15755 = vmatmul.mubr.bf16.vlgmr.msra.gmra.mrb[56].mxu0 %v15255_v59  ;;  %v16408_v26 = vld [vmem:[%s21438_s11] ss:$0 sm:$0xff] }
 0xa45   :  { %16578 = vmatpush3.bf16.msra.mxu0 %v17006_v20  ;;  %15834 = vmatprep.mubr.bf16.mxu0 %v15260_v43 }
 0xa46   :  { %16579 = vmatprep.subr.bf16.mxu0 %v17007_v42 }
 0xa47   :  { %16570 = vmatpush3.bf16.msra.mxu1 %v17004_v49 }
 0xa48   :  { %15842 = vmatprep.subr.bf16.mxu1 %v21635_v11 }
 0xa49   :  { %16580 = vmatpush3.bf16.msra.mxu0 %v17009_v63 }
 0xa4a   :  { %15795 = vmatmul.mubr.bf16.vlgmr.msra.gmra.mrb[56].mxu1 %v15257_v0  ;;  %16581 = vmatprep.subr.bf16.mxu0 %v17010_v2 }
 0xa4b   :  { %15843 = vmatpush1.bf16.msra.mxu1 %v17008_v1  ;;  %16466 = vmatprep.mubr.msk.bf16.mxu1 %vm1518_vm11, %v15262_v46 }
 0xa4c   :  { %15844 = vmatprep.subr.bf16.mxu1 %v21635_v11 }
 0xa4d   :  { %16582 = vmatpush3.bf16.msra.mxu0 %v17012_v39 }
 0xa4e   :  { %16583 = vmatprep.subr.bf16.mxu0 %v17013_v52 }
 0xa4f   :  { %15845 = vmatpush1.bf16.msra.mxu1 %v17011_v38 }
 0xa50   :  { %15846 = vmatprep.subr.bf16.mxu1 %v21635_v11 }
 0xa51   :  { %16584 = vmatpush3.bf16.msra.mxu0 %v17015_v30 }
 0xa52   :  { %16585 = vmatprep.subr.bf16.mxu0 %v17016_v28 }
 0xa53   :  { %15847 = vmatpush1.bf16.msra.mxu1 %v17014_v51 }
 0xa54   :  { %15848 = vmatprep.subr.bf16.mxu1 %v21635_v11 }
 0xa55   :  { %16586 = vmatpush3.bf16.msra.mxu0 %v17018_v48 }
 0xa56   :  { %16587 = vmatprep.subr.bf16.mxu0 %v17019_v40 }
 0xa57   :  { %15849 = vmatpush1.bf16.msra.mxu1 %v17017_v19 }
 0xa58   :  { %15850 = vmatprep.subr.bf16.mxu1 %v21635_v11 }
 0xa59   :  { %16588 = vmatpush3.bf16.msra.mxu0 %v17021_v44 }
 0xa5a   :  { %16589 = vmatprep.subr.bf16.mxu0 %v17022_v4 }
 0xa5b   :  { %15851 = vmatpush1.bf16.msra.mxu1 %v17020_v23 }
 0xa5c   :  { %15852 = vmatprep.subr.bf16.mxu1 %v21635_v11 }
 0xa5d   :  { %16590 = vmatpush3.bf16.msra.mxu0 %v17024_v61 }
 0xa5e   :  { %16591 = vmatprep.subr.bf16.mxu0 %v17025_v29 }
 0xa5f   :  { %15853 = vmatpush1.bf16.msra.mxu1 %v17023_v55 }
 0xa60   :  { %15854 = vmatprep.subr.bf16.mxu1 %v21635_v11 }
 0xa61   :  { %16592 = vmatpush3.bf16.msra.mxu0 %v17027_v53 }
 0xa63   :  { %15855 = vmatpush1.bf16.msra.mxu1 %v17026_v5 }
 0xa64   :  { %15856 = vmatprep.subr.bf16.mxu1 %v21635_v11  ;;  %15835 = vmatmul.mubr.bf16.vlgmr.msra.gmra.mrb[60].mxu0 %v15259_v17 }
 0xa67   :  { %15857 = vmatpush1.bf16.msra.mxu1 %v17028_v31 }
 0xa68   :  { %15858 = vmatprep.subr.bf16.mxu1 %v21635_v11 }
 0xa6b   :  { %15859 = vmatpush1.bf16.msra.mxu1 %v15720_v14 }
 0xa6e   :  { %15875 = vmatmul.mubr.bf16.vlgmr.msra.gmra.mrb[52].mxu1 %v15261_v13 }
 0xad7   :  { %v16483_v18 = vpop.f32.mrb[48].mxu0 }
 0xad8   :  { %v16484_v27 = vpop.f32.mrb[49].mxu0 }
 0xad9   :  { %v16505_v33 = vpop.f32.mrb[48].mxu1  ;;  %v16485_v56 = vadd.f32 %v16484_v27, %v16483_v18  ;;  %v16486_v54 = vpop.f32.mrb[50].mxu0 }
 0xada   :  { %v16506_v45 = vpop.f32.mrb[49].mxu1  ;;  %v16487_v21 = vpop.f32.mrb[51].mxu0 }
 0xadb   :  { %v16507_v25 = vadd.f32 %v16506_v45, %v16505_v33  ;;  %v16508_v34 = vpop.f32.mrb[50].mxu1 }
 0xadc   :  { %v16509_v36 = vpop.f32.mrb[51].mxu1 }
 0xadd   :  { %v15131_v22 = vadd.f32 %v16507_v25, %v16485_v56 }
 0xaf7   :  { %v16527_v32 = vpop.f32.mrb[52].mxu0 }
 0xaf8   :  { %v16528_v11 = vpop.f32.mrb[53].mxu0 }
 0xaf9   :  { %v16529_v58 = vadd.f32 %v16528_v11, %v16527_v32  ;;  %v16530_v16 = vpop.f32.mrb[54].mxu0 }
 0xafa   :  { %v16531_v50 = vpop.f32.mrb[55].mxu0 }
 0xafb   :  { %v15171_v10 = vadd.f32 %v16529_v58, %v15131_v22 }
 0xafd   :  { %v16599_v42 = vadd.f32 %v16408_v26, %v15171_v10 }
 0xb17   :  { %v16549_v9 = vpop.f32.mrb[56].mxu0 }
 0xb18   :  { %v16550_v47 = vpop.f32.mrb[57].mxu0 }
 0xb19   :  { %v16551_v8 = vadd.f32 %v16550_v47, %v16549_v9  ;;  %v16552_v3 = vpop.f32.mrb[58].mxu0 }
 0xb1a   :  { %v16553_v12 = vpop.f32.mrb[59].mxu0 }
 0xb1d   :  { %v16571_v7 = vpop.f32.mrb[56].mxu1 }
 0xb1e   :  { %v16572_v37 = vpop.f32.mrb[57].mxu1 }
 0xb1f   :  { %v16573_v57 = vadd.f32 %v16572_v37, %v16571_v7  ;;  %v16574_v60 = vpop.f32.mrb[58].mxu1 }
 0xb20   :  { %v16575_v41 = vpop.f32.mrb[59].mxu1 }
 0xb21   :  { %v15797_v24 = vadd.f32 %v16573_v57, %v16551_v8 }
 0xb37   :  { %v16593_v6 = vpop.f32.mrb[60].mxu0 }
 0xb38   :  { %v16594_v35 = vpop.f32.mrb[61].mxu0 }
 0xb39   :  { %v16595_v62 = vadd.f32 %v16594_v35, %v16593_v6  ;;  %v16596_v49 = vpop.f32.mrb[62].mxu0 }
 0xb3a   :  { %v16597_v20 = vpop.f32.mrb[63].mxu0 }
 0xb3b   :  { %v15837_v59 = vadd.f32 %v16595_v62, %v15797_v24 }
 0xb3d   :  { %v16600_v43 = vadd.f32 %v16599_v42, %v15837_v59 }
 0xb41   :  { %v15876_v1 = vpop.f32.mrb[52].mxu1 }
 0xb42   :  { %v16601_v0 = vadd.f32 %v16600_v43, %v15876_v1  ;;  %v15878_v63 = vpop.f32.mrb[53].mxu1 }
 0xb43   :  { %v15879_v46 = vpop.f32.mrb[54].mxu1 }
 0xb44   :  { %15883 = vst [vmem:[#allocation8] sm:$0x3] %v16601_v0  ;;  %v15880_v2 = vpop.f32.mrb[55].mxu1 }
 0xb45   :  { %17063 = shalt.err (!%p17060_p12)
}
 0xb46   :  { %s17064_s13 = scalar_lea.hbm %s21439_s12, 32 }
 0xb47   :  { %p17065_p13 = scmp.ne.s32.totalorder %s21439_s12, %s17064_s13  ;;  %p17068_p0 = scmp.lt.u32.totalorder %s17064_s13, %s21439_s12 }
 0xb49   :  { %p17070_p1 = pnand %p17068_p0, %p17065_p13 }
 0xb4b   :  { %17073 = shalt.err (!%p17070_p1)
}
 0xb4c   :  { %15893 = dma.vmem_to_hbm [thread:$0]  %s15891_s22, 32, %s21439_s12, [#allocation7]  }
 0xb4d   :  { %17076 = dma.done.wait [#allocation7], 32  }
 0xb4e   :  { %17077 = vsyncadd [#allocation7], 4294967264 }
 0xb4f   :  { %15897 = vsyncpa [#allocation6], 1 }
 0xb50   :  { %15898 = vsyncpa [#allocation7], 1 }

</bundles_post_ra>
